<compile_context>
chip_gen: v5e
topology: v5e:2x2
jax: 0.10.0
libtpu: 0.0.40
codegen_flags: <defaults>
</compile_context>

<pallas_src>
import numpy as np

import jax
import jax.numpy as jnp
from jax.experimental import pallas as pl
from jax.experimental.pallas import tpu as pltpu


# ----------------------------------------------------------------------------
# Init-time weight re-layouts (run once, outside the forward pass).
# ----------------------------------------------------------------------------
def make_banded_conv_weight(w, Wp):
    """w: (Co, Cin, K, K) torch OIHW conv weight.

    Returns (K, Wp*Cin, Wo*Co) float32, where Wo = Wp - K + 1 and the output
    columns are ordered (wo_parity, wo//2, co): even-wo columns first, odd-wo
    columns second, so a 2x2 max-pool along W is a max of the two lane halves.
    Row m = w_in*Cin + ci matches the (Hp, Wp*Cin) NHWC-row input layout.
    """
    w = np.asarray(w, np.float32)
    Co, Cin, K, K2 = w.shape
    assert K == K2
    Wo = Wp - K + 1
    assert Wo % 2 == 0
    Wo2 = Wo // 2
    wt = np.zeros((K, Wp, Cin, 2, Wo2, Co), np.float32)
    for kh in range(K):
        for kw in range(K):
            blk = w[:, :, kh, kw].T                       # (Cin, Co)
            for wo in range(Wo):
                p, j = wo % 2, wo // 2
                wt[kh, wo + kw, :, p, j, :] = blk
    return wt.reshape(K, Wp * Cin, Wo * Co)


def make_pooled_bias(b, Wo2):
    """Bias tiled over pooled output columns, order (wo//2, co)."""
    return np.tile(np.asarray(b, np.float32), Wo2)[None, :]   # (1, Wo2*Co)


def init_torch_like_params(key):
    """Synthetic parameters in the PyTorch layouts of CNNFeatureExtractor."""
    ks = jax.random.split(key, 6)
    return {
        "conv1_w": 0.10 * jax.random.normal(ks[0], (6, 3, 5, 5), jnp.float32),
        "conv1_b": 0.10 * jax.random.normal(ks[1], (6,), jnp.float32),
        "conv2_w": 0.10 * jax.random.normal(ks[2], (16, 6, 5, 5), jnp.float32),
        "conv2_b": 0.10 * jax.random.normal(ks[3], (16,), jnp.float32),
        "fc1_w": 0.02 * jax.random.normal(ks[4], (512, 16 * 14 * 14), jnp.float32),
        "fc1_b": 0.02 * jax.random.normal(ks[5], (512,), jnp.float32),
    }


def prepare_kernel_params(tp):
    """One-time transform of torch-layout params into kernel-friendly layouts."""
    # conv1: input padded to 68x68, conv2: input is the 32x32 pooled map.
    conv1_wt = make_banded_conv_weight(tp["conv1_w"], Wp=68)   # (5, 204, 384)
    conv2_wt = make_banded_conv_weight(tp["conv2_w"], Wp=32)   # (5, 192, 448)
    # fc1 weight: torch column order is (c, h, w); our flattened features are
    # (h, w, c).  Permute once and store as (3136, 512).
    fc1_w = np.asarray(tp["fc1_w"], np.float32)                # (512, 3136)
    fc1_w_hwc = (fc1_w.reshape(512, 16, 14, 14)
                 .transpose(0, 2, 3, 1)
                 .reshape(512, 16 * 14 * 14).T)                # (3136, 512)
    return {
        "conv1_wt": jnp.asarray(conv1_wt),
        "conv1_bt": jnp.asarray(make_pooled_bias(tp["conv1_b"], 32)),   # (1, 192)
        "conv2_wt": jnp.asarray(conv2_wt),
        "conv2_bt": jnp.asarray(make_pooled_bias(tp["conv2_b"], 14)),   # (1, 224)
        "fc1_w_hwc": jnp.asarray(np.ascontiguousarray(fc1_w_hwc)),
        "fc1_b2": jnp.asarray(np.asarray(tp["fc1_b"], np.float32)[None, :]),
    }


# ----------------------------------------------------------------------------
# Pallas kernel 1: fused conv (banded matmul) + bias + ReLU + 2x2 max-pool.
#   x_ref : (Hp, Wp*Cin)       padded NHWC rows for one image
#   wt_ref: (K, Wp*Cin, Wo*Co) banded weights (cols: even-wo half | odd-wo half)
#   b_ref : (1, Wo2*Co)        bias tiled over pooled columns
#   o_ref : (Ho2, Wo2*Co)      pooled, ReLU'd NHWC rows (lane-dense)
# ----------------------------------------------------------------------------
def _conv_relu_pool_kernel(x_ref, wt_ref, b_ref, o_ref):
    K, _, WoCo = wt_ref.shape
    Ho2, Wo2Co = o_ref.shape
    Ho = 2 * Ho2

    acc = jnp.zeros((Ho, WoCo), jnp.float32)
    for kh in range(K):                       # static unroll: 5 small matmuls
        acc = acc + jnp.dot(x_ref[kh:kh + Ho, :], wt_ref[kh],
                            preferred_element_type=jnp.float32)

    # 2x2 max-pool.  Rows: extract even/odd conv rows with exact 0/1 selection
    # matmuls and take the max.  Columns: the banded weight already groups
    # even-wo / odd-wo outputs into the two lane halves.
    col = jax.lax.broadcasted_iota(jnp.int32, (Ho2, Ho), 1)
    row2 = 2 * jax.lax.broadcasted_iota(jnp.int32, (Ho2, Ho), 0)
    sel_e = jnp.where(col == row2, 1.0, 0.0)
    sel_o = jnp.where(col == row2 + 1, 1.0, 0.0)
    even_rows = jnp.dot(sel_e, acc, preferred_element_type=jnp.float32)
    odd_rows = jnp.dot(sel_o, acc, preferred_element_type=jnp.float32)
    row_max = jnp.maximum(even_rows, odd_rows)                 # (Ho2, Wo*Co)
    pooled = jnp.maximum(row_max[:, :Wo2Co], row_max[:, Wo2Co:])

    # max(z) + b then ReLU == pool(relu(z + b)) since both are monotonic.
    o_ref[...] = jnp.maximum(pooled + b_ref[...], 0.0)


def conv_relu_pool(x_rows, wt, b_pool):
    """x_rows: (N, Hp, Wp*Cin) -> (N, Ho//2, (Wo//2)*Co), fused conv/ReLU/pool."""
    N, Hp, WpCin = x_rows.shape
    K, WpCin2, WoCo = wt.shape
    assert WpCin == WpCin2
    Wo2Co = WoCo // 2
    Ho = Hp - K + 1
    assert Ho % 2 == 0
    Ho2 = Ho // 2
    return pl.pallas_call(
        _conv_relu_pool_kernel,
        out_shape=jax.ShapeDtypeStruct((N, Ho2, Wo2Co), jnp.float32),
        grid=(N,),
        in_specs=[
            pl.BlockSpec((None, Hp, WpCin), lambda n: (n, 0, 0)),
            pl.BlockSpec((K, WpCin, WoCo), lambda n: (0, 0, 0)),
            pl.BlockSpec((1, Wo2Co), lambda n: (0, 0)),
        ],
        out_specs=pl.BlockSpec((None, Ho2, Wo2Co), lambda n: (n, 0, 0)),
        compiler_params=pltpu.CompilerParams(
            dimension_semantics=("parallel",)),
    )(x_rows, wt, b_pool)


# ----------------------------------------------------------------------------
# Pallas kernel 2: fc1 matmul + bias, tiled over output columns (lane-dense).
# ----------------------------------------------------------------------------
def _fc1_kernel(x_ref, w_ref, b_ref, o_ref):
    o_ref[...] = (jnp.dot(x_ref[...], w_ref[...],
                          preferred_element_type=jnp.float32) + b_ref[...])


def fc1_matmul(x, w, b2d, *, tn=128):
    N, Kd = x.shape
    Kd2, F = w.shape
    assert Kd == Kd2 and F % tn == 0
    return pl.pallas_call(
        _fc1_kernel,
        out_shape=jax.ShapeDtypeStruct((N, F), jnp.float32),
        grid=(F // tn,),
        in_specs=[
            pl.BlockSpec((N, Kd), lambda j: (0, 0)),
            pl.BlockSpec((Kd, tn), lambda j: (0, j)),
            pl.BlockSpec((1, tn), lambda j: (0, j)),
        ],
        out_specs=pl.BlockSpec((N, tn), lambda j: (0, j)),
        compiler_params=pltpu.CompilerParams(
            dimension_semantics=("parallel",)),
    )(x, w, b2d)


# ----------------------------------------------------------------------------
# Forward pass (glue is layout-only and tiny: NCHW->NHWC pad + final reshape).
# ----------------------------------------------------------------------------
def cnn_feature_extractor_forward(kp, x):
    """x: NCHW float32 (N, 3, 64, 64).  Returns (N, 512) fc1 features."""
    N, _, H, W = x.shape
    xr = jnp.transpose(x, (0, 2, 3, 1))                     # NHWC
    xr = jnp.pad(xr, ((0, 0), (2, 2), (2, 2), (0, 0)))      # (N, 68, 68, 3)
    xr = xr.reshape(N, H + 4, (W + 4) * 3)                  # (N, 68, 204)
    y1 = conv_relu_pool(xr, kp["conv1_wt"], kp["conv1_bt"])   # (N, 32, 192)
    y2 = conv_relu_pool(y1, kp["conv2_wt"], kp["conv2_bt"])   # (N, 14, 224)
    feats = y2.reshape(N, 14 * 14 * 16)                       # (N, 3136), (h,w,c)
    return fc1_matmul(feats, kp["fc1_w_hwc"], kp["fc1_b2"])   # (N, 512)


# ----------------------------------------------------------------------------
# Pure-JAX reference (same math, torch layouts) for a correctness check.
# ----------------------------------------------------------------------------
def reference_forward(tp, x):
    dn = ("NCHW", "OIHW", "NCHW")
    hi = jax.lax.Precision.HIGHEST
    y = jax.lax.conv_general_dilated(x, tp["conv1_w"], (1, 1), ((2, 2), (2, 2)),
                                     dimension_numbers=dn, precision=hi)
    y = jax.nn.relu(y + tp["conv1_b"][None, :, None, None])
    y = jax.lax.reduce_window(y, -jnp.inf, jax.lax.max,
                              (1, 1, 2, 2), (1, 1, 2, 2), "VALID")
    y = jax.lax.conv_general_dilated(y, tp["conv2_w"], (1, 1), "VALID",
                                     dimension_numbers=dn, precision=hi)
    y = jax.nn.relu(y + tp["conv2_b"][None, :, None, None])
    y = jax.lax.reduce_window(y, -jnp.inf, jax.lax.max,
                              (1, 1, 2, 2), (1, 1, 2, 2), "VALID")
    y = y.reshape(y.shape[0], -1)                            # torch (c,h,w) flatten
    return jnp.dot(y, tp["fc1_w"].T, precision=hi) + tp["fc1_b"]


if __name__ == "__main__":
    key = jax.random.PRNGKey(0)
    pkey, xkey = jax.random.split(key)

    torch_params = init_torch_like_params(pkey)
    kernel_params = prepare_kernel_params(torch_params)

    # fc1 requires 16*14*14 inputs -> the module implies 3x64x64 images.
    x = jax.random.normal(xkey, (2, 3, 64, 64), jnp.float32)

    fwd = jax.jit(cnn_feature_extractor_forward)
    out = fwd(kernel_params, x)
    jax.block_until_ready(out)
    assert out.shape == (2, 512) and out.dtype == jnp.float32

    ref = jax.jit(reference_forward)(torch_params, x)
    jax.block_until_ready(ref)
    out_np, ref_np = np.asarray(out), np.asarray(ref)
    if not np.allclose(out_np, ref_np, rtol=3e-2, atol=3e-2):
        raise AssertionError(
            "Pallas forward mismatch vs reference, max abs err = %g"
            % float(np.max(np.abs(out_np - ref_np))))

    print("KERNEL_OK")
</pallas_src>

<mosaic_0001>
module attributes {stable_mosaic.version = 11 : i64} {
  func.func @_conv_relu_pool_kernel(%arg0: i32, %arg1: memref<1x68x204xf32, #tpu.memory_space<vmem>>, %arg2: memref<5x204x384xf32, #tpu.memory_space<vmem>>, %arg3: memref<1x192xf32, #tpu.memory_space<vmem>>, %arg4: memref<1x32x192xf32, #tpu.memory_space<vmem>>) attributes {dimension_semantics = [#tpu.dimension_semantics<parallel>], iteration_bounds = array<i64: 2>, scalar_prefetch = 0 : i64, scratch_operands = 0 : i64, tpu.core_type = #tpu.core_type<tc>, window_params = [{transform_indices = @transform_0, window_bounds = array<i64: 1, 68, 204>}, {pipeline_mode = #tpu.pipeline_mode<synchronous>, transform_indices = @transform_1, window_bounds = array<i64: 5, 204, 384>}, {pipeline_mode = #tpu.pipeline_mode<synchronous>, transform_indices = @transform_2, window_bounds = array<i64: 1, 192>}, {transform_indices = @transform_3, window_bounds = array<i64: 1, 32, 192>}]} {
    %cst = arith.constant 0.000000e+00 : f32
    %0 = vector.broadcast %cst : f32 to vector<64x384xf32>
    %c0 = arith.constant 0 : index
    %c0_0 = arith.constant 0 : index
    %c0_1 = arith.constant 0 : index
    %1 = vector.load %arg1[%c0, %c0_0, %c0_1] : memref<1x68x204xf32, #tpu.memory_space<vmem>>, vector<1x64x204xf32>
    %2 = vector.shape_cast %1 : vector<1x64x204xf32> to vector<64x204xf32>
    %c0_2 = arith.constant 0 : index
    %c0_3 = arith.constant 0 : index
    %c0_4 = arith.constant 0 : index
    %3 = vector.load %arg2[%c0_2, %c0_3, %c0_4] : memref<5x204x384xf32, #tpu.memory_space<vmem>>, vector<1x204x384xf32>
    %4 = vector.shape_cast %3 : vector<1x204x384xf32> to vector<204x384xf32>
    %cst_5 = arith.constant dense<0.000000e+00> : vector<64x384xf32>
    %5 = tpu.matmul %2, %4, %cst_5 {dimension_numbers = #tpu.dot_dimension_numbers<[1], [0], [0], [1], [0, 0, 1, 1], [], []>} : vector<64x204xf32>, vector<204x384xf32>, vector<64x384xf32> -> vector<64x384xf32>
    %6 = arith.addf %0, %5 : vector<64x384xf32>
    %c0_6 = arith.constant 0 : index
    %c1 = arith.constant 1 : index
    %c0_7 = arith.constant 0 : index
    %7 = vector.load %arg1[%c0_6, %c1, %c0_7] : memref<1x68x204xf32, #tpu.memory_space<vmem>>, vector<1x64x204xf32>
    %8 = vector.shape_cast %7 : vector<1x64x204xf32> to vector<64x204xf32>
    %c1_8 = arith.constant 1 : index
    %c0_9 = arith.constant 0 : index
    %c0_10 = arith.constant 0 : index
    %9 = vector.load %arg2[%c1_8, %c0_9, %c0_10] : memref<5x204x384xf32, #tpu.memory_space<vmem>>, vector<1x204x384xf32>
    %10 = vector.shape_cast %9 : vector<1x204x384xf32> to vector<204x384xf32>
    %cst_11 = arith.constant dense<0.000000e+00> : vector<64x384xf32>
    %11 = tpu.matmul %8, %10, %cst_11 {dimension_numbers = #tpu.dot_dimension_numbers<[1], [0], [0], [1], [0, 0, 1, 1], [], []>} : vector<64x204xf32>, vector<204x384xf32>, vector<64x384xf32> -> vector<64x384xf32>
    %12 = arith.addf %6, %11 : vector<64x384xf32>
    %c0_12 = arith.constant 0 : index
    %c2 = arith.constant 2 : index
    %c0_13 = arith.constant 0 : index
    %13 = vector.load %arg1[%c0_12, %c2, %c0_13] : memref<1x68x204xf32, #tpu.memory_space<vmem>>, vector<1x64x204xf32>
    %14 = vector.shape_cast %13 : vector<1x64x204xf32> to vector<64x204xf32>
    %c2_14 = arith.constant 2 : index
    %c0_15 = arith.constant 0 : index
    %c0_16 = arith.constant 0 : index
    %15 = vector.load %arg2[%c2_14, %c0_15, %c0_16] : memref<5x204x384xf32, #tpu.memory_space<vmem>>, vector<1x204x384xf32>
    %16 = vector.shape_cast %15 : vector<1x204x384xf32> to vector<204x384xf32>
    %cst_17 = arith.constant dense<0.000000e+00> : vector<64x384xf32>
    %17 = tpu.matmul %14, %16, %cst_17 {dimension_numbers = #tpu.dot_dimension_numbers<[1], [0], [0], [1], [0, 0, 1, 1], [], []>} : vector<64x204xf32>, vector<204x384xf32>, vector<64x384xf32> -> vector<64x384xf32>
    %18 = arith.addf %12, %17 : vector<64x384xf32>
    %c0_18 = arith.constant 0 : index
    %c3 = arith.constant 3 : index
    %c0_19 = arith.constant 0 : index
    %19 = vector.load %arg1[%c0_18, %c3, %c0_19] : memref<1x68x204xf32, #tpu.memory_space<vmem>>, vector<1x64x204xf32>
    %20 = vector.shape_cast %19 : vector<1x64x204xf32> to vector<64x204xf32>
    %c3_20 = arith.constant 3 : index
    %c0_21 = arith.constant 0 : index
    %c0_22 = arith.constant 0 : index
    %21 = vector.load %arg2[%c3_20, %c0_21, %c0_22] : memref<5x204x384xf32, #tpu.memory_space<vmem>>, vector<1x204x384xf32>
    %22 = vector.shape_cast %21 : vector<1x204x384xf32> to vector<204x384xf32>
    %cst_23 = arith.constant dense<0.000000e+00> : vector<64x384xf32>
    %23 = tpu.matmul %20, %22, %cst_23 {dimension_numbers = #tpu.dot_dimension_numbers<[1], [0], [0], [1], [0, 0, 1, 1], [], []>} : vector<64x204xf32>, vector<204x384xf32>, vector<64x384xf32> -> vector<64x384xf32>
    %24 = arith.addf %18, %23 : vector<64x384xf32>
    %c0_24 = arith.constant 0 : index
    %c4 = arith.constant 4 : index
    %c0_25 = arith.constant 0 : index
    %25 = vector.load %arg1[%c0_24, %c4, %c0_25] : memref<1x68x204xf32, #tpu.memory_space<vmem>>, vector<1x64x204xf32>
    %26 = vector.shape_cast %25 : vector<1x64x204xf32> to vector<64x204xf32>
    %c4_26 = arith.constant 4 : index
    %c0_27 = arith.constant 0 : index
    %c0_28 = arith.constant 0 : index
    %27 = vector.load %arg2[%c4_26, %c0_27, %c0_28] : memref<5x204x384xf32, #tpu.memory_space<vmem>>, vector<1x204x384xf32>
    %28 = vector.shape_cast %27 : vector<1x204x384xf32> to vector<204x384xf32>
    %cst_29 = arith.constant dense<0.000000e+00> : vector<64x384xf32>
    %29 = tpu.matmul %26, %28, %cst_29 {dimension_numbers = #tpu.dot_dimension_numbers<[1], [0], [0], [1], [0, 0, 1, 1], [], []>} : vector<64x204xf32>, vector<204x384xf32>, vector<64x384xf32> -> vector<64x384xf32>
    %30 = arith.addf %24, %29 : vector<64x384xf32>
    %31 = tpu.iota {dimensions = array<i32: 1>} : vector<32x64xi32>
    %32 = tpu.iota {dimensions = array<i32: 0>} : vector<32x64xi32>
    %c2_i32 = arith.constant 2 : i32
    %33 = vector.broadcast %c2_i32 : i32 to vector<32x64xi32>
    %34 = arith.muli %33, %32 : vector<32x64xi32>
    %35 = arith.cmpi eq, %31, %34 : vector<32x64xi32>
    %cst_30 = arith.constant 1.000000e+00 : f32
    %cst_31 = arith.constant 0.000000e+00 : f32
    %36 = vector.broadcast %cst_30 : f32 to vector<32x64xf32>
    %37 = vector.broadcast %cst_31 : f32 to vector<32x64xf32>
    %38 = arith.select %35, %36, %37 : vector<32x64xi1>, vector<32x64xf32>
    %c1_i32 = arith.constant 1 : i32
    %39 = vector.broadcast %c1_i32 : i32 to vector<32x64xi32>
    %40 = arith.addi %34, %39 : vector<32x64xi32>
    %41 = arith.cmpi eq, %31, %40 : vector<32x64xi32>
    %cst_32 = arith.constant 1.000000e+00 : f32
    %cst_33 = arith.constant 0.000000e+00 : f32
    %42 = vector.broadcast %cst_32 : f32 to vector<32x64xf32>
    %43 = vector.broadcast %cst_33 : f32 to vector<32x64xf32>
    %44 = arith.select %41, %42, %43 : vector<32x64xi1>, vector<32x64xf32>
    %cst_34 = arith.constant dense<0.000000e+00> : vector<32x384xf32>
    %45 = tpu.matmul %38, %30, %cst_34 {dimension_numbers = #tpu.dot_dimension_numbers<[1], [0], [0], [1], [0, 0, 1, 1], [], []>} : vector<32x64xf32>, vector<64x384xf32>, vector<32x384xf32> -> vector<32x384xf32>
    %cst_35 = arith.constant dense<0.000000e+00> : vector<32x384xf32>
    %46 = tpu.matmul %44, %30, %cst_35 {dimension_numbers = #tpu.dot_dimension_numbers<[1], [0], [0], [1], [0, 0, 1, 1], [], []>} : vector<32x64xf32>, vector<64x384xf32>, vector<32x384xf32> -> vector<32x384xf32>
    %47 = arith.maximumf %45, %46 : vector<32x384xf32>
    %48 = vector.extract_strided_slice %47 {offsets = [0, 0], sizes = [32, 192], strides = [1, 1]} : vector<32x384xf32> to vector<32x192xf32>
    %49 = vector.extract_strided_slice %47 {offsets = [0, 192], sizes = [32, 192], strides = [1, 1]} : vector<32x384xf32> to vector<32x192xf32>
    %50 = arith.maximumf %48, %49 : vector<32x192xf32>
    %c0_36 = arith.constant 0 : index
    %c0_37 = arith.constant 0 : index
    %51 = vector.load %arg3[%c0_36, %c0_37] : memref<1x192xf32, #tpu.memory_space<vmem>>, vector<1x192xf32>
    %52 = vector.broadcast %51 : vector<1x192xf32> to vector<32x192xf32>
    %53 = arith.addf %50, %52 : vector<32x192xf32>
    %cst_38 = arith.constant 0.000000e+00 : f32
    %54 = vector.broadcast %cst_38 : f32 to vector<32x192xf32>
    %55 = arith.maximumf %53, %54 : vector<32x192xf32>
    %c0_39 = arith.constant 0 : index
    %c0_40 = arith.constant 0 : index
    %c0_41 = arith.constant 0 : index
    %56 = vector.load %arg4[%c0_39, %c0_40, %c0_41] : memref<1x32x192xf32, #tpu.memory_space<vmem>>, vector<1x32x192xf32>
    %57 = vector.shape_cast %56 : vector<1x32x192xf32> to vector<32x192xf32>
    %58 = vector.shape_cast %55 : vector<32x192xf32> to vector<1x32x192xf32>
    tpu.vector_store %arg4[%c0_39, %c0_40, %c0_41], %58 {strides = array<i32>} : memref<1x32x192xf32, #tpu.memory_space<vmem>>, vector<1x32x192xf32>,
    return
  }
  func.func @transform_0(%arg0: i32) -> (i32, i32, i32) {
    %c0_i32 = arith.constant 0 : i32
    %c0_i32_0 = arith.constant 0 : i32
    %c0_i32_1 = arith.constant 0 : i32
    return %arg0, %c0_i32, %c0_i32_0 : i32, i32, i32
  }
  func.func @transform_1(%arg0: i32) -> (i32, i32, i32) {
    %c0_i32 = arith.constant 0 : i32
    %c0_i32_0 = arith.constant 0 : i32
    %c0_i32_1 = arith.constant 0 : i32
    %c0_i32_2 = arith.constant 0 : i32
    return %c0_i32, %c0_i32_0, %c0_i32_1 : i32, i32, i32
  }
  func.func @transform_2(%arg0: i32) -> (i32, i32) {
    %c0_i32 = arith.constant 0 : i32
    %c0_i32_0 = arith.constant 0 : i32
    %c0_i32_1 = arith.constant 0 : i32
    return %c0_i32, %c0_i32_0 : i32, i32
  }
  func.func @transform_3(%arg0: i32) -> (i32, i32, i32) {
    %c0_i32 = arith.constant 0 : i32
    %c0_i32_0 = arith.constant 0 : i32
    %c0_i32_1 = arith.constant 0 : i32
    return %arg0, %c0_i32, %c0_i32_0 : i32, i32, i32
  }
}

module attributes {stable_mosaic.version = 11 : i64} {
  func.func @_conv_relu_pool_kernel(%arg0: i32, %arg1: memref<1x32x192xf32, #tpu.memory_space<vmem>>, %arg2: memref<5x192x448xf32, #tpu.memory_space<vmem>>, %arg3: memref<1x224xf32, #tpu.memory_space<vmem>>, %arg4: memref<1x14x224xf32, #tpu.memory_space<vmem>>) attributes {dimension_semantics = [#tpu.dimension_semantics<parallel>], iteration_bounds = array<i64: 2>, scalar_prefetch = 0 : i64, scratch_operands = 0 : i64, tpu.core_type = #tpu.core_type<tc>, window_params = [{transform_indices = @transform_0, window_bounds = array<i64: 1, 32, 192>}, {pipeline_mode = #tpu.pipeline_mode<synchronous>, transform_indices = @transform_1, window_bounds = array<i64: 5, 192, 448>}, {pipeline_mode = #tpu.pipeline_mode<synchronous>, transform_indices = @transform_2, window_bounds = array<i64: 1, 224>}, {transform_indices = @transform_3, window_bounds = array<i64: 1, 14, 224>}]} {
    %cst = arith.constant 0.000000e+00 : f32
    %0 = vector.broadcast %cst : f32 to vector<28x448xf32>
    %c0 = arith.constant 0 : index
    %c0_0 = arith.constant 0 : index
    %c0_1 = arith.constant 0 : index
    %1 = vector.load %arg1[%c0, %c0_0, %c0_1] : memref<1x32x192xf32, #tpu.memory_space<vmem>>, vector<1x28x192xf32>
    %2 = vector.shape_cast %1 : vector<1x28x192xf32> to vector<28x192xf32>
    %c0_2 = arith.constant 0 : index
    %c0_3 = arith.constant 0 : index
    %c0_4 = arith.constant 0 : index
    %3 = vector.load %arg2[%c0_2, %c0_3, %c0_4] : memref<5x192x448xf32, #tpu.memory_space<vmem>>, vector<1x192x448xf32>
    %4 = vector.shape_cast %3 : vector<1x192x448xf32> to vector<192x448xf32>
    %cst_5 = arith.constant dense<0.000000e+00> : vector<28x448xf32>
    %5 = tpu.matmul %2, %4, %cst_5 {dimension_numbers = #tpu.dot_dimension_numbers<[1], [0], [0], [1], [0, 0, 1, 1], [], []>} : vector<28x192xf32>, vector<192x448xf32>, vector<28x448xf32> -> vector<28x448xf32>
    %6 = arith.addf %0, %5 : vector<28x448xf32>
    %c0_6 = arith.constant 0 : index
    %c1 = arith.constant 1 : index
    %c0_7 = arith.constant 0 : index
    %7 = vector.load %arg1[%c0_6, %c1, %c0_7] : memref<1x32x192xf32, #tpu.memory_space<vmem>>, vector<1x28x192xf32>
    %8 = vector.shape_cast %7 : vector<1x28x192xf32> to vector<28x192xf32>
    %c1_8 = arith.constant 1 : index
    %c0_9 = arith.constant 0 : index
    %c0_10 = arith.constant 0 : index
    %9 = vector.load %arg2[%c1_8, %c0_9, %c0_10] : memref<5x192x448xf32, #tpu.memory_space<vmem>>, vector<1x192x448xf32>
    %10 = vector.shape_cast %9 : vector<1x192x448xf32> to vector<192x448xf32>
    %cst_11 = arith.constant dense<0.000000e+00> : vector<28x448xf32>
    %11 = tpu.matmul %8, %10, %cst_11 {dimension_numbers = #tpu.dot_dimension_numbers<[1], [0], [0], [1], [0, 0, 1, 1], [], []>} : vector<28x192xf32>, vector<192x448xf32>, vector<28x448xf32> -> vector<28x448xf32>
    %12 = arith.addf %6, %11 : vector<28x448xf32>
    %c0_12 = arith.constant 0 : index
    %c2 = arith.constant 2 : index
    %c0_13 = arith.constant 0 : index
    %13 = vector.load %arg1[%c0_12, %c2, %c0_13] : memref<1x32x192xf32, #tpu.memory_space<vmem>>, vector<1x28x192xf32>
    %14 = vector.shape_cast %13 : vector<1x28x192xf32> to vector<28x192xf32>
    %c2_14 = arith.constant 2 : index
    %c0_15 = arith.constant 0 : index
    %c0_16 = arith.constant 0 : index
    %15 = vector.load %arg2[%c2_14, %c0_15, %c0_16] : memref<5x192x448xf32, #tpu.memory_space<vmem>>, vector<1x192x448xf32>
    %16 = vector.shape_cast %15 : vector<1x192x448xf32> to vector<192x448xf32>
    %cst_17 = arith.constant dense<0.000000e+00> : vector<28x448xf32>
    %17 = tpu.matmul %14, %16, %cst_17 {dimension_numbers = #tpu.dot_dimension_numbers<[1], [0], [0], [1], [0, 0, 1, 1], [], []>} : vector<28x192xf32>, vector<192x448xf32>, vector<28x448xf32> -> vector<28x448xf32>
    %18 = arith.addf %12, %17 : vector<28x448xf32>
    %c0_18 = arith.constant 0 : index
    %c3 = arith.constant 3 : index
    %c0_19 = arith.constant 0 : index
    %19 = vector.load %arg1[%c0_18, %c3, %c0_19] : memref<1x32x192xf32, #tpu.memory_space<vmem>>, vector<1x28x192xf32>
    %20 = vector.shape_cast %19 : vector<1x28x192xf32> to vector<28x192xf32>
    %c3_20 = arith.constant 3 : index
    %c0_21 = arith.constant 0 : index
    %c0_22 = arith.constant 0 : index
    %21 = vector.load %arg2[%c3_20, %c0_21, %c0_22] : memref<5x192x448xf32, #tpu.memory_space<vmem>>, vector<1x192x448xf32>
    %22 = vector.shape_cast %21 : vector<1x192x448xf32> to vector<192x448xf32>
    %cst_23 = arith.constant dense<0.000000e+00> : vector<28x448xf32>
    %23 = tpu.matmul %20, %22, %cst_23 {dimension_numbers = #tpu.dot_dimension_numbers<[1], [0], [0], [1], [0, 0, 1, 1], [], []>} : vector<28x192xf32>, vector<192x448xf32>, vector<28x448xf32> -> vector<28x448xf32>
    %24 = arith.addf %18, %23 : vector<28x448xf32>
    %c0_24 = arith.constant 0 : index
    %c4 = arith.constant 4 : index
    %c0_25 = arith.constant 0 : index
    %25 = vector.load %arg1[%c0_24, %c4, %c0_25] : memref<1x32x192xf32, #tpu.memory_space<vmem>>, vector<1x28x192xf32>
    %26 = vector.shape_cast %25 : vector<1x28x192xf32> to vector<28x192xf32>
    %c4_26 = arith.constant 4 : index
    %c0_27 = arith.constant 0 : index
    %c0_28 = arith.constant 0 : index
    %27 = vector.load %arg2[%c4_26, %c0_27, %c0_28] : memref<5x192x448xf32, #tpu.memory_space<vmem>>, vector<1x192x448xf32>
    %28 = vector.shape_cast %27 : vector<1x192x448xf32> to vector<192x448xf32>
    %cst_29 = arith.constant dense<0.000000e+00> : vector<28x448xf32>
    %29 = tpu.matmul %26, %28, %cst_29 {dimension_numbers = #tpu.dot_dimension_numbers<[1], [0], [0], [1], [0, 0, 1, 1], [], []>} : vector<28x192xf32>, vector<192x448xf32>, vector<28x448xf32> -> vector<28x448xf32>
    %30 = arith.addf %24, %29 : vector<28x448xf32>
    %31 = tpu.iota {dimensions = array<i32: 1>} : vector<14x28xi32>
    %32 = tpu.iota {dimensions = array<i32: 0>} : vector<14x28xi32>
    %c2_i32 = arith.constant 2 : i32
    %33 = vector.broadcast %c2_i32 : i32 to vector<14x28xi32>
    %34 = arith.muli %33, %32 : vector<14x28xi32>
    %35 = arith.cmpi eq, %31, %34 : vector<14x28xi32>
    %cst_30 = arith.constant 1.000000e+00 : f32
    %cst_31 = arith.constant 0.000000e+00 : f32
    %36 = vector.broadcast %cst_30 : f32 to vector<14x28xf32>
    %37 = vector.broadcast %cst_31 : f32 to vector<14x28xf32>
    %38 = arith.select %35, %36, %37 : vector<14x28xi1>, vector<14x28xf32>
    %c1_i32 = arith.constant 1 : i32
    %39 = vector.broadcast %c1_i32 : i32 to vector<14x28xi32>
    %40 = arith.addi %34, %39 : vector<14x28xi32>
    %41 = arith.cmpi eq, %31, %40 : vector<14x28xi32>
    %cst_32 = arith.constant 1.000000e+00 : f32
    %cst_33 = arith.constant 0.000000e+00 : f32
    %42 = vector.broadcast %cst_32 : f32 to vector<14x28xf32>
    %43 = vector.broadcast %cst_33 : f32 to vector<14x28xf32>
    %44 = arith.select %41, %42, %43 : vector<14x28xi1>, vector<14x28xf32>
    %cst_34 = arith.constant dense<0.000000e+00> : vector<14x448xf32>
    %45 = tpu.matmul %38, %30, %cst_34 {dimension_numbers = #tpu.dot_dimension_numbers<[1], [0], [0], [1], [0, 0, 1, 1], [], []>} : vector<14x28xf32>, vector<28x448xf32>, vector<14x448xf32> -> vector<14x448xf32>
    %cst_35 = arith.constant dense<0.000000e+00> : vector<14x448xf32>
    %46 = tpu.matmul %44, %30, %cst_35 {dimension_numbers = #tpu.dot_dimension_numbers<[1], [0], [0], [1], [0, 0, 1, 1], [], []>} : vector<14x28xf32>, vector<28x448xf32>, vector<14x448xf32> -> vector<14x448xf32>
    %47 = arith.maximumf %45, %46 : vector<14x448xf32>
    %48 = vector.extract_strided_slice %47 {offsets = [0, 0], sizes = [14, 224], strides = [1, 1]} : vector<14x448xf32> to vector<14x224xf32>
    %49 = vector.extract_strided_slice %47 {offsets = [0, 224], sizes = [14, 224], strides = [1, 1]} : vector<14x448xf32> to vector<14x224xf32>
    %50 = arith.maximumf %48, %49 : vector<14x224xf32>
    %c0_36 = arith.constant 0 : index
    %c0_37 = arith.constant 0 : index
    %51 = vector.load %arg3[%c0_36, %c0_37] : memref<1x224xf32, #tpu.memory_space<vmem>>, vector<1x224xf32>
    %52 = vector.broadcast %51 : vector<1x224xf32> to vector<14x224xf32>
    %53 = arith.addf %50, %52 : vector<14x224xf32>
    %cst_38 = arith.constant 0.000000e+00 : f32
    %54 = vector.broadcast %cst_38 : f32 to vector<14x224xf32>
    %55 = arith.maximumf %53, %54 : vector<14x224xf32>
    %c0_39 = arith.constant 0 : index
    %c0_40 = arith.constant 0 : index
    %c0_41 = arith.constant 0 : index
    %56 = vector.load %arg4[%c0_39, %c0_40, %c0_41] : memref<1x14x224xf32, #tpu.memory_space<vmem>>, vector<1x14x224xf32>
    %57 = vector.shape_cast %56 : vector<1x14x224xf32> to vector<14x224xf32>
    %58 = vector.shape_cast %55 : vector<14x224xf32> to vector<1x14x224xf32>
    tpu.vector_store %arg4[%c0_39, %c0_40, %c0_41], %58 {strides = array<i32>} : memref<1x14x224xf32, #tpu.memory_space<vmem>>, vector<1x14x224xf32>,
    return
  }
  func.func @transform_0(%arg0: i32) -> (i32, i32, i32) {
    %c0_i32 = arith.constant 0 : i32
    %c0_i32_0 = arith.constant 0 : i32
    %c0_i32_1 = arith.constant 0 : i32
    return %arg0, %c0_i32, %c0_i32_0 : i32, i32, i32
  }
  func.func @transform_1(%arg0: i32) -> (i32, i32, i32) {
    %c0_i32 = arith.constant 0 : i32
    %c0_i32_0 = arith.constant 0 : i32
    %c0_i32_1 = arith.constant 0 : i32
    %c0_i32_2 = arith.constant 0 : i32
    return %c0_i32, %c0_i32_0, %c0_i32_1 : i32, i32, i32
  }
  func.func @transform_2(%arg0: i32) -> (i32, i32) {
    %c0_i32 = arith.constant 0 : i32
    %c0_i32_0 = arith.constant 0 : i32
    %c0_i32_1 = arith.constant 0 : i32
    return %c0_i32, %c0_i32_0 : i32, i32
  }
  func.func @transform_3(%arg0: i32) -> (i32, i32, i32) {
    %c0_i32 = arith.constant 0 : i32
    %c0_i32_0 = arith.constant 0 : i32
    %c0_i32_1 = arith.constant 0 : i32
    return %arg0, %c0_i32, %c0_i32_0 : i32, i32, i32
  }
}

module attributes {stable_mosaic.version = 11 : i64} {
  func.func @_fc1_kernel(%arg0: i32, %arg1: memref<2x3136xf32, #tpu.memory_space<vmem>>, %arg2: memref<3136x128xf32, #tpu.memory_space<vmem>>, %arg3: memref<1x128xf32, #tpu.memory_space<vmem>>, %arg4: memref<2x128xf32, #tpu.memory_space<vmem>>) attributes {dimension_semantics = [#tpu.dimension_semantics<parallel>], iteration_bounds = array<i64: 4>, scalar_prefetch = 0 : i64, scratch_operands = 0 : i64, tpu.core_type = #tpu.core_type<tc>, window_params = [{pipeline_mode = #tpu.pipeline_mode<synchronous>, transform_indices = @transform_0, window_bounds = array<i64: 2, 3136>}, {transform_indices = @transform_1, window_bounds = array<i64: 3136, 128>}, {transform_indices = @transform_2, window_bounds = array<i64: 1, 128>}, {transform_indices = @transform_3, window_bounds = array<i64: 2, 128>}]} {
    %c0 = arith.constant 0 : index
    %c0_0 = arith.constant 0 : index
    %0 = vector.load %arg1[%c0, %c0_0] : memref<2x3136xf32, #tpu.memory_space<vmem>>, vector<2x3136xf32>
    %c0_1 = arith.constant 0 : index
    %c0_2 = arith.constant 0 : index
    %1 = vector.load %arg2[%c0_1, %c0_2] : memref<3136x128xf32, #tpu.memory_space<vmem>>, vector<3136x128xf32>
    %cst = arith.constant dense<0.000000e+00> : vector<2x128xf32>
    %2 = tpu.matmul %0, %1, %cst {dimension_numbers = #tpu.dot_dimension_numbers<[1], [0], [0], [1], [0, 0, 1, 1], [], []>} : vector<2x3136xf32>, vector<3136x128xf32>, vector<2x128xf32> -> vector<2x128xf32>
    %c0_3 = arith.constant 0 : index
    %c0_4 = arith.constant 0 : index
    %3 = vector.load %arg3[%c0_3, %c0_4] : memref<1x128xf32, #tpu.memory_space<vmem>>, vector<1x128xf32>
    %4 = vector.broadcast %3 : vector<1x128xf32> to vector<2x128xf32>
    %5 = arith.addf %2, %4 : vector<2x128xf32>
    %c0_5 = arith.constant 0 : index
    %c0_6 = arith.constant 0 : index
    %6 = vector.load %arg4[%c0_5, %c0_6] : memref<2x128xf32, #tpu.memory_space<vmem>>, vector<2x128xf32>
    tpu.vector_store %arg4[%c0_5, %c0_6], %5 {strides = array<i32>} : memref<2x128xf32, #tpu.memory_space<vmem>>, vector<2x128xf32>,
    return
  }
  func.func @transform_0(%arg0: i32) -> (i32, i32) {
    %c0_i32 = arith.constant 0 : i32
    %c0_i32_0 = arith.constant 0 : i32
    %c0_i32_1 = arith.constant 0 : i32
    return %c0_i32, %c0_i32_0 : i32, i32
  }
  func.func @transform_1(%arg0: i32) -> (i32, i32) {
    %c0_i32 = arith.constant 0 : i32
    %c0_i32_0 = arith.constant 0 : i32
    return %c0_i32, %arg0 : i32, i32
  }
  func.func @transform_2(%arg0: i32) -> (i32, i32) {
    %c0_i32 = arith.constant 0 : i32
    %c0_i32_0 = arith.constant 0 : i32
    return %c0_i32, %arg0 : i32, i32
  }
  func.func @transform_3(%arg0: i32) -> (i32, i32) {
    %c0_i32 = arith.constant 0 : i32
    %c0_i32_0 = arith.constant 0 : i32
    return %c0_i32, %arg0 : i32, i32
  }
}

</mosaic_0001>

<bundles_post_ra>
// kernel: cnn_feature_extractor_forward.3
= control target key start
LH: loop header
LB: loop body
LE: loop exit
PB: predicated region body
PF: predicated region fallthrough
CT: control target
= control target key end

     0   :  { %8 = vsyncpa [#allocation3], 0  ;;  %s4389_s0 = inlined_call_operand.vmem [shape: f32[2,68,204], index: 0, kind: input, shape index: {}]   ;;  %s4390_s1 = inlined_call_operand.hbm [shape: f32[5,204,384], index: 1, kind: input, shape index: {}]   ;;  %s4391_s2 = inlined_call_operand.hbm [shape: f32[1,192], index: 2, kind: input, shape index: {}]   ;;  %s4392_s3 = inlined_call_operand.vmem [shape: f32[2,32,192], index: 3, kind: output, shape index: {}]  }
   0x1   :  { %9 = vsyncpa [#allocation5], 0  ;;  %s3000_s12 = smov 0  }
   0x2 LB: > { %s125_s15 = sshll.u32 %s4390_s1, 4  ;;  %s3009_s16 = sadd.s32 4294967295, %s2972_s12   ;;  %s2972_s12 = sphi %s3000_s12, %s15_s12   ;;  %s126_s15 = int_to_ptr.hbm [resolvable:$true] %s125_s15 }
   0x3   : > { %p2655_p0 = scmp.ge.s32.totalorder %s2972_s12, 1  ;;  %p114_p1 = scmp.lt.s32.totalorder %s2972_s12, 3 }
   0x4   : > { %p2859_p2 = scmp.eq.s32.totalorder %s3009_s16, 0  ;;  %s2974_s18 = smov [#allocation2]  }
   0x5   : > { %p3014_p3 = pnand %p2655_p0, %p114_p1  ;;  %s127_s19 = sshll.u32 %s2974_s18, 4  ;;  %s128_s19 = int_to_ptr.vmem [resolvable:$true] %s127_s19 }
   0x6   : > { %s140_s22 = sshll.u32 %s4391_s2, 4  ;;  %s2975_s23 = smov [#allocation4]   ;;  %s141_s22 = int_to_ptr.hbm [resolvable:$true] %s140_s22 }
   0x7   : > { %p2852_p4 = pneg %p3014_p3  ;;  %s142_s24 = sshll.u32 %s2975_s23, 4  ;;  %s143_s24 = int_to_ptr.vmem [resolvable:$true] %s142_s24 }
   0x8   : > { %s2976_s25 = smov 384   ;;  %s2977_s26 = smov 24  }
   0x9   : > { %p2853_p5 = pnand %p2859_p2, %p2852_p4  ;;  %163 = sbr.rel (%p3014_p3) target bundleno = 984 (0x3d8), region = 32 }
   0xb   : > { %2855 = dma.hbm_to_vmem [thread:$0]  (!%p2853_p5), %s126_s15, 49920, %s128_s19, [#allocation3], %s2976_s25, %s2976_s25, %s2977_s26  }
   0xc   : > { %2858 = dma.hbm_to_vmem [thread:$0]  (!%p2853_p5), %s141_s22, 32, %s143_s24, [#allocation5]  }
   0xe   : > { %2963 = dma.done.wait (%p2859_p2), [#allocation3], 49920  }
   0xf   : > { %2965 = vsyncadd (%p2859_p2), [#allocation3], 4294917376 }
  0x10   : > { %2967 = dma.done.wait (%p2859_p2), [#allocation5], 32  }
  0x11   : > { %2969 = vsyncadd (%p2859_p2), [#allocation5], 4294967264  ;;  %vm458_vm0 = vcmask 1043456   ;;  %p193_p6 = scmp.lt.s32.totalorder %s3009_s16, 1  ;;  %v347_v0 = vld [vmem:[#allocation2 + $0x3d8] sm:$0xff]  ;;  %v348_v2 = vld [vmem:[#allocation2 + $0x3e0] sm:$0xff] }
  0x12   : > { %v377_v1 = vld [vmem:[#allocation2 + $0x4c8] sm:$0xf]  ;;  %468 = vmatpush.msra.mxu0 %v347_v0  ;;  %v378_v3 = vld [vmem:[#allocation2 + $0x4d0] sm:$0xf]  ;;  %v344_v4 = vld [vmem:[#allocation2 + $0x3c0] sm:$0xff]  ;;  %550 = vmatpush.msra.mxu2 %v348_v2  ;;  %vm398_vm1 = vcmask 1046528  }
  0x13   : > { %2665 = vmatpush.msk.msra.mxu1 %vm458_vm0, %v377_v1  ;;  %v374_v5 = vld [vmem:[#allocation2 + $0x4b0] sm:$0xff]  ;;  %2674 = vmatpush.msk.msra.mxu3 %vm458_vm0, %v378_v3  ;;  %v345_v6 = vld [vmem:[#allocation2 + $0x3c8] sm:$0xff]  ;;  %v375_v7 = vld [vmem:[#allocation2 + $0x4b8] sm:$0xff]  ;;  %s4430_s16 = smov (!%p193_p6, %s3009_s16), 1  ;;  %vm441_vm2 = vcmask 621568   ;;  %vm1073_vm3 = vcmask 1045504  }
  0x14   : > { %v341_v8 = vld [vmem:[#allocation2 + $0x3a8] sm:$0xff]  ;;  %469 = vmatpush.msra.mxu0 %v344_v4  ;;  %v371_v9 = vld [vmem:[#allocation2 + $0x498] sm:$0xff]  ;;  %v342_v10 = vld [vmem:[#allocation2 + $0x3b0] sm:$0xff]  ;;  %551 = vmatpush.msra.mxu2 %v345_v6  ;;  %s2843_s27 = smul.u32 144, %s4430_s16  ;;  %vm1498_vm4 = vcmask 1044480   ;;  %vm2291_vm6 = vcmask 523264  }
  0x15   : > { %516 = vmatpush.msra.mxu1 %v374_v5  ;;  %v372_v11 = vld [vmem:[#allocation2 + $0x4a0] sm:$0xff]  ;;  %598 = vmatpush.msra.mxu3 %v375_v7  ;;  %v338_v12 = vld [vmem:[#allocation2 + $0x390] sm:$0xff]  ;;  %v339_v14 = vld [vmem:[#allocation2 + $0x398] sm:$0xff]  ;;  %s2979_s4 = smov 64   ;;  %s2826_s5 = sshll.u32 %s4430_s16, 6 }
  0x16   : > { %v368_v13 = vld [vmem:[#allocation2 + $0x480] sm:$0xff]  ;;  %470 = vmatpush.msra.mxu0 %v341_v8  ;;  %v369_v15 = vld [vmem:[#allocation2 + $0x488] sm:$0xff]  ;;  %552 = vmatpush.msra.mxu2 %v342_v10  ;;  %v335_v16 = vld [vmem:[#allocation2 + $0x378] sm:$0xff]  ;;  %s3047_s30 = scalar_lea.vmem %s4389_s0, %s2843_s27  ;;  %s4362_s8 = scalar_lea.vmem %s4392_s3, %s2826_s5 }
  0x17   : > { %517 = vmatpush.msra.mxu1 %v371_v9  ;;  %599 = vmatpush.msra.mxu3 %v372_v11  ;;  %v365_v17 = vld [vmem:[#allocation2 + $0x468] sm:$0xff]  ;;  %v336_v18 = vld [vmem:[#allocation2 + $0x380] sm:$0xff]  ;;  %v366_v19 = vld [vmem:[#allocation2 + $0x470] sm:$0xff] }
  0x18   : > { %471 = vmatpush.msra.mxu0 %v338_v12  ;;  %553 = vmatpush.msra.mxu2 %v339_v14  ;;  %v332_v20 = vld [vmem:[#allocation2 + $0x360] sm:$0xff]  ;;  %v362_v21 = vld [vmem:[#allocation2 + $0x450] sm:$0xff]  ;;  %v333_v22 = vld [vmem:[#allocation2 + $0x368] sm:$0xff] }
  0x19   : > { %518 = vmatpush.msra.mxu1 %v368_v13  ;;  %600 = vmatpush.msra.mxu3 %v369_v15  ;;  %v363_v23 = vld [vmem:[#allocation2 + $0x458] sm:$0xff]  ;;  %v329_v24 = vld [vmem:[#allocation2 + $0x348] sm:$0xff]  ;;  %v330_v26 = vld [vmem:[#allocation2 + $0x350] sm:$0xff] }
  0x1a   : > { %472 = vmatpush.msra.mxu0 %v335_v16  ;;  %554 = vmatpush.msra.mxu2 %v336_v18  ;;  %v359_v25 = vld [vmem:[#allocation2 + $0x438] sm:$0xff]  ;;  %v360_v27 = vld [vmem:[#allocation2 + $0x440] sm:$0xff]  ;;  %v326_v28 = vld [vmem:[#allocation2 + $0x330] sm:$0xff] }
  0x1b   : > { %519 = vmatpush.msra.mxu1 %v365_v17  ;;  %601 = vmatpush.msra.mxu3 %v366_v19  ;;  %v356_v29 = vld [vmem:[#allocation2 + $0x420] sm:$0xff]  ;;  %v327_v30 = vld [vmem:[#allocation2 + $0x338] sm:$0xff]  ;;  %v357_v31 = vld [vmem:[#allocation2 + $0x428] sm:$0xff] }
  0x1c   : > { %473 = vmatpush.msra.mxu0 %v332_v20  ;;  %555 = vmatpush.msra.mxu2 %v333_v22  ;;  %v3050_v32 = vld [vmem:[%s3047_s30 + $0x18] sm:$0xff]  ;;  %v298_v33 = vld [vmem:[%s3047_s30 + $0x8] sm:$0xfe]  ;;  %v324_v38 = vld [vmem:[#allocation2 + $0x320] sm:$0xff] }
  0x1d   : > { %520 = vmatpush.msra.mxu1 %v362_v21  ;;  %602 = vmatpush.msra.mxu3 %v363_v23  ;;  %v323_v34 = vld [vmem:[#allocation2 + $0x318] sm:$0xff]  ;;  %v353_v35 = vld [vmem:[#allocation2 + $0x408] sm:$0xff]  ;;  %v402_v36 = vrot.slane %v298_v33, 1  ;;  %v403_v37 = vrot.slane %v3050_v32, 1  ;;  %v354_v39 = vld [vmem:[#allocation2 + $0x410] sm:$0xff] }
  0x1e   : > { %474 = vmatpush.msra.mxu0 %v329_v24  ;;  %556 = vmatpush.msra.mxu2 %v330_v26  ;;  %v320_v40 = vld [vmem:[#allocation2 + $0x300] sm:$0xff]  ;;  %v350_v41 = vld [vmem:[#allocation2 + $0x3f0] sm:$0xff]  ;;  %v321_v42 = vld [vmem:[#allocation2 + $0x308] sm:$0xff] }
  0x1f   : > { %521 = vmatpush.msra.mxu1 %v359_v25  ;;  %603 = vmatpush.msra.mxu3 %v360_v27  ;;  %v351_v43 = vld [vmem:[#allocation2 + $0x3f8] sm:$0xff]  ;;  %v3055_v44 = vsel %vm398_vm1, %v402_v36, %v403_v37  ;;  %v317_v45 = vld [vmem:[#allocation2 + $0x2e8] sm:$0xff]  ;;  %v318_v46 = vld [vmem:[#allocation2 + $0x2f0] sm:$0xff] }
  0x20   : > { %475 = vmatpush.msra.mxu0 %v326_v28  ;;  %557 = vmatpush.msra.mxu2 %v327_v30  ;;  %v3058_v47 = vld [vmem:[%s3047_s30 + $0x28] sm:$0xff]  ;;  %v314_v48 = vld [vmem:[#allocation2 + $0x2d0] sm:$0xff]  ;;  %v315_v49 = vld [vmem:[#allocation2 + $0x2d8] sm:$0xff] }
  0x21   : > { %522 = vmatpush.msra.mxu1 %v356_v29  ;;  %604 = vmatpush.msra.mxu3 %v357_v31  ;;  %v349_v50 = vld [vmem:[#allocation2 + $0x3e8] sm:$0xff]  ;;  %v311_v51 = vld [vmem:[#allocation2 + $0x2b8] sm:$0xff]  ;;  %v407_v52 = vrot.slane %v3058_v47, 1  ;;  %v346_v53 = vld [vmem:[#allocation2 + $0x3d0] sm:$0xff] }
  0x22   : > { %476 = vmatpush.msra.mxu0 %v323_v34  ;;  %558 = vmatpush.msra.mxu2 %v324_v38  ;;  %v312_v54 = vld [vmem:[#allocation2 + $0x2c0] sm:$0xff]  ;;  %v3066_v55 = vld [vmem:[%s3047_s30 + $0x10] sm:$0xff]  ;;  %v309_v58 = vld [vmem:[#allocation2 + $0x2a8] sm:$0xff] }
  0x23   : > { %523 = vmatpush.msra.mxu1 %v353_v35  ;;  %605 = vmatpush.msra.mxu3 %v354_v39  ;;  %v297_v56 = vld [vmem:[%s3047_s30] sm:$0xfe]  ;;  %v343_v59 = vld [vmem:[#allocation2 + $0x3b8] sm:$0xff]  ;;  %v3070_v60 = vsel %vm398_vm1, %v403_v37, %v407_v52  ;;  %v400_v62 = vrot.slane %v3066_v55, 1  ;;  %v305_v63 = vld [vmem:[#allocation2 + $0x288] sm:$0xff] }
  0x24   : > { %477 = vmatpush.msra.mxu0 %v320_v40  ;;  %559 = vmatpush.msra.mxu2 %v321_v42  ;;  %v308_v57 = vld [vmem:[#allocation2 + $0x2a0] sm:$0xff]  ;;  %v399_v61 = vrot.slane %v297_v56, 1  ;;  %v306_v0 = vld [vmem:[#allocation2 + $0x290] sm:$0xff]  ;;  %v3074_v1 = vld [vmem:[%s3047_s30 + $0x38] sm:$0xff] }
  0x25   : > { %524 = vmatpush.msra.mxu1 %v350_v41  ;;  %606 = vmatpush.msra.mxu3 %v351_v43  ;;  %v340_v2 = vld [vmem:[#allocation2 + $0x3a0] sm:$0xff]  ;;  %v302_v3 = vld [vmem:[#allocation2 + $0x270] sm:$0xff]  ;;  %v303_v4 = vld [vmem:[#allocation2 + $0x278] sm:$0xff]  ;;  %v411_v7 = vrot.slane %v3074_v1, 1 }
  0x26   : > { %2666 = vmatmul.msk.f32.vlgmr.msra.gmra.mxu1 %vm441_vm2, %v3055_v44  ;;  %2675 = vmatmul.msk.f32.vlgmr.msra.gmra.mxu3 %vm441_vm2, %v3055_v44  ;;  %v379_v5 = vld [vmem:[#allocation2 + $0x4d8] sm:$0xf]  ;;  %v3081_v6 = vsel %vm398_vm1, %v399_v61, %v400_v62  ;;  %v3085_v8 = vld [vmem:[%s3047_s30 + $0x20] sm:$0xff]  ;;  %v337_v9 = vld [vmem:[#allocation2 + $0x388] sm:$0xff] }
  0x27   : > { %478 = vmatpush.msra.mxu0 %v317_v45  ;;  %560 = vmatpush.msra.mxu2 %v318_v46  ;;  %v334_v10 = vld [vmem:[#allocation2 + $0x370] sm:$0xff]  ;;  %v264_v11 = vld [vmem:[#allocation2 + $0x168] sm:$0xff]  ;;  %v3091_v12 = vsel %vm398_vm1, %v407_v52, %v411_v7  ;;  %v405_v13 = vrot.slane %v3085_v8, 1  ;;  %v376_v14 = vld [vmem:[#allocation2 + $0x4c0] sm:$0xff] }
  0x28   : > { %632 = vmatpush.msrb.mxu1 %v349_v50  ;;  %2683 = vmatpush.msk.msrb.mxu3 %vm458_vm0, %v379_v5  ;;  %v261_v15 = vld [vmem:[#allocation2 + $0x150] sm:$0xff]  ;;  %v3095_v16 = vld [vmem:[%s3047_s30 + $0x48] sm:$0xff]  ;;  %v331_v17 = vld [vmem:[#allocation2 + $0x358] sm:$0xff] }
  0x29   : > { %479 = vmatpush.msra.mxu0 %v314_v48  ;;  %561 = vmatpush.msra.mxu2 %v315_v49  ;;  %v328_v18 = vld [vmem:[#allocation2 + $0x340] sm:$0xff]  ;;  %v373_v19 = vld [vmem:[#allocation2 + $0x4a8] sm:$0xff]  ;;  %v258_v20 = vld [vmem:[#allocation2 + $0x138] sm:$0xff]  ;;  %v3102_v21 = vsel %vm398_vm1, %v400_v62, %v405_v13  ;;  %v415_v22 = vrot.slane %v3095_v16, 1 }
  0x2a   : > { %633 = vmatpush.msrb.mxu1 %v346_v53  ;;  %680 = vmatpush.msrb.mxu3 %v376_v14  ;;  %v370_v23 = vld [vmem:[#allocation2 + $0x490] sm:$0xff]  ;;  %v325_v25 = vld [vmem:[#allocation2 + $0x328] sm:$0xff]  ;;  %v255_v26 = vld [vmem:[#allocation2 + $0x120] sm:$0xff] }
  0x2b   : > { %480 = vmatpush.msra.mxu0 %v311_v51  ;;  %562 = vmatpush.msra.mxu2 %v312_v54  ;;  %v3106_v24 = vld [vmem:[%s3047_s30 + $0x30] sm:$0xff]  ;;  %v367_v28 = vld [vmem:[#allocation2 + $0x478] sm:$0xff]  ;;  %v252_v29 = vld [vmem:[#allocation2 + $0x108] sm:$0xff]  ;;  %v3111_v30 = vsel %vm398_vm1, %v411_v7, %v415_v22 }
  0x2c   : > { %634 = vmatpush.msrb.mxu1 %v343_v59  ;;  %681 = vmatpush.msrb.mxu3 %v373_v19  ;;  %v322_v27 = vld [vmem:[#allocation2 + $0x310] sm:$0xff]  ;;  %v409_v31 = vrot.slane %v3106_v24, 1  ;;  %v3115_v33 = vld [vmem:[%s3047_s30 + $0x58] sm:$0xff]  ;;  %v364_v35 = vld [vmem:[#allocation2 + $0x460] sm:$0xff] }
  0x2d   : > { %481 = vmatpush.msra.mxu0 %v308_v57  ;;  %563 = vmatpush.msra.mxu2 %v309_v58  ;;  %v319_v34 = vld [vmem:[#allocation2 + $0x2f8] sm:$0xff]  ;;  %v249_v36 = vld [vmem:[#allocation2 + $0xf0] sm:$0xff]  ;;  %v316_v37 = vld [vmem:[#allocation2 + $0x2e0] sm:$0xff]  ;;  %v419_v40 = vrot.slane %v3115_v33, 1 }
  0x2e   : > { %2667 = vmatmul.msk.f32.gmra.mxu1 %vm441_vm2, %v3070_v60  ;;  %2676 = vmatmul.msk.f32.gmra.mxu3 %vm441_vm2, %v3070_v60  ;;  %v361_v38 = vld [vmem:[#allocation2 + $0x448] sm:$0xff]  ;;  %v3122_v39 = vsel %vm398_vm1, %v405_v13, %v409_v31  ;;  %v294_v41 = vld [vmem:[#allocation2 + $0x258] sm:$0xf]  ;;  %v3126_v42 = vld [vmem:[%s3047_s30 + $0x40] sm:$0xff] }
  0x2f   : > { %482 = vmatpush.msra.mxu0 %v305_v63  ;;  %564 = vmatpush.msra.mxu2 %v306_v0  ;;  %v313_v43 = vld [vmem:[#allocation2 + $0x2c8] sm:$0xff]  ;;  %v246_v45 = vld [vmem:[#allocation2 + $0xd8] sm:$0xff]  ;;  %v358_v46 = vld [vmem:[#allocation2 + $0x430] sm:$0xff]  ;;  %v3132_v51 = vsel %vm398_vm1, %v415_v22, %v419_v40  ;;  %v413_v52 = vrot.slane %v3126_v42, 1 }
  0x30   : > { %635 = vmatpush.msrb.mxu1 %v340_v2  ;;  %682 = vmatpush.msrb.mxu3 %v370_v23  ;;  %v291_v48 = vld [vmem:[#allocation2 + $0x240] sm:$0xff]  ;;  %v310_v49 = vld [vmem:[#allocation2 + $0x2b0] sm:$0xff]  ;;  %v3136_v53 = vld [vmem:[%s3047_s30 + $0x68] sm:$0xff] }
  0x31   : > { %483 = vmatpush.msra.mxu0 %v302_v3  ;;  %565 = vmatpush.msra.mxu2 %v303_v4  ;;  %v243_v50 = vld [vmem:[#allocation2 + $0xc0] sm:$0xff]  ;;  %v307_v54 = vld [vmem:[#allocation2 + $0x298] sm:$0xff]  ;;  %v240_v57 = vld [vmem:[#allocation2 + $0xa8] sm:$0xff]  ;;  %v3143_v62 = vsel %vm398_vm1, %v409_v31, %v413_v52  ;;  %v423_v63 = vrot.slane %v3136_v53, 1 }
  0x32   : > { %484 = vmatmul.f32.vlgmr.msra.gmra.mxu0 %v3081_v6  ;;  %566 = vmatmul.f32.vlgmr.msra.gmra.mxu2 %v3081_v6  ;;  %v355_v56 = vld [vmem:[#allocation2 + $0x418] sm:$0xff]  ;;  %v288_v58 = vld [vmem:[#allocation2 + $0x228] sm:$0xff]  ;;  %v304_v59 = vld [vmem:[#allocation2 + $0x280] sm:$0xff] }
  0x33   : > { %636 = vmatpush.msrb.mxu1 %v337_v9  ;;  %740 = vmatpush.msrb.mxu0 %v264_v11  ;;  %v352_v61 = vld [vmem:[#allocation2 + $0x400] sm:$0xff]  ;;  %v3147_v0 = vld [vmem:[%s3047_s30 + $0x50] sm:$0xff]  ;;  %v234_v4 = vld [vmem:[#allocation2 + $0x78] sm:$0xff]  ;;  %v3152_v7 = vsel %vm398_vm1, %v419_v40, %v423_v63 }
  0x34   : > { %683 = vmatpush.msrb.mxu3 %v367_v28  ;;  %2692 = vmatpush.msk.msrb.mxu2 %vm458_vm0, %v294_v41  ;;  %v237_v2 = vld [vmem:[#allocation2 + $0x90] sm:$0xff]  ;;  %v282_v5 = vld [vmem:[#allocation2 + $0x1f8] sm:$0xff]  ;;  %v417_v9 = vrot.slane %v3147_v0, 1  ;;  %v231_v11 = vld [vmem:[#allocation2 + $0x60] sm:$0xff] }
  0x35   : > { %637 = vmatpush.msrb.mxu1 %v334_v10  ;;  %741 = vmatpush.msrb.mxu0 %v261_v15  ;;  %v285_v3 = vld [vmem:[#allocation2 + $0x210] sm:$0xff]  ;;  %v3156_v10 = vld [vmem:[%s3047_s30 + $0x78] sm:$0xff]  ;;  %v279_v13 = vld [vmem:[#allocation2 + $0x1e0] sm:$0xff] }
  0x36   : > { %2668 = vmatmul.msk.f32.gmra.mxu1 %vm441_vm2, %v3091_v12  ;;  %2677 = vmatmul.msk.f32.gmra.mxu3 %vm441_vm2, %v3091_v12  ;;  %v228_v14 = vld [vmem:[#allocation2 + $0x48] sm:$0xff]  ;;  %v3167_v19 = vld [vmem:[%s3047_s30 + $0x60] sm:$0xff]  ;;  %v273_v22 = vld [vmem:[#allocation2 + $0x1b0] sm:$0xff] }
  0x37   : > { %638 = vmatpush.msrb.mxu1 %v331_v17  ;;  %742 = vmatpush.msrb.mxu0 %v258_v20  ;;  %v276_v15 = vld [vmem:[#allocation2 + $0x1c8] sm:$0xff]  ;;  %v3163_v17 = vsel %vm398_vm1, %v413_v52, %v417_v9  ;;  %v225_v20 = vld [vmem:[#allocation2 + $0x30] sm:$0xff]  ;;  %v222_v23 = vld [vmem:[#allocation2 + $0x18] sm:$0xff] }
  0x38   : > { %684 = vmatpush.msrb.mxu3 %v364_v35  ;;  %788 = vmatpush.msrb.mxu2 %v291_v48  ;;  %v300_v28 = vld [vmem:[%s3047_s30 + $0x88] sm:$0x1]  ;;  %v267_v31 = vld [vmem:[#allocation2 + $0x180] sm:$0xff] }
  0x39   : > { %639 = vmatpush.msrb.mxu1 %v328_v18  ;;  %743 = vmatpush.msrb.mxu0 %v255_v26  ;;  %v427_v18 = vrot.slane %v3156_v10, 1  ;;  %v431_v35 = vrot.slane %v300_v28, 1  ;;  %v299_v41 = vld [vmem:[%s3047_s30 + $0x80] sm:$0x1]  ;;  %v293_v28 = vld [vmem:[#allocation2 + $0x250] sm:$0xff] }
  0x3a   : > { %487 = vmatmul.f32.gmra.mxu0 %v3102_v21  ;;  %569 = vmatmul.f32.gmra.mxu2 %v3102_v21  ;;  %v295_v52 = vld [vmem:[#allocation2 + $0x260] sm:$0xf] }
  0x3b   : > { %640 = vmatpush.msrb.mxu1 %v325_v25  ;;  %744 = vmatpush.msrb.mxu0 %v252_v29  ;;  %v270_v25 = vld [vmem:[#allocation2 + $0x198] sm:$0xff]  ;;  %v3172_v26 = vsel %vm398_vm1, %v423_v63, %v427_v18  ;;  %v219_v29 = vld [vmem:[#allocation2] sm:$0xff]  ;;  %v289_v63 = vld [vmem:[#allocation2 + $0x230] sm:$0xff] }
  0x3c   : > { %685 = vmatpush.msrb.mxu3 %v361_v38  ;;  %789 = vmatpush.msrb.mxu2 %v288_v58  ;;  %v244_v58 = vld [vmem:[#allocation2 + $0xc8] sm:$0xff] }
  0x3d   : > { %641 = vmatpush.msrb.mxu1 %v322_v27  ;;  %745 = vmatpush.msrb.mxu0 %v249_v36  ;;  %v421_v27 = vrot.slane %v3167_v19, 1  ;;  %v3184_v36 = vld [vmem:[%s3047_s30 + $0x70] sm:$0xff] }
  0x3e   : > { %2669 = vmatmul.msk.f32.gmra.mxu1 %vm441_vm2, %v3111_v30  ;;  %2678 = vmatmul.msk.f32.gmra.mxu3 %vm441_vm2, %v3111_v30  ;;  %v425_v38 = vrot.slane %v3184_v36, 1 }
  0x3f   : > { %642 = vmatpush.msrb.mxu1 %v319_v34  ;;  %746 = vmatpush.msrb.mxu0 %v246_v45  ;;  %v3181_v34 = vsel %vm398_vm1, %v417_v9, %v421_v27  ;;  %v265_v45 = vld [vmem:[#allocation2 + $0x170] sm:$0xff]  ;;  %v283_v9 = vld [vmem:[#allocation2 + $0x200] sm:$0xff] }
  0x40   : > { %686 = vmatpush.msrb.mxu3 %v358_v46  ;;  %790 = vmatpush.msrb.mxu2 %v285_v3  ;;  %v3197_v40 = vsel %vm398_vm1, %v421_v27, %v425_v38  ;;  %v262_v46 = vld [vmem:[#allocation2 + $0x158] sm:$0xff]  ;;  %v245_v27 = vld [vmem:[#allocation2 + $0xd0] sm:$0xff] }
  0x41   : > { %643 = vmatpush.msrb.mxu1 %v316_v37  ;;  %747 = vmatpush.msrb.mxu0 %v243_v50  ;;  %v3189_v37 = vsel %vm398_vm1, %v427_v18, %v431_v35  ;;  %v256_v50 = vld [vmem:[#allocation2 + $0x128] sm:$0xff]  ;;  %v238_v3 = vld [vmem:[#allocation2 + $0x98] sm:$0xff]  ;;  %v277_v18 = vld [vmem:[#allocation2 + $0x1d0] sm:$0xff] }
  0x42   : > { %490 = vmatmul.f32.gmra.mxu0 %v3122_v39  ;;  %572 = vmatmul.f32.gmra.mxu2 %v3122_v39  ;;  %v220_v35 = vld [vmem:[#allocation2 + $0x8] sm:$0xff] }
  0x43   : > { %644 = vmatpush.msrb.mxu1 %v313_v43  ;;  %687 = vmatpush.msrb.mxu3 %v355_v56  ;;  %v429_v43 = vrot.slane %v299_v41, 1  ;;  %v3217_v56 = vld [vmem:[%s3047_s30 + $0x8] sm:$0xff]  ;;  %v239_v41 = vld [vmem:[#allocation2 + $0xa0] sm:$0xff] }
  0x44   : > { %748 = vmatpush.msrb.mxu0 %v240_v57  ;;  %791 = vmatpush.msrb.mxu2 %v282_v5  ;;  %v266_v57 = vld [vmem:[#allocation2 + $0x178] sm:$0xff]  ;;  %v257_v5 = vld [vmem:[#allocation2 + $0x130] sm:$0xff] }
  0x45   : > { %645 = vmatpush.msrb.mxu1 %v310_v49  ;;  %688 = vmatpush.msrb.mxu3 %v352_v61  ;;  %v3206_v48 = vsel %vm398_vm1, %v425_v38, %v429_v43  ;;  %v259_v49 = vld [vmem:[#allocation2 + $0x140] sm:$0xff]  ;;  %v241_v61 = vld [vmem:[#allocation2 + $0xb0] sm:$0xff]  ;;  %v268_v38 = vld [vmem:[#allocation2 + $0x188] sm:$0xff] }
  0x46   : > { %2670 = vmatmul.msk.f32.gmra.mxu1 %vm441_vm2, %v3132_v51  ;;  %2679 = vmatmul.msk.f32.gmra.mxu3 %vm441_vm2, %v3132_v51  ;;  %v287_v43 = vld [vmem:[#allocation2 + $0x220] sm:$0xff] }
  0x47   : > { %646 = vmatpush.msrb.mxu1 %v307_v54  ;;  %749 = vmatpush.msrb.mxu0 %v237_v2  ;;  %v3214_v54 = vld [vmem:[%s3047_s30] sm:$0xff]  ;;  %v260_v2 = vld [vmem:[#allocation2 + $0x148] sm:$0xff] }
  0x48   : > { %792 = vmatpush.msrb.mxu2 %v279_v13  ;;  %2701 = vmatpush.msk.msra.mxu3 %vm458_vm0, %v295_v52  ;;  %v280_v13 = vld [vmem:[#allocation2 + $0x1e8] sm:$0xff] }
  0x49   : > { %647 = vmatpush.msrb.mxu1 %v304_v59  ;;  %750 = vmatpush.msrb.mxu0 %v234_v4  ;;  %v263_v59 = vld [vmem:[#allocation2 + $0x160] sm:$0xff]  ;;  %v286_v4 = vld [vmem:[#allocation2 + $0x218] sm:$0xff]  ;;  %v224_v52 = vld [vmem:[#allocation2 + $0x28] sm:$0xff] }
  0x4a   : > { %493 = vmatmul.f32.gmra.mxu0 %v3143_v62  ;;  %575 = vmatmul.f32.gmra.mxu2 %v3143_v62 }
  0x4b   : > { %751 = vmatpush.msrb.mxu0 %v231_v11  ;;  %793 = vmatpush.msrb.mxu2 %v276_v15  ;;  %v254_v11 = vld [vmem:[#allocation2 + $0x118] sm:$0xff]  ;;  %v229_v15 = vld [vmem:[#allocation2 + $0x50] sm:$0xff] }
  0x4c   : > { %822 = vmatpush.msra.mxu1 %v265_v45  ;;  %v236_v45 = vld [vmem:[#allocation2 + $0x88] sm:$0xff] }
  0x4d   : > { %752 = vmatpush.msrb.mxu0 %v228_v14  ;;  %794 = vmatpush.msrb.mxu2 %v273_v22  ;;  %v251_v14 = vld [vmem:[#allocation2 + $0x100] sm:$0xff]  ;;  %v296_v22 = vld [vmem:[#allocation2 + $0x268] sm:$0xf] }
  0x4e   : > { %2671 = vmatmul.msk.f32.gmra.mxu1 %vm441_vm2, %v3152_v7  ;;  %2680 = vmatmul.msk.f32.gmra.mxu3 %vm441_vm2, %v3152_v7 }
  0x4f   : > { %753 = vmatpush.msrb.mxu0 %v225_v20  ;;  %795 = vmatpush.msrb.mxu2 %v270_v25  ;;  %v248_v20 = vld [vmem:[#allocation2 + $0xe8] sm:$0xff]  ;;  %v274_v25 = vld [vmem:[#allocation2 + $0x1b8] sm:$0xff] }
  0x50   : > { %823 = vmatpush.msra.mxu1 %v262_v46  ;;  %v284_v46 = vld [vmem:[#allocation2 + $0x208] sm:$0xff] }
  0x51   : > { %754 = vmatpush.msrb.mxu0 %v222_v23  ;;  %796 = vmatpush.msrb.mxu2 %v267_v31  ;;  %v226_v23 = vld [vmem:[#allocation2 + $0x38] sm:$0xff] }
  0x52   : > { %496 = vmatmul.f32.gmra.mxu0 %v3163_v17  ;;  %578 = vmatmul.f32.gmra.mxu2 %v3163_v17  ;;  %v290_v31 = vld [vmem:[#allocation2 + $0x238] sm:$0xff] }
  0x53   : > { %755 = vmatpush.msrb.mxu0 %v219_v29  ;;  %824 = vmatpush.msra.mxu1 %v259_v49  ;;  %v242_v29 = vld [vmem:[#allocation2 + $0xb8] sm:$0xff]  ;;  %v233_v49 = vld [vmem:[#allocation2 + $0x70] sm:$0xff] }
  0x54   : > { %2710 = vmatpush.msk.msra.mxu2 %vm458_vm0, %v296_v22 }
  0x55   : > { %825 = vmatpush.msra.mxu1 %v256_v50  ;;  %904 = vmatpush.msra.mxu0 %v266_v57  ;;  %v278_v50 = vld [vmem:[#allocation2 + $0x1d8] sm:$0xff]  ;;  %v221_v57 = vld [vmem:[#allocation2 + $0x10] sm:$0xff] }
  0x56   : > { %2672 = vmatmul.msk.f32.gmra.mxu1 %vm441_vm2, %v3172_v26  ;;  %2681 = vmatmul.msk.f32.gmra.mxu3 %vm441_vm2, %v3172_v26 }
  0x57   : > { %905 = vmatpush.msra.mxu0 %v263_v59  ;;  %952 = vmatpush.msra.mxu2 %v293_v28 }
  0x59   : > { %906 = vmatpush.msra.mxu0 %v260_v2  ;;  %953 = vmatpush.msra.mxu2 %v290_v31 }
  0x5a   : > { %499 = vmatmul.f32.gmra.mxu0 %v3181_v34  ;;  %581 = vmatmul.f32.gmra.mxu2 %v3181_v34 }
  0x5b   : > { %907 = vmatpush.msra.mxu0 %v257_v5  ;;  %954 = vmatpush.msra.mxu2 %v287_v43 }
  0x5d   : > { %908 = vmatpush.msra.mxu0 %v254_v11  ;;  %955 = vmatpush.msra.mxu2 %v284_v46  ;;  %v1018_v11 = vld [vmem:[#allocation2 + $0x5b8] sm:$0xff]  ;;  %v1064_v46 = vld [vmem:[#allocation2 + $0x728] sm:$0xff] }
  0x5e   : > { %2673 = vmatmul.msk.f32.gmra.mxu1 %vm441_vm2, %v3189_v37  ;;  %2682 = vmatmul.msk.f32.gmra.mxu3 %vm441_vm2, %v3189_v37 }
  0x5f   : > { %909 = vmatpush.msra.mxu0 %v251_v14 }
  0x61   : > { %910 = vmatpush.msra.mxu0 %v248_v20  ;;  %v1034_v20 = vld [vmem:[#allocation2 + $0x638] sm:$0xff] }
  0x62   : > { %502 = vmatmul.f32.gmra.mxu0 %v3197_v40  ;;  %584 = vmatmul.f32.gmra.mxu2 %v3197_v40 }
  0x63   : > { %911 = vmatpush.msra.mxu0 %v245_v27  ;;  %v1031_v27 = vld [vmem:[#allocation2 + $0x620] sm:$0xff] }
  0x65   : > { %912 = vmatpush.msra.mxu0 %v242_v29  ;;  %v1028_v29 = vld [vmem:[#allocation2 + $0x608] sm:$0xff] }
  0x66   : > { %648 = vmatmul.f32.vlgmr.msrb.gmra.mxu1 %v3081_v6  ;;  %2684 = vmatmul.msk.f32.vlgmr.msrb.gmra.mxu3 %vm441_vm2, %v3055_v44  ;;  %v253_v44 = vld [vmem:[#allocation2 + $0x110] sm:$0xff]  ;;  %v250_v6 = vld [vmem:[#allocation2 + $0xf8] sm:$0xff] }
  0x67   : > { %826 = vmatpush.msra.mxu1 %v253_v44  ;;  %913 = vmatpush.msra.mxu0 %v239_v41  ;;  %v227_v44 = vld [vmem:[#allocation2 + $0x40] sm:$0xff]  ;;  %v1045_v41 = vld [vmem:[#allocation2 + $0x690] sm:$0xff] }
  0x69   : > { %827 = vmatpush.msra.mxu1 %v250_v6  ;;  %914 = vmatpush.msra.mxu0 %v236_v45  ;;  %v275_v6 = vld [vmem:[#allocation2 + $0x1c0] sm:$0xff]  ;;  %v1025_v45 = vld [vmem:[#allocation2 + $0x5f0] sm:$0xff] }
  0x6a   : > { %505 = vmatmul.f32.gmra.mxu0 %v3206_v48  ;;  %587 = vmatmul.f32.gmra.mxu2 %v3206_v48 }
  0x6b   : > { %915 = vmatpush.msra.mxu0 %v233_v49  ;;  %v1003_v49 = vld [vmem:[#allocation2 + $0x540] sm:$0xff] }
  0x6e   : > { %651 = vmatmul.f32.gmra.mxu1 %v3102_v21  ;;  %2685 = vmatmul.msk.f32.gmra.mxu3 %vm441_vm2, %v3070_v60  ;;  %v247_v21 = vld [vmem:[#allocation2 + $0xe0] sm:$0xff]  ;;  %v292_v60 = vld [vmem:[#allocation2 + $0x248] sm:$0xff] }
  0x6f   : > { %828 = vmatpush.msra.mxu1 %v247_v21  ;;  %870 = vmatpush.msra.mxu3 %v292_v60  ;;  %v272_v21 = vld [vmem:[#allocation2 + $0x1a8] sm:$0xff]  ;;  %v1030_v60 = vld [vmem:[#allocation2 + $0x618] sm:$0xff] }
  0x71   : > { %829 = vmatpush.msra.mxu1 %v244_v58  ;;  %871 = vmatpush.msra.mxu3 %v289_v63  ;;  %v269_v58 = vld [vmem:[#allocation2 + $0x190] sm:$0xff]  ;;  %v1027_v63 = vld [vmem:[#allocation2 + $0x600] sm:$0xff] }
  0x72   : > { %756 = vmatmul.f32.vlgmr.msrb.gmra.mxu0 %v3214_v54  ;;  %2693 = vmatmul.msk.f32.vlgmr.msrb.gmra.mxu2 %vm441_vm2, %v3217_v56 }
  0x73   : > { %830 = vmatpush.msra.mxu1 %v241_v61  ;;  %872 = vmatpush.msra.mxu3 %v286_v4  ;;  %v1066_v61 = vld [vmem:[#allocation2 + $0x738] sm:$0xf]  ;;  %v1063_v4 = vld [vmem:[#allocation2 + $0x720] sm:$0xff] }
  0x75   : > { %831 = vmatpush.msra.mxu1 %v238_v3  ;;  %873 = vmatpush.msra.mxu3 %v283_v9  ;;  %v1024_v3 = vld [vmem:[#allocation2 + $0x5e8] sm:$0xff] }
  0x76   : > { %654 = vmatmul.f32.gmra.mxu1 %v3122_v39  ;;  %2686 = vmatmul.msk.f32.gmra.mxu3 %vm441_vm2, %v3091_v12  ;;  %v235_v39 = vld [vmem:[#allocation2 + $0x80] sm:$0xff]  ;;  %v232_v12 = vld [vmem:[#allocation2 + $0x68] sm:$0xff] }
  0x77   : > { %832 = vmatpush.msra.mxu1 %v235_v39  ;;  %874 = vmatpush.msra.mxu3 %v280_v13  ;;  %v1037_v13 = vld [vmem:[#allocation2 + $0x650] sm:$0xff] }
  0x79   : > { %833 = vmatpush.msra.mxu1 %v232_v12  ;;  %875 = vmatpush.msra.mxu3 %v277_v18  ;;  %v1057_v12 = vld [vmem:[#allocation2 + $0x6f0] sm:$0xff]  ;;  %v1054_v18 = vld [vmem:[#allocation2 + $0x6d8] sm:$0xff] }
  0x7a   : > { %759 = vmatmul.f32.gmra.mxu0 %v3066_v55  ;;  %2694 = vmatmul.msk.f32.gmra.mxu2 %vm441_vm2, %v3050_v32 }
  0x7b   : > { %834 = vmatpush.msra.mxu1 %v229_v15  ;;  %876 = vmatpush.msra.mxu3 %v274_v25  ;;  %v1015_v15 = vld [vmem:[#allocation2 + $0x5a0] sm:$0xff] }
  0x7c   : > { %v1051_v25 = vld [vmem:[#allocation2 + $0x6c0] sm:$0xff] }
  0x7d   : > { %835 = vmatpush.msra.mxu1 %v226_v23  ;;  %v1012_v23 = vld [vmem:[#allocation2 + $0x588] sm:$0xff] }
  0x7e   : > { %657 = vmatmul.f32.gmra.mxu1 %v3143_v62  ;;  %2687 = vmatmul.msk.f32.gmra.mxu3 %vm441_vm2, %v3111_v30  ;;  %v223_v30 = vld [vmem:[#allocation2 + $0x20] sm:$0xff] }
  0x7f   : > { %v271_v62 = vld [vmem:[#allocation2 + $0x1a0] sm:$0xff]  ;;  %836 = vmatpush.msra.mxu1 %v223_v30 }
  0x80   : > { %877 = vmatpush.msra.mxu3 %v271_v62  ;;  %v1048_v62 = vld [vmem:[#allocation2 + $0x6a8] sm:$0xff] }
  0x81   : > { %837 = vmatpush.msra.mxu1 %v220_v35  ;;  %v1067_v35 = vld [vmem:[#allocation2 + $0x740] sm:$0xf] }
  0x82   : > { %762 = vmatmul.f32.gmra.mxu0 %v3085_v8  ;;  %2695 = vmatmul.msk.f32.gmra.mxu2 %vm441_vm2, %v3058_v47 }
  0x83   : > { %878 = vmatpush.msra.mxu3 %v268_v38  ;;  %v1006_v38 = vld [vmem:[#allocation2 + $0x558] sm:$0xff] }
  0x85   : > { %2719 = vmatpush.msk.msrb.mxu3 %vm458_vm0, %v1066_v61  ;;  %v994_v61 = vld [vmem:[#allocation2 + $0x4f8] sm:$0xff] }
  0x86   : > { %660 = vmatmul.f32.gmra.mxu1 %v3163_v17  ;;  %2688 = vmatmul.msk.f32.gmra.mxu3 %vm441_vm2, %v3132_v51  ;;  %v281_v17 = vld [vmem:[#allocation2 + $0x1f0] sm:$0xff]  ;;  %v230_v51 = vld [vmem:[#allocation2 + $0x58] sm:$0xff] }
  0x87   : > { %956 = vmatpush.msra.mxu2 %v281_v17  ;;  %916 = vmatpush.msra.mxu0 %v230_v51  ;;  %v1042_v17 = vld [vmem:[#allocation2 + $0x678] sm:$0xff] }
  0x88   : > { %1189 = vmatpush.msrb.mxu3 %v1063_v4  ;;  %v1052_v4 = vld [vmem:[#allocation2 + $0x6c8] sm:$0xff] }
  0x89   : > { %957 = vmatpush.msra.mxu2 %v278_v50  ;;  %917 = vmatpush.msra.mxu0 %v227_v44  ;;  %v1022_v50 = vld [vmem:[#allocation2 + $0x5d8] sm:$0xff]  ;;  %v1061_v44 = vld [vmem:[#allocation2 + $0x710] sm:$0xff] }
  0x8a   : > { %765 = vmatmul.f32.gmra.mxu0 %v3106_v24  ;;  %2696 = vmatmul.msk.f32.gmra.mxu2 %vm441_vm2, %v3074_v1 }
  0x8b   : > { %958 = vmatpush.msra.mxu2 %v275_v6  ;;  %918 = vmatpush.msra.mxu0 %v224_v52  ;;  %v1000_v52 = vld [vmem:[#allocation2 + $0x528] sm:$0xff] }
  0x8d   : > { %959 = vmatpush.msra.mxu2 %v272_v21  ;;  %919 = vmatpush.msra.mxu0 %v221_v57  ;;  %v1039_v21 = vld [vmem:[#allocation2 + $0x660] sm:$0xff] }
  0x8e   : > { %663 = vmatmul.f32.gmra.mxu1 %v3181_v34  ;;  %2689 = vmatmul.msk.f32.gmra.mxu3 %vm441_vm2, %v3152_v7 }
  0x8f   : > { %960 = vmatpush.msra.mxu2 %v269_v58  ;;  %1223 = vmatpush.msrb.mxu0 %v1037_v13  ;;  %v1058_v58 = vld [vmem:[#allocation2 + $0x6f8] sm:$0xff]  ;;  %v1007_v13 = vld [vmem:[#allocation2 + $0x560] sm:$0xff] }
  0x91   : > { %1224 = vmatpush.msrb.mxu0 %v1034_v20  ;;  %2728 = vmatpush.msk.msrb.mxu2 %vm458_vm0, %v1067_v35  ;;  %v1043_v20 = vld [vmem:[#allocation2 + $0x680] sm:$0xff] }
  0x92   : > { %768 = vmatmul.f32.gmra.mxu0 %v3126_v42  ;;  %2697 = vmatmul.msk.f32.gmra.mxu2 %vm441_vm2, %v3095_v16 }
  0x93   : > { %1225 = vmatpush.msrb.mxu0 %v1031_v27  ;;  %1271 = vmatpush.msrb.mxu2 %v1064_v46  ;;  %v1040_v27 = vld [vmem:[#allocation2 + $0x668] sm:$0xff] }
  0x95   : > { %1226 = vmatpush.msrb.mxu0 %v1028_v29  ;;  %1272 = vmatpush.msrb.mxu2 %v1061_v44  ;;  %v995_v29 = vld [vmem:[#allocation2 + $0x500] sm:$0xff]  ;;  %v3352_v44 = vld [vmem:[%s3047_s30 + $0x18] sm:$0xff] }
  0x96   : > { %666 = vmatmul.f32.gmra.mxu1 %v3197_v40  ;;  %2690 = vmatmul.msk.f32.gmra.mxu3 %vm441_vm2, %v3172_v26  ;;  %v1033_v40 = vld [vmem:[#allocation2 + $0x630] sm:$0xff] }
  0x97   : > { %1227 = vmatpush.msrb.mxu0 %v1025_v45  ;;  %1273 = vmatpush.msrb.mxu2 %v1058_v58  ;;  %v986_v45 = vld [vmem:[%s3047_s30] sm:$0xfc] }
  0x99   : > { %1228 = vmatpush.msrb.mxu0 %v1022_v50 }
  0x9a   : > { %771 = vmatmul.f32.gmra.mxu0 %v3147_v0  ;;  %2698 = vmatmul.msk.f32.gmra.mxu2 %vm441_vm2, %v3115_v33 }
  0x9e   : > { %669 = vmatmul.f32.gmra.mxu1 %v3206_v48  ;;  %2691 = vmatmul.msk.f32.gmra.mxu3 %vm441_vm2, %v3189_v37  ;;  %v1036_v37 = vld [vmem:[#allocation2 + $0x648] sm:$0xff] }
  0x9f   : > { %1141 = vmatpush.msrb.mxu1 %v1036_v37  ;;  %v997_v37 = vld [vmem:[#allocation2 + $0x510] sm:$0xff] }
  0xa1   : > { %1142 = vmatpush.msrb.mxu1 %v1033_v40  ;;  %v1016_v40 = vld [vmem:[#allocation2 + $0x5a8] sm:$0xff] }
  0xa2   : > { %774 = vmatmul.f32.gmra.mxu0 %v3167_v19  ;;  %2699 = vmatmul.msk.f32.gmra.mxu2 %vm441_vm2, %v3136_v53 }
  0xa3   : > { %v3260_v7 = vpop.f32.mrf.mxu1  ;;  %1143 = vmatpush.msrb.mxu1 %v1030_v60 }
  0xa5   : > { %1144 = vmatpush.msrb.mxu1 %v1027_v63  ;;  %v1013_v63 = vld [vmem:[#allocation2 + $0x590] sm:$0xff] }
  0xa6   : > { %838 = vmatmul.f32.vlgmr.msra.gmra.mxu1 %v3214_v54  ;;  %2702 = vmatmul.msk.f32.vlgmr.msra.gmra.mxu3 %vm441_vm2, %v3217_v56 }
  0xa7   : > { %1145 = vmatpush.msrb.mxu1 %v1024_v3 }
  0xa9   : > { %v608_v26 = vpop.f32.mrf.mxu3 }
  0xaa   : > { %777 = vmatmul.f32.gmra.mxu0 %v3184_v36  ;;  %2700 = vmatmul.msk.f32.gmra.mxu2 %vm441_vm2, %v3156_v10 }
  0xab   : > { %v3268_v34 = vpop.f32.mrf.mxu1 }
  0xae   : > { %841 = vmatmul.f32.gmra.mxu1 %v3066_v55  ;;  %2703 = vmatmul.msk.f32.gmra.mxu3 %vm441_vm2, %v3050_v32 }
  0xaf   : > { %v3273_v48 = vpop.f32.mrf.mxu0 }
  0xb1   : > { %v611_v59 = vpop.f32.mrf.mxu3 }
  0xb2   : > { %920 = vmatmul.f32.vlgmr.msra.gmra.mxu0 %v3214_v54  ;;  %2711 = vmatmul.msk.f32.vlgmr.msra.gmra.mxu2 %vm441_vm2, %v3217_v56  ;;  %v1021_v54 = vld [vmem:[#allocation2 + $0x5d0] sm:$0xff]  ;;  %v1060_v56 = vld [vmem:[#allocation2 + $0x708] sm:$0xff] }
  0xb3   : > { %v3278_v2 = vpop.f32.mrf.mxu1  ;;  %1146 = vmatpush.msrb.mxu1 %v1021_v54  ;;  %1190 = vmatpush.msrb.mxu3 %v1060_v56  ;;  %v1010_v56 = vld [vmem:[#allocation2 + $0x578] sm:$0xff] }
  0xb5   : > { %v567_v5 = vpop.f32.mrf.mxu2  ;;  %1147 = vmatpush.msrb.mxu1 %v1018_v11  ;;  %1191 = vmatpush.msrb.mxu3 %v1057_v12 }
  0xb6   : > { %v3281_v39 = vadd.f32 %v608_v26, %v567_v5  ;;  %844 = vmatmul.f32.gmra.mxu1 %v3085_v8  ;;  %2704 = vmatmul.msk.f32.gmra.mxu3 %vm441_vm2, %v3058_v47  ;;  %v991_v5 = vld [vmem:[#allocation2 + $0x4e0] sm:$0xff] }
  0xb7   : > { %v3286_v9 = vpop.f32.mrf.mxu0  ;;  %1148 = vmatpush.msrb.mxu1 %v1015_v15  ;;  %1192 = vmatpush.msrb.mxu3 %v1054_v18  ;;  %v1004_v18 = vld [vmem:[#allocation2 + $0x548] sm:$0xff] }
  0xb9   : > { %v614_v14 = vpop.f32.mrf.mxu3  ;;  %1149 = vmatpush.msrb.mxu1 %v1012_v23  ;;  %1193 = vmatpush.msrb.mxu3 %v1051_v25  ;;  %v1001_v25 = vld [vmem:[#allocation2 + $0x530] sm:$0xff] }
  0xba   : > { %923 = vmatmul.f32.gmra.mxu0 %v3066_v55  ;;  %2712 = vmatmul.msk.f32.gmra.mxu2 %vm441_vm2, %v3050_v32  ;;  %v1009_v32 = vld [vmem:[#allocation2 + $0x570] sm:$0xff] }
  0xbb   : > { %v3291_v22 = vpop.f32.mrf.mxu1  ;;  %1150 = vmatpush.msrb.mxu1 %v1009_v32  ;;  %1194 = vmatpush.msrb.mxu3 %v1048_v62 }
  0xbd   : > { %v570_v28 = vpop.f32.mrf.mxu2  ;;  %1151 = vmatpush.msrb.mxu1 %v1006_v38  ;;  %1195 = vmatpush.msrb.mxu3 %v1045_v41  ;;  %v992_v38 = vld [vmem:[#allocation2 + $0x4e8] sm:$0xff] }
  0xbe   : > { %v3293_v30 = vadd.f32 %v611_v59, %v570_v28  ;;  %847 = vmatmul.f32.gmra.mxu1 %v3106_v24  ;;  %2705 = vmatmul.msk.f32.gmra.mxu3 %vm441_vm2, %v3074_v1  ;;  %v1055_v59 = vld [vmem:[#allocation2 + $0x6e0] sm:$0xff] }
  0xbf   : > { %v3298_v31 = vpop.f32.mrf.mxu0  ;;  %1152 = vmatpush.msrb.mxu1 %v1003_v49  ;;  %1196 = vmatpush.msrb.mxu3 %v1042_v17 }
  0xc0   : > { %1274 = vmatpush.msrb.mxu2 %v1055_v59  ;;  %v3373_v59 = vld [vmem:[%s3047_s30 + $0x28] sm:$0xff] }
  0xc1   : > { %v617_v43 = vpop.f32.mrf.mxu3  ;;  %1153 = vmatpush.msrb.mxu1 %v1000_v52  ;;  %1197 = vmatpush.msrb.mxu3 %v1039_v21  ;;  %v1075_v52 = vrot.slane %v3066_v55, 2 }
  0xc2   : > { %926 = vmatmul.f32.gmra.mxu0 %v3085_v8  ;;  %2713 = vmatmul.msk.f32.gmra.mxu2 %vm441_vm2, %v3058_v47  ;;  %v1019_v47 = vld [vmem:[#allocation2 + $0x5c0] sm:$0xff] }
  0xc3   : > { %v3304_v51 = vpop.f32.mrf.mxu1  ;;  %1229 = vmatpush.msrb.mxu0 %v1019_v47  ;;  %1154 = vmatpush.msrb.mxu1 %v997_v37 }
  0xc4   : > { %1275 = vmatpush.msrb.mxu2 %v1052_v4 }
  0xc5   : > { %v573_v6 = vpop.f32.mrf.mxu2  ;;  %1230 = vmatpush.msrb.mxu0 %v1016_v40  ;;  %1155 = vmatpush.msrb.mxu1 %v994_v61  ;;  %v1080_v61 = vrot.slane %v3085_v8, 2 }
  0xc6   : > { %v3306_v57 = vadd.f32 %v614_v14, %v573_v6  ;;  %850 = vmatmul.f32.gmra.mxu1 %v3126_v42  ;;  %2706 = vmatmul.msk.f32.gmra.mxu3 %vm441_vm2, %v3095_v16  ;;  %v1046_v14 = vld [vmem:[#allocation2 + $0x698] sm:$0xff]  ;;  %v1074_v6 = vrot.slane %v986_v45, 2  ;;  %v1065_v45 = vld [vmem:[#allocation2 + $0x730] sm:$0xff] }
  0xc7   : > { %v3311_v26 = vpop.f32.mrf.mxu0  ;;  %1231 = vmatpush.msrb.mxu0 %v1013_v63  ;;  %1156 = vmatpush.msrb.mxu1 %v991_v5 }
  0xc8   : > { %v3363_v37 = vsel %vm1073_vm3, %v1074_v6, %v1075_v52  ;;  %v1062_v6 = vld [vmem:[#allocation2 + $0x718] sm:$0xff] }
  0xc9   : > { %v620_v60 = vpop.f32.mrf.mxu3  ;;  %1232 = vmatpush.msrb.mxu0 %v1010_v56  ;;  %v3386_v56 = vsel %vm1073_vm3, %v1075_v52, %v1080_v61 }
  0xca   : > { %929 = vmatmul.f32.gmra.mxu0 %v3106_v24  ;;  %2714 = vmatmul.msk.f32.gmra.mxu2 %vm441_vm2, %v3074_v1  ;;  %v1049_v1 = vld [vmem:[#allocation2 + $0x6b0] sm:$0xff] }
  0xcb   : > { %v3316_v3 = vpop.f32.mrf.mxu1  ;;  %1276 = vmatpush.msrb.mxu2 %v1049_v1  ;;  %1233 = vmatpush.msrb.mxu0 %v1007_v13  ;;  %v1038_v1 = vld [vmem:[#allocation2 + $0x658] sm:$0xff] }
  0xcc   : > { %1305 = vmatpush.msra.mxu1 %v1038_v1  ;;  %v530_v1 = vadd.f32 %v3268_v34, %v3286_v9  ;;  %v1014_v9 = vld [vmem:[#allocation2 + $0x598] sm:$0xff] }
  0xcd   : > { %v576_v54 = vpop.f32.mrf.mxu2  ;;  %1277 = vmatpush.msrb.mxu2 %v1046_v14  ;;  %1234 = vmatpush.msrb.mxu0 %v1004_v18  ;;  %v1035_v14 = vld [vmem:[#allocation2 + $0x640] sm:$0xff] }
  0xce   : > { %v3318_v11 = vadd.f32 %v617_v43, %v576_v54  ;;  %853 = vmatmul.f32.gmra.mxu1 %v3147_v0  ;;  %2707 = vmatmul.msk.f32.gmra.mxu3 %vm441_vm2, %v3115_v33  ;;  %v987_v43 = vld [vmem:[%s3047_s30 + $0x8] sm:$0xfc] }
  0xcf   : > { %v3323_v12 = vpop.f32.mrf.mxu0  ;;  %1278 = vmatpush.msrb.mxu2 %v1043_v20  ;;  %1235 = vmatpush.msrb.mxu0 %v1001_v25  ;;  %v1077_v50 = vrot.slane %v987_v43, 2  ;;  %v1084_v20 = vrot.slane %v3106_v24, 2  ;;  %v1032_v25 = vld [vmem:[#allocation2 + $0x628] sm:$0xff] }
  0xd0   : > { %1306 = vmatpush.msra.mxu1 %v1035_v14  ;;  %v1017_v14 = vld [vmem:[#allocation2 + $0x5b0] sm:$0xff] }
  0xd1   : > { %v623_v15 = vpop.f32.mrf.mxu3  ;;  %1279 = vmatpush.msrb.mxu2 %v1040_v27  ;;  %v3409_v24 = vsel %vm1073_vm3, %v1080_v61, %v1084_v20  ;;  %v1059_v61 = vld [vmem:[#allocation2 + $0x700] sm:$0xff] }
  0xd2   : > { %932 = vmatmul.f32.gmra.mxu0 %v3126_v42  ;;  %2715 = vmatmul.msk.f32.gmra.mxu2 %vm441_vm2, %v3095_v16  ;;  %v998_v16 = vld [vmem:[#allocation2 + $0x518] sm:$0xff] }
  0xd3   : > { %v3328_v23 = vpop.f32.mrf.mxu1  ;;  %1236 = vmatpush.msrb.mxu0 %v998_v16  ;;  %1307 = vmatpush.msra.mxu1 %v1032_v25 }
  0xd5   : > { %v579_v28 = vpop.f32.mrf.mxu2  ;;  %1237 = vmatpush.msrb.mxu0 %v995_v29  ;;  %v1068_v29 = vld [vmem:[#allocation2 + $0x748] sm:$0xf] }
  0xd6   : > { %v3330_v32 = vadd.f32 %v620_v60, %v579_v28  ;;  %856 = vmatmul.f32.gmra.mxu1 %v3167_v19  ;;  %2708 = vmatmul.msk.f32.gmra.mxu3 %vm441_vm2, %v3136_v53  ;;  %v527_v28 = vadd.f32 %v3260_v7, %v3273_v48  ;;  %v1026_v48 = vld [vmem:[#allocation2 + $0x5f8] sm:$0xff] }
  0xd7   : > { %v3335_v62 = vpop.f32.mrf.mxu0  ;;  %1238 = vmatpush.msrb.mxu0 %v992_v38  ;;  %2737 = vmatpush.msk.msra.mxu3 %vm458_vm0, %v1068_v29  ;;  %v1053_v29 = vld [vmem:[#allocation2 + $0x6d0] sm:$0xff] }
  0xd9   : > { %v626_v35 = vpop.f32.mrf.mxu3  ;;  %1353 = vmatpush.msra.mxu3 %v1065_v45 }
  0xda   : > { %935 = vmatmul.f32.gmra.mxu0 %v3147_v0  ;;  %2716 = vmatmul.msk.f32.gmra.mxu2 %vm441_vm2, %v3115_v33  ;;  %v1078_v33 = vrot.slane %v3352_v44, 2 }
  0xdb   : > { %v3340_v41 = vpop.f32.mrf.mxu1  ;;  %1354 = vmatpush.msra.mxu3 %v1062_v6  ;;  %v1092_v6 = vrot.slane %v3147_v0, 2  ;;  %v1005_v0 = vld [vmem:[#allocation2 + $0x550] sm:$0xff] }
  0xdc   : > { %v3360_v58 = vsel %vm1073_vm3, %v1077_v50, %v1078_v33 }
  0xdd   : > { %v582_v46 = vpop.f32.mrf.mxu2  ;;  %1355 = vmatpush.msra.mxu3 %v1059_v61  ;;  %v1047_v61 = vld [vmem:[#allocation2 + $0x6a0] sm:$0xff] }
  0xde   : > { %v3344_v49 = vadd.f32 %v623_v15, %v582_v46  ;;  %859 = vmatmul.f32.gmra.mxu1 %v3184_v36  ;;  %2709 = vmatmul.msk.f32.gmra.mxu3 %vm441_vm2, %v3156_v10 }
  0xdf   : > { %v3349_v17 = vpop.f32.mrf.mxu0 }
  0xe1   : > { %v629_v21 = vpop.f32.mrf.mxu3 }
  0xe2   : > { %938 = vmatmul.f32.gmra.mxu0 %v3167_v19  ;;  %2717 = vmatmul.msk.f32.gmra.mxu2 %vm441_vm2, %v3136_v53  ;;  %v1082_v53 = vrot.slane %v3373_v59, 2 }
  0xe3   : > { %v649_v47 = vpop.f32.mrf.mxu1 }
  0xe4   : > { %v3383_v54 = vsel %vm1073_vm3, %v1078_v33, %v1082_v53  ;;  %v1023_v33 = vld [vmem:[#allocation2 + $0x5e0] sm:$0xff] }
  0xe5   : > { %v585_v40 = vpop.f32.mrf.mxu2 }
  0xe6   : > { %v3365_v60 = vadd.f32 %v626_v35, %v585_v40  ;;  %2720 = vmatmul.msk.f32.vlgmr.msrb.gmra.mxu3 %vm441_vm2, %v3360_v58  ;;  %1157 = vmatmul.f32.vlgmr.msrb.gmra.mxu1 %v3363_v37  ;;  %v1029_v35 = vld [vmem:[#allocation2 + $0x610] sm:$0xff]  ;;  %v1088_v40 = vrot.slane %v3126_v42, 2  ;;  %v1056_v42 = vld [vmem:[#allocation2 + $0x6e8] sm:$0xff] }
  0xe7   : > { %v3370_v55 = vpop.f32.mrf.mxu0  ;;  %1308 = vmatpush.msra.mxu1 %v1029_v35  ;;  %1356 = vmatpush.msra.mxu3 %v1056_v42  ;;  %v1455_v35 = vld [vmem:[#allocation2 + $0x888] sm:$0xff] }
  0xe9   : > { %v690_v63 = vpop.f32.mrf.mxu3  ;;  %1309 = vmatpush.msra.mxu1 %v1026_v48  ;;  %v1452_v48 = vld [vmem:[#allocation2 + $0x870] sm:$0xff]  ;;  %1357 = vmatpush.msra.mxu3 %v1053_v29  ;;  %v3457_v29 = vsel %vm1073_vm3, %v1088_v40, %v1092_v6 }
  0xea   : > { %v3377_v4 = vadd.f32 %v690_v63, %v649_v47  ;;  %941 = vmatmul.f32.gmra.mxu0 %v3184_v36  ;;  %2718 = vmatmul.msk.f32.gmra.mxu2 %vm441_vm2, %v3156_v10  ;;  %v3394_v10 = vld [vmem:[%s3047_s30 + $0x38] sm:$0xff] }
  0xeb   : > { %v652_v5 = vpop.f32.mrf.mxu1  ;;  %v1086_v18 = vrot.slane %v3394_v10, 2  ;;  %1310 = vmatpush.msra.mxu1 %v1023_v33  ;;  %v1461_v63 = vld [vmem:[#allocation2 + $0x8b8] sm:$0xff] }
  0xec   : > { %1566 = vmatpush.msra.mxu0 %v1461_v63 }
  0xed   : > { %v588_v13 = vpop.f32.mrf.mxu2  ;;  %v3406_v43 = vsel %vm1073_vm3, %v1082_v53, %v1086_v18  ;;  %v1020_v53 = vld [vmem:[#allocation2 + $0x5c8] sm:$0xff] }
  0xee   : > { %v3388_v8 = vadd.f32 %v629_v21, %v588_v13  ;;  %2721 = vmatmul.msk.f32.gmra.mxu3 %vm441_vm2, %v3383_v54  ;;  %1160 = vmatmul.f32.gmra.mxu1 %v3386_v56  ;;  %v3418_v21 = vld [vmem:[%s3047_s30 + $0x48] sm:$0xff] }
  0xef   : > { %v757_v15 = vpop.f32.mrf.mxu0  ;;  %v1090_v47 = vrot.slane %v3418_v21, 2  ;;  %1311 = vmatpush.msra.mxu1 %v1020_v53  ;;  %v1008_v53 = vld [vmem:[#allocation2 + $0x568] sm:$0xff] }
  0xf0   : > { %v758_v7 = vadd.f32 %v757_v15, %v527_v28  ;;  %v1458_v15 = vld [vmem:[#allocation2 + $0x8a0] sm:$0xff]  ;;  %v3433_v28 = vsel %vm1073_vm3, %v1084_v20, %v1088_v40  ;;  %v1050_v20 = vld [vmem:[#allocation2 + $0x6b8] sm:$0xff] }
  0xf1   : > { %v693_v27 = vpop.f32.mrf.mxu3  ;;  %1312 = vmatpush.msra.mxu1 %v1017_v14  ;;  %1567 = vmatpush.msra.mxu0 %v1458_v15  ;;  %v533_v14 = vadd.f32 %v3278_v2, %v3298_v31  ;;  %v1044_v15 = vld [vmem:[#allocation2 + $0x688] sm:$0xff]  ;;  %v1446_v2 = vld [vmem:[#allocation2 + $0x840] sm:$0xff]  ;;  %v1485_v31 = vld [vmem:[#allocation2 + $0x978] sm:$0xff] }
  0xf2   : > { %v3400_v16 = vadd.f32 %v693_v27, %v652_v5  ;;  %2729 = vmatmul.msk.f32.vlgmr.msrb.gmra.mxu2 %vm441_vm2, %v3360_v58  ;;  %1239 = vmatmul.f32.vlgmr.msrb.gmra.mxu0 %v3363_v37  ;;  %v3430_v27 = vsel %vm1073_vm3, %v1086_v18, %v1090_v47  ;;  %v1011_v18 = vld [vmem:[#allocation2 + $0x580] sm:$0xff] }
  0xf3   : > { %v655_v38 = vpop.f32.mrf.mxu1  ;;  %1313 = vmatpush.msra.mxu1 %v1014_v9  ;;  %1568 = vmatpush.msra.mxu0 %v1455_v35  ;;  %v1482_v40 = vld [vmem:[#allocation2 + $0x960] sm:$0xff] }
  0xf4   : > { %1358 = vmatpush.msra.mxu3 %v1050_v20 }
  0xf5   : > { %v798_v46 = vpop.f32.mrf.mxu2  ;;  %1314 = vmatpush.msra.mxu1 %v1011_v18  ;;  %1569 = vmatpush.msra.mxu0 %v1452_v48  ;;  %v1041_v18 = vld [vmem:[#allocation2 + $0x670] sm:$0xff] }
  0xf6   : > { %v3412_v50 = vadd.f32 %v798_v46, %v758_v7  ;;  %2722 = vmatmul.msk.f32.gmra.mxu3 %vm441_vm2, %v3406_v43  ;;  %1163 = vmatmul.f32.gmra.mxu1 %v3409_v24  ;;  %v3441_v46 = vld [vmem:[%s3047_s30 + $0x58] sm:$0xff] }
  0xf7   : > { %v760_v52 = vpop.f32.mrf.mxu0  ;;  %v1094_v33 = vrot.slane %v3441_v46, 2  ;;  %1315 = vmatpush.msra.mxu1 %v1008_v53  ;;  %1359 = vmatpush.msra.mxu3 %v1047_v61  ;;  %v1096_v53 = vrot.slane %v3167_v19, 2  ;;  %v999_v61 = vld [vmem:[#allocation2 + $0x520] sm:$0xff]  ;;  %v996_v19 = vld [vmem:[#allocation2 + $0x508] sm:$0xff] }
  0xf8   : > { %v761_v34 = vadd.f32 %v760_v52, %v530_v1  ;;  %v1491_v52 = vld [vmem:[#allocation2 + $0x9a8] sm:$0xf]  ;;  %v1488_v1 = vld [vmem:[#allocation2 + $0x990] sm:$0xff] }
  0xf9   : > { %v696_v5 = vpop.f32.mrf.mxu3  ;;  %2746 = vmatpush.msk.msra.mxu2 %vm458_vm0, %v1491_v52  ;;  %v3454_v9 = vsel %vm1073_vm3, %v1090_v47, %v1094_v33  ;;  %1316 = vmatpush.msra.mxu1 %v1005_v0  ;;  %v1443_v47 = vld [vmem:[#allocation2 + $0x828] sm:$0xff] }
  0xfa   : > { %v3424_v13 = vadd.f32 %v696_v5, %v655_v38  ;;  %2730 = vmatmul.msk.f32.gmra.mxu2 %vm441_vm2, %v3383_v54  ;;  %1242 = vmatmul.f32.gmra.mxu0 %v3386_v56  ;;  %v1449_v5 = vld [vmem:[#allocation2 + $0x858] sm:$0xff] }
  0xfb   : > { %v658_v25 = vpop.f32.mrf.mxu1  ;;  %1570 = vmatpush.msra.mxu0 %v1449_v5  ;;  %1614 = vmatpush.msra.mxu2 %v1488_v1  ;;  %v1479_v1 = vld [vmem:[#allocation2 + $0x948] sm:$0xff] }
  0xfc   : > { %1360 = vmatpush.msra.mxu3 %v1044_v15  ;;  %v1437_v15 = vld [vmem:[#allocation2 + $0x7f8] sm:$0xff] }
  0xfd   : > { %v801_v38 = vpop.f32.mrf.mxu2  ;;  %1571 = vmatpush.msra.mxu0 %v1446_v2  ;;  %1615 = vmatpush.msra.mxu2 %v1485_v31  ;;  %v3480_v31 = vsel %vm1073_vm3, %v1092_v6, %v1096_v53 }
  0xfe   : > { %v3435_v7 = vadd.f32 %v801_v38, %v761_v34  ;;  %2723 = vmatmul.msk.f32.gmra.mxu3 %vm441_vm2, %v3430_v27  ;;  %1166 = vmatmul.f32.gmra.mxu1 %v3433_v28  ;;  %v1002_v38 = vld [vmem:[#allocation2 + $0x538] sm:$0xff] }
  0xff   : > { %v763_v45 = vpop.f32.mrf.mxu0  ;;  %1317 = vmatpush.msra.mxu1 %v1002_v38  ;;  %1361 = vmatpush.msra.mxu3 %v1041_v18  ;;  %v1434_v38 = vld [vmem:[#allocation2 + $0x7e0] sm:$0xff] }
 0x100   : > { %v764_v35 = vadd.f32 %v763_v45, %v533_v14  ;;  %v3465_v45 = vld [vmem:[%s3047_s30 + $0x68] sm:$0xff]  ;;  %1572 = vmatpush.msra.mxu0 %v1443_v47  ;;  %1616 = vmatpush.msra.mxu2 %v1482_v40  ;;  %v536_v14 = vadd.f32 %v3291_v22, %v3311_v26  ;;  %v1476_v26 = vld [vmem:[#allocation2 + $0x930] sm:$0xff]  ;;  %v3488_v47 = vld [vmem:[%s3047_s30 + $0x78] sm:$0xff] }
 0x101   : > { %v699_v63 = vpop.f32.mrf.mxu3  ;;  %v1098_v52 = vrot.slane %v3465_v45, 2  ;;  %1318 = vmatpush.msra.mxu1 %v999_v61  ;;  %v1102_v40 = vrot.slane %v3488_v47, 2  ;;  %v1431_v61 = vld [vmem:[#allocation2 + $0x7c8] sm:$0xff] }
 0x102   : > { %v3448_v42 = vadd.f32 %v699_v63, %v658_v25  ;;  %2731 = vmatmul.msk.f32.gmra.mxu2 %vm441_vm2, %v3406_v43  ;;  %1245 = vmatmul.f32.gmra.mxu0 %v3409_v24  ;;  %v1440_v63 = vld [vmem:[#allocation2 + $0x810] sm:$0xff] }
 0x103   : > { %v661_v34 = vpop.f32.mrf.mxu1  ;;  %v3477_v2 = vsel %vm1073_vm3, %v1094_v33, %v1098_v52  ;;  %1573 = vmatpush.msra.mxu0 %v1440_v63  ;;  %1617 = vmatpush.msra.mxu2 %v1479_v1  ;;  %v1473_v33 = vld [vmem:[#allocation2 + $0x918] sm:$0xff]  ;;  %v1470_v63 = vld [vmem:[#allocation2 + $0x900] sm:$0xff]  ;;  %v539_v1 = vadd.f32 %v3304_v51, %v3323_v12 }
 0x104   : > { %1319 = vmatpush.msra.mxu1 %v996_v19  ;;  %v1467_v19 = vld [vmem:[#allocation2 + $0x8e8] sm:$0xff]  ;;  %v988_v12 = vld [vmem:[%s3047_s30 + $0x80] sm:$0x3] }
 0x105   : > { %v804_v25 = vpop.f32.mrf.mxu2  ;;  %1574 = vmatpush.msra.mxu0 %v1437_v15  ;;  %1618 = vmatpush.msra.mxu2 %v1476_v26 }
 0x106   : > { %v3459_v20 = vadd.f32 %v804_v25, %v764_v35  ;;  %2724 = vmatmul.msk.f32.gmra.mxu3 %vm441_vm2, %v3454_v9  ;;  %1169 = vmatmul.f32.gmra.mxu1 %v3457_v29 }
 0x107   : > { %v766_v48 = vpop.f32.mrf.mxu0  ;;  %1575 = vmatpush.msra.mxu0 %v1434_v38  ;;  %1619 = vmatpush.msra.mxu2 %v1473_v33 }
 0x108   : > { %v767_v22 = vadd.f32 %v766_v48, %v536_v14  ;;  %v1100_v48 = vrot.slane %v3184_v36, 2  ;;  %v1428_v36 = vld [vmem:[#allocation2 + $0x7b0] sm:$0xff] }
 0x109   : > { %v702_v5 = vpop.f32.mrf.mxu3  ;;  %1576 = vmatpush.msra.mxu0 %v1431_v61  ;;  %1620 = vmatpush.msra.mxu2 %v1470_v63  ;;  %v542_v63 = vadd.f32 %v3316_v3, %v3335_v62 }
 0x10a   : > { %v3471_v0 = vadd.f32 %v702_v5, %v661_v34  ;;  %2732 = vmatmul.msk.f32.gmra.mxu2 %vm441_vm2, %v3430_v27  ;;  %1248 = vmatmul.f32.gmra.mxu0 %v3433_v28  ;;  %v993_v34 = vld [vmem:[#allocation2 + $0x4f0] sm:$0xff]  ;;  %v3503_v26 = vsel %vm1073_vm3, %v1096_v53, %v1100_v48 }
 0x10b   : > { %v664_v35 = vpop.f32.mrf.mxu1  ;;  %1320 = vmatpush.msra.mxu1 %v993_v34  ;;  %v989_v34 = vld [vmem:[%s3047_s30 + $0x88] sm:$0x3]  ;;  %1577 = vmatpush.msra.mxu0 %v1428_v36  ;;  %v1416_v36 = vld [vmem:[#allocation2 + $0x750] sm:$0xff] }
 0x10c   : > { %1621 = vmatpush.msra.mxu2 %v1467_v19 }
 0x10d   : > { %v807_v25 = vpop.f32.mrf.mxu2 }
 0x10e   : > { %v3482_v18 = vadd.f32 %v807_v25, %v767_v22  ;;  %2725 = vmatmul.msk.f32.gmra.mxu3 %vm441_vm2, %v3477_v2  ;;  %1172 = vmatmul.f32.gmra.mxu1 %v3480_v31  ;;  %v3500_v22 = vsel %vm1073_vm3, %v1098_v52, %v1102_v40  ;;  %v1464_v25 = vld [vmem:[#allocation2 + $0x8d0] sm:$0xff]  ;;  %v1422_v52 = vld [vmem:[#allocation2 + $0x780] sm:$0xff] }
 0x10f   : > { %v769_v6 = vpop.f32.mrf.mxu0  ;;  %1622 = vmatpush.msra.mxu2 %v1464_v25 }
 0x110   : > { %4396 = vst [vmem:[#allocation8_spill] sm:$0xff] %v3482_v18  ;;  %v770_v51 = vadd.f32 %v769_v6, %v539_v1  ;;  %v1104_v18 = vrot.slane %v988_v12, 2  ;;  %v1419_v6 = vld [vmem:[#allocation2 + $0x768] sm:$0xff] }
 0x111   : > { %v705_v5 = vpop.f32.mrf.mxu3 }
 0x112   : > { %v3494_v14 = vadd.f32 %v705_v5, %v664_v35  ;;  %2733 = vmatmul.msk.f32.gmra.mxu2 %vm441_vm2, %v3454_v9  ;;  %1251 = vmatmul.f32.gmra.mxu0 %v3457_v29  ;;  %v1425_v35 = vld [vmem:[#allocation2 + $0x798] sm:$0xff]  ;;  %v1106_v5 = vrot.slane %v989_v34, 2 }
 0x113   : > { %v667_v15 = vpop.f32.mrf.mxu1  ;;  %1578 = vmatpush.msra.mxu0 %v1425_v35 }
 0x114   : > { %v3520_v34 = vsel %vm1073_vm3, %v1102_v40, %v1106_v5  ;;  %v545_v40 = vadd.f32 %v3328_v23, %v3349_v17  ;;  %v1412_v17 = vld [vmem:[%s3047_s30 + $0x8] sm:$0xf8]  ;;  %v1411_v5 = vld [vmem:[%s3047_s30] sm:$0xf8] }
 0x115   : > { %v810_v38 = vpop.f32.mrf.mxu2  ;;  %1579 = vmatpush.msra.mxu0 %v1422_v52 }
 0x116   : > { %v3507_v33 = vadd.f32 %v810_v38, %v770_v51  ;;  %2726 = vmatmul.msk.f32.gmra.mxu3 %vm441_vm2, %v3500_v22  ;;  %1175 = vmatmul.f32.gmra.mxu1 %v3503_v26  ;;  %v3523_v51 = vsel %vm1073_vm3, %v1100_v48, %v1104_v18 }
 0x117   : > { %v772_v53 = vpop.f32.mrf.mxu0  ;;  %1580 = vmatpush.msra.mxu0 %v1419_v6 }
 0x118   : > { %v773_v12 = vadd.f32 %v772_v53, %v542_v63 }
 0x119   : > { %v708_v61 = vpop.f32.mrf.mxu3  ;;  %1581 = vmatpush.msra.mxu0 %v1416_v36 }
 0x11a   : > { %v3514_v1 = vadd.f32 %v708_v61, %v667_v15  ;;  %2734 = vmatmul.msk.f32.gmra.mxu2 %vm441_vm2, %v3477_v2  ;;  %1254 = vmatmul.f32.gmra.mxu0 %v3480_v31  ;;  %v548_v61 = vadd.f32 %v3340_v41, %v3370_v55 }
 0x11b   : > { %v670_v19 = vpop.f32.mrf.mxu1 }
 0x11d   : > { %v813_v35 = vpop.f32.mrf.mxu2 }
 0x11e   : > { %v3525_v3 = vadd.f32 %v813_v35, %v773_v12  ;;  %2727 = vmatmul.msk.f32.gmra.mxu3 %vm441_vm2, %v3520_v34  ;;  %1178 = vmatmul.f32.gmra.mxu1 %v3523_v51  ;;  %v3554_v12 = vld [vmem:[%s3047_s30 + $0x10] sm:$0xff] }
 0x11f   : > { %v775_v62 = vpop.f32.mrf.mxu0 }
 0x120   : > { %v776_v25 = vadd.f32 %v775_v62, %v545_v40  ;;  %v1462_v62 = vld [vmem:[#allocation2 + $0x8c0] sm:$0xff] }
 0x121   : > { %v711_v15 = vpop.f32.mrf.mxu3  ;;  %1648 = vmatpush.msrb.mxu1 %v1462_v62  ;;  %v1486_v62 = vld [vmem:[#allocation2 + $0x980] sm:$0xff] }
 0x122   : > { %v3532_v18 = vadd.f32 %v711_v15, %v670_v19  ;;  %2735 = vmatmul.msk.f32.gmra.mxu2 %vm441_vm2, %v3500_v22  ;;  %1257 = vmatmul.f32.gmra.mxu0 %v3503_v26  ;;  %v1499_v19 = vrot.slane %v1411_v5, 3  ;;  %v1459_v15 = vld [vmem:[#allocation2 + $0x8a8] sm:$0xff]  ;;  %v1507_v5 = vrot.slane %v3373_v59, 3 }
 0x123   : > { %v839_v48 = vpop.f32.mrf.mxu1  ;;  %1649 = vmatpush.msrb.mxu1 %v1459_v15  ;;  %v1447_v59 = vld [vmem:[#allocation2 + $0x848] sm:$0xff] }
 0x124   : > { %v840_v23 = vadd.f32 %v839_v48, %v3281_v39  ;;  %v1500_v39 = vrot.slane %v3554_v12, 3 }
 0x125   : > { %v816_v38 = vpop.f32.mrf.mxu2 }
 0x126   : > { %v3537_v52 = vadd.f32 %v816_v38, %v776_v25  ;;  %2738 = vmatmul.msk.f32.vlgmr.msra.gmra.mxu3 %vm441_vm2, %v3360_v58  ;;  %1321 = vmatmul.f32.vlgmr.msra.gmra.mxu1 %v3363_v37  ;;  %v1502_v58 = vrot.slane %v1412_v17, 3  ;;  %v1503_v37 = vrot.slane %v3352_v44, 3  ;;  %v3566_v48 = vsel %vm1498_vm4, %v1499_v19, %v1500_v39  ;;  %v1456_v38 = vld [vmem:[#allocation2 + $0x890] sm:$0xff] }
 0x127   : > { %v778_v53 = vpop.f32.mrf.mxu0  ;;  %1650 = vmatpush.msrb.mxu1 %v1456_v38  ;;  %v1483_v38 = vld [vmem:[#allocation2 + $0x968] sm:$0xff] }
 0x128   : > { %v779_v35 = vadd.f32 %v778_v53, %v548_v61  ;;  %v3563_v40 = vsel %vm1498_vm4, %v1502_v58, %v1503_v37  ;;  %v1489_v58 = vld [vmem:[#allocation2 + $0x998] sm:$0xff]  ;;  %v3587_v15 = vsel %vm1498_vm4, %v1503_v37, %v1507_v5 }
 0x129   : > { %v880_v6 = vpop.f32.mrf.mxu3  ;;  %v1441_v37 = vld [vmem:[#allocation2 + $0x818] sm:$0xff] }
 0x12a   : > { %v3547_v63 = vadd.f32 %v880_v6, %v840_v23  ;;  %2736 = vmatmul.msk.f32.gmra.mxu2 %vm441_vm2, %v3520_v34  ;;  %1260 = vmatmul.f32.gmra.mxu0 %v3523_v51  ;;  %v3576_v6 = vld [vmem:[%s3047_s30 + $0x20] sm:$0xff] }
 0x12b   : > { %v842_v36 = vpop.f32.mrf.mxu1  ;;  %v1505_v61 = vrot.slane %v3576_v6, 3 }
 0x12c   : > { %v843_v25 = vadd.f32 %v842_v36, %v3293_v30  ;;  %v1450_v36 = vld [vmem:[#allocation2 + $0x860] sm:$0xff] }
 0x12d   : > { %v819_v41 = vpop.f32.mrf.mxu2 }
 0x12e   : > { %v3557_v55 = vadd.f32 %v819_v41, %v779_v35  ;;  %2739 = vmatmul.msk.f32.gmra.mxu3 %vm441_vm2, %v3383_v54  ;;  %1324 = vmatmul.f32.gmra.mxu1 %v3386_v56  ;;  %v1492_v54 = vld [vmem:[#allocation2 + $0x9b0] sm:$0xf]  ;;  %v1453_v56 = vld [vmem:[#allocation2 + $0x878] sm:$0xff] }
 0x12f   : > { %v921_v44 = vpop.f32.mrf.mxu0  ;;  %2755 = vmatpush.msk.msrb.mxu3 %vm458_vm0, %v1492_v54  ;;  %1651 = vmatpush.msrb.mxu1 %v1453_v56  ;;  %v1460_v54 = vld [vmem:[#allocation2 + $0x8b0] sm:$0xff] }
 0x130   : > { %v922_v30 = vadd.f32 %v921_v44, %v3377_v4  ;;  %v3590_v4 = vsel %vm1498_vm4, %v1500_v39, %v1505_v61  ;;  %v1480_v39 = vld [vmem:[#allocation2 + $0x950] sm:$0xff] }
 0x131   : > { %v883_v53 = vpop.f32.mrf.mxu3  ;;  %1652 = vmatpush.msrb.mxu1 %v1450_v36  ;;  %1696 = vmatpush.msrb.mxu3 %v1489_v58  ;;  %v1438_v58 = vld [vmem:[#allocation2 + $0x800] sm:$0xff] }
 0x132   : > { %v3569_v23 = vadd.f32 %v883_v53, %v843_v25  ;;  %2747 = vmatmul.msk.f32.vlgmr.msra.gmra.mxu2 %vm441_vm2, %v3563_v40  ;;  %1582 = vmatmul.f32.vlgmr.msra.gmra.mxu0 %v3566_v48  ;;  %v1444_v25 = vld [vmem:[#allocation2 + $0x830] sm:$0xff]  ;;  %v1463_v53 = vld [vmem:[#allocation2 + $0x8c8] sm:$0xff] }
 0x133   : > { %v845_v17 = vpop.f32.mrf.mxu1  ;;  %1653 = vmatpush.msrb.mxu1 %v1447_v59  ;;  %1697 = vmatpush.msrb.mxu3 %v1486_v62  ;;  %v1457_v59 = vld [vmem:[#allocation2 + $0x898] sm:$0xff] }
 0x134   : > { %v846_v44 = vadd.f32 %v845_v17, %v3306_v57  ;;  %v3600_v57 = vld [vmem:[%s3047_s30 + $0x30] sm:$0xff]  ;;  %1730 = vmatpush.msrb.mxu0 %v1463_v53  ;;  %v1454_v53 = vld [vmem:[#allocation2 + $0x880] sm:$0xff] }
 0x135   : > { %v962_v19 = vpop.f32.mrf.mxu2  ;;  %1654 = vmatpush.msrb.mxu1 %v1444_v25  ;;  %1698 = vmatpush.msrb.mxu3 %v1483_v38  ;;  %v1509_v17 = vrot.slane %v3600_v57, 3  ;;  %v1435_v25 = vld [vmem:[#allocation2 + $0x7e8] sm:$0xff]  ;;  %v1474_v38 = vld [vmem:[#allocation2 + $0x920] sm:$0xff] }
 0x136   : > { %v3581_v35 = vadd.f32 %v962_v19, %v922_v30  ;;  %2740 = vmatmul.msk.f32.gmra.mxu3 %vm441_vm2, %v3406_v43  ;;  %1327 = vmatmul.f32.gmra.mxu1 %v3409_v24  ;;  %v4393_v30 = vrot.slane %v3394_v10, 3  ;;  %v1477_v19 = vld [vmem:[#allocation2 + $0x938] sm:$0xff] }
 0x137   : > { %v924_v41 = vpop.f32.mrf.mxu0  ;;  %1655 = vmatpush.msrb.mxu1 %v1441_v37  ;;  %1699 = vmatpush.msrb.mxu3 %v1480_v39  ;;  %v1493_v37 = vld [vmem:[#allocation2 + $0x9b8] sm:$0xf] }
 0x138   : > { %v925_v36 = vadd.f32 %v924_v41, %v3400_v16  ;;  %1731 = vmatpush.msrb.mxu0 %v1460_v54  ;;  %v3612_v16 = vsel %vm1498_vm4, %v1507_v5, %v4393_v30  ;;  %v3615_v41 = vsel %vm1498_vm4, %v1505_v61, %v1509_v17  ;;  %2764 = vmatpush.msk.msrb.mxu2 %vm458_vm0, %v1493_v37  ;;  %v1490_v5 = vld [vmem:[#allocation2 + $0x9a0] sm:$0xff]  ;;  %v1429_v61 = vld [vmem:[#allocation2 + $0x7b8] sm:$0xff] }
 0x139   : > { %v886_v43 = vpop.f32.mrf.mxu3  ;;  %1656 = vmatpush.msrb.mxu1 %v1438_v58  ;;  %1700 = vmatpush.msrb.mxu3 %v1477_v19  ;;  %v1515_v19 = vrot.slane %v3418_v21, 3  ;;  %v1445_v21 = vld [vmem:[#allocation2 + $0x838] sm:$0xff] }
 0x13a   : > { %v3593_v24 = vadd.f32 %v886_v43, %v846_v44  ;;  %2748 = vmatmul.msk.f32.gmra.mxu2 %vm441_vm2, %v3587_v15  ;;  %1585 = vmatmul.f32.gmra.mxu0 %v3590_v4 }
 0x13b   : > { %v848_v56 = vpop.f32.mrf.mxu1  ;;  %1732 = vmatpush.msrb.mxu0 %v1457_v59  ;;  %1657 = vmatpush.msrb.mxu1 %v1435_v25  ;;  %v3626_v59 = vld [vmem:[%s3047_s30 + $0x40] sm:$0xff] }
 0x13c   : > { %v849_v39 = vadd.f32 %v848_v56, %v3318_v11  ;;  %1701 = vmatpush.msrb.mxu3 %v1474_v38  ;;  %v1468_v11 = vld [vmem:[#allocation2 + $0x8f0] sm:$0xff]  ;;  %1778 = vmatpush.msrb.mxu2 %v1490_v5 }
 0x13d   : > { %v965_v62 = vpop.f32.mrf.mxu2  ;;  %1733 = vmatpush.msrb.mxu0 %v1454_v53  ;;  %v1448_v38 = vld [vmem:[#allocation2 + $0x850] sm:$0xff]  ;;  %v1487_v53 = vld [vmem:[#allocation2 + $0x988] sm:$0xff] }
 0x13e   : > { %v3604_v44 = vadd.f32 %v965_v62, %v925_v36  ;;  %2741 = vmatmul.msk.f32.gmra.mxu3 %vm441_vm2, %v3430_v27  ;;  %1330 = vmatmul.f32.gmra.mxu1 %v3433_v28  ;;  %v1432_v27 = vld [vmem:[#allocation2 + $0x7d0] sm:$0xff]  ;;  %v1471_v28 = vld [vmem:[#allocation2 + $0x908] sm:$0xff]  ;;  %v1513_v62 = vrot.slane %v3626_v59, 3 }
 0x13f   : > { %v927_v43 = vpop.f32.mrf.mxu0  ;;  %v1451_v36 = vld [vmem:[#allocation2 + $0x868] sm:$0xff]  ;;  %1658 = vmatpush.msrb.mxu1 %v1432_v27  ;;  %1702 = vmatpush.msrb.mxu3 %v1471_v28  ;;  %v1484_v27 = vld [vmem:[#allocation2 + $0x970] sm:$0xff] }
 0x140   : > { %v928_v25 = vadd.f32 %v927_v43, %v3424_v13  ;;  %1734 = vmatpush.msrb.mxu0 %v1451_v36  ;;  %v4397_v13 = vrot.slane %v3394_v10, 3  ;;  %v3641_v36 = vsel %vm1498_vm4, %v1509_v17, %v1513_v62  ;;  %1779 = vmatpush.msrb.mxu2 %v1487_v53  ;;  %v1420_v17 = vld [vmem:[#allocation2 + $0x770] sm:$0xff] }
 0x141   : > { %v889_v54 = vpop.f32.mrf.mxu3  ;;  %1659 = vmatpush.msrb.mxu1 %v1429_v61  ;;  %1703 = vmatpush.msrb.mxu3 %v1468_v11  ;;  %v1481_v11 = vld [vmem:[#allocation2 + $0x958] sm:$0xff] }
 0x142   : > { %v3619_v58 = vadd.f32 %v889_v54, %v849_v39  ;;  %2749 = vmatmul.msk.f32.gmra.mxu2 %vm441_vm2, %v3612_v16  ;;  %1588 = vmatmul.f32.gmra.mxu0 %v3615_v41  ;;  %v1426_v39 = vld [vmem:[#allocation2 + $0x7a0] sm:$0xff]  ;;  %v1465_v54 = vld [vmem:[#allocation2 + $0x8d8] sm:$0xff]  ;;  %v3638_v43 = vsel %vm1498_vm4, %v4397_v13, %v1515_v19 }
 0x143   : > { %v851_v56 = vpop.f32.mrf.mxu1  ;;  %1735 = vmatpush.msrb.mxu0 %v1448_v38  ;;  %1660 = vmatpush.msrb.mxu1 %v1426_v39  ;;  %v1478_v39 = vld [vmem:[#allocation2 + $0x940] sm:$0xff] }
 0x144   : > { %v852_v5 = vadd.f32 %v851_v56, %v3330_v32  ;;  %1704 = vmatpush.msrb.mxu3 %v1465_v54  ;;  %1780 = vmatpush.msrb.mxu2 %v1484_v27  ;;  %v1519_v32 = vrot.slane %v3441_v46, 3  ;;  %v3651_v56 = vld [vmem:[%s3047_s30 + $0x50] sm:$0xff]  ;;  %v1417_v54 = vld [vmem:[#allocation2 + $0x758] sm:$0xff]  ;;  %v1475_v46 = vld [vmem:[#allocation2 + $0x928] sm:$0xff] }
 0x145   : > { %v968_v37 = vpop.f32.mrf.mxu2  ;;  %1736 = vmatpush.msrb.mxu0 %v1445_v21  ;;  %v1517_v53 = vrot.slane %v3651_v56, 3  ;;  %v1436_v27 = vld [vmem:[#allocation2 + $0x7f0] sm:$0xff] }
 0x146   : > { %v3630_v30 = vadd.f32 %v968_v37, %v928_v25  ;;  %2742 = vmatmul.msk.f32.gmra.mxu3 %vm441_vm2, %v3454_v9  ;;  %1333 = vmatmul.f32.gmra.mxu1 %v3457_v29  ;;  %v1423_v9 = vld [vmem:[#allocation2 + $0x788] sm:$0xff]  ;;  %v1442_v29 = vld [vmem:[#allocation2 + $0x820] sm:$0xff] }
 0x147   : > { %v930_v28 = vpop.f32.mrf.mxu0  ;;  %v1439_v25 = vld [vmem:[#allocation2 + $0x808] sm:$0xff]  ;;  %1661 = vmatpush.msrb.mxu1 %v1423_v9  ;;  %1737 = vmatpush.msrb.mxu0 %v1442_v29  ;;  %v3661_v9 = vsel %vm1498_vm4, %v1515_v19, %v1519_v32  ;;  %v1433_v29 = vld [vmem:[#allocation2 + $0x7d8] sm:$0xff] }
 0x148   : > { %v931_v37 = vadd.f32 %v930_v28, %v3448_v42  ;;  %1781 = vmatpush.msrb.mxu2 %v1481_v11  ;;  %v3664_v42 = vsel %vm1498_vm4, %v1513_v62, %v1517_v53  ;;  %v1469_v19 = vld [vmem:[#allocation2 + $0x8f8] sm:$0xff] }
 0x149   : > { %v892_v61 = vpop.f32.mrf.mxu3  ;;  %1662 = vmatpush.msrb.mxu1 %v1420_v17  ;;  %1738 = vmatpush.msrb.mxu0 %v1439_v25  ;;  %v1523_v17 = vrot.slane %v3465_v45, 3  ;;  %v3674_v25 = vld [vmem:[%s3047_s30 + $0x60] sm:$0xff]  ;;  %v1424_v45 = vld [vmem:[#allocation2 + $0x790] sm:$0xff] }
 0x14a   : > { %v3644_v10 = vadd.f32 %v892_v61, %v852_v5  ;;  %2750 = vmatmul.msk.f32.gmra.mxu2 %vm441_vm2, %v3638_v43  ;;  %1591 = vmatmul.f32.gmra.mxu0 %v3641_v36  ;;  %v1472_v61 = vld [vmem:[#allocation2 + $0x910] sm:$0xff] }
 0x14b   : > { %v854_v38 = vpop.f32.mrf.mxu1  ;;  %1782 = vmatpush.msrb.mxu2 %v1478_v39  ;;  %1663 = vmatpush.msrb.mxu1 %v1417_v54  ;;  %v1466_v39 = vld [vmem:[#allocation2 + $0x8e0] sm:$0xff] }
 0x14c   : > { %v855_v28 = vadd.f32 %v854_v38, %v3344_v49  ;;  %1739 = vmatpush.msrb.mxu0 %v1436_v27  ;;  %v1521_v49 = vrot.slane %v3674_v25, 3 }
 0x14d   : > { %v971_v21 = vpop.f32.mrf.mxu2  ;;  %1783 = vmatpush.msrb.mxu2 %v1475_v46  ;;  %v3684_v46 = vsel %vm1498_vm4, %v1519_v32, %v1523_v17  ;;  %v1527_v32 = vrot.slane %v3488_v47, 3 }
 0x14e   : > { %v3655_v13 = vadd.f32 %v971_v21, %v931_v37  ;;  %2743 = vmatmul.msk.f32.gmra.mxu3 %vm441_vm2, %v3477_v2  ;;  %1336 = vmatmul.f32.gmra.mxu1 %v3480_v31  ;;  %v1430_v31 = vld [vmem:[#allocation2 + $0x7c0] sm:$0xff]  ;;  %v1427_v37 = vld [vmem:[#allocation2 + $0x7a8] sm:$0xff] }
 0x14f   : > { %v933_v5 = vpop.f32.mrf.mxu0  ;;  %1740 = vmatpush.msrb.mxu0 %v1433_v29  ;;  %1784 = vmatpush.msrb.mxu2 %v1472_v61 }
 0x150   : > { %v934_v38 = vadd.f32 %v933_v5, %v3471_v0  ;;  %v3687_v0 = vsel %vm1498_vm4, %v1517_v53, %v1521_v49  ;;  %v3697_v53 = vld [vmem:[%s3047_s30 + $0x70] sm:$0xff] }
 0x151   : > { %v895_v11 = vpop.f32.mrf.mxu3  ;;  %1741 = vmatpush.msrb.mxu0 %v1430_v31  ;;  %1785 = vmatpush.msrb.mxu2 %v1469_v19 }
 0x152   : > { %v3667_v2 = vadd.f32 %v895_v11, %v855_v28  ;;  %2751 = vmatmul.msk.f32.gmra.mxu2 %vm441_vm2, %v3661_v9  ;;  %1594 = vmatmul.f32.gmra.mxu0 %v3664_v42  ;;  %v1421_v28 = vld [vmem:[#allocation2 + $0x778] sm:$0xff] }
 0x153   : > { %v857_v62 = vpop.f32.mrf.mxu1  ;;  %1742 = vmatpush.msrb.mxu0 %v1427_v37  ;;  %1786 = vmatpush.msrb.mxu2 %v1466_v39  ;;  %v1414_v39 = vld [vmem:[%s3047_s30 + $0x88] sm:$0x7] }
 0x154   : > { %v858_v5 = vadd.f32 %v857_v62, %v3365_v60  ;;  %v1525_v60 = vrot.slane %v3697_v53, 3 }
 0x155   : > { %v974_v54 = vpop.f32.mrf.mxu2  ;;  %1743 = vmatpush.msrb.mxu0 %v1424_v45 }
 0x156   : > { %v3678_v21 = vadd.f32 %v974_v54, %v934_v38  ;;  %2744 = vmatmul.msk.f32.gmra.mxu3 %vm441_vm2, %v3500_v22  ;;  %1339 = vmatmul.f32.gmra.mxu1 %v3503_v26  ;;  %v1418_v22 = vld [vmem:[#allocation2 + $0x760] sm:$0xff]  ;;  %v3707_v38 = vsel %vm1498_vm4, %v1523_v17, %v1527_v32  ;;  %v3710_v47 = vsel %vm1498_vm4, %v1521_v49, %v1525_v60 }
 0x157   : > { %v936_v27 = vpop.f32.mrf.mxu0  ;;  %1744 = vmatpush.msrb.mxu0 %v1421_v28 }
 0x158   : > { %v937_v11 = vadd.f32 %v936_v27, %v3494_v14  ;;  %v1413_v14 = vld [vmem:[%s3047_s30 + $0x80] sm:$0x7] }
 0x159   : > { %v898_v29 = vpop.f32.mrf.mxu3  ;;  %1745 = vmatpush.msrb.mxu0 %v1418_v22  ;;  %v1529_v27 = vrot.slane %v1413_v14, 3  ;;  %v1880_v14 = vld [vmem:[#allocation2 + $0xaf8] sm:$0xff] }
 0x15a   : > { %v3690_v61 = vadd.f32 %v898_v29, %v858_v5  ;;  %2752 = vmatmul.msk.f32.gmra.mxu2 %vm441_vm2, %v3684_v46  ;;  %1597 = vmatmul.f32.gmra.mxu0 %v3687_v0 }
 0x15b   : > { %v860_v26 = vpop.f32.mrf.mxu1  ;;  %v3730_v29 = vsel %vm1498_vm4, %v1525_v60, %v1529_v27  ;;  %v1883_v60 = vld [vmem:[#allocation2 + $0xb10] sm:$0xff] }
 0x15c   : > { %v861_v37 = vadd.f32 %v860_v26, %v3388_v8 }
 0x15d   : > { %v977_v31 = vpop.f32.mrf.mxu2 }
 0x15e   : > { %v3701_v19 = vadd.f32 %v977_v31, %v937_v11  ;;  %2745 = vmatmul.msk.f32.gmra.mxu3 %vm441_vm2, %v3520_v34  ;;  %1342 = vmatmul.f32.gmra.mxu1 %v3523_v51  ;;  %v1531_v51 = vrot.slane %v1414_v39, 3 }
 0x15f   : > { %v939_v62 = vpop.f32.mrf.mxu0 }
 0x160   : > { %v940_v17 = vadd.f32 %v939_v62, %v3514_v1  ;;  %v3727_v28 = vsel %vm1498_vm4, %v1527_v32, %v1531_v51  ;;  %v1886_v62 = vld [vmem:[#allocation2 + $0xb28] sm:$0xff] }
 0x161   : > { %v901_v54 = vpop.f32.mrf.mxu3  ;;  %1990 = vmatpush.msra.mxu1 %v1886_v62  ;;  %v1887_v62 = vld [vmem:[#allocation2 + $0xb30] sm:$0xff] }
 0x162   : > { %v3715_v45 = vadd.f32 %v901_v54, %v861_v37  ;;  %2753 = vmatmul.msk.f32.gmra.mxu2 %vm441_vm2, %v3707_v38  ;;  %1600 = vmatmul.f32.gmra.mxu0 %v3710_v47 }
 0x163   : > { %v1158_v34 = vpop.f32.mrf.mxu1  ;;  %1991 = vmatpush.msra.mxu1 %v1883_v60  ;;  %2072 = vmatpush.msra.mxu0 %v1887_v62  ;;  %v1914_v62 = vld [vmem:[#allocation2 + $0xc08] sm:$0xff] }
 0x165   : > { %v980_v5 = vpop.f32.mrf.mxu2  ;;  %1992 = vmatpush.msra.mxu1 %v1880_v14  ;;  %v1904_v14 = vld [vmem:[#allocation2 + $0xbb8] sm:$0xff] }
 0x166   : > { %v3721_v49 = vadd.f32 %v980_v5, %v940_v17  ;;  %2756 = vmatmul.msk.f32.vlgmr.msrb.gmra.mxu3 %vm441_vm2, %v3563_v40  ;;  %1664 = vmatmul.f32.vlgmr.msrb.gmra.mxu1 %v3566_v48  ;;  %v1874_v17 = vld [vmem:[#allocation2 + $0xac8] sm:$0xff]  ;;  %v1913_v5 = vld [vmem:[#allocation2 + $0xc00] sm:$0xff] }
 0x167   : > { %v942_v8 = vpop.f32.mrf.mxu0 }
 0x168   : > { %v943_v11 = vadd.f32 %v942_v8, %v3532_v18 }
 0x169   : > { %v1199_v22 = vpop.f32.mrf.mxu3 }
 0x16a   : > { %v1200_v26 = vadd.f32 %v1199_v22, %v1158_v34  ;;  %2754 = vmatmul.msk.f32.gmra.mxu2 %vm441_vm2, %v3727_v28  ;;  %1603 = vmatmul.f32.gmra.mxu0 %v3730_v29  ;;  %v1877_v34 = vld [vmem:[#allocation2 + $0xae0] sm:$0xff] }
 0x16b   : > { %v1161_v1 = vpop.f32.mrf.mxu1  ;;  %1993 = vmatpush.msra.mxu1 %v1877_v34  ;;  %v1901_v34 = vld [vmem:[#allocation2 + $0xba0] sm:$0xff] }
 0x16c   : > { %v3737_v31 = vadd.f32 %v1200_v26, %v3412_v50  ;;  %v1916_v50 = vld [vmem:[#allocation2 + $0xc18] sm:$0xf] }
 0x16d   : > { %v983_v37 = vpop.f32.mrf.mxu2  ;;  %2773 = vmatpush.msk.msra.mxu3 %vm458_vm0, %v1916_v50  ;;  %1994 = vmatpush.msra.mxu1 %v1874_v17  ;;  %v1862_v50 = vld [vmem:[#allocation2 + $0xa68] sm:$0xff]  ;;  %v1881_v17 = vld [vmem:[#allocation2 + $0xb00] sm:$0xff] }
 0x16e   : > { %v3739_v32 = vadd.f32 %v983_v37, %v943_v11  ;;  %2757 = vmatmul.msk.f32.gmra.mxu3 %vm441_vm2, %v3587_v15  ;;  %1667 = vmatmul.f32.gmra.mxu1 %v3590_v4  ;;  %v1907_v11 = vld [vmem:[#allocation2 + $0xbd0] sm:$0xff] }
 0x16f   : > { %v1240_v39 = vpop.f32.mrf.mxu0  ;;  %2038 = vmatpush.msra.mxu3 %v1913_v5 }
 0x171   : > { %v1202_v54 = vpop.f32.mrf.mxu3 }
 0x172   : > { %v1203_v18 = vadd.f32 %v1202_v54, %v1161_v1  ;;  %2765 = vmatmul.msk.f32.vlgmr.msrb.gmra.mxu2 %vm441_vm2, %v3563_v40  ;;  %1746 = vmatmul.f32.vlgmr.msrb.gmra.mxu0 %v3566_v48  ;;  %v1871_v40 = vld [vmem:[#allocation2 + $0xab0] sm:$0xff]  ;;  %v1910_v48 = vld [vmem:[#allocation2 + $0xbe8] sm:$0xff]  ;;  %v1884_v54 = vld [vmem:[#allocation2 + $0xb18] sm:$0xff] }
 0x173   : > { %v1164_v51 = vpop.f32.mrf.mxu1  ;;  %1995 = vmatpush.msra.mxu1 %v1871_v40  ;;  %2039 = vmatpush.msra.mxu3 %v1910_v48  ;;  %v1856_v48 = vld [vmem:[#allocation2 + $0xa38] sm:$0xff] }
 0x174   : > { %v3749_v27 = vadd.f32 %v1203_v18, %v3435_v7  ;;  %v1868_v7 = vld [vmem:[#allocation2 + $0xa98] sm:$0xff]  ;;  %2073 = vmatpush.msra.mxu0 %v1884_v54 }
 0x175   : > { %v1281_v8 = vpop.f32.mrf.mxu2  ;;  %1996 = vmatpush.msra.mxu1 %v1868_v7  ;;  %2040 = vmatpush.msra.mxu3 %v1907_v11  ;;  %v1875_v11 = vld [vmem:[#allocation2 + $0xad0] sm:$0xff] }
 0x176   : > { %v1282_v22 = vadd.f32 %v1281_v8, %v1240_v39  ;;  %2758 = vmatmul.msk.f32.gmra.mxu3 %vm441_vm2, %v3612_v16  ;;  %1670 = vmatmul.f32.gmra.mxu1 %v3615_v41  ;;  %v1865_v39 = vld [vmem:[#allocation2 + $0xa80] sm:$0xff]  ;;  %v1878_v8 = vld [vmem:[#allocation2 + $0xae8] sm:$0xff] }
 0x177   : > { %v1243_v26 = vpop.f32.mrf.mxu0  ;;  %1997 = vmatpush.msra.mxu1 %v1865_v39  ;;  %2041 = vmatpush.msra.mxu3 %v1904_v14  ;;  %v1892_v39 = vld [vmem:[#allocation2 + $0xb58] sm:$0xff] }
 0x178   : > { %v3755_v1 = vadd.f32 %v1282_v22, %v3547_v63  ;;  %2074 = vmatpush.msra.mxu0 %v1881_v17  ;;  %v4399_v14 = vld [vmem:[#allocation8_spill] sm:$0xff] }
 0x179   : > { %v1205_v37 = vpop.f32.mrf.mxu3  ;;  %1998 = vmatpush.msra.mxu1 %v1862_v50  ;;  %2042 = vmatpush.msra.mxu3 %v1901_v34  ;;  %v1872_v50 = vld [vmem:[#allocation2 + $0xab8] sm:$0xff]  ;;  %v1911_v34 = vld [vmem:[#allocation2 + $0xbf0] sm:$0xff] }
 0x17a   : > { %v1206_v60 = vadd.f32 %v1205_v37, %v1164_v51  ;;  %2766 = vmatmul.msk.f32.gmra.mxu2 %vm441_vm2, %v3587_v15  ;;  %1749 = vmatmul.f32.gmra.mxu0 %v3590_v4  ;;  %v1859_v15 = vld [vmem:[#allocation2 + $0xa50] sm:$0xff]  ;;  %v1898_v4 = vld [vmem:[#allocation2 + $0xb88] sm:$0xff] }
 0x17b   : > { %v1167_v18 = vpop.f32.mrf.mxu1  ;;  %1999 = vmatpush.msra.mxu1 %v1859_v15  ;;  %2043 = vmatpush.msra.mxu3 %v1898_v4 }
 0x17c   : > { %v3761_v63 = vadd.f32 %v1206_v60, %v3459_v20  ;;  %v1917_v20 = vld [vmem:[#allocation2 + $0xc20] sm:$0xf]  ;;  %2075 = vmatpush.msra.mxu0 %v1878_v8  ;;  %v1847_v8 = vld [vmem:[#allocation2 + $0x9f0] sm:$0xff] }
 0x17d   : > { %v1284_v5 = vpop.f32.mrf.mxu2  ;;  %2782 = vmatpush.msk.msra.mxu2 %vm458_vm0, %v1917_v20  ;;  %v1853_v60 = vld [vmem:[#allocation2 + $0xa20] sm:$0xff]  ;;  %2000 = vmatpush.msra.mxu1 %v1856_v48  ;;  %v1866_v20 = vld [vmem:[#allocation2 + $0xa88] sm:$0xff] }
 0x17e   : > { %v1285_v51 = vadd.f32 %v1284_v5, %v1243_v26  ;;  %2759 = vmatmul.msk.f32.gmra.mxu3 %vm441_vm2, %v3638_v43  ;;  %1673 = vmatmul.f32.gmra.mxu1 %v3641_v36  ;;  %v1895_v26 = vld [vmem:[#allocation2 + $0xb70] sm:$0xff]  ;;  %v1889_v5 = vld [vmem:[#allocation2 + $0xb40] sm:$0xff] }
 0x17f   : > { %v1246_v22 = vpop.f32.mrf.mxu0  ;;  %2044 = vmatpush.msra.mxu3 %v1895_v26  ;;  %2076 = vmatpush.msra.mxu0 %v1875_v11  ;;  %v1863_v11 = vld [vmem:[#allocation2 + $0xa70] sm:$0xff] }
 0x180   : > { %v3767_v40 = vadd.f32 %v1285_v51, %v3569_v23  ;;  %2120 = vmatpush.msra.mxu2 %v1914_v62  ;;  %2001 = vmatpush.msra.mxu1 %v1853_v60  ;;  %v1908_v51 = vld [vmem:[#allocation2 + $0xbd8] sm:$0xff]  ;;  %v1841_v60 = vld [vmem:[#allocation2 + $0x9c0] sm:$0xff] }
 0x181   : > { %v1208_v7 = vpop.f32.mrf.mxu3  ;;  %2045 = vmatpush.msra.mxu3 %v1892_v39  ;;  %2077 = vmatpush.msra.mxu0 %v1872_v50  ;;  %v1857_v50 = vld [vmem:[#allocation2 + $0xa40] sm:$0xff] }
 0x182   : > { %4398 = vst [vmem:[#allocation9_spill] sm:$0xff] %v3767_v40  ;;  %v1209_v37 = vadd.f32 %v1208_v7, %v1167_v18  ;;  %2767 = vmatmul.msk.f32.gmra.mxu2 %vm441_vm2, %v3612_v16  ;;  %1752 = vmatmul.f32.gmra.mxu0 %v3615_v41  ;;  %v1850_v18 = vld [vmem:[#allocation2 + $0xa08] sm:$0xff]  ;;  %v1869_v41 = vld [vmem:[#allocation2 + $0xaa0] sm:$0xff]  ;;  %v1844_v7 = vld [vmem:[#allocation2 + $0x9d8] sm:$0xff] }
 0x183   : > { %v1170_v23 = vpop.f32.mrf.mxu1  ;;  %2121 = vmatpush.msra.mxu2 %v1911_v34  ;;  %2002 = vmatpush.msra.mxu1 %v1850_v18  ;;  %v1896_v34 = vld [vmem:[#allocation2 + $0xb78] sm:$0xff] }
 0x184   : > { %v3774_v54 = vadd.f32 %v1209_v37, %v4399_v14  ;;  %2046 = vmatpush.msra.mxu3 %v1889_v5  ;;  %2078 = vmatpush.msra.mxu0 %v1869_v41  ;;  %v1902_v37 = vld [vmem:[#allocation2 + $0xba8] sm:$0xff] }
 0x185   : > { %v1287_v17 = vpop.f32.mrf.mxu2  ;;  %2122 = vmatpush.msra.mxu2 %v1908_v51  ;;  %2003 = vmatpush.msra.mxu1 %v1847_v8  ;;  %v1854_v5 = vld [vmem:[#allocation2 + $0xa28] sm:$0xff] }
 0x186   : > { %v1288_v16 = vadd.f32 %v1287_v17, %v1246_v22  ;;  %2760 = vmatmul.msk.f32.gmra.mxu3 %vm441_vm2, %v3661_v9  ;;  %1676 = vmatmul.f32.gmra.mxu1 %v3664_v42  ;;  %v1905_v22 = vld [vmem:[#allocation2 + $0xbc0] sm:$0xff] }
 0x187   : > { %v1249_v15 = vpop.f32.mrf.mxu0  ;;  %2079 = vmatpush.msra.mxu0 %v1866_v20  ;;  %2123 = vmatpush.msra.mxu2 %v1905_v22 }
 0x188   : > { %v3780_v4 = vadd.f32 %v1288_v16, %v3593_v24  ;;  %2004 = vmatpush.msra.mxu1 %v1844_v7  ;;  %v1893_v16 = vld [vmem:[#allocation2 + $0xb60] sm:$0xff]  ;;  %v1842_v7 = vld [vmem:[#allocation2 + $0x9c8] sm:$0xff] }
 0x189   : > { %v1211_v48 = vpop.f32.mrf.mxu3  ;;  %2080 = vmatpush.msra.mxu0 %v1863_v11  ;;  %2124 = vmatpush.msra.mxu2 %v1902_v37  ;;  %v1837_v37 = vld [vmem:[%s3047_s30 + $0x8] sm:$0xf0] }
 0x18a   : > { %4400 = vst [vmem:[#allocation8_spill] sm:$0xff] %v3780_v4  ;;  %v1212_v26 = vadd.f32 %v1211_v48, %v1170_v23  ;;  %2768 = vmatmul.msk.f32.gmra.mxu2 %vm441_vm2, %v3638_v43  ;;  %1755 = vmatmul.f32.gmra.mxu0 %v3641_v36  ;;  %v1860_v23 = vld [vmem:[#allocation2 + $0xa58] sm:$0xff]  ;;  %v1899_v43 = vld [vmem:[#allocation2 + $0xb90] sm:$0xff]  ;;  %v1845_v48 = vld [vmem:[#allocation2 + $0x9e0] sm:$0xff] }
 0x18b   : > { %v1173_v62 = vpop.f32.mrf.mxu1  ;;  %2005 = vmatpush.msra.mxu1 %v1841_v60  ;;  %2081 = vmatpush.msra.mxu0 %v1860_v23  ;;  %v1836_v60 = vld [vmem:[%s3047_s30] sm:$0xf0] }
 0x18c   : > { %v3786_v24 = vadd.f32 %v1212_v26, %v3507_v33  ;;  %2125 = vmatpush.msra.mxu2 %v1899_v43  ;;  %v1923_v43 = vrot.slane %v1836_v60, 4 }
 0x18d   : > { %v1290_v39 = vpop.f32.mrf.mxu2  ;;  %2082 = vmatpush.msra.mxu0 %v1857_v50 }
 0x18e   : > { %v1291_v14 = vadd.f32 %v1290_v39, %v1249_v15  ;;  %2761 = vmatmul.msk.f32.gmra.mxu3 %vm441_vm2, %v3684_v46  ;;  %1679 = vmatmul.f32.gmra.mxu1 %v3687_v0  ;;  %v1890_v15 = vld [vmem:[#allocation2 + $0xb48] sm:$0xff] }
 0x18f   : > { %v1252_v36 = vpop.f32.mrf.mxu0  ;;  %2126 = vmatpush.msra.mxu2 %v1896_v34  ;;  %2083 = vmatpush.msra.mxu0 %v1854_v5 }
 0x190   : > { %v3792_v33 = vadd.f32 %v1291_v14, %v3619_v58  ;;  %v1851_v58 = vld [vmem:[#allocation2 + $0xa10] sm:$0xff]  ;;  %v2891_v14 = vld [vmem:[%s3047_s30 + $0x18] sm:$0xff] }
 0x191   : > { %v1214_v17 = vpop.f32.mrf.mxu3  ;;  %2127 = vmatpush.msra.mxu2 %v1893_v16  ;;  %2084 = vmatpush.msra.mxu0 %v1851_v58  ;;  %v1929_v58 = vrot.slane %v3576_v6, 4 }
 0x192   : > { %v1215_v18 = vadd.f32 %v1214_v17, %v1173_v62  ;;  %2769 = vmatmul.msk.f32.gmra.mxu2 %vm441_vm2, %v3661_v9  ;;  %1758 = vmatmul.f32.gmra.mxu0 %v3664_v42  ;;  %v1848_v9 = vld [vmem:[#allocation2 + $0x9f8] sm:$0xff] }
 0x193   : > { %v1176_v41 = vpop.f32.mrf.mxu1  ;;  %2128 = vmatpush.msra.mxu2 %v1890_v15  ;;  %2085 = vmatpush.msra.mxu0 %v1848_v9 }
 0x194   : > { %v3798_v51 = vadd.f32 %v1215_v18, %v3525_v3 }
 0x195   : > { %v1293_v8 = vpop.f32.mrf.mxu2  ;;  %2086 = vmatpush.msra.mxu0 %v1845_v48 }
 0x196   : > { %v1294_v20 = vadd.f32 %v1293_v8, %v1252_v36  ;;  %2762 = vmatmul.msk.f32.gmra.mxu3 %vm441_vm2, %v3707_v38  ;;  %1682 = vmatmul.f32.gmra.mxu1 %v3710_v47  ;;  %v1924_v36 = vrot.slane %v3554_v12, 4 }
 0x197   : > { %v1255_v42 = vpop.f32.mrf.mxu0  ;;  %2087 = vmatpush.msra.mxu0 %v1842_v7 }
 0x198   : > { %v3804_v3 = vadd.f32 %v1294_v20, %v3644_v10  ;;  %v3829_v5 = vsel %vm458_vm0, %v1923_v43, %v1924_v36  ;;  %v1915_v43 = vld [vmem:[#allocation2 + $0xc10] sm:$0xff] }
 0x199   : > { %v1217_v22 = vpop.f32.mrf.mxu3 }
 0x19a   : > { %v1218_v26 = vadd.f32 %v1217_v22, %v1176_v41  ;;  %2770 = vmatmul.msk.f32.gmra.mxu2 %vm441_vm2, %v3684_v46  ;;  %1761 = vmatmul.f32.gmra.mxu0 %v3687_v0  ;;  %v1926_v46 = vrot.slane %v1837_v37, 4  ;;  %v1927_v0 = vrot.slane %v2891_v14, 4  ;;  %v2892_v41 = vld [vmem:[%s3047_s30 + $0x28] sm:$0xff] }
 0x19b   : > { %v1179_v11 = vpop.f32.mrf.mxu1  ;;  %v1882_v37 = vld [vmem:[#allocation2 + $0xb08] sm:$0xff] }
 0x19c   : > { %v3810_v62 = vadd.f32 %v1218_v26, %v3537_v52  ;;  %v3826_v17 = vsel %vm458_vm0, %v1926_v46, %v1927_v0  ;;  %v2893_v26 = vld [vmem:[%s3047_s30 + $0x38] sm:$0xff] }
 0x19d   : > { %v1296_v10 = vpop.f32.mrf.mxu2  ;;  %v1935_v7 = vrot.slane %v2893_v26, 4 }
 0x19e   : > { %v1297_v39 = vadd.f32 %v1296_v10, %v1255_v42  ;;  %2763 = vmatmul.msk.f32.gmra.mxu3 %vm441_vm2, %v3727_v28  ;;  %1685 = vmatmul.f32.gmra.mxu1 %v3730_v29  ;;  %v3849_v42 = vsel %vm458_vm0, %v1924_v36, %v1929_v58 }
 0x19f   : > { %v1258_v23 = vpop.f32.mrf.mxu0 }
 0x1a0   : > { %v3820_v52 = vadd.f32 %v1297_v39, %v3667_v2  ;;  %v1918_v39 = vld [vmem:[#allocation2 + $0xc28] sm:$0xf] }
 0x1a1   : > { %v1220_v50 = vpop.f32.mrf.mxu3  ;;  %2791 = vmatpush.msk.msrb.mxu3 %vm458_vm0, %v1918_v39  ;;  %v1858_v39 = vld [vmem:[#allocation2 + $0xa48] sm:$0xff] }
 0x1a2   : > { %v1221_v34 = vadd.f32 %v1220_v50, %v1179_v11  ;;  %2771 = vmatmul.msk.f32.gmra.mxu2 %vm441_vm2, %v3707_v38  ;;  %1764 = vmatmul.f32.gmra.mxu0 %v3710_v47  ;;  %v1931_v47 = vrot.slane %v2892_v41, 4  ;;  %v1933_v11 = vrot.slane %v3600_v57, 4  ;;  %v1873_v50 = vld [vmem:[#allocation2 + $0xac0] sm:$0xff] }
 0x1a3   : > { %v1322_v18 = vpop.f32.mrf.mxu1  ;;  %2202 = vmatpush.msrb.mxu3 %v1915_v43  ;;  %v1909_v41 = vld [vmem:[#allocation2 + $0xbe0] sm:$0xff]  ;;  %v1855_v43 = vld [vmem:[#allocation2 + $0xa30] sm:$0xff] }
 0x1a4   : > { %v3832_v16 = vadd.f32 %v1221_v34, %v3557_v55  ;;  %v3846_v55 = vsel %vm458_vm0, %v1927_v0, %v1931_v47  ;;  %v3868_v46 = vsel %vm458_vm0, %v1931_v47, %v1935_v7  ;;  %v3871_v14 = vsel %vm458_vm0, %v1929_v58, %v1933_v11  ;;  %v1876_v0 = vld [vmem:[#allocation2 + $0xad8] sm:$0xff] }
 0x1a5   : > { %v1299_v12 = vpop.f32.mrf.mxu2  ;;  %v1912_v34 = vld [vmem:[#allocation2 + $0xbf8] sm:$0xff] }
 0x1a6   : > { %v1300_v2 = vadd.f32 %v1299_v12, %v1258_v23  ;;  %2774 = vmatmul.msk.f32.vlgmr.msra.gmra.mxu3 %vm441_vm2, %v3826_v17  ;;  %2006 = vmatmul.f32.vlgmr.msra.gmra.mxu1 %v3829_v5  ;;  %v1879_v23 = vld [vmem:[#allocation2 + $0xaf0] sm:$0xff]  ;;  %v2894_v12 = vld [vmem:[%s3047_s30 + $0x48] sm:$0xff] }
 0x1a7   : > { %v1261_v38 = vpop.f32.mrf.mxu0  ;;  %2203 = vmatpush.msrb.mxu3 %v1912_v34 }
 0x1a8   : > { %v3840_v15 = vadd.f32 %v1300_v2, %v3690_v61  ;;  %v1888_v61 = vld [vmem:[#allocation2 + $0xb38] sm:$0xff]  ;;  %v1939_v2 = vrot.slane %v2894_v12, 4 }
 0x1a9   : > { %v1363_v8 = vpop.f32.mrf.mxu3  ;;  %2154 = vmatpush.msrb.mxu1 %v1888_v61  ;;  %2204 = vmatpush.msrb.mxu3 %v1909_v41  ;;  %v1852_v41 = vld [vmem:[#allocation2 + $0xa18] sm:$0xff] }
 0x1aa   : > { %v1364_v20 = vadd.f32 %v1363_v8, %v1322_v18  ;;  %2772 = vmatmul.msk.f32.gmra.mxu2 %vm441_vm2, %v3727_v28  ;;  %1767 = vmatmul.f32.gmra.mxu0 %v3730_v29  ;;  %v1885_v28 = vld [vmem:[#allocation2 + $0xb20] sm:$0xff]  ;;  %v1867_v8 = vld [vmem:[#allocation2 + $0xa90] sm:$0xff] }
 0x1ab   : > { %v1325_v9 = vpop.f32.mrf.mxu1  ;;  %2155 = vmatpush.msrb.mxu1 %v1885_v28  ;;  %v1903_v28 = vld [vmem:[#allocation2 + $0xbb0] sm:$0xff] }
 0x1ac   : > { %v3852_v6 = vadd.f32 %v1364_v20, %v3581_v35  ;;  %v1906_v20 = vld [vmem:[#allocation2 + $0xbc8] sm:$0xff] }
 0x1ad   : > { %v1302_v48 = vpop.f32.mrf.mxu2  ;;  %2156 = vmatpush.msrb.mxu1 %v1882_v37  ;;  %2205 = vmatpush.msrb.mxu3 %v1906_v20  ;;  %v1900_v37 = vld [vmem:[#allocation2 + $0xb98] sm:$0xff] }
 0x1ae   : > { %v1303_v22 = vadd.f32 %v1302_v48, %v1261_v38  ;;  %2775 = vmatmul.msk.f32.gmra.mxu3 %vm441_vm2, %v3846_v55  ;;  %2009 = vmatmul.f32.gmra.mxu1 %v3849_v42  ;;  %v1870_v38 = vld [vmem:[#allocation2 + $0xaa8] sm:$0xff] }
 0x1af   : > { %v3857_v29 = vpop.f32.mrf.mxu0  ;;  %2157 = vmatpush.msrb.mxu1 %v1879_v23  ;;  %2206 = vmatpush.msrb.mxu3 %v1903_v28  ;;  %v1897_v23 = vld [vmem:[#allocation2 + $0xb80] sm:$0xff] }
 0x1b0   : > { %v3862_v35 = vadd.f32 %v1303_v22, %v3715_v45  ;;  %v1864_v22 = vld [vmem:[#allocation2 + $0xa78] sm:$0xff] }
 0x1b1   : > { %v1366_v60 = vpop.f32.mrf.mxu3  ;;  %2158 = vmatpush.msrb.mxu1 %v1876_v0  ;;  %2207 = vmatpush.msrb.mxu3 %v1900_v37 }
 0x1b2   : > { %v1367_v10 = vadd.f32 %v1366_v60, %v1325_v9  ;;  %2783 = vmatmul.msk.f32.vlgmr.msra.gmra.mxu2 %vm441_vm2, %v3826_v17  ;;  %2088 = vmatmul.f32.vlgmr.msra.gmra.mxu0 %v3829_v5  ;;  %v3890_v9 = vsel %vm458_vm0, %v1935_v7, %v1939_v2  ;;  %v1861_v7 = vld [vmem:[#allocation2 + $0xa60] sm:$0xff]  ;;  %v2895_v60 = vld [vmem:[%s3047_s30 + $0x58] sm:$0xff] }
 0x1b3   : > { %v1328_v57 = vpop.f32.mrf.mxu1  ;;  %2159 = vmatpush.msrb.mxu1 %v1873_v50  ;;  %2208 = vmatpush.msrb.mxu3 %v1897_v23  ;;  %v1894_v50 = vld [vmem:[#allocation2 + $0xb68] sm:$0xff] }
 0x1b4   : > { %v3875_v45 = vadd.f32 %v1367_v10, %v3604_v44  ;;  %v1937_v44 = vrot.slane %v3626_v59, 4  ;;  %v1943_v10 = vrot.slane %v2895_v60, 4 }
 0x1b5   : > { %v3877_v36 = vpop.f32.mrf.mxu2  ;;  %2160 = vmatpush.msrb.mxu1 %v1870_v38  ;;  %2209 = vmatpush.msrb.mxu3 %v1894_v50 }
 0x1b6   : > { %2776 = vmatmul.msk.f32.gmra.mxu3 %vm441_vm2, %v3868_v46  ;;  %2012 = vmatmul.f32.gmra.mxu1 %v3871_v14  ;;  %v3893_v61 = vsel %vm458_vm0, %v1933_v11, %v1937_v44  ;;  %v3911_v34 = vsel %vm458_vm0, %v1939_v2, %v1943_v10  ;;  %v1849_v2 = vld [vmem:[#allocation2 + $0xa00] sm:$0xff] }
 0x1b7   : > { %v3882_v18 = vpop.f32.mrf.mxu0  ;;  %2161 = vmatpush.msrb.mxu1 %v1867_v8 }
 0x1b9   : > { %v1369_v47 = vpop.f32.mrf.mxu3  ;;  %2162 = vmatpush.msrb.mxu1 %v1864_v22 }
 0x1ba   : > { %v1370_v58 = vadd.f32 %v1369_v47, %v1328_v57  ;;  %2784 = vmatmul.msk.f32.gmra.mxu2 %vm441_vm2, %v3846_v55  ;;  %2091 = vmatmul.f32.gmra.mxu0 %v3849_v42  ;;  %v1891_v47 = vld [vmem:[#allocation2 + $0xb50] sm:$0xff] }
 0x1bb   : > { %v1331_v59 = vpop.f32.mrf.mxu1  ;;  %2163 = vmatpush.msrb.mxu1 %v1861_v7  ;;  %2210 = vmatpush.msrb.mxu3 %v1891_v47  ;;  %v1843_v7 = vld [vmem:[#allocation2 + $0x9d0] sm:$0xff] }
 0x1bc   : > { %v3896_v48 = vadd.f32 %v1370_v58, %v3630_v30  ;;  %v1941_v30 = vrot.slane %v3651_v56, 4 }
 0x1bd   : > { %v3898_v26 = vpop.f32.mrf.mxu2  ;;  %2164 = vmatpush.msrb.mxu1 %v1858_v39 }
 0x1be   : > { %2777 = vmatmul.msk.f32.gmra.mxu3 %vm441_vm2, %v3890_v9  ;;  %2015 = vmatmul.f32.gmra.mxu1 %v3893_v61  ;;  %v3914_v12 = vsel %vm458_vm0, %v1937_v44, %v1941_v30  ;;  %v2896_v44 = vld [vmem:[%s3047_s30 + $0x68] sm:$0xff] }
 0x1bf   : > { %v3903_v11 = vpop.f32.mrf.mxu0  ;;  %2165 = vmatpush.msrb.mxu1 %v1855_v43  ;;  %v1947_v20 = vrot.slane %v2896_v44, 4  ;;  %v1838_v44 = vld [vmem:[%s3047_s30 + $0x80] sm:$0xf] }
 0x1c1   : > { %v1372_v57 = vpop.f32.mrf.mxu3  ;;  %2166 = vmatpush.msrb.mxu1 %v1852_v41  ;;  %v3932_v37 = vsel %vm458_vm0, %v1943_v10, %v1947_v20  ;;  %v2897_v10 = vld [vmem:[%s3047_s30 + $0x78] sm:$0xff] }
 0x1c2   : > { %v1373_v0 = vadd.f32 %v1372_v57, %v1331_v59  ;;  %2785 = vmatmul.msk.f32.gmra.mxu2 %vm441_vm2, %v3868_v46  ;;  %2094 = vmatmul.f32.gmra.mxu0 %v3871_v14  ;;  %v1945_v59 = vrot.slane %v3674_v25, 4 }
 0x1c3   : > { %v1334_v56 = vpop.f32.mrf.mxu1  ;;  %2167 = vmatpush.msrb.mxu1 %v1849_v2  ;;  %v1839_v2 = vld [vmem:[%s3047_s30 + $0x88] sm:$0xf] }
 0x1c4   : > { %v3917_v38 = vadd.f32 %v1373_v0, %v3655_v13  ;;  %v1846_v13 = vld [vmem:[#allocation2 + $0x9e8] sm:$0xff]  ;;  %v3935_v39 = vsel %vm458_vm0, %v1941_v30, %v1945_v59  ;;  %v1951_v0 = vrot.slane %v2897_v10, 4  ;;  %v1949_v30 = vrot.slane %v3697_v53, 4 }
 0x1c5   : > { %v3919_v58 = vpop.f32.mrf.mxu2  ;;  %2168 = vmatpush.msrb.mxu1 %v1846_v13 }
 0x1c6   : > { %2778 = vmatmul.msk.f32.gmra.mxu3 %vm441_vm2, %v3911_v34  ;;  %2018 = vmatmul.f32.gmra.mxu1 %v3914_v12  ;;  %v3956_v41 = vsel %vm458_vm0, %v1945_v59, %v1949_v30 }
 0x1c7   : > { %v3924_v8 = vpop.f32.mrf.mxu0  ;;  %2169 = vmatpush.msrb.mxu1 %v1843_v7 }
 0x1c9   : > { %v1375_v22 = vpop.f32.mrf.mxu3 }
 0x1ca   : > { %v1376_v28 = vadd.f32 %v1375_v22, %v1334_v56  ;;  %2786 = vmatmul.msk.f32.gmra.mxu2 %vm441_vm2, %v3890_v9  ;;  %2097 = vmatmul.f32.gmra.mxu0 %v3893_v61  ;;  %v1953_v22 = vrot.slane %v1838_v44, 4 }
 0x1cb   : > { %v1337_v60 = vpop.f32.mrf.mxu1 }
 0x1cc   : > { %v3938_v25 = vadd.f32 %v1376_v28, %v3678_v21  ;;  %v3953_v21 = vsel %vm458_vm0, %v1947_v20, %v1951_v0  ;;  %v1955_v20 = vrot.slane %v1839_v2, 4 }
 0x1cd   : > { %v3940_v23 = vpop.f32.mrf.mxu2 }
 0x1ce   : > { %2779 = vmatmul.msk.f32.gmra.mxu3 %vm441_vm2, %v3932_v37  ;;  %2021 = vmatmul.f32.gmra.mxu1 %v3935_v39 }
 0x1cf   : > { %v3945_v57 = vpop.f32.mrf.mxu0 }
 0x1d1   : > { %v1378_v43 = vpop.f32.mrf.mxu3 }
 0x1d2   : > { %v1379_v50 = vadd.f32 %v1378_v43, %v1337_v60  ;;  %2787 = vmatmul.msk.f32.gmra.mxu2 %vm441_vm2, %v3911_v34  ;;  %2100 = vmatmul.f32.gmra.mxu0 %v3914_v12  ;;  %v3977_v60 = vsel %vm458_vm0, %v1949_v30, %v1953_v22 }
 0x1d3   : > { %v1340_v56 = vpop.f32.mrf.mxu1 }
 0x1d4   : > { %v3959_v47 = vadd.f32 %v1379_v50, %v3701_v19  ;;  %v3974_v19 = vsel %vm458_vm0, %v1951_v0, %v1955_v20 }
 0x1d5   : > { %v3963_v53 = vpop.f32.mrf.mxu2 }
 0x1d6   : > { %2780 = vmatmul.msk.f32.gmra.mxu3 %vm441_vm2, %v3953_v21  ;;  %2024 = vmatmul.f32.gmra.mxu1 %v3956_v41 }
 0x1d7   : > { %v3968_v13 = vpop.f32.mrf.mxu0 }
 0x1d9   : > { %v1381_v28 = vpop.f32.mrf.mxu3 }
 0x1da   : > { %v1382_v7 = vadd.f32 %v1381_v28, %v1340_v56  ;;  %2788 = vmatmul.msk.f32.gmra.mxu2 %vm441_vm2, %v3932_v37  ;;  %2103 = vmatmul.f32.gmra.mxu0 %v3935_v39 }
 0x1db   : > { %v1343_v59 = vpop.f32.mrf.mxu1 }
 0x1dc   : > { %v3980_v10 = vadd.f32 %v1382_v7, %v3721_v49 }
 0x1dd   : > { %v3982_v43 = vpop.f32.mrf.mxu2 }
 0x1de   : > { %2781 = vmatmul.msk.f32.gmra.mxu3 %vm441_vm2, %v3974_v19  ;;  %2027 = vmatmul.f32.gmra.mxu1 %v3977_v60 }
 0x1df   : > { %v3987_v50 = vpop.f32.mrf.mxu0 }
 0x1e1   : > { %v1384_v56 = vpop.f32.mrf.mxu3 }
 0x1e2   : > { %v1385_v2 = vadd.f32 %v1384_v56, %v1343_v59  ;;  %2789 = vmatmul.msk.f32.gmra.mxu2 %vm441_vm2, %v3953_v21  ;;  %2106 = vmatmul.f32.gmra.mxu0 %v3956_v41 }
 0x1e3   : > { %v3992_v0 = vpop.f32.mrf.mxu1 }
 0x1e4   : > { %v3995_v49 = vadd.f32 %v1385_v2, %v3739_v32 }
 0x1e5   : > { %v3997_v30 = vpop.f32.mrf.mxu2 }
 0x1e6   : > { %2792 = vmatmul.msk.f32.vlgmr.msrb.gmra.mxu3 %vm441_vm2, %v3826_v17  ;;  %2170 = vmatmul.f32.vlgmr.msrb.gmra.mxu1 %v3829_v5 }
 0x1e7   : > { %v4002_v44 = vpop.f32.mrf.mxu0 }
 0x1e9   : > { %v4004_v20 = vpop.f32.mrf.mxu3 }
 0x1ea   : > { %2790 = vmatmul.msk.f32.gmra.mxu2 %vm441_vm2, %v3974_v19  ;;  %2109 = vmatmul.f32.gmra.mxu0 %v3977_v60 }
 0x1eb   : > { %v4009_v22 = vpop.f32.mrf.mxu1 }
 0x1ec   : > { %4401 = vst [vmem:[#allocation10_spill] sm:$0xff] %v4009_v22 }
 0x1ed   : > { %v4011_v32 = vpop.f32.mrf.mxu2 }
 0x1ee   : > { %2793 = vmatmul.msk.f32.gmra.mxu3 %vm441_vm2, %v3846_v55  ;;  %2173 = vmatmul.f32.gmra.mxu1 %v3849_v42 }
 0x1ef   : > { %v4016_v17 = vpop.f32.mrf.mxu0 }
 0x1f1   : > { %v4018_v5 = vpop.f32.mrf.mxu3 }
 0x1f2   : > { %4402 = vst [vmem:[#allocation11_spill] sm:$0xff] %v4018_v5 }
 0x1f3   : > { %v4020_v28 = vpop.f32.mrf.mxu1 }
 0x1f4   : > { %4403 = vst [vmem:[#allocation12_spill] sm:$0xff] %v4020_v28 }
 0x1f5   : > { %v4022_v7 = vpop.f32.mrf.mxu2 }
 0x1f6   : > { %2794 = vmatmul.msk.f32.gmra.mxu3 %vm441_vm2, %v3868_v46  ;;  %2176 = vmatmul.f32.gmra.mxu1 %v3871_v14 }
 0x1f7   : > { %v1750_v59 = vpop.f32.mrf.mxu0 }
 0x1f9   : > { %v4027_v56 = vpop.f32.mrf.mxu3 }
 0x1fa   : > { %4404 = vst [vmem:[#allocation13_spill] sm:$0xff] %v4027_v56 }
 0x1fb   : > { %v1674_v2 = vpop.f32.mrf.mxu1 }
 0x1fd   : > { %v1791_v55 = vpop.f32.mrf.mxu2 }
 0x1fe   : > { %v1792_v40 = vadd.f32 %v1791_v55, %v1750_v59  ;;  %2795 = vmatmul.msk.f32.gmra.mxu3 %vm441_vm2, %v3890_v9  ;;  %2179 = vmatmul.f32.gmra.mxu1 %v3893_v61 }
 0x1ff   : > { %v1753_v42 = vpop.f32.mrf.mxu0 }
 0x200   : > { %v4033_v4 = vadd.f32 %v1792_v40, %v3875_v45 }
 0x201   : > { %v1715_v5 = vpop.f32.mrf.mxu3 }
 0x202   : > { %4405 = vst [vmem:[#allocation14_spill] sm:$0xff] %v4033_v4  ;;  %v1716_v22 = vadd.f32 %v1715_v5, %v1674_v2 }
 0x203   : > { %v1677_v46 = vpop.f32.mrf.mxu1 }
 0x204   : > { %v4036_v14 = vadd.f32 %v1716_v22, %v3792_v33 }
 0x205   : > { %v1794_v28 = vpop.f32.mrf.mxu2 }
 0x206   : > { %4406 = vst [vmem:[#allocation15_spill] sm:$0xff] %v4036_v14  ;;  %v1795_v56 = vadd.f32 %v1794_v28, %v1753_v42  ;;  %2796 = vmatmul.msk.f32.gmra.mxu3 %vm441_vm2, %v3911_v34  ;;  %2182 = vmatmul.f32.gmra.mxu1 %v3914_v12 }
 0x207   : > { %v1756_v9 = vpop.f32.mrf.mxu0 }
 0x208   : > { %v4042_v61 = vadd.f32 %v1795_v56, %v3896_v48 }
 0x209   : > { %v1718_v59 = vpop.f32.mrf.mxu3 }
 0x20a   : > { %4407 = vst [vmem:[#allocation16_spill] sm:$0xff] %v4042_v61  ;;  %v1719_v40 = vadd.f32 %v1718_v59, %v1677_v46  ;;  %v1640_v61 = vadd.f32 %v3982_v43, %v3968_v13 }
 0x20b   : > { %v1680_v45 = vpop.f32.mrf.mxu1 }
 0x20c   : > { %v4045_v5 = vadd.f32 %v1719_v40, %v3804_v3  ;;  %v1827_v13 = vadd.f32 %v1640_v61, %v3798_v51  ;;  %v1628_v51 = vadd.f32 %v3898_v26, %v3882_v18 }
 0x20d   : > { %v1797_v2 = vpop.f32.mrf.mxu2 }
 0x20e   : > { %v1798_v33 = vadd.f32 %v1797_v2, %v1756_v9  ;;  %2797 = vmatmul.msk.f32.gmra.mxu3 %vm441_vm2, %v3932_v37  ;;  %2185 = vmatmul.f32.gmra.mxu1 %v3935_v39 }
 0x20f   : > { %v1759_v34 = vpop.f32.mrf.mxu0 }
 0x210   : > { %v4051_v12 = vadd.f32 %v1798_v33, %v3917_v38 }
 0x211   : > { %v1721_v22 = vpop.f32.mrf.mxu3 }
 0x212   : > { %4408 = vst [vmem:[#allocation17_spill] sm:$0xff] %v4051_v12  ;;  %v1722_v48 = vadd.f32 %v1721_v22, %v1680_v45 }
 0x213   : > { %v1683_v28 = vpop.f32.mrf.mxu1 }
 0x214   : > { %v4054_v56 = vadd.f32 %v1722_v48, %v3820_v52 }
 0x215   : > { %v1800_v55 = vpop.f32.mrf.mxu2 }
 0x216   : > { %v1801_v3 = vadd.f32 %v1800_v55, %v1759_v34  ;;  %2798 = vmatmul.msk.f32.gmra.mxu3 %vm441_vm2, %v3953_v21  ;;  %2188 = vmatmul.f32.gmra.mxu1 %v3956_v41 }
 0x217   : > { %v1762_v37 = vpop.f32.mrf.mxu0 }
 0x218   : > { %v4060_v39 = vadd.f32 %v1801_v3, %v3938_v25 }
 0x219   : > { %v1724_v42 = vpop.f32.mrf.mxu3 }
 0x21a   : > { %4409 = vst [vmem:[#allocation18_spill] sm:$0xff] %v4060_v39  ;;  %v1725_v38 = vadd.f32 %v1724_v42, %v1683_v28 }
 0x21b   : > { %v1686_v46 = vpop.f32.mrf.mxu1 }
 0x21c   : > { %v4063_v9 = vadd.f32 %v1725_v38, %v3840_v15  ;;  %v1625_v15 = vadd.f32 %v3877_v36, %v3857_v29  ;;  %v1707_v36 = vadd.f32 %v4004_v20, %v3992_v0 }
 0x21d   : > { %v1803_v59 = vpop.f32.mrf.mxu2 }
 0x21e   : > { %v1804_v52 = vadd.f32 %v1803_v59, %v1762_v37  ;;  %2799 = vmatmul.msk.f32.gmra.mxu3 %vm441_vm2, %v3974_v19  ;;  %2191 = vmatmul.f32.gmra.mxu1 %v3977_v60  ;;  %v1812_v48 = vadd.f32 %v1625_v15, %v3737_v31  ;;  %v1813_v31 = vadd.f32 %v1707_v36, %v3755_v1 }
 0x21f   : > { %v1765_v21 = vpop.f32.mrf.mxu0 }
 0x220   : > { %v4069_v41 = vadd.f32 %v1804_v52, %v3959_v47 }
 0x221   : > { %v1727_v40 = vpop.f32.mrf.mxu3 }
 0x222   : > { %4410 = vst [vmem:[#allocation19_spill] sm:$0xff] %v4069_v41  ;;  %v1728_v25 = vadd.f32 %v1727_v40, %v1686_v46 }
 0x223   : > { %v2007_v45 = vpop.f32.mrf.mxu1 }
 0x224   : > { %v4072_v2 = vadd.f32 %v1728_v25, %v3862_v35 }
 0x225   : > { %v1806_v33 = vpop.f32.mrf.mxu2 }
 0x226   : > { %v1807_v34 = vadd.f32 %v1806_v33, %v1765_v21 }
 0x227   : > { %v1768_v22 = vpop.f32.mrf.mxu0 }
 0x228   : > { %v4077_v19 = vadd.f32 %v1807_v34, %v3980_v10 }
 0x229   : > { %v2048_v60 = vpop.f32.mrf.mxu3 }
 0x22a   : > { %4411 = vst [vmem:[#allocation20_spill] sm:$0xff] %v4077_v19  ;;  %v2049_v47 = vadd.f32 %v2048_v60, %v2007_v45 }
 0x22b   : > { %v4080_v28 = vpop.f32.mrf.mxu1 }
 0x22c   : > { %v4082_v55 = vadd.f32 %v2049_v47, %v1812_v48 }
 0x22d   : > { %v1809_v3 = vpop.f32.mrf.mxu2 }
 0x22e   : > { %v1810_v35 = vadd.f32 %v1809_v3, %v1768_v22 }
 0x22f   : > { %v2089_v37 = vpop.f32.mrf.mxu0 }
 0x230   : > { %v4085_v42 = vadd.f32 %v1810_v35, %v3995_v49 }
 0x231   : > { %v4087_v29 = vpop.f32.mrf.mxu3 }
 0x232   : > { %4412 = vst [vmem:[#allocation21_spill] sm:$0xff] %v4085_v42  ;;  %v1637_v42 = vadd.f32 %v3963_v53, %v3945_v57  ;;  %v2052_v18 = vadd.f32 %v4087_v29, %v4080_v28 }
 0x233   : > { %v2013_v10 = vpop.f32.mrf.mxu1 }
 0x234   : > { %v1824_v57 = vadd.f32 %v1637_v42, %v3786_v24  ;;  %v1815_v42 = vadd.f32 %v1628_v51, %v3749_v27 }
 0x235   : > { %v2130_v38 = vpop.f32.mrf.mxu2 }
 0x236   : > { %v2131_v46 = vadd.f32 %v2130_v38, %v2089_v37  ;;  %v1646_v38 = vadd.f32 %v4011_v32, %v4002_v44  ;;  %v2260_v32 = vlaneseq  ;;  %v4160_v28 = vadd.f32 %v2052_v18, %v1815_v42 }
 0x237   : > { %v4092_v59 = vpop.f32.mrf.mxu0 }
 0x238   : > { %v4094_v52 = vadd.f32 %v2131_v46, %v1813_v31  ;;  %v1643_v31 = vadd.f32 %v3997_v30, %v3987_v50  ;;  %v1833_v12 = vadd.f32 %v1646_v38, %v3832_v16  ;;  %v1634_v50 = vadd.f32 %v3940_v23, %v3924_v8 }
 0x239   : > { %v2054_v21 = vpop.f32.mrf.mxu3  ;;  %v1789_v16 = vadd.f32 %v4022_v7, %v4016_v17  ;;  %v4137_v17 = vshrl.u32 %v2260_v32, 7 }
 0x23a   : > { %4413 = vst [vmem:[#allocation22_spill] sm:$0xff] %v4094_v52  ;;  %v1830_v52 = vadd.f32 %v1643_v31, %v3810_v62  ;;  %v1631_v62 = vadd.f32 %v3919_v58, %v3903_v11  ;;  %v1821_v8 = vadd.f32 %v1634_v50, %v3774_v54  ;;  %v2055_v61 = vadd.f32 %v2054_v21, %v2013_v10 }
 0x23b   : > { %v2016_v40 = vpop.f32.mrf.mxu1  ;;  %v1814_v7 = vadd.f32 %v1789_v16, %v3852_v6  ;;  %v2264_v27 = vadd.s32 8, %v4137_v17 }
 0x23d   : > { %v4096_v25 = vpop.f32.mrf.mxu2 }
 0x23e   : > { %v2134_v31 = vadd.f32 %v4096_v25, %v4092_v59 }
 0x23f   : > { %v4098_v49 = vpop.f32.mrf.mxu0 }
 0x241   : > { %v2057_v45 = vpop.f32.mrf.mxu3 }
 0x242   : > { %v2058_v53 = vadd.f32 %v2057_v45, %v2016_v40 }
 0x243   : > { %v2019_v33 = vpop.f32.mrf.mxu1 }
 0x244   : > { %v4148_v54 = vadd.f32 %v2058_v53, %v1821_v8  ;;  %v2266_v8 = vadd.s32 24, %v4137_v17 }
 0x245   : > { %v4100_v15 = vpop.f32.mrf.mxu2 }
 0x247   : > { %v4102_v0 = vpop.f32.mrf.mxu0 }
 0x249   : > { %v2060_v20 = vpop.f32.mrf.mxu3 }
 0x24a   : > { %v2061_v43 = vadd.f32 %v2060_v20, %v2019_v33  ;;  %v4415_v33 = vld [vmem:[#allocation13_spill] sm:$0xff] }
 0x24b   : > { %v2022_v34 = vpop.f32.mrf.mxu1 }
 0x24d   : > { %v4104_v1 = vpop.f32.mrf.mxu2 }
 0x24f   : > { %v4106_v22 = vpop.f32.mrf.mxu0 }
 0x251   : > { %v2063_v60 = vpop.f32.mrf.mxu3 }
 0x252   : > { %v2064_v14 = vadd.f32 %v2063_v60, %v2022_v34  ;;  %v2140_v60 = vadd.f32 %v4104_v1, %v4102_v0  ;;  %v4417_v0 = vld [vmem:[#allocation11_spill] sm:$0xff] }
 0x253   : > { %v2025_v48 = vpop.f32.mrf.mxu1 }
 0x255   : > { %v2142_v47 = vpop.f32.mrf.mxu2 }
 0x257   : > { %v2104_v3 = vpop.f32.mrf.mxu0 }
 0x259   : > { %v2066_v35 = vpop.f32.mrf.mxu3 }
 0x25a   : > { %v2067_v39 = vadd.f32 %v2066_v35, %v2025_v48  ;;  %v4416_v35 = vld [vmem:[#allocation10_spill] sm:$0xff] }
 0x25b   : > { %v2028_v37 = vpop.f32.mrf.mxu1  ;;  %v1710_v1 = vadd.f32 %v4417_v0, %v4416_v35  ;;  %v4426_v35 = vld [vmem:[#allocation17_spill] sm:$0xff] }
 0x25c   : > { %v4125_v48 = vadd.f32 %v2067_v39, %v1830_v52  ;;  %v4140_v39 = vadd.f32 %v2061_v43, %v1824_v57  ;;  %v4421_v57 = vld [vmem:[#allocation22_spill] sm:$0xff] }
 0x25d   : > { %v2145_v36 = vpop.f32.mrf.mxu2 }
 0x25e   : > { %v2146_v29 = vadd.f32 %v2145_v36, %v2104_v3  ;;  %v4418_v36 = vld [vmem:[#allocation8_spill] sm:$0xff] }
 0x25f   : > { %v2107_v4 = vpop.f32.mrf.mxu0 }
 0x260   : > { %v4186_v3 = vadd.f32 %v2146_v29, %v4054_v56  ;;  %v2137_v56 = vadd.f32 %v4100_v15, %v4098_v49  ;;  %v4420_v15 = vld [vmem:[#allocation9_spill] sm:$0xff] }
 0x261   : > { %v2069_v46 = vpop.f32.mrf.mxu3  ;;  %v4422_v29 = vld [vmem:[#allocation21_spill] sm:$0xff] }
 0x262   : > { %v2070_v41 = vadd.f32 %v2069_v46, %v2028_v37  ;;  %v4419_v46 = vld [vmem:[#allocation15_spill] sm:$0xff] }
 0x263   : > { %v2171_v19 = vpop.f32.mrf.mxu1  ;;  %v4209_v50 = vadd.f32 %v2140_v60, %v4419_v46  ;;  %v4425_v60 = vld [vmem:[#allocation18_spill] sm:$0xff] }
 0x264   : > { %v4118_v44 = vadd.f32 %v2070_v41, %v1833_v12  ;;  %v4131_v12 = vadd.f32 %v2064_v14, %v1827_v13  ;;  %v1818_v14 = vadd.f32 %v1631_v62, %v3761_v63  ;;  %v4153_v41 = vand.u32 127, %v2260_v32 }
 0x265   : > { %v2148_v30 = vpop.f32.mrf.mxu2  ;;  %v1816_v32 = vadd.f32 %v1710_v1, %v4420_v15  ;;  %v4427_v1 = vld [vmem:[#allocation16_spill] sm:$0xff] }
 0x266   : > { %2312 = vmatpush.msrb.mxu0 %v4118_v44  ;;  %v4157_v10 = vadd.f32 %v2055_v61, %v1818_v14  ;;  %v2149_v52 = vadd.f32 %v2148_v30, %v2107_v4  ;;  %v2143_v4 = vadd.f32 %v2142_v47, %v4106_v22  ;;  %v2268_v47 = vmul.u32 2, %v2264_v27 }
 0x267   : > { %v2110_v24 = vpop.f32.mrf.mxu0  ;;  %v4224_v25 = vadd.f32 %v2134_v31, %v1816_v32  ;;  %v2270_v61 = vmul.u32 2, %v2266_v8 }
 0x268   : > { %2313 = vmatpush.msrb.mxu0 %v4125_v48  ;;  %v4174_v45 = vadd.f32 %v2149_v52, %v4063_v9  ;;  %v2978_v9 = vmov 0.0   ;;  %v4201_v37 = vadd.f32 %v2143_v4, %v4045_v5  ;;  %v2280_v30 = vadd.s32 1, %v2268_v47 }
 0x269   : > { %v2212_v23 = vpop.f32.mrf.mxu3  ;;  %vm2272_vm7 = vcmp.eq.s32.totalorder %v4153_v41, %v2268_v47  ;;  %v2265_v5 = vadd.s32 16, %v4137_v17  ;;  %vm2274_vm11 = vcmp.eq.s32.totalorder %v4153_v41, %v2270_v61 }
 0x26a   : > { %v2213_v11 = vadd.f32 %v2212_v23, %v2171_v19  ;;  %2314 = vmatpush.msrb.mxu0 %v4131_v12  ;;  %v2267_v19 = vmul.u32 2, %v4137_v17  ;;  %v4228_v16 = vsel %vm2272_vm7, 1.0, %v2978_v9  ;;  %vm2284_vm8 = vcmp.eq.s32.totalorder %v4153_v41, %v2280_v30  ;;  %v4423_v17 = vld [vmem:[#allocation20_spill] sm:$0xff] }
 0x26b   : > { %v4143_v58 = vpop.f32.mrf.mxu1  ;;  %v2269_v43 = vmul.u32 2, %v2265_v5  ;;  %v4237_v62 = vsel %vm2284_vm8, 1.0, %v2978_v9 }
 0x26c   : > { %v4150_v26 = vadd.f32 %v2213_v11, %v1814_v7  ;;  %2315 = vmatpush.msrb.mxu0 %v4140_v39  ;;  %vm2271_vm5 = vcmp.eq.s32.totalorder %v4153_v41, %v2267_v19 }
 0x26d   : > { %v2151_v6 = vpop.f32.mrf.mxu2  ;;  %v4191_v22 = vsel %vm2271_vm5, 1.0, %v2978_v9  ;;  %v2281_v53 = vadd.s32 1, %v2269_v43  ;;  %vm2273_vm9 = vcmp.eq.s32.totalorder %v4153_v41, %v2269_v43 }
 0x26e   : > { %v2152_v63 = vadd.f32 %v2151_v6, %v2110_v24  ;;  %2316 = vmatpush.msrb.mxu0 %v4148_v54  ;;  %v4250_v7 = vsel %vm2273_vm9, 1.0, %v2978_v9 }
 0x26f   : > { %vm2285_vm10 = vcmp.eq.s32.totalorder %v4153_v41, %v2281_v53 }
 0x270   : > { %v4163_v21 = vadd.f32 %v2152_v63, %v4072_v2  ;;  %2317 = vmatpush.msrb.mxu0 %v4157_v10  ;;  %v4414_v2 = vld [vmem:[#allocation12_spill] sm:$0xff]  ;;  %v4257_v11 = vsel %vm2285_vm10, 1.0, %v2978_v9 }
 0x271   : > { %v4166_v40 = vpop.f32.mrf.mxu3  ;;  %v1713_v20 = vadd.f32 %v4415_v33, %v4414_v2 }
 0x272   : > { %2318 = vmatpush.msrb.mxu0 %v4160_v28  ;;  %2341 = vmatpush.msrb.mxu2 %v4163_v21  ;;  %v2216_v47 = vadd.f32 %v4166_v40, %v4143_v58 }
 0x273   : > { %2827 = vmatpush.msra.mxu1 %v4163_v21  ;;  %v4181_v34 = vpop.f32.mrf.mxu1  ;;  %v1819_v38 = vadd.f32 %v1713_v20, %v4418_v36  ;;  %v4428_v36 = vld [vmem:[#allocation14_spill] sm:$0xff] }
 0x274   : > { %2319 = vmatpush.msrb.mxu0 %v4082_v55  ;;  %2342 = vmatpush.msrb.mxu2 %v4174_v45 }
 0x275   : > { %2828 = vmatpush.msra.mxu1 %v4174_v45  ;;  %2800 = vmatmul.msk.f32.vlgmr.msrb.gmra.mxu0 %vm2291_vm6, %v4191_v22  ;;  %v4218_v13 = vadd.f32 %v2137_v56, %v1819_v38 }
 0x276   : > { %2343 = vmatpush.msrb.mxu2 %v4186_v3 }
 0x277   : > { %2829 = vmatpush.msra.mxu1 %v4186_v3 }
 0x278   : > { %2344 = vmatpush.msrb.mxu2 %v4201_v37 }
 0x279   : > { %2830 = vmatpush.msra.mxu1 %v4201_v37  ;;  %v4213_v49 = vpop.f32.mrf.mxu3 }
 0x27a   : > { %2345 = vmatpush.msrb.mxu2 %v4209_v50  ;;  %v2219_v20 = vadd.f32 %v4213_v49, %v4181_v34  ;;  %v2241_v34 = vadd.f32 %v2216_v47, %v4428_v36 }
 0x27b   : > { %2831 = vmatpush.msra.mxu1 %v4209_v50  ;;  %v4222_v59 = vpop.f32.mrf.mxu1 }
 0x27c   : > { %2346 = vmatpush.msrb.mxu2 %v4218_v13  ;;  %v2244_v56 = vadd.f32 %v2219_v20, %v4427_v1 }
 0x27d   : > { %2832 = vmatpush.msra.mxu1 %v4218_v13  ;;  %2801 = vmatmul.msk.f32.gmra.mxu0 %vm2291_vm6, %v4228_v16 }
 0x27e   : > { %2347 = vmatpush.msrb.mxu2 %v4224_v25 }
 0x27f   : > { %2833 = vmatpush.msra.mxu1 %v4224_v25 }
 0x280   : > { %2348 = vmatpush.msrb.mxu2 %v4421_v57 }
 0x281   : > { %2834 = vmatpush.msra.mxu1 %v4421_v57  ;;  %v2221_v51 = vpop.f32.mrf.mxu3  ;;  %2804 = vmatmul.msk.f32.vlgmr.msrb.gmra.mxu2 %vm2291_vm6, %v4191_v22 }
 0x282   : > { %2411 = vmatpush.msra.mxu2 %v4118_v44  ;;  %2817 = vmatmul.msk.f32.vlgmr.msra.gmra.mxu1 %vm2291_vm6, %v4237_v62  ;;  %v2282_v44 = vadd.s32 1, %v2270_v61  ;;  %v2222_v2 = vadd.f32 %v2221_v51, %v4222_v59 }
 0x283   : > { %v2183_v23 = vpop.f32.mrf.mxu1 }
 0x284   : > { %2412 = vmatpush.msra.mxu2 %v4125_v48  ;;  %vm2286_vm12 = vcmp.eq.s32.totalorder %v4153_v41, %v2282_v44  ;;  %v2247_v0 = vadd.f32 %v2222_v2, %v4426_v35 }
 0x285   : > { %2802 = vmatmul.msk.f32.gmra.mxu0 %vm2291_vm6, %v4250_v7 }
 0x286   : > { %2413 = vmatpush.msra.mxu2 %v4131_v12  ;;  %v4268_v12 = vsel %vm2274_vm11, 1.0, %v2978_v9 }
 0x288   : > { %2414 = vmatpush.msra.mxu2 %v4140_v39  ;;  %v4275_v39 = vsel %vm2286_vm12, 1.0, %v2978_v9 }
 0x289   : > { %v2224_v24 = vpop.f32.mrf.mxu3  ;;  %2805 = vmatmul.msk.f32.gmra.mxu2 %vm2291_vm6, %v4228_v16 }
 0x28a   : > { %2415 = vmatpush.msra.mxu2 %v4148_v54  ;;  %2818 = vmatmul.msk.f32.gmra.mxu1 %vm2291_vm6, %v4257_v11  ;;  %v2279_v54 = vadd.s32 1, %v2267_v19  ;;  %v2225_v4 = vadd.f32 %v2224_v24, %v2183_v23 }
 0x28b   : > { %v2186_v48 = vpop.f32.mrf.mxu1 }
 0x28c   : > { %2416 = vmatpush.msra.mxu2 %v4157_v10  ;;  %vm2283_vm13 = vcmp.eq.s32.totalorder %v4153_v41, %v2279_v54  ;;  %v4424_v41 = vld [vmem:[#allocation19_spill] sm:$0xff] }
 0x28d   : > { %2803 = vmatmul.msk.f32.gmra.mxu0 %vm2291_vm6, %v4268_v12  ;;  %v2287_v42 = vsel %vm2283_vm13, 1.0, %v2978_v9  ;;  %v2250_v9 = vadd.f32 %v2225_v4, %v4425_v60 }
 0x28e   : > { %2417 = vmatpush.msra.mxu2 %v4160_v28 }
 0x290   : > { %2418 = vmatpush.msra.mxu2 %v4082_v55 }
 0x291   : > { %v2227_v14 = vpop.f32.mrf.mxu3  ;;  %2806 = vmatmul.msk.f32.gmra.mxu2 %vm2291_vm6, %v4250_v7 }
 0x292   : > { %2819 = vmatmul.msk.f32.gmra.mxu1 %vm2291_vm6, %v4275_v39  ;;  %v2228_v28 = vadd.f32 %v2227_v14, %v2186_v48 }
 0x293   : > { %v2189_v18 = vpop.f32.mrf.mxu1 }
 0x294   : > { %v2253_v33 = vadd.f32 %v2228_v28, %v4424_v41 }
 0x299   : > { %v2230_v6 = vpop.f32.mrf.mxu3  ;;  %2807 = vmatmul.msk.f32.gmra.mxu2 %vm2291_vm6, %v4268_v12 }
 0x29a   : > { %v2231_v52 = vadd.f32 %v2230_v6, %v2189_v18  ;;  %v2546_v18 = vld [vmem:[#allocation4] sm:$0x3] }
 0x29b   : > { %v2192_v55 = vpop.f32.mrf.mxu1  ;;  %v2549_v54 = vperm.slane %v2546_v18, 1  ;;  %v2548_v6 = vperm.slane %v2546_v18, 0 }
 0x29c   : > { %v2256_v19 = vadd.f32 %v2231_v52, %v4423_v17 }
 0x2a1   : > { %v2233_v10 = vpop.f32.mrf.mxu3  ;;  %2812 = vmatmul.msk.f32.vlgmr.msra.gmra.mxu2 %vm2291_vm6, %v2287_v42 }
 0x2a2   : > { %v2234_v63 = vadd.f32 %v2233_v10, %v2192_v55 }
 0x2a4   : > { %v2259_v27 = vadd.f32 %v2234_v63, %v4422_v29 }
 0x2a6   : > { %2370 = vmatpush.msra.mxu0 %v2259_v27  ;;  %2469 = vmatpush.msrb.mxu2 %v2259_v27 }
 0x2a7   : > { %2835 = vmatpush.msra.mxu3 %v2259_v27 }
 0x2a8   : > { %2371 = vmatpush.msra.mxu0 %v2256_v19  ;;  %2470 = vmatpush.msrb.mxu2 %v2256_v19 }
 0x2a9   : > { %2836 = vmatpush.msra.mxu3 %v2256_v19  ;;  %2813 = vmatmul.msk.f32.gmra.mxu2 %vm2291_vm6, %v4237_v62 }
 0x2aa   : > { %2372 = vmatpush.msra.mxu0 %v2253_v33  ;;  %2471 = vmatpush.msrb.mxu2 %v2253_v33 }
 0x2ab   : > { %2837 = vmatpush.msra.mxu3 %v2253_v33 }
 0x2ac   : > { %2373 = vmatpush.msra.mxu0 %v2250_v9  ;;  %2472 = vmatpush.msrb.mxu2 %v2250_v9 }
 0x2ad   : > { %2838 = vmatpush.msra.mxu3 %v2250_v9 }
 0x2ae   : > { %2374 = vmatpush.msra.mxu0 %v2247_v0  ;;  %2473 = vmatpush.msrb.mxu2 %v2247_v0 }
 0x2af   : > { %2839 = vmatpush.msra.mxu3 %v2247_v0 }
 0x2b0   : > { %2375 = vmatpush.msra.mxu0 %v2244_v56  ;;  %2474 = vmatpush.msrb.mxu2 %v2244_v56 }
 0x2b1   : > { %2840 = vmatpush.msra.mxu3 %v2244_v56  ;;  %2814 = vmatmul.msk.f32.gmra.mxu2 %vm2291_vm6, %v4257_v11 }
 0x2b2   : > { %2376 = vmatpush.msra.mxu0 %v2241_v34  ;;  %2475 = vmatpush.msrb.mxu2 %v2241_v34 }
 0x2b3   : > { %2841 = vmatpush.msra.mxu3 %v2241_v34 }
 0x2b4   : > { %2377 = vmatpush.msra.mxu0 %v4150_v26  ;;  %2476 = vmatpush.msrb.mxu2 %v4150_v26 }
 0x2b5   : > { %2842 = vmatpush.msra.mxu3 %v4150_v26  ;;  %2808 = vmatmul.msk.f32.vlgmr.msra.gmra.mxu0 %vm2291_vm6, %v4191_v22 }
 0x2b6   : > { %2440 = vmatpush.msrb.mxu0 %v4163_v21  ;;  %2821 = vmatmul.msk.f32.vlgmr.msra.gmra.mxu3 %vm2291_vm6, %v4237_v62 }
 0x2b8   : > { %2441 = vmatpush.msrb.mxu0 %v4174_v45 }
 0x2b9   : > { %2815 = vmatmul.msk.f32.gmra.mxu2 %vm2291_vm6, %v4275_v39 }
 0x2ba   : > { %2442 = vmatpush.msrb.mxu0 %v4186_v3 }
 0x2bc   : > { %2443 = vmatpush.msrb.mxu0 %v4201_v37 }
 0x2bd   : > { %2809 = vmatmul.msk.f32.gmra.mxu0 %vm2291_vm6, %v4228_v16 }
 0x2be   : > { %2444 = vmatpush.msrb.mxu0 %v4209_v50  ;;  %2822 = vmatmul.msk.f32.gmra.mxu3 %vm2291_vm6, %v4257_v11 }
 0x2c0   : > { %2445 = vmatpush.msrb.mxu0 %v4218_v13 }
 0x2c1   : > { %2820 = vmatmul.msk.f32.vlgmr.msrb.gmra.mxu2 %vm2291_vm6, %v2287_v42 }
 0x2c2   : > { %2446 = vmatpush.msrb.mxu0 %v4224_v25 }
 0x2c4   : > { %2447 = vmatpush.msrb.mxu0 %v4421_v57 }
 0x2c5   : > { %2810 = vmatmul.msk.f32.gmra.mxu0 %vm2291_vm6, %v4250_v7 }
 0x2c6   : > { %2823 = vmatmul.msk.f32.gmra.mxu3 %vm2291_vm6, %v4275_v39 }
 0x2cd   : > { %2811 = vmatmul.msk.f32.gmra.mxu0 %vm2291_vm6, %v4268_v12 }
 0x2d5   : > { %2816 = vmatmul.msk.f32.vlgmr.msrb.gmra.mxu0 %vm2291_vm6, %v2287_v42 }
 0x2f2   : > { %v4334_v21 = vpop.f32.mrf.mxu0 }
 0x2fa   : > { %v2324_v37 = vpop.f32.mrf.mxu0 }
 0x2ff   : > { %v2452_v26 = vpop.f32.mrf.mxu1 }
 0x302   : > { %v2327_v46 = vpop.f32.mrf.mxu0 }
 0x304   : > { %v2350_v58 = vpop.f32.mrf.mxu2 }
 0x307   : > { %v2455_v3 = vpop.f32.mrf.mxu1 }
 0x30a   : > { %v4345_v49 = vpop.f32.mrf.mxu0 }
 0x30c   : > { %v2353_v40 = vpop.f32.mrf.mxu2 }
 0x30d   : > { %v4336_v45 = vmax.f32 %v2353_v40, %v2452_v26 }
 0x30f   : > { %2514 = vrot.lane.b32.xlu1 %v4336_v45, %s2979_s4  ;;  %v2458_v12 = vpop.f32.mrf.mxu1 }
 0x314   : > { %v2356_v22 = vpop.f32.mrf.mxu2 }
 0x315   : > { %v2497_v38 = vmax.f32 %v2356_v22, %v2455_v3 }
 0x317   : > { %2518 = vrot.lane.b32.xlu2 %v2497_v38, %s2979_s4 }
 0x31c   : > { %v2359_v31 = vpop.f32.mrf.mxu2 }
 0x31d   : > { %v2500_v39 = vmax.f32 %v2359_v31, %v2458_v12 }
 0x324   : > { %v4341_v50 = vpop.f32.mrf.mxu2 }
 0x325   : > { %v2490_v30 = vmax.f32 %v4334_v21, %v4341_v50 }
 0x32c   : > { %v2423_v5 = vpop.f32.mrf.mxu2 }
 0x32d   : > { %v2493_v15 = vmax.f32 %v2324_v37, %v2423_v5 }
 0x332   : > { %v2379_v32 = vpop.f32.mrf.mxu0 }
 0x334   : > { %v2426_v13 = vpop.f32.mrf.mxu2 }
 0x335   : > { %v2496_v59 = vmax.f32 %v2327_v46, %v2426_v13 }
 0x339   : > { %v2481_v25 = vpop.f32.mrf.mxu3 }
 0x33a   : > { %v2382_v16 = vpop.f32.mrf.mxu0 }
 0x33b   : > { %v2495_v43 = vmax.f32 %v2382_v16, %v2481_v25 }
 0x33c   : > { %v4347_v62 = vpop.f32.mrf.mxu2 }
 0x33d   : > { %v2499_v57 = vmax.f32 %v4345_v49, %v4347_v62  ;;  %2516 = vrot.lane.b32.xlu1 %v2495_v43, %s2979_s4 }
 0x341   : > { %v2484_v53 = vpop.f32.mrf.mxu3 }
 0x342   : > { %v2385_v51 = vpop.f32.mrf.mxu0 }
 0x343   : > { %v2498_v8 = vmax.f32 %v2385_v51, %v2484_v53 }
 0x344   : > { %v2478_v23 = vpop.f32.mrf.mxu2 }
 0x345   : > { %v2492_v7 = vmax.f32 %v2379_v32, %v2478_v23  ;;  %2520 = vrot.lane.b32.xlu2 %v2498_v8, %s2979_s4 }
 0x347   : > { %2512 = vrot.lane.b32.xlu0 %v2492_v7, %s2979_s4 }
 0x349   : > { %v2487_v61 = vpop.f32.mrf.mxu3 }
 0x34a   : > { %v2388_v11 = vpop.f32.mrf.mxu0 }
 0x34b   : > { %v2501_v44 = vmax.f32 %v2388_v11, %v2487_v61 }
 0x34d   : > { %2524 = vrot.lane.b32.xlu1 %v2501_v44, %s2979_s4 }
 0x352   : > { %v2449_v24 = vpop.f32.mrf.mxu0 }
 0x353   : > { %v2491_v48 = vmax.f32 %v2350_v58, %v2449_v24 }
 0x355   : > { %2510 = vrot.lane.b32.xlu0 %v2491_v48, %s2979_s4 }
 0x35d   : > { %2522 = vrot.lane.b32.xlu0 %v2500_v39, %s2979_s4 }
 0x371   : > { %v2519_v14 = vpop.permute.xlu2 %2518 }
 0x381   : > { %v2515_v4 = vpop.permute.xlu1 %2514 }
 0x39f   : > { %v2521_v42 = vpop.permute.xlu2 %2520 }
 0x3a0   : > { %v2528_v55 = vsel %vm2291_vm6, %v2519_v14, %v2521_v42  ;;  %v2543_v10 = vmax.f32 %v2497_v38, %v2521_v42 }
 0x3a1   : > { %v2542_v52 = vmax.f32 %v2496_v59, %v2528_v55 }
 0x3a2   : > { %v2557_v63 = vadd.f32 %v2549_v54, %v2543_v10 }
 0x3a3   : > { %v2556_v28 = vadd.f32 %v2548_v6, %v2542_v52 }
 0x3a4   : > { %v2565_v29 = vmax.f32 %v2557_v63, 0.0 }
 0x3a5   : > { %v2564_v27 = vmax.f32 %v2556_v28, 0.0 }
 0x3a6   : > { %2573 = vst.msk [vmem:[%s4362_s8 + $0x28] sm:$0xff] %vm2291_vm6, %v2565_v29 }
 0x3a7   : > { %2572 = vst [vmem:[%s4362_s8 + $0x20] sm:$0xff] %v2564_v27 }
 0x3af   : > { %v2517_v17 = vpop.permute.xlu1 %2516 }
 0x3b0   : > { %v2527_v19 = vsel %vm2291_vm6, %v2515_v4, %v2517_v17  ;;  %v2541_v2 = vmax.f32 %v4336_v45, %v2517_v17 }
 0x3b1   : > { %v2540_v41 = vmax.f32 %v2493_v15, %v2527_v19 }
 0x3b2   : > { %v2555_v33 = vadd.f32 %v2549_v54, %v2541_v2 }
 0x3b3   : > { %v2554_v20 = vadd.f32 %v2548_v6, %v2540_v41 }
 0x3b4   : > { %v2563_v60 = vmax.f32 %v2555_v33, 0.0 }
 0x3b5   : > { %v2562_v9 = vmax.f32 %v2554_v20, 0.0 }
 0x3b6   : > { %2571 = vst.msk [vmem:[%s4362_s8 + $0x18] sm:$0xff] %vm2291_vm6, %v2563_v60 }
 0x3b7   : > { %2570 = vst [vmem:[%s4362_s8 + $0x10] sm:$0xff] %v2562_v9 }
 0x3b9   : > { %v2513_v47 = vpop.permute.xlu0 %2512 }
 0x3ba   : > { %v2539_v35 = vmax.f32 %v2491_v48, %v2513_v47 }
 0x3bc   : > { %v2553_v0 = vadd.f32 %v2549_v54, %v2539_v35 }
 0x3be   : > { %v2561_v1 = vmax.f32 %v2553_v0, 0.0 }
 0x3bf   : > { %v2525_v56 = vpop.permute.xlu1 %2524 }
 0x3c0   : > { %2569 = vst.msk [vmem:[%s4362_s8 + $0x8] sm:$0xff] %vm2291_vm6, %v2561_v1  ;;  %v2545_v36 = vmax.f32 %v2500_v39, %v2525_v56 }
 0x3c2   : > { %v2559_v34 = vadd.f32 %v2549_v54, %v2545_v36 }
 0x3c4   : > { %v2567_v58 = vmax.f32 %v2559_v34, 0.0 }
 0x3c6   : > { %2575 = vst.msk [vmem:[%s4362_s8 + $0x38] sm:$0xff] %vm2291_vm6, %v2567_v58 }
 0x3c7   : > { %v2511_v26 = vpop.permute.xlu0 %2510 }
 0x3c8   : > { %v2526_v40 = vsel %vm2291_vm6, %v2511_v26, %v2513_v47 }
 0x3c9   : > { %v2538_v45 = vmax.f32 %v2490_v30, %v2526_v40 }
 0x3cb   : > { %v2552_v3 = vadd.f32 %v2548_v6, %v2538_v45 }
 0x3cd   : > { %v2560_v22 = vmax.f32 %v2552_v3, 0.0 }
 0x3cf   : > { %2568 = vst [vmem:[%s4362_s8] sm:$0xff] %v2560_v22  ;;  %v2523_v37 = vpop.permute.xlu0 %2522 }
 0x3d0   : > { %v2529_v38 = vsel %vm2291_vm6, %v2523_v37, %v2525_v56 }
 0x3d1   : > { %v2544_v31 = vmax.f32 %v2499_v57, %v2529_v38 }
 0x3d3   : > { %v2558_v46 = vadd.f32 %v2548_v6, %v2544_v31 }
 0x3d5   : > { %v2566_v5 = vmax.f32 %v2558_v46, 0.0 }
 0x3d7   : > { %2574 = vst [vmem:[%s4362_s8 + $0x30] sm:$0xff] %v2566_v5 }
 0x3d8 PF: > { %s15_s12 = sadd.s32 1, %s2972_s12  }
 0x3d9   : > { %p12_p7 = scmp.ge.s32.totalorder %s15_s12, 4  }
 0x3db   :  { %14 = sbr.rel (!%p12_p7) target bundleno = 2 (0x2), region = 75 }
 0x3e0   :  { %2597 = vsyncpa [#allocation3], 1 }
 0x3e1   :  { %2599 = vsyncpa [#allocation3 + $0x1], 1 }
 0x3e2   :  { %2600 = vsyncpa [#allocation5], 1 }

// kernel: cnn_feature_extractor_forward.5
= control target key start
LH: loop header
LB: loop body
LE: loop exit
PB: predicated region body
PF: predicated region fallthrough
CT: control target
= control target key end

     0   :  { %s2140_s0 = inlined_call_operand.vmem [shape: f32[2,3136], index: 0, kind: input, shape index: {}]   ;;  %s2141_s1 = inlined_call_operand.hbm [shape: f32[3136,512], index: 1, kind: input, shape index: {}]   ;;  %s2142_s2 = inlined_call_operand.hbm [shape: f32[1,512], index: 2, kind: input, shape index: {}]   ;;  %s2143_s3 = inlined_call_operand.hbm [shape: f32[2,512], index: 3, kind: output, shape index: {}]  }
   0x1   :  { %2144 = sst [smem:[#allocation11_spill]] %s2141_s1 }
   0x2   :  { %8 = vsyncpa [#allocation3], 0 }
   0x3   :  { %10 = vsyncpa [#allocation3 + $0x1], 0 }
   0x4   :  { %11 = vsyncpa [#allocation6], 0 }
   0x5   :  { %13 = vsyncpa [#allocation6 + $0x1], 0 }
   0x6   :  { %14 = vsyncpa [#allocation4], 0 }
   0x7   :  { %16 = vsyncpa [#allocation4 + $0x1], 0  ;;  %s1524_s12 = smov 0   ;;  %s1526_s13 = smov 0  }
   0x8   :  { %s1528_s14 = smov 0   ;;  %s1530_s15 = smov 0  }
   0x9 LB: > { %s1545_s16 = sadd.s32 4294967295, %s1499_s15   ;;  %s1301_s17 = sadd.s32 4294967294, %s1499_s15   ;;  %s1499_s15 = sphi %s1530_s15, %s2154_s15   ;;  %s1495_s14 = sphi %s1528_s14, %s2153_s14   ;;  %s1491_s13 = sphi %s1526_s13, %s2152_s13   ;;  %s1487_s12 = sphi %s1524_s12, %s2151_s12  }
   0xa   : > { %s1549_s18 = sadd.s32 1, %s1499_s15   ;;  %s50_s19 = sadd.s32 1, %s1495_s14 }
   0xb   : > { %s47_s20 = ssub.s32 %s1499_s15, %s1549_s18  ;;  %p57_p0 = scmp.ne.s32.totalorder %s1495_s14, %s1491_s13 }
   0xc   : > { %p48_p1 = scmp.eq.s32.totalorder %s47_s20, 0  ;;  %p58_p2 = scmp.eq.s32.totalorder %s1499_s15, 0 }
   0xd   : > { %p63_p3 = scmp.ne.s32.totalorder %s1491_s13, %s1487_s12  ;;  %p64_p4 = scmp.eq.s32.totalorder %s1545_s16, 0 }
   0xe   : > { %s1561_s21 = scalar_select %p48_p1, %s1495_s14, %s50_s19  }
   0xf   : > { %p59_p5 = por %p58_p2, %p57_p0  ;;  %p1563_p6 = por %p64_p4, %p63_p3 }
  0x10   : > { %p113_p7 = scmp.eq.s32.totalorder %s1545_s16, 3  ;;  %p119_p8 = scmp.eq.s32.totalorder %s1301_s17, 3 }
  0x11   : > { %p1331_p9 = scmp.lt.s32.totalorder %s1499_s15, 4  ;;  %s1578_s25 = sand.u32 1, %s1495_s14  }
  0x12   : > { %p1569_p10 = por %p113_p7, %p57_p0  ;;  %p1573_p11 = por %p119_p8, %p63_p3 }
  0x13   : > { %s1304_s26 = sshll.u32 %s1499_s15, 3  ;;  %s1312_s27 = smul.u32 3136, %s1578_s25 }
  0x14   : > { %s2148_s1 = sld [smem:[#allocation11_spill]]  ;;  %p1585_p12 = pnand %p1331_p9, %p59_p5 }
  0x15   : > { %s146_s6 = scalar_lea.vmem [#allocation2], %s1312_s27  ;;  %p1305_p13 = scmp.ge.s32.totalorder %s1499_s15, 1 }
  0x16   : > { %s153_s7 = sshll.u32 %s146_s6, 4  ;;  %s143_s8 = scalar_lea.sflag [#allocation3], %s1578_s25  ;;  %s154_s7 = int_to_ptr.vmem [resolvable:$true] %s153_s7 }
  0x17   : > { %p1373_p1 = pneg %p1585_p12 }
  0x1a   : > { %s150_s30 = scalar_lea.hbm %s2148_s1, %s1304_s26  ;;  %s1376_s19 = scalar_lea.hbm %s2148_s1, 12544 }
  0x1b   : > { %s151_s5 = sshll.u32 %s150_s30, 4  ;;  %s152_s5 = int_to_ptr.hbm [resolvable:$true] %s151_s5 }
  0x1c   : > { %s1369_s9 = sshra.s32 %s152_s5, 4  ;;  %s1370_s9 = int_to_ptr.hbm [resolvable:$true] %s1369_s9 }
  0x1d   : > { %s1371_s10 = scalar_lea.hbm %s1370_s9, 3136  ;;  %p1377_p4 = scmp.lt.s32.totalorder %s1370_s9, %s2148_s1 }
  0x1e   : > { %p1372_p0 = scmp.ne.s32.totalorder %s1370_s9, %s1371_s10  ;;  %p1378_p5 = scmp.lt.s32.totalorder %s1376_s19, %s1371_s10 }
  0x20   : > { %p1374_p2 = pnand %p1373_p1, %p1372_p0  ;;  %p1379_p7 = por %p1378_p5, %p1377_p4 }
  0x22   : > { %p1375_p3 = pneg %p1374_p2 }
  0x24   : > { %p1380_p8 = pnand %p1379_p7, %p1375_p3 }
  0x26   : > { %1383 = shalt.err (!%p1380_p8)
}
  0x27   : > { %s1501_s27 = smov 512   ;;  %s1502_s28 = smov 128  }
  0x28   : > { %s1503_s29 = smov 8   ;;  %p178_p9 = scmp.lt.s32.totalorder %s1499_s15, 5 }
  0x29   : > { %1323 = dma.hbm_to_vmem [thread:$0]  (!%p1585_p12), %s152_s5, 50176, %s154_s7, %s143_s8, %s1501_s27, %s1502_s28, %s1503_s29  }
  0x2a   : > { %s169_s9 = scalar_lea.hbm %s2142_s2, %s1499_s15  ;;  %p1611_p0 = pnand %p1305_p13, %p178_p9 }
  0x2b   : > { %s171_s11 = sshll.u32 %s169_s9, 4  ;;  %s166_s17 = scalar_lea.vmem [#allocation5], %s1578_s25  ;;  %s172_s11 = int_to_ptr.hbm [resolvable:$true] %s171_s11 }
  0x2c   : > { %s173_s19 = sshll.u32 %s166_s17, 4  ;;  %s164_s20 = scalar_lea.sflag [#allocation6], %s1578_s25  ;;  %s174_s19 = int_to_ptr.vmem [resolvable:$true] %s173_s19 }
  0x2d   : > { %s1399_s26 = sshra.s32 %s172_s11, 4  ;;  %s1406_s8 = scalar_lea.hbm %s2142_s2, 4  ;;  %s1400_s26 = int_to_ptr.hbm [resolvable:$true] %s1399_s26 }
  0x2e   : > { %s1401_s1 = scalar_lea.hbm %s1400_s26, 1  ;;  %p1407_p13 = scmp.lt.s32.totalorder %s1400_s26, %s2142_s2 }
  0x2f   : > { %p1402_p2 = scmp.ne.s32.totalorder %s1400_s26, %s1401_s1  ;;  %p1408_p5 = scmp.lt.s32.totalorder %s1406_s8, %s1401_s1 }
  0x31   : > { %p1404_p3 = pnand %p1402_p2, %p1373_p1  ;;  %p1409_p7 = por %p1408_p5, %p1407_p13 }
  0x33   : > { %p1405_p4 = pneg %p1404_p3 }
  0x35   : > { %p1410_p8 = pnand %p1409_p7, %p1405_p4 }
  0x37   : > { %1413 = shalt.err (!%p1410_p8)
}
  0x38   : > { %1326 = dma.hbm_to_vmem [thread:$0]  (!%p1585_p12), %s172_s11, 16, %s174_s19, %s164_s20  }
  0x39   : > { %182 = sbr.rel (%p1611_p0) target bundleno = 415 (0x19f), region = 32  ;;  %s1631_s25 = sand.u32 (!%p1611_p0), 1, %s1491_s13  }
  0x3a   : > { %s1313_s29 = smul.u32 (!%p1611_p0), 3136, %s1631_s25  ;;  %s185_s30 = scalar_lea.sflag (!%p1611_p0), [#allocation3], %s1631_s25 }
  0x3c   : > { %s1635_s6 = scalar_lea.vmem (!%p1611_p0), [#allocation2], %s1313_s29 }
  0x3e   : > { %1474 = dma.done.wait (%p1563_p6), %s185_s30, 50176  }
  0x3f   : > { %1476 = vsyncadd (%p1563_p6), %s185_s30, 4294917120  ;;  %s195_s1 = scalar_lea.sflag [#allocation6], %s1631_s25  ;;  %s197_s4 = scalar_lea.vmem [#allocation5], %s1631_s25 }
  0x40   : > { %1478 = dma.done.wait (%p1563_p6), %s195_s1, 16  }
  0x41   : > { %1480 = vsyncadd (%p1563_p6), %s195_s1, 4294967280  ;;  %v247_v0 = vld [vmem:[%s1635_s6 + $0x78] sm:$0xff]  ;;  %v246_v2 = vld [vmem:[%s1635_s6 + $0x70] sm:$0xff]  ;;  %vm692_vm0 = vcmask 523264   ;;  %s1306_s30 = sshll.u32 %s1631_s25, 1  ;;  %s1197_s17 = scalar_lea.sflag [#allocation4], %s1631_s25 }
  0x42   : > { %v279_v1 = vld [vmem:[%s1635_s6 + $0x178] sm:$0xff]  ;;  %695 = vmatpush.msra.mxu0 %v247_v0  ;;  %v278_v4 = vld [vmem:[%s1635_s6 + $0x170] sm:$0xff]  ;;  %v245_v6 = vld [vmem:[%s1635_s6 + $0x68] sm:$0xff]  ;;  %s224_s9 = scalar_lea.vmem [#allocation7], %s1306_s30  ;;  %s1449_s5 = scalar_lea.hbm %s2143_s3, 8 }
  0x43   : > { %735 = vmatpush.msra.mxu2 %v279_v1  ;;  %v263_v3 = vld [vmem:[%s1635_s6 + $0xf8] sm:$0xff]  ;;  %v262_v7 = vld [vmem:[%s1635_s6 + $0xf0] sm:$0xff]  ;;  %v277_v8 = vld [vmem:[%s1635_s6 + $0x168] sm:$0xff]  ;;  %s1209_s10 = sshll.u32 %s224_s9, 4  ;;  %s1210_s10 = int_to_ptr.vmem [resolvable:$true] %s1209_s10 }
  0x44   : > { %v295_v5 = vld [vmem:[%s1635_s6 + $0x1f8] sm:$0xff]  ;;  %715 = vmatpush.msra.mxu1 %v263_v3  ;;  %696 = vmatpush.msra.mxu0 %v246_v2  ;;  %v294_v9 = vld [vmem:[%s1635_s6 + $0x1f0] sm:$0xff]  ;;  %v261_v10 = vld [vmem:[%s1635_s6 + $0xe8] sm:$0xff] }
  0x45   : > { %755 = vmatpush.msra.mxu3 %v295_v5  ;;  %736 = vmatpush.msra.mxu2 %v278_v4  ;;  %v244_v11 = vld [vmem:[%s1635_s6 + $0x60] sm:$0xff]  ;;  %v293_v13 = vld [vmem:[%s1635_s6 + $0x1e8] sm:$0xff]  ;;  %v243_v16 = vld [vmem:[%s1635_s6 + $0x58] sm:$0xff] }
  0x46   : > { %716 = vmatpush.msra.mxu1 %v262_v7  ;;  %v276_v12 = vld [vmem:[%s1635_s6 + $0x160] sm:$0xff]  ;;  %697 = vmatpush.msra.mxu0 %v245_v6  ;;  %v275_v17 = vld [vmem:[%s1635_s6 + $0x158] sm:$0xff]  ;;  %v242_v20 = vld [vmem:[%s1635_s6 + $0x50] sm:$0xff] }
  0x47   : > { %756 = vmatpush.msra.mxu3 %v294_v9  ;;  %737 = vmatpush.msra.mxu2 %v277_v8  ;;  %v260_v14 = vld [vmem:[%s1635_s6 + $0xe0] sm:$0xff]  ;;  %v259_v18 = vld [vmem:[%s1635_s6 + $0xd8] sm:$0xff]  ;;  %v274_v21 = vld [vmem:[%s1635_s6 + $0x150] sm:$0xff] }
  0x48   : > { %v292_v15 = vld [vmem:[%s1635_s6 + $0x1e0] sm:$0xff]  ;;  %717 = vmatpush.msra.mxu1 %v261_v10  ;;  %698 = vmatpush.msra.mxu0 %v244_v11  ;;  %v291_v19 = vld [vmem:[%s1635_s6 + $0x1d8] sm:$0xff]  ;;  %v258_v22 = vld [vmem:[%s1635_s6 + $0xd0] sm:$0xff] }
  0x49   : > { %757 = vmatpush.msra.mxu3 %v293_v13  ;;  %738 = vmatpush.msra.mxu2 %v276_v12  ;;  %v290_v23 = vld [vmem:[%s1635_s6 + $0x1d0] sm:$0xff]  ;;  %v241_v24 = vld [vmem:[%s1635_s6 + $0x48] sm:$0xff]  ;;  %v240_v28 = vld [vmem:[%s1635_s6 + $0x40] sm:$0xff] }
  0x4a   : > { %718 = vmatpush.msra.mxu1 %v260_v14  ;;  %699 = vmatpush.msra.mxu0 %v243_v16  ;;  %v273_v25 = vld [vmem:[%s1635_s6 + $0x148] sm:$0xff]  ;;  %v272_v29 = vld [vmem:[%s1635_s6 + $0x140] sm:$0xff]  ;;  %v239_v32 = vld [vmem:[%s1635_s6 + $0x38] sm:$0xff] }
  0x4b   : > { %758 = vmatpush.msra.mxu3 %v292_v15  ;;  %739 = vmatpush.msra.mxu2 %v275_v17  ;;  %v257_v26 = vld [vmem:[%s1635_s6 + $0xc8] sm:$0xff]  ;;  %v256_v30 = vld [vmem:[%s1635_s6 + $0xc0] sm:$0xff]  ;;  %v271_v33 = vld [vmem:[%s1635_s6 + $0x138] sm:$0xff] }
  0x4c   : > { %719 = vmatpush.msra.mxu1 %v259_v18  ;;  %700 = vmatpush.msra.mxu0 %v242_v20  ;;  %v289_v27 = vld [vmem:[%s1635_s6 + $0x1c8] sm:$0xff]  ;;  %v288_v31 = vld [vmem:[%s1635_s6 + $0x1c0] sm:$0xff]  ;;  %v255_v34 = vld [vmem:[%s1635_s6 + $0xb8] sm:$0xff] }
  0x4d   : > { %759 = vmatpush.msra.mxu3 %v291_v19  ;;  %740 = vmatpush.msra.mxu2 %v274_v21  ;;  %v287_v35 = vld [vmem:[%s1635_s6 + $0x1b8] sm:$0xff]  ;;  %v238_v36 = vld [vmem:[%s1635_s6 + $0x30] sm:$0xff]  ;;  %v237_v40 = vld [vmem:[%s1635_s6 + $0x28] sm:$0xff] }
  0x4e   : > { %720 = vmatpush.msra.mxu1 %v258_v22  ;;  %701 = vmatpush.msra.mxu0 %v241_v24  ;;  %v270_v37 = vld [vmem:[%s1635_s6 + $0x130] sm:$0xff]  ;;  %v269_v41 = vld [vmem:[%s1635_s6 + $0x128] sm:$0xff]  ;;  %v236_v44 = vld [vmem:[%s1635_s6 + $0x20] sm:$0xff] }
  0x4f   : > { %760 = vmatpush.msra.mxu3 %v290_v23  ;;  %741 = vmatpush.msra.mxu2 %v273_v25  ;;  %v254_v38 = vld [vmem:[%s1635_s6 + $0xb0] sm:$0xff]  ;;  %v253_v42 = vld [vmem:[%s1635_s6 + $0xa8] sm:$0xff]  ;;  %v268_v45 = vld [vmem:[%s1635_s6 + $0x120] sm:$0xff] }
  0x50   : > { %721 = vmatpush.msra.mxu1 %v257_v26  ;;  %702 = vmatpush.msra.mxu0 %v240_v28  ;;  %v286_v39 = vld [vmem:[%s1635_s6 + $0x1b0] sm:$0xff]  ;;  %v285_v43 = vld [vmem:[%s1635_s6 + $0x1a8] sm:$0xff]  ;;  %v252_v46 = vld [vmem:[%s1635_s6 + $0xa0] sm:$0xff] }
  0x51   : > { %761 = vmatpush.msra.mxu3 %v289_v27  ;;  %742 = vmatpush.msra.mxu2 %v272_v29  ;;  %v284_v47 = vld [vmem:[%s1635_s6 + $0x1a0] sm:$0xff]  ;;  %v235_v48 = vld [vmem:[%s1635_s6 + $0x18] sm:$0xff]  ;;  %v234_v52 = vld [vmem:[%s1635_s6 + $0x10] sm:$0xff] }
  0x52   : > { %722 = vmatpush.msra.mxu1 %v256_v30  ;;  %703 = vmatpush.msra.mxu0 %v239_v32  ;;  %v267_v49 = vld [vmem:[%s1635_s6 + $0x118] sm:$0xff]  ;;  %v266_v53 = vld [vmem:[%s1635_s6 + $0x110] sm:$0xff]  ;;  %v233_v56 = vld [vmem:[%s1635_s6 + $0x8] sm:$0xff] }
  0x53   : > { %762 = vmatpush.msra.mxu3 %v288_v31  ;;  %743 = vmatpush.msra.mxu2 %v271_v33  ;;  %v251_v50 = vld [vmem:[%s1635_s6 + $0x98] sm:$0xff]  ;;  %v250_v54 = vld [vmem:[%s1635_s6 + $0x90] sm:$0xff]  ;;  %v265_v57 = vld [vmem:[%s1635_s6 + $0x108] sm:$0xff] }
  0x54   : > { %723 = vmatpush.msra.mxu1 %v255_v34  ;;  %704 = vmatpush.msra.mxu0 %v238_v36  ;;  %v283_v51 = vld [vmem:[%s1635_s6 + $0x198] sm:$0xff]  ;;  %v282_v55 = vld [vmem:[%s1635_s6 + $0x190] sm:$0xff]  ;;  %v249_v58 = vld [vmem:[%s1635_s6 + $0x88] sm:$0xff] }
  0x55   : > { %763 = vmatpush.msra.mxu3 %v287_v35  ;;  %744 = vmatpush.msra.mxu2 %v270_v37  ;;  %v281_v59 = vld [vmem:[%s1635_s6 + $0x188] sm:$0xff]  ;;  %v232_v60 = vld [vmem:[%s1635_s6] sm:$0xff]  ;;  %v311_v62 = vld [vmem:[%s1635_s6 + $0x278] sm:$0xff] }
  0x56   : > { %724 = vmatpush.msra.mxu1 %v254_v38  ;;  %705 = vmatpush.msra.mxu0 %v237_v40  ;;  %v264_v61 = vld [vmem:[%s1635_s6 + $0x100] sm:$0xff]  ;;  %v343_v63 = vld [vmem:[%s1635_s6 + $0x378] sm:$0xff]  ;;  %v310_v2 = vld [vmem:[%s1635_s6 + $0x270] sm:$0xff] }
  0x57   : > { %764 = vmatpush.msra.mxu3 %v286_v39  ;;  %745 = vmatpush.msra.mxu2 %v269_v41  ;;  %v248_v0 = vld [vmem:[%s1635_s6 + $0x80] sm:$0xff]  ;;  %v327_v3 = vld [vmem:[%s1635_s6 + $0x2f8] sm:$0xff]  ;;  %v342_v4 = vld [vmem:[%s1635_s6 + $0x370] sm:$0xff] }
  0x58   : > { %725 = vmatpush.msra.mxu1 %v253_v42  ;;  %706 = vmatpush.msra.mxu0 %v236_v44  ;;  %v280_v1 = vld [vmem:[%s1635_s6 + $0x180] sm:$0xff]  ;;  %v359_v5 = vld [vmem:[%s1635_s6 + $0x3f8] sm:$0xff]  ;;  %v309_v6 = vld [vmem:[%s1635_s6 + $0x268] sm:$0xff] }
  0x59   : > { %765 = vmatpush.msra.mxu3 %v285_v43  ;;  %746 = vmatpush.msra.mxu2 %v268_v45  ;;  %v326_v7 = vld [vmem:[%s1635_s6 + $0x2f0] sm:$0xff]  ;;  %v341_v8 = vld [vmem:[%s1635_s6 + $0x368] sm:$0xff]  ;;  %v308_v10 = vld [vmem:[%s1635_s6 + $0x260] sm:$0xff] }
  0x5a   : > { %726 = vmatpush.msra.mxu1 %v252_v46  ;;  %707 = vmatpush.msra.mxu0 %v235_v48  ;;  %v358_v9 = vld [vmem:[%s1635_s6 + $0x3f0] sm:$0xff]  ;;  %v325_v11 = vld [vmem:[%s1635_s6 + $0x2e8] sm:$0xff]  ;;  %v340_v12 = vld [vmem:[%s1635_s6 + $0x360] sm:$0xff] }
  0x5b   : > { %766 = vmatpush.msra.mxu3 %v284_v47  ;;  %747 = vmatpush.msra.mxu2 %v267_v49  ;;  %v357_v13 = vld [vmem:[%s1635_s6 + $0x3e8] sm:$0xff]  ;;  %v307_v14 = vld [vmem:[%s1635_s6 + $0x258] sm:$0xff]  ;;  %v324_v15 = vld [vmem:[%s1635_s6 + $0x2e0] sm:$0xff] }
  0x5c   : > { %727 = vmatpush.msra.mxu1 %v251_v50  ;;  %708 = vmatpush.msra.mxu0 %v234_v52  ;;  %v339_v16 = vld [vmem:[%s1635_s6 + $0x358] sm:$0xff]  ;;  %v356_v17 = vld [vmem:[%s1635_s6 + $0x3e0] sm:$0xff]  ;;  %v306_v18 = vld [vmem:[%s1635_s6 + $0x250] sm:$0xff] }
  0x5d   : > { %767 = vmatpush.msra.mxu3 %v283_v51  ;;  %748 = vmatpush.msra.mxu2 %v266_v53  ;;  %v323_v19 = vld [vmem:[%s1635_s6 + $0x2d8] sm:$0xff]  ;;  %v338_v20 = vld [vmem:[%s1635_s6 + $0x350] sm:$0xff]  ;;  %v305_v23 = vld [vmem:[%s1635_s6 + $0x248] sm:$0xff] }
  0x5e   : > { %728 = vmatpush.msra.mxu1 %v250_v54  ;;  %709 = vmatpush.msra.mxu0 %v233_v56  ;;  %v355_v21 = vld [vmem:[%s1635_s6 + $0x3d8] sm:$0xff]  ;;  %v322_v24 = vld [vmem:[%s1635_s6 + $0x2d0] sm:$0xff]  ;;  %v337_v25 = vld [vmem:[%s1635_s6 + $0x348] sm:$0xff] }
  0x5f   : > { %768 = vmatpush.msra.mxu3 %v282_v55  ;;  %749 = vmatpush.msra.mxu2 %v265_v57  ;;  %v225_v22 = vld [vmem:[%s2140_s0] sm:$0xff]  ;;  %v354_v26 = vld [vmem:[%s1635_s6 + $0x3d0] sm:$0xff]  ;;  %v304_v27 = vld [vmem:[%s1635_s6 + $0x240] sm:$0xff] }
  0x60   : > { %729 = vmatpush.msra.mxu1 %v249_v58  ;;  %710 = vmatpush.msra.mxu0 %v232_v60  ;;  %635 = vst [vmem:[#allocation1] ss:$4 sm:$0xff] %v225_v22  ;;  %v321_v28 = vld [vmem:[%s1635_s6 + $0x2c8] sm:$0xff]  ;;  %v336_v29 = vld [vmem:[%s1635_s6 + $0x340] sm:$0xff]  ;;  %v303_v31 = vld [vmem:[%s1635_s6 + $0x238] sm:$0xff] }
  0x61   : > { %769 = vmatpush.msra.mxu3 %v281_v59  ;;  %750 = vmatpush.msra.mxu2 %v264_v61  ;;  %v353_v30 = vld [vmem:[%s1635_s6 + $0x3c8] sm:$0xff]  ;;  %v320_v32 = vld [vmem:[%s1635_s6 + $0x2c0] sm:$0xff]  ;;  %v335_v33 = vld [vmem:[%s1635_s6 + $0x338] sm:$0xff] }
  0x62   : > { %775 = vmatpush.msrb.mxu0 %v311_v62  ;;  %730 = vmatpush.msra.mxu1 %v248_v0  ;;  %v352_v34 = vld [vmem:[%s1635_s6 + $0x3c0] sm:$0xff]  ;;  %v302_v35 = vld [vmem:[%s1635_s6 + $0x230] sm:$0xff]  ;;  %v319_v36 = vld [vmem:[%s1635_s6 + $0x2b8] sm:$0xff] }
  0x63   : > { %815 = vmatpush.msrb.mxu2 %v343_v63  ;;  %770 = vmatpush.msra.mxu3 %v280_v1  ;;  %v334_v37 = vld [vmem:[%s1635_s6 + $0x330] sm:$0xff]  ;;  %v351_v38 = vld [vmem:[%s1635_s6 + $0x3b8] sm:$0xff]  ;;  %v226_v39 = vld [vmem:[%s2140_s0 + $0x8] sm:$0xff] }
  0x64   : > { %776 = vmatpush.msrb.mxu0 %v310_v2  ;;  %795 = vmatpush.msrb.mxu1 %v327_v3  ;;  %v301_v40 = vld [vmem:[%s1635_s6 + $0x228] sm:$0xff]  ;;  %v318_v41 = vld [vmem:[%s1635_s6 + $0x2b0] sm:$0xff]  ;;  %637 = vst [vmem:[#allocation1 + $0x20] ss:$4 sm:$0xff] %v226_v39  ;;  %v300_v49 = vld [vmem:[%s1635_s6 + $0x220] sm:$0xff] }
  0x65   : > { %816 = vmatpush.msrb.mxu2 %v342_v4  ;;  %835 = vmatpush.msrb.mxu3 %v359_v5  ;;  %v227_v42 = vld [vmem:[%s2140_s0 + $0x10] sm:$0xff]  ;;  %v350_v48 = vld [vmem:[%s1635_s6 + $0x3b0] sm:$0xff]  ;;  %v332_v51 = vld [vmem:[%s1635_s6 + $0x320] sm:$0xff] }
  0x66   : > { %777 = vmatpush.msrb.mxu0 %v309_v6  ;;  %796 = vmatpush.msrb.mxu1 %v326_v7  ;;  %v333_v43 = vld [vmem:[%s1635_s6 + $0x328] sm:$0xff]  ;;  %v299_v53 = vld [vmem:[%s1635_s6 + $0x218] sm:$0xff]  ;;  %v316_v54 = vld [vmem:[%s1635_s6 + $0x2a0] sm:$0xff] }
  0x67   : > { %817 = vmatpush.msrb.mxu2 %v341_v8  ;;  %836 = vmatpush.msrb.mxu3 %v358_v9  ;;  %v640_v44 = vld.sshfl [vmem:[#allocation1 + $0x10] sm:$0xff pattern:$0x73625140]  ;;  %v1761_v45 = vld.sshfl [vmem:[#allocation1] sm:$0xff pattern:$0x73625140] }
  0x68   : > { %778 = vmatpush.msrb.mxu0 %v308_v10  ;;  %797 = vmatpush.msrb.mxu1 %v325_v11  ;;  %v1763_v46 = vld.sshfl [vmem:[#allocation1 + $0x18] sm:$0xff pattern:$0x73625140]  ;;  %v1765_v47 = vld.sshfl [vmem:[#allocation1 + $0x8] sm:$0xff pattern:$0x73625140] }
  0x69   : > { %818 = vmatpush.msrb.mxu2 %v340_v12  ;;  %837 = vmatpush.msrb.mxu3 %v357_v13  ;;  %v317_v50 = vld [vmem:[%s1635_s6 + $0x2a8] sm:$0xff]  ;;  %646 = vst [vmem:[#allocation1] ss:$4 sm:$0xff] %v227_v42  ;;  %v331_v55 = vld [vmem:[%s1635_s6 + $0x318] sm:$0xff]  ;;  %v348_v56 = vld [vmem:[%s1635_s6 + $0x3a0] sm:$0xff] }
  0x6a   : > { %779 = vmatpush.msrb.mxu0 %v307_v14  ;;  %798 = vmatpush.msrb.mxu1 %v324_v15  ;;  %v349_v52 = vld [vmem:[%s1635_s6 + $0x3a8] sm:$0xff]  ;;  %v298_v57 = vld [vmem:[%s1635_s6 + $0x210] sm:$0xff]  ;;  %v315_v58 = vld [vmem:[%s1635_s6 + $0x298] sm:$0xff] }
  0x6b   : > { %819 = vmatpush.msrb.mxu2 %v339_v16  ;;  %838 = vmatpush.msrb.mxu3 %v356_v17  ;;  %v228_v59 = vld [vmem:[%s2140_s0 + $0x18] sm:$0xff]  ;;  %v1781_v60 = vld.sshfl [vmem:[#allocation1 + $0x30] sm:$0xff pattern:$0x73625140]  ;;  %v347_v1 = vld [vmem:[%s1635_s6 + $0x398] sm:$0xff] }
  0x6c   : > { %780 = vmatpush.msrb.mxu0 %v306_v18  ;;  %799 = vmatpush.msrb.mxu1 %v323_v19  ;;  %v1783_v61 = vld.sshfl [vmem:[#allocation1 + $0x20] sm:$0xff pattern:$0x73625140]  ;;  %v1785_v62 = vld.sshfl [vmem:[#allocation1 + $0x38] sm:$0xff pattern:$0x73625140] }
  0x6d   : > { %820 = vmatpush.msrb.mxu2 %v338_v20  ;;  %839 = vmatpush.msrb.mxu3 %v355_v21  ;;  %v1787_v63 = vld.sshfl [vmem:[#allocation1 + $0x28] sm:$0xff pattern:$0x73625140]  ;;  %v330_v0 = vld [vmem:[%s1635_s6 + $0x310] sm:$0xff]  ;;  %v297_v2 = vld [vmem:[%s1635_s6 + $0x208] sm:$0xff] }
  0x6e   : > { %781 = vmatpush.msrb.mxu0 %v305_v23  ;;  %800 = vmatpush.msrb.mxu1 %v322_v24  ;;  %647 = vst [vmem:[#allocation1 + $0x20] ss:$4 sm:$0xff] %v228_v59  ;;  %v314_v3 = vld [vmem:[%s1635_s6 + $0x290] sm:$0xff]  ;;  %v329_v4 = vld [vmem:[%s1635_s6 + $0x308] sm:$0xff]  ;;  %v296_v6 = vld [vmem:[%s1635_s6 + $0x200] sm:$0xff] }
  0x6f   : > { %821 = vmatpush.msrb.mxu2 %v337_v25  ;;  %840 = vmatpush.msrb.mxu3 %v354_v26  ;;  %v346_v5 = vld [vmem:[%s1635_s6 + $0x390] sm:$0xff]  ;;  %v313_v7 = vld [vmem:[%s1635_s6 + $0x288] sm:$0xff]  ;;  %v328_v8 = vld [vmem:[%s1635_s6 + $0x300] sm:$0xff] }
  0x70   : > { %782 = vmatpush.msrb.mxu0 %v304_v27  ;;  %801 = vmatpush.msrb.mxu1 %v321_v28  ;;  %v345_v9 = vld [vmem:[%s1635_s6 + $0x388] sm:$0xff]  ;;  %v375_v10 = vld [vmem:[%s1635_s6 + $0x478] sm:$0xff]  ;;  %v312_v12 = vld [vmem:[%s1635_s6 + $0x280] sm:$0xff] }
  0x71   : > { %822 = vmatpush.msrb.mxu2 %v336_v29  ;;  %841 = vmatpush.msrb.mxu3 %v353_v30  ;;  %v407_v11 = vld [vmem:[%s1635_s6 + $0x578] sm:$0xff]  ;;  %v344_v13 = vld [vmem:[%s1635_s6 + $0x380] sm:$0xff]  ;;  %v374_v14 = vld [vmem:[%s1635_s6 + $0x470] sm:$0xff] }
  0x72   : > { %783 = vmatpush.msrb.mxu0 %v303_v31  ;;  %802 = vmatpush.msrb.mxu1 %v320_v32  ;;  %v391_v15 = vld [vmem:[%s1635_s6 + $0x4f8] sm:$0xff]  ;;  %v406_v16 = vld [vmem:[%s1635_s6 + $0x570] sm:$0xff]  ;;  %v373_v18 = vld [vmem:[%s1635_s6 + $0x468] sm:$0xff] }
  0x73   : > { %823 = vmatpush.msrb.mxu2 %v335_v33  ;;  %842 = vmatpush.msrb.mxu3 %v352_v34  ;;  %v423_v17 = vld [vmem:[%s1635_s6 + $0x5f8] sm:$0xff]  ;;  %v390_v19 = vld [vmem:[%s1635_s6 + $0x4f0] sm:$0xff]  ;;  %v405_v20 = vld [vmem:[%s1635_s6 + $0x568] sm:$0xff] }
  0x74   : > { %784 = vmatpush.msrb.mxu0 %v302_v35  ;;  %803 = vmatpush.msrb.mxu1 %v319_v36  ;;  %v422_v21 = vld [vmem:[%s1635_s6 + $0x5f0] sm:$0xff]  ;;  %v372_v22 = vld [vmem:[%s1635_s6 + $0x460] sm:$0xff]  ;;  %v389_v23 = vld [vmem:[%s1635_s6 + $0x4e8] sm:$0xff] }
  0x75   : > { %824 = vmatpush.msrb.mxu2 %v334_v37  ;;  %843 = vmatpush.msrb.mxu3 %v351_v38  ;;  %v404_v24 = vld [vmem:[%s1635_s6 + $0x560] sm:$0xff]  ;;  %v1817_v25 = vld.sshfl [vmem:[#allocation1] sm:$0xff pattern:$0x73625140]  ;;  %v421_v28 = vld [vmem:[%s1635_s6 + $0x5e8] sm:$0xff] }
  0x76   : > { %785 = vmatpush.msrb.mxu0 %v301_v40  ;;  %804 = vmatpush.msrb.mxu1 %v318_v41  ;;  %v1819_v26 = vld.sshfl [vmem:[#allocation1 + $0x10] sm:$0xff pattern:$0x73625140]  ;;  %v1821_v27 = vld.sshfl [vmem:[#allocation1 + $0x8] sm:$0xff pattern:$0x73625140] }
  0x77   : > { %825 = vmatpush.msrb.mxu2 %v333_v43  ;;  %844 = vmatpush.msrb.mxu3 %v350_v48  ;;  %v229_v29 = vld [vmem:[%s2140_s0 + $0x20] sm:$0xff]  ;;  %v1827_v30 = vld.sshfl [vmem:[#allocation1 + $0x18] sm:$0xff pattern:$0x73625140]  ;;  %v388_v32 = vld [vmem:[%s1635_s6 + $0x4e0] sm:$0xff] }
  0x78   : > { %786 = vmatpush.msrb.mxu0 %v300_v49  ;;  %805 = vmatpush.msrb.mxu1 %v317_v50  ;;  %v371_v31 = vld [vmem:[%s1635_s6 + $0x458] sm:$0xff]  ;;  %656 = vst [vmem:[#allocation1] ss:$4 sm:$0xff] %v229_v29  ;;  %v420_v34 = vld [vmem:[%s1635_s6 + $0x5e0] sm:$0xff]  ;;  %v370_v35 = vld [vmem:[%s1635_s6 + $0x450] sm:$0xff] }
  0x79   : > { %826 = vmatpush.msrb.mxu2 %v332_v51  ;;  %845 = vmatpush.msrb.mxu3 %v349_v52  ;;  %v403_v33 = vld [vmem:[%s1635_s6 + $0x558] sm:$0xff]  ;;  %v402_v37 = vld [vmem:[%s1635_s6 + $0x550] sm:$0xff]  ;;  %v369_v39 = vld [vmem:[%s1635_s6 + $0x448] sm:$0xff] }
  0x7a   : > { %787 = vmatpush.msrb.mxu0 %v299_v53  ;;  %806 = vmatpush.msrb.mxu1 %v316_v54  ;;  %v387_v36 = vld [vmem:[%s1635_s6 + $0x4d8] sm:$0xff]  ;;  %v386_v40 = vld [vmem:[%s1635_s6 + $0x4d0] sm:$0xff]  ;;  %v401_v41 = vld [vmem:[%s1635_s6 + $0x548] sm:$0xff] }
  0x7b   : > { %827 = vmatpush.msrb.mxu2 %v331_v55  ;;  %846 = vmatpush.msrb.mxu3 %v348_v56  ;;  %v419_v38 = vld [vmem:[%s1635_s6 + $0x5d8] sm:$0xff]  ;;  %v418_v42 = vld [vmem:[%s1635_s6 + $0x5d0] sm:$0xff]  ;;  %v368_v43 = vld [vmem:[%s1635_s6 + $0x440] sm:$0xff] }
  0x7c   : > { %788 = vmatpush.msrb.mxu0 %v298_v57  ;;  %807 = vmatpush.msrb.mxu1 %v315_v58  ;;  %v384_v48 = vld [vmem:[%s1635_s6 + $0x4c0] sm:$0xff]  ;;  %v399_v49 = vld [vmem:[%s1635_s6 + $0x538] sm:$0xff]  ;;  %v366_v51 = vld [vmem:[%s1635_s6 + $0x430] sm:$0xff] }
  0x7d   : > { %828 = vmatpush.msrb.mxu2 %v330_v0  ;;  %847 = vmatpush.msrb.mxu3 %v347_v1  ;;  %v416_v50 = vld [vmem:[%s1635_s6 + $0x5c0] sm:$0xff]  ;;  %v383_v52 = vld [vmem:[%s1635_s6 + $0x4b8] sm:$0xff]  ;;  %v398_v53 = vld [vmem:[%s1635_s6 + $0x530] sm:$0xff] }
  0x7e   : > { %789 = vmatpush.msrb.mxu0 %v297_v2  ;;  %808 = vmatpush.msrb.mxu1 %v314_v3  ;;  %v415_v54 = vld [vmem:[%s1635_s6 + $0x5b8] sm:$0xff]  ;;  %v365_v55 = vld [vmem:[%s1635_s6 + $0x428] sm:$0xff]  ;;  %v382_v56 = vld [vmem:[%s1635_s6 + $0x4b0] sm:$0xff] }
  0x7f   : > { %829 = vmatpush.msrb.mxu2 %v329_v4  ;;  %848 = vmatpush.msrb.mxu3 %v346_v5  ;;  %v397_v57 = vld [vmem:[%s1635_s6 + $0x528] sm:$0xff]  ;;  %v414_v58 = vld [vmem:[%s1635_s6 + $0x5b0] sm:$0xff]  ;;  %v364_v59 = vld [vmem:[%s1635_s6 + $0x420] sm:$0xff] }
  0x80   : > { %751 = vmatmul.f32.vlgmr.msra.gmra.mxu2 %v640_v44  ;;  %790 = vmatpush.msrb.mxu0 %v296_v6  ;;  %v385_v44 = vld [vmem:[%s1635_s6 + $0x4c8] sm:$0xff]  ;;  %v380_v0 = vld [vmem:[%s1635_s6 + $0x4a0] sm:$0xff]  ;;  %v395_v1 = vld [vmem:[%s1635_s6 + $0x518] sm:$0xff] }
  0x81   : > { %809 = vmatpush.msrb.mxu1 %v313_v7  ;;  %830 = vmatpush.msrb.mxu2 %v328_v8  ;;  %v412_v2 = vld [vmem:[%s1635_s6 + $0x5a0] sm:$0xff]  ;;  %v362_v3 = vld [vmem:[%s1635_s6 + $0x410] sm:$0xff]  ;;  %v379_v4 = vld [vmem:[%s1635_s6 + $0x498] sm:$0xff] }
  0x82   : > { %849 = vmatpush.msrb.mxu3 %v345_v9  ;;  %711 = vmatmul.f32.vlgmr.msra.gmra.mxu0 %v1761_v45  ;;  %v400_v45 = vld [vmem:[%s1635_s6 + $0x540] sm:$0xff]  ;;  %v394_v5 = vld [vmem:[%s1635_s6 + $0x510] sm:$0xff]  ;;  %v411_v6 = vld [vmem:[%s1635_s6 + $0x598] sm:$0xff] }
  0x83   : > { %771 = vmatmul.f32.vlgmr.msra.gmra.mxu3 %v1763_v46  ;;  %855 = vmatpush.msra.mxu0 %v375_v10  ;;  %v417_v46 = vld [vmem:[%s1635_s6 + $0x5c8] sm:$0xff]  ;;  %v378_v8 = vld [vmem:[%s1635_s6 + $0x490] sm:$0xff]  ;;  %v1898_v29 = vld.sshfl [vmem:[#allocation1 + $0x20] sm:$0xff pattern:$0x73625140] }
  0x84   : > { %895 = vmatpush.msra.mxu2 %v407_v11  ;;  %810 = vmatpush.msrb.mxu1 %v312_v12  ;;  %v361_v7 = vld [vmem:[%s1635_s6 + $0x408] sm:$0xff]  ;;  %v410_v10 = vld [vmem:[%s1635_s6 + $0x590] sm:$0xff]  ;;  %v360_v11 = vld [vmem:[%s1635_s6 + $0x400] sm:$0xff] }
  0x85   : > { %850 = vmatpush.msrb.mxu3 %v344_v13  ;;  %731 = vmatmul.f32.vlgmr.msra.gmra.mxu1 %v1765_v47  ;;  %v367_v47 = vld [vmem:[%s1635_s6 + $0x438] sm:$0xff]  ;;  %v393_v9 = vld [vmem:[%s1635_s6 + $0x508] sm:$0xff]  ;;  %v392_v13 = vld [vmem:[%s1635_s6 + $0x500] sm:$0xff] }
  0x86   : > { %856 = vmatpush.msra.mxu0 %v374_v14  ;;  %875 = vmatpush.msra.mxu1 %v391_v15  ;;  %v377_v12 = vld [vmem:[%s1635_s6 + $0x488] sm:$0xff]  ;;  %v439_v15 = vld [vmem:[%s1635_s6 + $0x678] sm:$0xff] }
  0x87   : > { %896 = vmatpush.msra.mxu2 %v406_v16  ;;  %915 = vmatpush.msra.mxu3 %v423_v17  ;;  %v409_v14 = vld [vmem:[%s1635_s6 + $0x588] sm:$0xff]  ;;  %v471_v16 = vld [vmem:[%s1635_s6 + $0x778] sm:$0xff]  ;;  %v376_v17 = vld [vmem:[%s1635_s6 + $0x480] sm:$0xff] }
  0x88   : > { %857 = vmatpush.msra.mxu0 %v373_v18  ;;  %876 = vmatpush.msra.mxu1 %v390_v19  ;;  %v408_v18 = vld [vmem:[%s1635_s6 + $0x580] sm:$0xff]  ;;  %v438_v19 = vld [vmem:[%s1635_s6 + $0x670] sm:$0xff] }
  0x89   : > { %897 = vmatpush.msra.mxu2 %v405_v20  ;;  %916 = vmatpush.msra.mxu3 %v422_v21  ;;  %v455_v20 = vld [vmem:[%s1635_s6 + $0x6f8] sm:$0xff]  ;;  %v470_v21 = vld [vmem:[%s1635_s6 + $0x770] sm:$0xff] }
  0x8a   : > { %831 = vmatmul.f32.vlgmr.msrb.gmra.mxu2 %v1781_v60  ;;  %858 = vmatpush.msra.mxu0 %v372_v22  ;;  %v381_v60 = vld [vmem:[%s1635_s6 + $0x4a8] sm:$0xff]  ;;  %v487_v22 = vld [vmem:[%s1635_s6 + $0x7f8] sm:$0xff] }
  0x8b   : > { %877 = vmatpush.msra.mxu1 %v389_v23  ;;  %898 = vmatpush.msra.mxu2 %v404_v24  ;;  %v437_v23 = vld [vmem:[%s1635_s6 + $0x668] sm:$0xff]  ;;  %v454_v24 = vld [vmem:[%s1635_s6 + $0x6f0] sm:$0xff] }
  0x8c   : > { %917 = vmatpush.msra.mxu3 %v421_v28  ;;  %791 = vmatmul.f32.vlgmr.msrb.gmra.mxu0 %v1783_v61  ;;  %v396_v61 = vld [vmem:[%s1635_s6 + $0x520] sm:$0xff]  ;;  %v469_v28 = vld [vmem:[%s1635_s6 + $0x768] sm:$0xff] }
  0x8d   : > { %851 = vmatmul.f32.vlgmr.msrb.gmra.mxu3 %v1785_v62  ;;  %859 = vmatpush.msra.mxu0 %v371_v31  ;;  %v413_v62 = vld [vmem:[%s1635_s6 + $0x5a8] sm:$0xff] }
  0x8e   : > { %878 = vmatpush.msra.mxu1 %v388_v32  ;;  %899 = vmatpush.msra.mxu2 %v403_v33  ;;  %v1900_v31 = vld.sshfl [vmem:[#allocation1 + $0x30] sm:$0xff pattern:$0x73625140]  ;;  %v1902_v32 = vld.sshfl [vmem:[#allocation1 + $0x28] sm:$0xff pattern:$0x73625140] }
  0x8f   : > { %918 = vmatpush.msra.mxu3 %v420_v34  ;;  %811 = vmatmul.f32.vlgmr.msrb.gmra.mxu1 %v1787_v63  ;;  %v363_v63 = vld [vmem:[%s1635_s6 + $0x418] sm:$0xff]  ;;  %v1908_v33 = vld.sshfl [vmem:[#allocation1 + $0x38] sm:$0xff pattern:$0x73625140]  ;;  %v468_v34 = vld [vmem:[%s1635_s6 + $0x760] sm:$0xff] }
  0x90   : > { %860 = vmatpush.msra.mxu0 %v370_v35  ;;  %879 = vmatpush.msra.mxu1 %v387_v36  ;;  %v485_v35 = vld [vmem:[%s1635_s6 + $0x7e8] sm:$0xff]  ;;  %v435_v36 = vld [vmem:[%s1635_s6 + $0x658] sm:$0xff] }
  0x91   : > { %900 = vmatpush.msra.mxu2 %v402_v37  ;;  %919 = vmatpush.msra.mxu3 %v419_v38  ;;  %v452_v37 = vld [vmem:[%s1635_s6 + $0x6e0] sm:$0xff]  ;;  %v467_v38 = vld [vmem:[%s1635_s6 + $0x758] sm:$0xff] }
  0x92   : > { %861 = vmatpush.msra.mxu0 %v369_v39  ;;  %880 = vmatpush.msra.mxu1 %v386_v40  ;;  %v484_v39 = vld [vmem:[%s1635_s6 + $0x7e0] sm:$0xff]  ;;  %v434_v40 = vld [vmem:[%s1635_s6 + $0x650] sm:$0xff] }
  0x93   : > { %901 = vmatpush.msra.mxu2 %v401_v41  ;;  %920 = vmatpush.msra.mxu3 %v418_v42  ;;  %v451_v41 = vld [vmem:[%s1635_s6 + $0x6d8] sm:$0xff]  ;;  %v466_v42 = vld [vmem:[%s1635_s6 + $0x750] sm:$0xff] }
  0x94   : > { %862 = vmatpush.msra.mxu0 %v368_v43  ;;  %881 = vmatpush.msra.mxu1 %v385_v44  ;;  %v483_v43 = vld [vmem:[%s1635_s6 + $0x7d8] sm:$0xff]  ;;  %v433_v44 = vld [vmem:[%s1635_s6 + $0x648] sm:$0xff] }
  0x95   : > { %902 = vmatpush.msra.mxu2 %v400_v45  ;;  %921 = vmatpush.msra.mxu3 %v417_v46  ;;  %v450_v45 = vld [vmem:[%s1635_s6 + $0x6d0] sm:$0xff]  ;;  %v465_v46 = vld [vmem:[%s1635_s6 + $0x748] sm:$0xff] }
  0x96   : > { %863 = vmatpush.msra.mxu0 %v367_v47  ;;  %882 = vmatpush.msra.mxu1 %v384_v48  ;;  %v482_v47 = vld [vmem:[%s1635_s6 + $0x7d0] sm:$0xff]  ;;  %v432_v48 = vld [vmem:[%s1635_s6 + $0x640] sm:$0xff] }
  0x97   : > { %903 = vmatpush.msra.mxu2 %v399_v49  ;;  %922 = vmatpush.msra.mxu3 %v416_v50  ;;  %v449_v49 = vld [vmem:[%s1635_s6 + $0x6c8] sm:$0xff]  ;;  %v464_v50 = vld [vmem:[%s1635_s6 + $0x740] sm:$0xff] }
  0x98   : > { %864 = vmatpush.msra.mxu0 %v366_v51  ;;  %883 = vmatpush.msra.mxu1 %v383_v52  ;;  %v481_v51 = vld [vmem:[%s1635_s6 + $0x7c8] sm:$0xff]  ;;  %v431_v52 = vld [vmem:[%s1635_s6 + $0x638] sm:$0xff] }
  0x99   : > { %904 = vmatpush.msra.mxu2 %v398_v53  ;;  %923 = vmatpush.msra.mxu3 %v415_v54  ;;  %v448_v53 = vld [vmem:[%s1635_s6 + $0x6c0] sm:$0xff]  ;;  %v463_v54 = vld [vmem:[%s1635_s6 + $0x738] sm:$0xff] }
  0x9a   : > { %865 = vmatpush.msra.mxu0 %v365_v55  ;;  %884 = vmatpush.msra.mxu1 %v382_v56  ;;  %v480_v55 = vld [vmem:[%s1635_s6 + $0x7c0] sm:$0xff]  ;;  %v430_v56 = vld [vmem:[%s1635_s6 + $0x630] sm:$0xff] }
  0x9b   : > { %905 = vmatpush.msra.mxu2 %v397_v57  ;;  %924 = vmatpush.msra.mxu3 %v414_v58  ;;  %v447_v57 = vld [vmem:[%s1635_s6 + $0x6b8] sm:$0xff]  ;;  %v462_v58 = vld [vmem:[%s1635_s6 + $0x730] sm:$0xff] }
  0x9c   : > { %866 = vmatpush.msra.mxu0 %v364_v59  ;;  %885 = vmatpush.msra.mxu1 %v381_v60  ;;  %v479_v59 = vld [vmem:[%s1635_s6 + $0x7b8] sm:$0xff]  ;;  %v429_v60 = vld [vmem:[%s1635_s6 + $0x628] sm:$0xff] }
  0x9d   : > { %906 = vmatpush.msra.mxu2 %v396_v61  ;;  %925 = vmatpush.msra.mxu3 %v413_v62  ;;  %v446_v61 = vld [vmem:[%s1635_s6 + $0x6b0] sm:$0xff]  ;;  %v461_v62 = vld [vmem:[%s1635_s6 + $0x728] sm:$0xff] }
  0x9e   : > { %867 = vmatpush.msra.mxu0 %v363_v63  ;;  %886 = vmatpush.msra.mxu1 %v380_v0  ;;  %v478_v63 = vld [vmem:[%s1635_s6 + $0x7b0] sm:$0xff]  ;;  %v428_v0 = vld [vmem:[%s1635_s6 + $0x620] sm:$0xff] }
  0x9f   : > { %907 = vmatpush.msra.mxu2 %v395_v1  ;;  %926 = vmatpush.msra.mxu3 %v412_v2  ;;  %v445_v1 = vld [vmem:[%s1635_s6 + $0x6a8] sm:$0xff]  ;;  %v460_v2 = vld [vmem:[%s1635_s6 + $0x720] sm:$0xff] }
  0xa0   : > { %868 = vmatpush.msra.mxu0 %v362_v3  ;;  %887 = vmatpush.msra.mxu1 %v379_v4  ;;  %v477_v3 = vld [vmem:[%s1635_s6 + $0x7a8] sm:$0xff]  ;;  %v427_v4 = vld [vmem:[%s1635_s6 + $0x618] sm:$0xff] }
  0xa1   : > { %908 = vmatpush.msra.mxu2 %v394_v5  ;;  %927 = vmatpush.msra.mxu3 %v411_v6  ;;  %v444_v5 = vld [vmem:[%s1635_s6 + $0x6a0] sm:$0xff]  ;;  %v459_v6 = vld [vmem:[%s1635_s6 + $0x718] sm:$0xff] }
  0xa2   : > { %869 = vmatpush.msra.mxu0 %v361_v7  ;;  %888 = vmatpush.msra.mxu1 %v378_v8  ;;  %v476_v7 = vld [vmem:[%s1635_s6 + $0x7a0] sm:$0xff]  ;;  %v426_v8 = vld [vmem:[%s1635_s6 + $0x610] sm:$0xff] }
  0xa3   : > { %909 = vmatpush.msra.mxu2 %v393_v9  ;;  %928 = vmatpush.msra.mxu3 %v410_v10  ;;  %v443_v9 = vld [vmem:[%s1635_s6 + $0x698] sm:$0xff]  ;;  %v458_v10 = vld [vmem:[%s1635_s6 + $0x710] sm:$0xff] }
  0xa4   : > { %870 = vmatpush.msra.mxu0 %v360_v11  ;;  %889 = vmatpush.msra.mxu1 %v377_v12  ;;  %v475_v11 = vld [vmem:[%s1635_s6 + $0x798] sm:$0xff]  ;;  %v425_v12 = vld [vmem:[%s1635_s6 + $0x608] sm:$0xff] }
  0xa5   : > { %910 = vmatpush.msra.mxu2 %v392_v13  ;;  %929 = vmatpush.msra.mxu3 %v409_v14  ;;  %v442_v13 = vld [vmem:[%s1635_s6 + $0x690] sm:$0xff]  ;;  %v457_v14 = vld [vmem:[%s1635_s6 + $0x708] sm:$0xff] }
  0xa6   : > { %871 = vmatmul.f32.vlgmr.msra.gmra.mxu0 %v1817_v25  ;;  %911 = vmatmul.f32.vlgmr.msra.gmra.mxu2 %v1819_v26  ;;  %v486_v25 = vld [vmem:[%s1635_s6 + $0x7f0] sm:$0xff]  ;;  %v436_v26 = vld [vmem:[%s1635_s6 + $0x660] sm:$0xff] }
  0xa7   : > { %935 = vmatpush.msrb.mxu0 %v439_v15  ;;  %975 = vmatpush.msrb.mxu2 %v471_v16  ;;  %v474_v15 = vld [vmem:[%s1635_s6 + $0x790] sm:$0xff]  ;;  %v424_v16 = vld [vmem:[%s1635_s6 + $0x600] sm:$0xff] }
  0xa8   : > { %890 = vmatpush.msra.mxu1 %v376_v17  ;;  %930 = vmatpush.msra.mxu3 %v408_v18  ;;  %v441_v17 = vld [vmem:[%s1635_s6 + $0x688] sm:$0xff]  ;;  %v456_v18 = vld [vmem:[%s1635_s6 + $0x700] sm:$0xff] }
  0xa9   : > { %891 = vmatmul.f32.vlgmr.msra.gmra.mxu1 %v1821_v27  ;;  %931 = vmatmul.f32.vlgmr.msra.gmra.mxu3 %v1827_v30  ;;  %v453_v27 = vld [vmem:[%s1635_s6 + $0x6e8] sm:$0xff]  ;;  %v230_v30 = vld [vmem:[%s2140_s0 + $0x28] sm:$0xff] }
  0xaa   : > { %936 = vmatpush.msrb.mxu0 %v438_v19  ;;  %955 = vmatpush.msrb.mxu1 %v455_v20  ;;  %657 = vst [vmem:[#allocation1 + $0x20] ss:$4 sm:$0xff] %v230_v30  ;;  %v473_v19 = vld [vmem:[%s1635_s6 + $0x788] sm:$0xff]  ;;  %v503_v20 = vld [vmem:[%s1635_s6 + $0x878] sm:$0xff]  ;;  %v550_v30 = vld [vmem:[%s1635_s6 + $0x9f0] sm:$0xff] }
  0xab   : > { %976 = vmatpush.msrb.mxu2 %v470_v21  ;;  %995 = vmatpush.msrb.mxu3 %v487_v22  ;;  %v535_v21 = vld [vmem:[%s1635_s6 + $0x978] sm:$0xff]  ;;  %v440_v22 = vld [vmem:[%s1635_s6 + $0x680] sm:$0xff] }
  0xac   : > { %937 = vmatpush.msrb.mxu0 %v437_v23  ;;  %956 = vmatpush.msrb.mxu1 %v454_v24  ;;  %v472_v23 = vld [vmem:[%s1635_s6 + $0x780] sm:$0xff]  ;;  %v502_v24 = vld [vmem:[%s1635_s6 + $0x870] sm:$0xff] }
  0xad   : > { %977 = vmatpush.msrb.mxu2 %v469_v28  ;;  %996 = vmatpush.msrb.mxu3 %v486_v25  ;;  %v519_v28 = vld [vmem:[%s1635_s6 + $0x8f8] sm:$0xff]  ;;  %v534_v25 = vld [vmem:[%s1635_s6 + $0x970] sm:$0xff] }
  0xae   : > { %938 = vmatpush.msrb.mxu0 %v436_v26  ;;  %957 = vmatpush.msrb.mxu1 %v453_v27  ;;  %v551_v26 = vld [vmem:[%s1635_s6 + $0x9f8] sm:$0xff]  ;;  %v533_v27 = vld [vmem:[%s1635_s6 + $0x968] sm:$0xff] }
  0xaf   : > { %978 = vmatpush.msrb.mxu2 %v468_v34  ;;  %997 = vmatpush.msrb.mxu3 %v485_v35  ;;  %v500_v34 = vld [vmem:[%s1635_s6 + $0x860] sm:$0xff]  ;;  %v517_v35 = vld [vmem:[%s1635_s6 + $0x8e8] sm:$0xff] }
  0xb0   : > { %939 = vmatpush.msrb.mxu0 %v435_v36  ;;  %958 = vmatpush.msrb.mxu1 %v452_v37  ;;  %v499_v36 = vld [vmem:[%s1635_s6 + $0x858] sm:$0xff]  ;;  %v516_v37 = vld [vmem:[%s1635_s6 + $0x8e0] sm:$0xff] }
  0xb1   : > { %979 = vmatpush.msrb.mxu2 %v467_v38  ;;  %998 = vmatpush.msrb.mxu3 %v484_v39  ;;  %v531_v38 = vld [vmem:[%s1635_s6 + $0x958] sm:$0xff]  ;;  %v548_v39 = vld [vmem:[%s1635_s6 + $0x9e0] sm:$0xff] }
  0xb2   : > { %940 = vmatpush.msrb.mxu0 %v434_v40  ;;  %959 = vmatpush.msrb.mxu1 %v451_v41  ;;  %v498_v40 = vld [vmem:[%s1635_s6 + $0x850] sm:$0xff]  ;;  %v515_v41 = vld [vmem:[%s1635_s6 + $0x8d8] sm:$0xff] }
  0xb3   : > { %980 = vmatpush.msrb.mxu2 %v466_v42  ;;  %999 = vmatpush.msrb.mxu3 %v483_v43  ;;  %v530_v42 = vld [vmem:[%s1635_s6 + $0x950] sm:$0xff]  ;;  %v547_v43 = vld [vmem:[%s1635_s6 + $0x9d8] sm:$0xff] }
  0xb4   : > { %941 = vmatpush.msrb.mxu0 %v433_v44  ;;  %960 = vmatpush.msrb.mxu1 %v450_v45  ;;  %v497_v44 = vld [vmem:[%s1635_s6 + $0x848] sm:$0xff]  ;;  %v514_v45 = vld [vmem:[%s1635_s6 + $0x8d0] sm:$0xff] }
  0xb5   : > { %981 = vmatpush.msrb.mxu2 %v465_v46  ;;  %1000 = vmatpush.msrb.mxu3 %v482_v47  ;;  %v529_v46 = vld [vmem:[%s1635_s6 + $0x948] sm:$0xff]  ;;  %v546_v47 = vld [vmem:[%s1635_s6 + $0x9d0] sm:$0xff] }
  0xb6   : > { %942 = vmatpush.msrb.mxu0 %v432_v48  ;;  %961 = vmatpush.msrb.mxu1 %v449_v49  ;;  %v496_v48 = vld [vmem:[%s1635_s6 + $0x840] sm:$0xff]  ;;  %v513_v49 = vld [vmem:[%s1635_s6 + $0x8c8] sm:$0xff] }
  0xb7   : > { %982 = vmatpush.msrb.mxu2 %v464_v50  ;;  %1001 = vmatpush.msrb.mxu3 %v481_v51  ;;  %v528_v50 = vld [vmem:[%s1635_s6 + $0x940] sm:$0xff]  ;;  %v545_v51 = vld [vmem:[%s1635_s6 + $0x9c8] sm:$0xff] }
  0xb8   : > { %943 = vmatpush.msrb.mxu0 %v431_v52  ;;  %962 = vmatpush.msrb.mxu1 %v448_v53  ;;  %v495_v52 = vld [vmem:[%s1635_s6 + $0x838] sm:$0xff]  ;;  %v512_v53 = vld [vmem:[%s1635_s6 + $0x8c0] sm:$0xff] }
  0xb9   : > { %983 = vmatpush.msrb.mxu2 %v463_v54  ;;  %1002 = vmatpush.msrb.mxu3 %v480_v55  ;;  %v527_v54 = vld [vmem:[%s1635_s6 + $0x938] sm:$0xff]  ;;  %v544_v55 = vld [vmem:[%s1635_s6 + $0x9c0] sm:$0xff] }
  0xba   : > { %944 = vmatpush.msrb.mxu0 %v430_v56  ;;  %963 = vmatpush.msrb.mxu1 %v447_v57  ;;  %v494_v56 = vld [vmem:[%s1635_s6 + $0x830] sm:$0xff]  ;;  %v511_v57 = vld [vmem:[%s1635_s6 + $0x8b8] sm:$0xff] }
  0xbb   : > { %984 = vmatpush.msrb.mxu2 %v462_v58  ;;  %1003 = vmatpush.msrb.mxu3 %v479_v59  ;;  %v526_v58 = vld [vmem:[%s1635_s6 + $0x930] sm:$0xff]  ;;  %v543_v59 = vld [vmem:[%s1635_s6 + $0x9b8] sm:$0xff] }
  0xbc   : > { %945 = vmatpush.msrb.mxu0 %v429_v60  ;;  %964 = vmatpush.msrb.mxu1 %v446_v61  ;;  %v493_v60 = vld [vmem:[%s1635_s6 + $0x828] sm:$0xff]  ;;  %v510_v61 = vld [vmem:[%s1635_s6 + $0x8b0] sm:$0xff] }
  0xbd   : > { %985 = vmatpush.msrb.mxu2 %v461_v62  ;;  %1004 = vmatpush.msrb.mxu3 %v478_v63  ;;  %v525_v62 = vld [vmem:[%s1635_s6 + $0x928] sm:$0xff]  ;;  %v542_v63 = vld [vmem:[%s1635_s6 + $0x9b0] sm:$0xff] }
  0xbe   : > { %946 = vmatpush.msrb.mxu0 %v428_v0  ;;  %965 = vmatpush.msrb.mxu1 %v445_v1  ;;  %v492_v0 = vld [vmem:[%s1635_s6 + $0x820] sm:$0xff]  ;;  %v509_v1 = vld [vmem:[%s1635_s6 + $0x8a8] sm:$0xff] }
  0xbf   : > { %986 = vmatpush.msrb.mxu2 %v460_v2  ;;  %1005 = vmatpush.msrb.mxu3 %v477_v3  ;;  %v524_v2 = vld [vmem:[%s1635_s6 + $0x920] sm:$0xff]  ;;  %v541_v3 = vld [vmem:[%s1635_s6 + $0x9a8] sm:$0xff] }
  0xc0   : > { %947 = vmatpush.msrb.mxu0 %v427_v4  ;;  %966 = vmatpush.msrb.mxu1 %v444_v5  ;;  %v491_v4 = vld [vmem:[%s1635_s6 + $0x818] sm:$0xff]  ;;  %v508_v5 = vld [vmem:[%s1635_s6 + $0x8a0] sm:$0xff] }
  0xc1   : > { %987 = vmatpush.msrb.mxu2 %v459_v6  ;;  %1006 = vmatpush.msrb.mxu3 %v476_v7  ;;  %v523_v6 = vld [vmem:[%s1635_s6 + $0x918] sm:$0xff]  ;;  %v540_v7 = vld [vmem:[%s1635_s6 + $0x9a0] sm:$0xff] }
  0xc2   : > { %948 = vmatpush.msrb.mxu0 %v426_v8  ;;  %967 = vmatpush.msrb.mxu1 %v443_v9  ;;  %v490_v8 = vld [vmem:[%s1635_s6 + $0x810] sm:$0xff]  ;;  %v507_v9 = vld [vmem:[%s1635_s6 + $0x898] sm:$0xff] }
  0xc3   : > { %988 = vmatpush.msrb.mxu2 %v458_v10  ;;  %1007 = vmatpush.msrb.mxu3 %v475_v11  ;;  %v522_v10 = vld [vmem:[%s1635_s6 + $0x910] sm:$0xff]  ;;  %v539_v11 = vld [vmem:[%s1635_s6 + $0x998] sm:$0xff] }
  0xc4   : > { %949 = vmatpush.msrb.mxu0 %v425_v12  ;;  %968 = vmatpush.msrb.mxu1 %v442_v13  ;;  %v489_v12 = vld [vmem:[%s1635_s6 + $0x808] sm:$0xff]  ;;  %v506_v13 = vld [vmem:[%s1635_s6 + $0x890] sm:$0xff] }
  0xc5   : > { %989 = vmatpush.msrb.mxu2 %v457_v14  ;;  %1008 = vmatpush.msrb.mxu3 %v474_v15  ;;  %v521_v14 = vld [vmem:[%s1635_s6 + $0x908] sm:$0xff]  ;;  %v538_v15 = vld [vmem:[%s1635_s6 + $0x990] sm:$0xff] }
  0xc6   : > { %950 = vmatpush.msrb.mxu0 %v424_v16  ;;  %969 = vmatpush.msrb.mxu1 %v441_v17  ;;  %v488_v16 = vld [vmem:[%s1635_s6 + $0x800] sm:$0xff]  ;;  %v505_v17 = vld [vmem:[%s1635_s6 + $0x888] sm:$0xff] }
  0xc7   : > { %990 = vmatpush.msrb.mxu2 %v456_v18  ;;  %1009 = vmatpush.msrb.mxu3 %v473_v19  ;;  %v520_v18 = vld [vmem:[%s1635_s6 + $0x900] sm:$0xff]  ;;  %v537_v19 = vld [vmem:[%s1635_s6 + $0x988] sm:$0xff] }
  0xc8   : > { %951 = vmatmul.f32.vlgmr.msrb.gmra.mxu0 %v1898_v29  ;;  %991 = vmatmul.f32.vlgmr.msrb.gmra.mxu2 %v1900_v31  ;;  %v501_v29 = vld [vmem:[%s1635_s6 + $0x868] sm:$0xff]  ;;  %v518_v31 = vld [vmem:[%s1635_s6 + $0x8f0] sm:$0xff] }
  0xc9   : > { %1015 = vmatpush.msra.mxu0 %v503_v20  ;;  %1055 = vmatpush.msra.mxu2 %v535_v21  ;;  %v658_v20 = vld.sshfl [vmem:[#allocation1] sm:$0xff pattern:$0x73625140]  ;;  %v660_v21 = vld.sshfl [vmem:[#allocation1 + $0x10] sm:$0xff pattern:$0x73625140] }
  0xca   : > { %970 = vmatpush.msrb.mxu1 %v440_v22  ;;  %1010 = vmatpush.msrb.mxu3 %v472_v23  ;;  %v567_v22 = vld [vmem:[%s1635_s6 + $0xa78] sm:$0xff] }
  0xcb   : > { %971 = vmatmul.f32.vlgmr.msrb.gmra.mxu1 %v1902_v32  ;;  %1011 = vmatmul.f32.vlgmr.msrb.gmra.mxu3 %v1908_v33  ;;  %v532_v32 = vld [vmem:[%s1635_s6 + $0x960] sm:$0xff]  ;;  %v549_v33 = vld [vmem:[%s1635_s6 + $0x9e8] sm:$0xff]  ;;  %v599_v23 = vld [vmem:[%s1635_s6 + $0xb78] sm:$0xff] }
  0xcc   : > { %1016 = vmatpush.msra.mxu0 %v502_v24  ;;  %1035 = vmatpush.msra.mxu1 %v519_v28  ;;  %v504_v24 = vld [vmem:[%s1635_s6 + $0x880] sm:$0xff] }
  0xcd   : > { %1056 = vmatpush.msra.mxu2 %v534_v25  ;;  %1075 = vmatpush.msra.mxu3 %v551_v26  ;;  %v536_v28 = vld [vmem:[%s1635_s6 + $0x980] sm:$0xff]  ;;  %v661_v26 = vld.sshfl [vmem:[#allocation1 + $0x18] sm:$0xff pattern:$0x73625140] }
  0xce   : > { %1017 = vmatpush.msra.mxu0 %v501_v29  ;;  %1036 = vmatpush.msra.mxu1 %v518_v31  ;;  %v659_v25 = vld.sshfl [vmem:[#allocation1 + $0x8] sm:$0xff pattern:$0x73625140]  ;;  %v566_v29 = vld [vmem:[%s1635_s6 + $0xa70] sm:$0xff]  ;;  %v583_v31 = vld [vmem:[%s1635_s6 + $0xaf8] sm:$0xff] }
  0xcf   : > { %1057 = vmatpush.msra.mxu2 %v533_v27  ;;  %1076 = vmatpush.msra.mxu3 %v550_v30  ;;  %v598_v27 = vld [vmem:[%s1635_s6 + $0xb70] sm:$0xff]  ;;  %v615_v30 = vld [vmem:[%s1635_s6 + $0xbf8] sm:$0xff] }
  0xd0   : > { %1018 = vmatpush.msra.mxu0 %v500_v34  ;;  %1037 = vmatpush.msra.mxu1 %v517_v35  ;;  %v565_v34 = vld [vmem:[%s1635_s6 + $0xa68] sm:$0xff]  ;;  %v582_v35 = vld [vmem:[%s1635_s6 + $0xaf0] sm:$0xff] }
  0xd1   : > { %1058 = vmatpush.msra.mxu2 %v532_v32  ;;  %1077 = vmatpush.msra.mxu3 %v549_v33  ;;  %v597_v32 = vld [vmem:[%s1635_s6 + $0xb68] sm:$0xff]  ;;  %v614_v33 = vld [vmem:[%s1635_s6 + $0xbf0] sm:$0xff] }
  0xd2   : > { %1019 = vmatpush.msra.mxu0 %v499_v36  ;;  %1038 = vmatpush.msra.mxu1 %v516_v37  ;;  %v564_v36 = vld [vmem:[%s1635_s6 + $0xa60] sm:$0xff]  ;;  %v581_v37 = vld [vmem:[%s1635_s6 + $0xae8] sm:$0xff] }
  0xd3   : > { %1059 = vmatpush.msra.mxu2 %v531_v38  ;;  %1078 = vmatpush.msra.mxu3 %v548_v39  ;;  %v596_v38 = vld [vmem:[%s1635_s6 + $0xb60] sm:$0xff]  ;;  %v613_v39 = vld [vmem:[%s1635_s6 + $0xbe8] sm:$0xff] }
  0xd4   : > { %1020 = vmatpush.msra.mxu0 %v498_v40  ;;  %1039 = vmatpush.msra.mxu1 %v515_v41  ;;  %v563_v40 = vld [vmem:[%s1635_s6 + $0xa58] sm:$0xff]  ;;  %v580_v41 = vld [vmem:[%s1635_s6 + $0xae0] sm:$0xff] }
  0xd5   : > { %1060 = vmatpush.msra.mxu2 %v530_v42  ;;  %1079 = vmatpush.msra.mxu3 %v547_v43  ;;  %v595_v42 = vld [vmem:[%s1635_s6 + $0xb58] sm:$0xff]  ;;  %v612_v43 = vld [vmem:[%s1635_s6 + $0xbe0] sm:$0xff] }
  0xd6   : > { %1021 = vmatpush.msra.mxu0 %v497_v44  ;;  %1040 = vmatpush.msra.mxu1 %v514_v45  ;;  %v562_v44 = vld [vmem:[%s1635_s6 + $0xa50] sm:$0xff]  ;;  %v579_v45 = vld [vmem:[%s1635_s6 + $0xad8] sm:$0xff] }
  0xd7   : > { %1061 = vmatpush.msra.mxu2 %v529_v46  ;;  %1080 = vmatpush.msra.mxu3 %v546_v47  ;;  %v231_v46 = vld [vmem:[%s2140_s0 + $0x30] sm:$0x3]  ;;  %v594_v47 = vld [vmem:[%s1635_s6 + $0xb50] sm:$0xff] }
  0xd8   : > { %1022 = vmatpush.msra.mxu0 %v496_v48  ;;  %1041 = vmatpush.msra.mxu1 %v513_v49  ;;  %v611_v48 = vld [vmem:[%s1635_s6 + $0xbd8] sm:$0xff]  ;;  %666 = vst [vmem:[#allocation1] ss:$4 sm:$0xff] %v231_v46  ;;  %v561_v49 = vld [vmem:[%s1635_s6 + $0xa48] sm:$0xff] }
  0xd9   : > { %1062 = vmatpush.msra.mxu2 %v528_v50  ;;  %1081 = vmatpush.msra.mxu3 %v545_v51  ;;  %v578_v50 = vld [vmem:[%s1635_s6 + $0xad0] sm:$0xff]  ;;  %v593_v51 = vld [vmem:[%s1635_s6 + $0xb48] sm:$0xff] }
  0xda   : > { %1023 = vmatpush.msra.mxu0 %v495_v52  ;;  %1042 = vmatpush.msra.mxu1 %v512_v53  ;;  %v610_v52 = vld [vmem:[%s1635_s6 + $0xbd0] sm:$0xff]  ;;  %v560_v53 = vld [vmem:[%s1635_s6 + $0xa40] sm:$0xff] }
  0xdb   : > { %1063 = vmatpush.msra.mxu2 %v527_v54  ;;  %1082 = vmatpush.msra.mxu3 %v544_v55  ;;  %v577_v54 = vld [vmem:[%s1635_s6 + $0xac8] sm:$0xff]  ;;  %v592_v55 = vld [vmem:[%s1635_s6 + $0xb40] sm:$0xff] }
  0xdc   : > { %1024 = vmatpush.msra.mxu0 %v494_v56  ;;  %1043 = vmatpush.msra.mxu1 %v511_v57  ;;  %v609_v56 = vld [vmem:[%s1635_s6 + $0xbc8] sm:$0xff]  ;;  %v559_v57 = vld [vmem:[%s1635_s6 + $0xa38] sm:$0xff] }
  0xdd   : > { %1064 = vmatpush.msra.mxu2 %v526_v58  ;;  %1083 = vmatpush.msra.mxu3 %v543_v59  ;;  %v576_v58 = vld [vmem:[%s1635_s6 + $0xac0] sm:$0xff]  ;;  %v591_v59 = vld [vmem:[%s1635_s6 + $0xb38] sm:$0xff] }
  0xde   : > { %1025 = vmatpush.msra.mxu0 %v493_v60  ;;  %1044 = vmatpush.msra.mxu1 %v510_v61  ;;  %v608_v60 = vld [vmem:[%s1635_s6 + $0xbc0] sm:$0xff]  ;;  %v558_v61 = vld [vmem:[%s1635_s6 + $0xa30] sm:$0xff] }
  0xdf   : > { %1065 = vmatpush.msra.mxu2 %v525_v62  ;;  %1084 = vmatpush.msra.mxu3 %v542_v63  ;;  %v575_v62 = vld [vmem:[%s1635_s6 + $0xab8] sm:$0xff]  ;;  %v590_v63 = vld [vmem:[%s1635_s6 + $0xb30] sm:$0xff] }
  0xe0   : > { %1026 = vmatpush.msra.mxu0 %v492_v0  ;;  %1045 = vmatpush.msra.mxu1 %v509_v1  ;;  %v607_v0 = vld [vmem:[%s1635_s6 + $0xbb8] sm:$0xff]  ;;  %v557_v1 = vld [vmem:[%s1635_s6 + $0xa28] sm:$0xff] }
  0xe1   : > { %1066 = vmatpush.msra.mxu2 %v524_v2  ;;  %1085 = vmatpush.msra.mxu3 %v541_v3  ;;  %v574_v2 = vld [vmem:[%s1635_s6 + $0xab0] sm:$0xff]  ;;  %v589_v3 = vld [vmem:[%s1635_s6 + $0xb28] sm:$0xff] }
  0xe2   : > { %1027 = vmatpush.msra.mxu0 %v491_v4  ;;  %1046 = vmatpush.msra.mxu1 %v508_v5  ;;  %v606_v4 = vld [vmem:[%s1635_s6 + $0xbb0] sm:$0xff]  ;;  %v556_v5 = vld [vmem:[%s1635_s6 + $0xa20] sm:$0xff] }
  0xe3   : > { %1067 = vmatpush.msra.mxu2 %v523_v6  ;;  %1086 = vmatpush.msra.mxu3 %v540_v7  ;;  %v573_v6 = vld [vmem:[%s1635_s6 + $0xaa8] sm:$0xff]  ;;  %v588_v7 = vld [vmem:[%s1635_s6 + $0xb20] sm:$0xff] }
  0xe4   : > { %1028 = vmatpush.msra.mxu0 %v490_v8  ;;  %1047 = vmatpush.msra.mxu1 %v507_v9  ;;  %v605_v8 = vld [vmem:[%s1635_s6 + $0xba8] sm:$0xff]  ;;  %v555_v9 = vld [vmem:[%s1635_s6 + $0xa18] sm:$0xff] }
  0xe5   : > { %1068 = vmatpush.msra.mxu2 %v522_v10  ;;  %1087 = vmatpush.msra.mxu3 %v539_v11  ;;  %v572_v10 = vld [vmem:[%s1635_s6 + $0xaa0] sm:$0xff]  ;;  %v587_v11 = vld [vmem:[%s1635_s6 + $0xb18] sm:$0xff] }
  0xe6   : > { %1029 = vmatpush.msra.mxu0 %v489_v12  ;;  %1048 = vmatpush.msra.mxu1 %v506_v13  ;;  %v604_v12 = vld [vmem:[%s1635_s6 + $0xba0] sm:$0xff]  ;;  %v554_v13 = vld [vmem:[%s1635_s6 + $0xa10] sm:$0xff] }
  0xe7   : > { %1069 = vmatpush.msra.mxu2 %v521_v14  ;;  %1088 = vmatpush.msra.mxu3 %v538_v15  ;;  %v571_v14 = vld [vmem:[%s1635_s6 + $0xa98] sm:$0xff]  ;;  %v586_v15 = vld [vmem:[%s1635_s6 + $0xb10] sm:$0xff] }
  0xe8   : > { %1030 = vmatpush.msra.mxu0 %v488_v16  ;;  %1049 = vmatpush.msra.mxu1 %v505_v17  ;;  %v603_v16 = vld [vmem:[%s1635_s6 + $0xb98] sm:$0xff]  ;;  %v553_v17 = vld [vmem:[%s1635_s6 + $0xa08] sm:$0xff] }
  0xe9   : > { %1070 = vmatpush.msra.mxu2 %v520_v18  ;;  %1089 = vmatpush.msra.mxu3 %v537_v19  ;;  %v570_v18 = vld [vmem:[%s1635_s6 + $0xa90] sm:$0xff]  ;;  %v585_v19 = vld [vmem:[%s1635_s6 + $0xb08] sm:$0xff] }
  0xea   : > { %1031 = vmatmul.f32.vlgmr.msra.gmra.mxu0 %v658_v20  ;;  %1071 = vmatmul.f32.vlgmr.msra.gmra.mxu2 %v660_v21  ;;  %v602_v20 = vld [vmem:[%s1635_s6 + $0xb90] sm:$0xff]  ;;  %v552_v21 = vld [vmem:[%s1635_s6 + $0xa00] sm:$0xff] }
  0xeb   : > { %1095 = vmatpush.msrb.mxu0 %v567_v22  ;;  %1135 = vmatpush.msrb.mxu2 %v599_v23  ;;  %v569_v22 = vld [vmem:[%s1635_s6 + $0xa88] sm:$0xff]  ;;  %v584_v23 = vld [vmem:[%s1635_s6 + $0xb00] sm:$0xff] }
  0xec   : > { %1050 = vmatpush.msra.mxu1 %v504_v24  ;;  %1090 = vmatpush.msra.mxu3 %v536_v28  ;;  %v601_v24 = vld [vmem:[%s1635_s6 + $0xb88] sm:$0xff]  ;;  %v662_v28 = vld.sshfl [vmem:[#allocation1 + $0x20] sm:$0xff pattern:$0x73625140] }
  0xed   : > { %1051 = vmatmul.f32.vlgmr.msra.gmra.mxu1 %v659_v25  ;;  %1091 = vmatmul.f32.vlgmr.msra.gmra.mxu3 %v661_v26  ;;  %v664_v25 = vld.sshfl [vmem:[#allocation1 + $0x30] sm:$0xff pattern:$0x73625140]  ;;  %v623_v26 = vld [vmem:[%s1635_s6 + $0xc38] sm:$0xff] }
  0xee   : > { %1096 = vmatpush.msrb.mxu0 %v566_v29  ;;  %1115 = vmatpush.msrb.mxu1 %v583_v31  ;;  %v568_v29 = vld [vmem:[%s1635_s6 + $0xa80] sm:$0xff] }
  0xef   : > { %1136 = vmatpush.msrb.mxu2 %v598_v27  ;;  %1155 = vmatpush.msrb.mxu3 %v615_v30  ;;  %v600_v31 = vld [vmem:[%s1635_s6 + $0xb80] sm:$0xff]  ;;  %v665_v30 = vld.sshfl [vmem:[#allocation1 + $0x38] sm:$0xff pattern:$0x73625140] }
  0xf0   : > { %1097 = vmatpush.msrb.mxu0 %v565_v34  ;;  %1116 = vmatpush.msrb.mxu1 %v582_v35  ;;  %v663_v27 = vld.sshfl [vmem:[#allocation1 + $0x28] sm:$0xff pattern:$0x73625140]  ;;  %v622_v34 = vld [vmem:[%s1635_s6 + $0xc30] sm:$0xff]  ;;  %v621_v35 = vld [vmem:[%s1635_s6 + $0xc28] sm:$0xff] }
  0xf1   : > { %1137 = vmatpush.msrb.mxu2 %v597_v32  ;;  %1156 = vmatpush.msrb.mxu3 %v614_v33  ;;  %v620_v32 = vld [vmem:[%s1635_s6 + $0xc20] sm:$0xff]  ;;  %v619_v33 = vld [vmem:[%s1635_s6 + $0xc18] sm:$0xff] }
  0xf2   : > { %1098 = vmatpush.msrb.mxu0 %v564_v36  ;;  %1117 = vmatpush.msrb.mxu1 %v581_v37  ;;  %v618_v36 = vld [vmem:[%s1635_s6 + $0xc10] sm:$0xff]  ;;  %v617_v37 = vld [vmem:[%s1635_s6 + $0xc08] sm:$0xff] }
  0xf3   : > { %1138 = vmatpush.msrb.mxu2 %v596_v38  ;;  %1157 = vmatpush.msrb.mxu3 %v613_v39  ;;  %v616_v38 = vld [vmem:[%s1635_s6 + $0xc00] sm:$0xff]  ;;  %v667_v39 = vld.sshfl [vmem:[#allocation1] sm:$0xff pattern:$0x73625140]  ;;  %s1309_s6 = sshll.u32 %s1545_s16, 1 }
  0xf4   : > { %1099 = vmatpush.msrb.mxu0 %v563_v40  ;;  %1118 = vmatpush.msrb.mxu1 %v580_v41  ;;  %v1368_v40 = vld [vmem:[%s197_s4] ss:$0 sm:$0xff]  ;;  %s1207_s22 = scalar_lea.hbm %s2143_s3, %s1309_s6 }
  0xf5   : > { %1139 = vmatpush.msrb.mxu2 %v595_v42  ;;  %1158 = vmatpush.msrb.mxu3 %v612_v43  ;;  %s1211_s11 = sshll.u32 %s1207_s22, 4  ;;  %s1212_s11 = int_to_ptr.hbm [resolvable:$true] %s1211_s11 }
  0xf6   : > { %1100 = vmatpush.msrb.mxu0 %v562_v44  ;;  %1119 = vmatpush.msrb.mxu1 %v579_v45  ;;  %s1443_s19 = sshra.s32 %s1212_s11, 4  ;;  %s1444_s19 = int_to_ptr.hbm [resolvable:$true] %s1443_s19 }
  0xf7   : > { %1140 = vmatpush.msrb.mxu2 %v594_v47  ;;  %1159 = vmatpush.msrb.mxu3 %v611_v48  ;;  %s1445_s16 = scalar_lea.hbm %s1444_s19, 2  ;;  %p1450_p9 = scmp.lt.s32.totalorder %s1444_s19, %s2143_s3 }
  0xf8   : > { %1101 = vmatpush.msrb.mxu0 %v561_v49  ;;  %1120 = vmatpush.msrb.mxu1 %v578_v50  ;;  %p1446_p6 = scmp.ne.s32.totalorder %s1444_s19, %s1445_s16  ;;  %p1451_p0 = scmp.lt.s32.totalorder %s1449_s5, %s1445_s16 }
  0xf9   : > { %1141 = vmatpush.msrb.mxu2 %v593_v51  ;;  %1160 = vmatpush.msrb.mxu3 %v610_v52 }
  0xfa   : > { %1102 = vmatpush.msrb.mxu0 %v560_v53  ;;  %1121 = vmatpush.msrb.mxu1 %v577_v54  ;;  %p1447_p12 = pnand %p1446_p6, %p1569_p10  ;;  %p1452_p2 = por %p1451_p0, %p1450_p9 }
  0xfb   : > { %1142 = vmatpush.msrb.mxu2 %v592_v55  ;;  %1161 = vmatpush.msrb.mxu3 %v609_v56 }
  0xfc   : > { %1103 = vmatpush.msrb.mxu0 %v559_v57  ;;  %1122 = vmatpush.msrb.mxu1 %v576_v58  ;;  %p1448_p1 = pneg %p1447_p12 }
  0xfd   : > { %1143 = vmatpush.msrb.mxu2 %v591_v59  ;;  %1162 = vmatpush.msrb.mxu3 %v608_v60 }
  0xfe   : > { %1104 = vmatpush.msrb.mxu0 %v558_v61  ;;  %1123 = vmatpush.msrb.mxu1 %v575_v62  ;;  %p1453_p3 = pnand %p1452_p2, %p1448_p1 }
  0xff   : > { %1144 = vmatpush.msrb.mxu2 %v590_v63  ;;  %1163 = vmatpush.msrb.mxu3 %v607_v0  ;;  %v712_v41 = vpop.f32.mrf.mxu0 }
 0x100   : > { %1105 = vmatpush.msrb.mxu0 %v557_v1  ;;  %1124 = vmatpush.msrb.mxu1 %v574_v2  ;;  %v713_v42 = vadd.f32 %v1368_v40, %v712_v41 }
 0x101   : > { %1145 = vmatpush.msrb.mxu2 %v589_v3  ;;  %1164 = vmatpush.msrb.mxu3 %v606_v4 }
 0x102   : > { %1106 = vmatpush.msrb.mxu0 %v556_v5  ;;  %1125 = vmatpush.msrb.mxu1 %v573_v6  ;;  %v732_v43 = vpop.f32.mrf.mxu1 }
 0x103   : > { %1146 = vmatpush.msrb.mxu2 %v588_v7  ;;  %1165 = vmatpush.msrb.mxu3 %v605_v8  ;;  %v733_v44 = vadd.f32 %v732_v43, %v713_v42  ;;  %v752_v45 = vpop.f32.mrf.mxu2 }
 0x104   : > { %1107 = vmatpush.msrb.mxu0 %v555_v9  ;;  %1126 = vmatpush.msrb.mxu1 %v572_v10 }
 0x105   : > { %1147 = vmatpush.msrb.mxu2 %v587_v11  ;;  %1166 = vmatpush.msrb.mxu3 %v604_v12  ;;  %v753_v46 = vadd.f32 %v752_v45, %v733_v44 }
 0x106   : > { %1108 = vmatpush.msrb.mxu0 %v554_v13  ;;  %1127 = vmatpush.msrb.mxu1 %v571_v14  ;;  %v772_v47 = vpop.f32.mrf.mxu3 }
 0x107   : > { %1148 = vmatpush.msrb.mxu2 %v586_v15  ;;  %1167 = vmatpush.msrb.mxu3 %v603_v16  ;;  %v773_v48 = vadd.f32 %v772_v47, %v753_v46 }
 0x108   : > { %1109 = vmatpush.msrb.mxu0 %v553_v17  ;;  %1128 = vmatpush.msrb.mxu1 %v570_v18 }
 0x109   : > { %1149 = vmatpush.msrb.mxu2 %v585_v19  ;;  %1168 = vmatpush.msrb.mxu3 %v602_v20  ;;  %v792_v49 = vpop.f32.mrf.mxu0 }
 0x10a   : > { %1110 = vmatpush.msrb.mxu0 %v552_v21  ;;  %1129 = vmatpush.msrb.mxu1 %v569_v22  ;;  %v793_v50 = vadd.f32 %v792_v49, %v773_v48 }
 0x10b   : > { %1150 = vmatpush.msrb.mxu2 %v584_v23  ;;  %1169 = vmatpush.msrb.mxu3 %v601_v24 }
 0x10c   : > { %1111 = vmatmul.f32.vlgmr.msrb.gmra.mxu0 %v662_v28  ;;  %1151 = vmatmul.f32.vlgmr.msrb.gmra.mxu2 %v664_v25  ;;  %v812_v51 = vpop.f32.mrf.mxu1 }
 0x10d   : > { %1183 = vmatpush.msra.mxu0 %v623_v26  ;;  %1130 = vmatpush.msrb.mxu1 %v568_v29  ;;  %v813_v52 = vadd.f32 %v812_v51, %v793_v50  ;;  %v832_v53 = vpop.f32.mrf.mxu2 }
 0x10e   : > { %1170 = vmatpush.msrb.mxu3 %v600_v31  ;;  %1131 = vmatmul.f32.vlgmr.msrb.gmra.mxu1 %v663_v27 }
 0x10f   : > { %1171 = vmatmul.f32.vlgmr.msrb.gmra.mxu3 %v665_v30  ;;  %1184 = vmatpush.msra.mxu0 %v622_v34  ;;  %v833_v54 = vadd.f32 %v832_v53, %v813_v52 }
 0x110   : > { %v852_v55 = vpop.f32.mrf.mxu3 }
 0x111   : > { %1185 = vmatpush.msra.mxu0 %v621_v35  ;;  %v853_v57 = vadd.f32 %v852_v55, %v833_v54 }
 0x113   : > { %1186 = vmatpush.msra.mxu0 %v620_v32 }
 0x115   : > { %1187 = vmatpush.msra.mxu0 %v619_v33 }
 0x117   : > { %1188 = vmatpush.msra.mxu0 %v618_v36 }
 0x119   : > { %1189 = vmatpush.msra.mxu0 %v617_v37 }
 0x11b   : > { %1190 = vmatpush.msra.mxu0 %v616_v38 }
 0x11c   : > { %1307 = vmatmul.msk.f32.vlgmr.msra.gmra.mxu0 %vm692_vm0, %v667_v39 }
 0x123   : > { %v872_v56 = vpop.f32.mrf.mxu0 }
 0x124   : > { %v873_v58 = vadd.f32 %v872_v56, %v853_v57 }
 0x126   : > { %v892_v59 = vpop.f32.mrf.mxu1 }
 0x127   : > { %v893_v61 = vadd.f32 %v892_v59, %v873_v58 }
 0x129   : > { %v912_v60 = vpop.f32.mrf.mxu2 }
 0x12a   : > { %v913_v62 = vadd.f32 %v912_v60, %v893_v61 }
 0x12c   : > { %v932_v63 = vpop.f32.mrf.mxu3 }
 0x12d   : > { %v933_v1 = vadd.f32 %v932_v63, %v913_v62 }
 0x145   : > { %v952_v0 = vpop.f32.mrf.mxu0 }
 0x146   : > { %v953_v2 = vadd.f32 %v952_v0, %v933_v1 }
 0x148   : > { %v972_v3 = vpop.f32.mrf.mxu1 }
 0x149   : > { %v973_v5 = vadd.f32 %v972_v3, %v953_v2 }
 0x14b   : > { %v992_v4 = vpop.f32.mrf.mxu2 }
 0x14c   : > { %v993_v6 = vadd.f32 %v992_v4, %v973_v5 }
 0x14e   : > { %v1012_v7 = vpop.f32.mrf.mxu3 }
 0x14f   : > { %v1013_v9 = vadd.f32 %v1012_v7, %v993_v6 }
 0x167   : > { %v1032_v8 = vpop.f32.mrf.mxu0 }
 0x168   : > { %v1033_v10 = vadd.f32 %v1032_v8, %v1013_v9 }
 0x16a   : > { %v1052_v11 = vpop.f32.mrf.mxu1 }
 0x16b   : > { %v1053_v13 = vadd.f32 %v1052_v11, %v1033_v10 }
 0x16d   : > { %v1072_v12 = vpop.f32.mrf.mxu2 }
 0x16e   : > { %v1073_v14 = vadd.f32 %v1072_v12, %v1053_v13 }
 0x170   : > { %v1092_v15 = vpop.f32.mrf.mxu3 }
 0x171   : > { %v1093_v17 = vadd.f32 %v1092_v15, %v1073_v14 }
 0x189   : > { %v1112_v16 = vpop.f32.mrf.mxu0 }
 0x18a   : > { %v1113_v18 = vadd.f32 %v1112_v16, %v1093_v17 }
 0x18b   : > { %v1132_v19 = vpop.f32.mrf.mxu1 }
 0x18c   : > { %v1133_v21 = vadd.f32 %v1132_v19, %v1113_v18 }
 0x18f   : > { %v1152_v20 = vpop.f32.mrf.mxu2 }
 0x190   : > { %v1153_v22 = vadd.f32 %v1152_v20, %v1133_v21 }
 0x192   : > { %v1172_v23 = vpop.f32.mrf.mxu3 }
 0x193   : > { %v1173_v24 = vadd.f32 %v1172_v23, %v1153_v22 }
 0x199   : > { %v1192_v28 = vpop.f32.mrf.mxu0 }
 0x19a   : > { %v1193_v25 = vadd.f32 %v1192_v28, %v1173_v24 }
 0x19c   : > { %1195 = vst [vmem:[%s224_s9] sm:$0x3] %v1193_v25 }
 0x19d   : > { %1456 = shalt.err (!%p1453_p3)
}
 0x19e   : > { %1318 = dma.vmem_to_hbm [thread:$0]  (%p1569_p10), %s1210_s10, 32, %s1212_s11, %s1197_s17  }
 0x19f PF: > { %p1332_p4 = scmp.ge.s32.totalorder %s1499_s15, 2  ;;  %s1223_s25 = sand.u32 1, %s1487_s12  }
 0x1a0   : > { %s1224_s27 = scalar_lea.sflag [#allocation4], %s1223_s25 }
 0x1a1   : > { %p1328_p13 = pnand %p1332_p4, %p1573_p11 }
 0x1a3   : > { %p1329_p5 = pneg %p1328_p13 }
 0x1a5   : > { %1482 = dma.done.wait (%p1329_p5), %s1224_s27, 32  }
 0x1a6   : > { %1484 = vsyncadd (%p1329_p5), %s1224_s27, 4294967264  ;;  %p19_p7 = scmp.ge.s32.totalorder %s1549_s18, 6   ;;  %s2151_s12 = smov %s1491_s13 }
 0x1a7   : > { %s2152_s13 = smov %s1495_s14  ;;  %s2153_s14 = smov %s1561_s21 }
 0x1a8   : > { %s2154_s15 = smov %s1549_s18  ;;  %21 = sbr.rel (!%p19_p7) target bundleno = 9 (0x9), region = 91 }
 0x1ad   :  { %1230 = vsyncpa [#allocation3], 1 }
 0x1ae   :  { %1232 = vsyncpa [#allocation3 + $0x1], 1 }
 0x1af   :  { %1233 = vsyncpa [#allocation6], 1 }
 0x1b0   :  { %1235 = vsyncpa [#allocation6 + $0x1], 1 }
 0x1b1   :  { %1236 = vsyncpa [#allocation4], 1 }
 0x1b2   :  { %1238 = vsyncpa [#allocation4 + $0x1], 1 }

// kernel: cnn_feature_extractor_forward.4
= control target key start
LH: loop header
LB: loop body
LE: loop exit
PB: predicated region body
PF: predicated region fallthrough
CT: control target
= control target key end

     0   :  { %8 = vsyncpa [#allocation3], 0  ;;  %s3521_s0 = inlined_call_operand.vmem [shape: f32[2,32,192], index: 0, kind: input, shape index: {}]   ;;  %s3522_s1 = inlined_call_operand.hbm [shape: f32[5,192,448], index: 1, kind: input, shape index: {}]   ;;  %s3523_s2 = inlined_call_operand.hbm [shape: f32[1,224], index: 2, kind: input, shape index: {}]   ;;  %s3524_s3 = inlined_call_operand.vmem [shape: f32[2,14,224], index: 3, kind: output, shape index: {}]  }
   0x1   :  { %9 = vsyncpa [#allocation5], 0  ;;  %s2689_s12 = smov 0  }
   0x2 LB: > { %s125_s15 = sshll.u32 %s3522_s1, 4  ;;  %s2420_s16 = sadd.s32 4294967295, %s2661_s12   ;;  %s2661_s12 = sphi %s2689_s12, %s15_s12   ;;  %s126_s15 = int_to_ptr.hbm [resolvable:$true] %s125_s15 }
   0x3   : > { %p2422_p0 = scmp.ge.s32.totalorder %s2661_s12, 1  ;;  %p114_p1 = scmp.lt.s32.totalorder %s2661_s12, 3 }
   0x4   : > { %p2564_p2 = scmp.eq.s32.totalorder %s2420_s16, 0  ;;  %s2663_s18 = smov [#allocation2]  }
   0x5   : > { %p2700_p3 = pnand %p2422_p0, %p114_p1  ;;  %s127_s19 = sshll.u32 %s2663_s18, 4  ;;  %s128_s19 = int_to_ptr.vmem [resolvable:$true] %s127_s19 }
   0x6   : > { %s140_s22 = sshll.u32 %s3523_s2, 4  ;;  %s2664_s23 = smov [#allocation4]   ;;  %s141_s22 = int_to_ptr.hbm [resolvable:$true] %s140_s22 }
   0x7   : > { %p2557_p4 = pneg %p2700_p3  ;;  %s142_s24 = sshll.u32 %s2664_s23, 4  ;;  %s143_s24 = int_to_ptr.vmem [resolvable:$true] %s142_s24 }
   0x8   : > { %s2665_s25 = smov 512   ;;  %s2666_s26 = smov 32  }
   0x9   : > { %p2558_p5 = pnand %p2564_p2, %p2557_p4  ;;  %163 = sbr.rel (%p2700_p3) target bundleno = 790 (0x316), region = 32 }
   0xb   : > { %2560 = dma.hbm_to_vmem [thread:$0]  (!%p2558_p5), %s126_s15, 61440, %s128_s19, [#allocation3], %s2665_s25, %s2665_s25, %s2666_s26  }
   0xc   : > { %2563 = dma.hbm_to_vmem [thread:$0]  (!%p2558_p5), %s141_s22, 32, %s143_s24, [#allocation5]  }
   0xe   : > { %2652 = dma.done.wait (%p2564_p2), [#allocation3], 61440  }
   0xf   : > { %2654 = vsyncadd (%p2564_p2), [#allocation3], 4294905856 }
  0x10   : > { %2656 = dma.done.wait (%p2564_p2), [#allocation5], 32  }
  0x11   : > { %2658 = vsyncadd (%p2564_p2), [#allocation5], 4294967264  ;;  %p193_p6 = scmp.lt.s32.totalorder %s2420_s16, 1  ;;  %v372_v0 = vld [vmem:[#allocation2 + $0x4e0] sm:$0xff]  ;;  %v373_v2 = vld [vmem:[#allocation2 + $0x4e8] sm:$0xff]  ;;  %vm416_vm0 = vcmask 1046528  }
  0x12   : > { %v404_v1 = vld [vmem:[#allocation2 + $0x5e0] sm:$0xff]  ;;  %444 = vmatpush.msra.mxu0 %v372_v0  ;;  %v405_v3 = vld [vmem:[#allocation2 + $0x5e8] sm:$0xff]  ;;  %502 = vmatpush.msra.mxu2 %v373_v2  ;;  %vm435_vm1 = vcmask 523264   ;;  %v374_v40 = vld [vmem:[#allocation2 + $0x4f0] sm:$0xff]  ;;  %vm1023_vm2 = vcmask 1045504   ;;  %vm1403_vm3 = vcmask 1044480  }
  0x13   : > { %s3565_s16 = smov (!%p193_p6, %s2420_s16), 1  ;;  %481 = vmatpush.msra.mxu1 %v404_v1  ;;  %v368_v4 = vld [vmem:[#allocation2 + $0x4c0] sm:$0xff]  ;;  %539 = vmatpush.msra.mxu3 %v405_v3  ;;  %v369_v6 = vld [vmem:[#allocation2 + $0x4c8] sm:$0xff]  ;;  %v370_v43 = vld [vmem:[#allocation2 + $0x4d0] sm:$0xff]  ;;  %vm1783_vm4 = vcmask 1043456   ;;  %vm2075_vm7 = vcmask 228352  }
  0x14   : > { %v400_v5 = vld [vmem:[#allocation2 + $0x5c0] sm:$0xff]  ;;  %v401_v7 = vld [vmem:[#allocation2 + $0x5c8] sm:$0xff]  ;;  %445 = vmatpush.msra.mxu0 %v368_v4  ;;  %503 = vmatpush.msra.mxu2 %v369_v6  ;;  %s2539_s27 = sshll.u32 %s3565_s16, 6  ;;  %v366_v47 = vld [vmem:[#allocation2 + $0x4b0] sm:$0xff]  ;;  %s2668_s4 = smov 32   ;;  %vm2310_vm10 = vcmask 261120  }
  0x15   : > { %v364_v8 = vld [vmem:[#allocation2 + $0x4a0] sm:$0xff]  ;;  %482 = vmatpush.msra.mxu1 %v400_v5  ;;  %v365_v10 = vld [vmem:[#allocation2 + $0x4a8] sm:$0xff]  ;;  %540 = vmatpush.msra.mxu3 %v401_v7  ;;  %s2722_s30 = scalar_lea.vmem %s3521_s0, %s2539_s27  ;;  %v406_v50 = vld [vmem:[#allocation2 + $0x5f0] sm:$0xff]  ;;  %s2540_s5 = sshll.u32 %s3565_s16, 5  ;;  %vm2341_vm11 = vcmask 783360   ;;  %vm2338_vm12 = vcmask 785408  }
  0x16   : > { %v396_v9 = vld [vmem:[#allocation2 + $0x5a0] sm:$0xff]  ;;  %v397_v11 = vld [vmem:[#allocation2 + $0x5a8] sm:$0xff]  ;;  %446 = vmatpush.msra.mxu0 %v364_v8  ;;  %504 = vmatpush.msra.mxu2 %v365_v10  ;;  %v2725_v26 = vld [vmem:[%s2722_s30 + $0x18] sm:$0xff]  ;;  %s202_s8 = scalar_lea.vmem %s3524_s3, %s2540_s5 }
  0x17   : > { %v360_v12 = vld [vmem:[#allocation2 + $0x480] sm:$0xff]  ;;  %483 = vmatpush.msra.mxu1 %v396_v9  ;;  %v361_v14 = vld [vmem:[#allocation2 + $0x488] sm:$0xff]  ;;  %541 = vmatpush.msra.mxu3 %v397_v11  ;;  %v421_v30 = vrot.slane %v2725_v26, 1  ;;  %v362_v51 = vld [vmem:[#allocation2 + $0x490] sm:$0xff] }
  0x18   : > { %v392_v13 = vld [vmem:[#allocation2 + $0x580] sm:$0xff]  ;;  %v393_v15 = vld [vmem:[#allocation2 + $0x588] sm:$0xff]  ;;  %447 = vmatpush.msra.mxu0 %v360_v12  ;;  %505 = vmatpush.msra.mxu2 %v361_v14  ;;  %v358_v55 = vld [vmem:[#allocation2 + $0x470] sm:$0xff] }
  0x19   : > { %v356_v16 = vld [vmem:[#allocation2 + $0x460] sm:$0xff]  ;;  %484 = vmatpush.msra.mxu1 %v392_v13  ;;  %v357_v18 = vld [vmem:[#allocation2 + $0x468] sm:$0xff]  ;;  %542 = vmatpush.msra.mxu3 %v393_v15  ;;  %v2744_v56 = vld [vmem:[%s2722_s30 + $0x10] sm:$0xff] }
  0x1a   : > { %v388_v17 = vld [vmem:[#allocation2 + $0x560] sm:$0xff]  ;;  %v389_v19 = vld [vmem:[#allocation2 + $0x568] sm:$0xff]  ;;  %448 = vmatpush.msra.mxu0 %v356_v16  ;;  %506 = vmatpush.msra.mxu2 %v357_v18  ;;  %v310_v58 = vld [vmem:[%s2722_s30 + $0x38] sm:$0x1f]  ;;  %v418_v1 = vrot.slane %v2744_v56, 1 }
  0x1b   : > { %v352_v20 = vld [vmem:[#allocation2 + $0x440] sm:$0xff]  ;;  %485 = vmatpush.msra.mxu1 %v388_v17  ;;  %v353_v22 = vld [vmem:[#allocation2 + $0x448] sm:$0xff]  ;;  %543 = vmatpush.msra.mxu3 %v389_v19  ;;  %v402_v60 = vld [vmem:[#allocation2 + $0x5d0] sm:$0xff]  ;;  %v2753_v2 = vrot.slane %v310_v58, 1 }
  0x1c   : > { %v384_v21 = vld [vmem:[#allocation2 + $0x540] sm:$0xff]  ;;  %v385_v23 = vld [vmem:[#allocation2 + $0x548] sm:$0xff]  ;;  %449 = vmatpush.msra.mxu0 %v352_v20  ;;  %507 = vmatpush.msra.mxu2 %v353_v22  ;;  %v354_v62 = vld [vmem:[#allocation2 + $0x450] sm:$0xff] }
  0x1d   : > { %v348_v24 = vld [vmem:[#allocation2 + $0x420] sm:$0xff]  ;;  %486 = vmatpush.msra.mxu1 %v384_v21  ;;  %v349_v27 = vld [vmem:[#allocation2 + $0x428] sm:$0xff]  ;;  %544 = vmatpush.msra.mxu3 %v385_v23  ;;  %v398_v3 = vld [vmem:[#allocation2 + $0x5b0] sm:$0xff] }
  0x1e   : > { %v380_v25 = vld [vmem:[#allocation2 + $0x520] sm:$0xff]  ;;  %v381_v28 = vld [vmem:[#allocation2 + $0x528] sm:$0xff]  ;;  %450 = vmatpush.msra.mxu0 %v348_v24  ;;  %508 = vmatpush.msra.mxu2 %v349_v27  ;;  %v350_v5 = vld [vmem:[#allocation2 + $0x430] sm:$0xff] }
  0x1f   : > { %v308_v29 = vld [vmem:[%s2722_s30 + $0x8] sm:$0xfe]  ;;  %v344_v31 = vld [vmem:[#allocation2 + $0x400] sm:$0xff]  ;;  %487 = vmatpush.msra.mxu1 %v380_v25  ;;  %545 = vmatpush.msra.mxu3 %v381_v28  ;;  %v394_v7 = vld [vmem:[#allocation2 + $0x590] sm:$0xff] }
  0x20   : > { %v376_v32 = vld [vmem:[#allocation2 + $0x500] sm:$0xff]  ;;  %v420_v33 = vrot.slane %v308_v29, 1  ;;  %v345_v34 = vld [vmem:[#allocation2 + $0x408] sm:$0xff]  ;;  %451 = vmatpush.msra.mxu0 %v344_v31  ;;  %v346_v9 = vld [vmem:[#allocation2 + $0x410] sm:$0xff] }
  0x21   : > { %v377_v35 = vld [vmem:[#allocation2 + $0x508] sm:$0xff]  ;;  %488 = vmatpush.msra.mxu1 %v376_v32  ;;  %v340_v37 = vld [vmem:[#allocation2 + $0x3e0] sm:$0xff]  ;;  %509 = vmatpush.msra.mxu2 %v345_v34  ;;  %v342_v12 = vld [vmem:[#allocation2 + $0x3f0] sm:$0xff] }
  0x22   : > { %v2730_v36 = vsel %vm416_vm0, %v420_v33, %v421_v30  ;;  %v341_v38 = vld [vmem:[#allocation2 + $0x3e8] sm:$0xff]  ;;  %546 = vmatpush.msra.mxu3 %v377_v35  ;;  %v336_v41 = vld [vmem:[#allocation2 + $0x3c0] sm:$0xff]  ;;  %452 = vmatpush.msra.mxu0 %v340_v37  ;;  %v375_v13 = vld [vmem:[#allocation2 + $0x4f8] sm:$0xff] }
  0x23   : > { %v2733_v39 = vld [vmem:[%s2722_s30 + $0x28] sm:$0xff]  ;;  %2433 = vmatmul.msk.f32.vlgmr.msra.gmra.mxu1 %vm435_vm1, %v2730_v36  ;;  %2437 = vmatmul.msk.f32.vlgmr.msra.gmra.mxu3 %vm435_vm1, %v2730_v36  ;;  %v332_v45 = vld [vmem:[#allocation2 + $0x3a0] sm:$0xff]  ;;  %v407_v15 = vld [vmem:[#allocation2 + $0x5f8] sm:$0xff] }
  0x24   : > { %v337_v42 = vld [vmem:[#allocation2 + $0x3c8] sm:$0xff]  ;;  %510 = vmatpush.msra.mxu2 %v341_v38  ;;  %v425_v44 = vrot.slane %v2733_v39, 1  ;;  %560 = vmatpush.msrb.mxu1 %v374_v40  ;;  %v328_v48 = vld [vmem:[#allocation2 + $0x380] sm:$0xff]  ;;  %v390_v16 = vld [vmem:[#allocation2 + $0x570] sm:$0xff] }
  0x25   : > { %v333_v46 = vld [vmem:[#allocation2 + $0x3a8] sm:$0xff]  ;;  %453 = vmatpush.msra.mxu0 %v336_v41  ;;  %v324_v53 = vld [vmem:[#allocation2 + $0x360] sm:$0xff]  ;;  %597 = vmatpush.msrb.mxu3 %v406_v50  ;;  %v338_v17 = vld [vmem:[#allocation2 + $0x3d0] sm:$0xff] }
  0x26   : > { %511 = vmatpush.msra.mxu2 %v337_v42  ;;  %561 = vmatpush.msrb.mxu1 %v370_v43  ;;  %v329_v49 = vld [vmem:[#allocation2 + $0x388] sm:$0xff]  ;;  %v2741_v52 = vsel %vm416_vm0, %v421_v30, %v425_v44  ;;  %v307_v57 = vld [vmem:[%s2722_s30] sm:$0xfe]  ;;  %v2760_v11 = vsel %vm416_vm0, %v425_v44, %v2753_v2  ;;  %v371_v18 = vld [vmem:[#allocation2 + $0x4d8] sm:$0xff] }
  0x27   : > { %454 = vmatpush.msra.mxu0 %v332_v45  ;;  %v325_v54 = vld [vmem:[#allocation2 + $0x368] sm:$0xff]  ;;  %v320_v59 = vld [vmem:[#allocation2 + $0x340] sm:$0xff]  ;;  %v417_v0 = vrot.slane %v307_v57, 1  ;;  %598 = vmatpush.msrb.mxu3 %v402_v60  ;;  %v403_v19 = vld [vmem:[#allocation2 + $0x5d8] sm:$0xff] }
  0x28   : > { %512 = vmatpush.msra.mxu2 %v333_v46  ;;  %562 = vmatpush.msrb.mxu1 %v366_v47  ;;  %v321_v61 = vld [vmem:[#allocation2 + $0x348] sm:$0xff]  ;;  %v316_v63 = vld [vmem:[#allocation2 + $0x320] sm:$0xff]  ;;  %v386_v21 = vld [vmem:[#allocation2 + $0x550] sm:$0xff] }
  0x29   : > { %455 = vmatpush.msra.mxu0 %v328_v48  ;;  %v317_v4 = vld [vmem:[#allocation2 + $0x328] sm:$0xff]  ;;  %v312_v6 = vld [vmem:[#allocation2 + $0x300] sm:$0xff]  ;;  %599 = vmatpush.msrb.mxu3 %v398_v3  ;;  %v2756_v10 = vsel %vm416_vm0, %v417_v0, %v418_v1  ;;  %v334_v22 = vld [vmem:[#allocation2 + $0x3b0] sm:$0xff] }
  0x2a   : > { %513 = vmatpush.msra.mxu2 %v329_v49  ;;  %563 = vmatpush.msrb.mxu1 %v362_v51  ;;  %v313_v8 = vld [vmem:[#allocation2 + $0x308] sm:$0xff]  ;;  %v2763_v14 = vld [vmem:[%s2722_s30 + $0x20] sm:$0xff]  ;;  %v367_v23 = vld [vmem:[#allocation2 + $0x4b8] sm:$0xff] }
  0x2b   : > { %2438 = vmatmul.msk.f32.gmra.mxu3 %vm435_vm1, %v2741_v52  ;;  %2434 = vmatmul.msk.f32.gmra.mxu1 %vm435_vm1, %v2741_v52  ;;  %v423_v20 = vrot.slane %v2763_v14, 1  ;;  %v399_v24 = vld [vmem:[#allocation2 + $0x5b8] sm:$0xff]  ;;  %v382_v25 = vld [vmem:[#allocation2 + $0x530] sm:$0xff]  ;;  %v303_v41 = vld [vmem:[#allocation2 + $0x2e0] sm:$0xff] }
  0x2c   : > { %456 = vmatpush.msra.mxu0 %v324_v53  ;;  %514 = vmatpush.msra.mxu2 %v325_v54  ;;  %v330_v27 = vld [vmem:[#allocation2 + $0x390] sm:$0xff]  ;;  %v363_v28 = vld [vmem:[#allocation2 + $0x498] sm:$0xff]  ;;  %v299_v45 = vld [vmem:[#allocation2 + $0x2c0] sm:$0xff] }
  0x2d   : > { %564 = vmatpush.msrb.mxu1 %v358_v55  ;;  %600 = vmatpush.msrb.mxu3 %v394_v7  ;;  %v2773_v29 = vsel %vm416_vm0, %v418_v1, %v423_v20  ;;  %v326_v30 = vld [vmem:[#allocation2 + $0x370] sm:$0xff]  ;;  %v359_v31 = vld [vmem:[#allocation2 + $0x478] sm:$0xff]  ;;  %v271_v50 = vld [vmem:[#allocation2 + $0x1e0] sm:$0xff] }
  0x2e   : > { %457 = vmatpush.msra.mxu0 %v320_v59  ;;  %515 = vmatpush.msra.mxu2 %v321_v61  ;;  %v309_v32 = vld [vmem:[%s2722_s30 + $0x30] sm:$0x1f]  ;;  %v395_v33 = vld [vmem:[#allocation2 + $0x598] sm:$0xff]  ;;  %v295_v53 = vld [vmem:[#allocation2 + $0x2a0] sm:$0xff] }
  0x2f   : > { %565 = vmatpush.msrb.mxu1 %v354_v62  ;;  %601 = vmatpush.msrb.mxu3 %v390_v16  ;;  %v378_v34 = vld [vmem:[#allocation2 + $0x510] sm:$0xff]  ;;  %v355_v37 = vld [vmem:[#allocation2 + $0x458] sm:$0xff]  ;;  %v2782_v38 = vrot.slane %v309_v32, 1  ;;  %v267_v55 = vld [vmem:[#allocation2 + $0x1c0] sm:$0xff] }
  0x30   : > { %458 = vmatpush.msra.mxu0 %v316_v63  ;;  %516 = vmatpush.msra.mxu2 %v317_v4  ;;  %v322_v35 = vld [vmem:[#allocation2 + $0x350] sm:$0xff]  ;;  %v391_v40 = vld [vmem:[#allocation2 + $0x578] sm:$0xff]  ;;  %v291_v58 = vld [vmem:[#allocation2 + $0x280] sm:$0xff] }
  0x31   : > { %566 = vmatpush.msrb.mxu1 %v350_v5  ;;  %602 = vmatpush.msrb.mxu3 %v386_v21  ;;  %v318_v42 = vld [vmem:[#allocation2 + $0x330] sm:$0xff]  ;;  %v351_v43 = vld [vmem:[#allocation2 + $0x438] sm:$0xff]  ;;  %v2786_v48 = vsel %vm416_vm0, %v423_v20, %v2782_v38  ;;  %v263_v60 = vld [vmem:[#allocation2 + $0x1a0] sm:$0xff] }
  0x32   : > { %459 = vmatpush.msra.mxu0 %v312_v6  ;;  %517 = vmatpush.msra.mxu2 %v313_v8  ;;  %v387_v44 = vld [vmem:[#allocation2 + $0x558] sm:$0xff]  ;;  %v314_v46 = vld [vmem:[#allocation2 + $0x310] sm:$0xff]  ;;  %v304_v61 = vld [vmem:[#allocation2 + $0x2e8] sm:$0xff] }
  0x33   : > { %567 = vmatpush.msrb.mxu1 %v346_v9  ;;  %460 = vmatmul.f32.vlgmr.msra.gmra.mxu0 %v2756_v10  ;;  %v347_v47 = vld [vmem:[#allocation2 + $0x418] sm:$0xff]  ;;  %v287_v62 = vld [vmem:[#allocation2 + $0x260] sm:$0xff]  ;;  %v300_v4 = vld [vmem:[#allocation2 + $0x2c8] sm:$0xff] }
  0x34   : > { %2435 = vmatmul.msk.f32.gmra.mxu1 %vm435_vm1, %v2760_v11  ;;  %518 = vmatmul.f32.vlgmr.msra.gmra.mxu2 %v2756_v10  ;;  %v343_v49 = vld [vmem:[#allocation2 + $0x3f8] sm:$0xff]  ;;  %v259_v0 = vld [vmem:[#allocation2 + $0x180] sm:$0xff]  ;;  %v296_v8 = vld [vmem:[#allocation2 + $0x2a8] sm:$0xff] }
  0x35   : > { %2439 = vmatmul.msk.f32.gmra.mxu3 %vm435_vm1, %v2760_v11  ;;  %568 = vmatpush.msrb.mxu1 %v342_v12  ;;  %v383_v51 = vld [vmem:[#allocation2 + $0x538] sm:$0xff]  ;;  %v255_v3 = vld [vmem:[#allocation2 + $0x160] sm:$0xff]  ;;  %v272_v20 = vld [vmem:[#allocation2 + $0x1e8] sm:$0xff] }
  0x36   : > { %618 = vmatpush.msrb.mxu0 %v375_v13  ;;  %655 = vmatpush.msrb.mxu2 %v407_v15  ;;  %v339_v54 = vld [vmem:[#allocation2 + $0x3d8] sm:$0xff]  ;;  %v283_v5 = vld [vmem:[#allocation2 + $0x240] sm:$0xff]  ;;  %v292_v15 = vld [vmem:[#allocation2 + $0x288] sm:$0xff] }
  0x37   : > { %569 = vmatpush.msrb.mxu1 %v338_v17  ;;  %603 = vmatpush.msrb.mxu3 %v382_v25  ;;  %v379_v57 = vld [vmem:[#allocation2 + $0x518] sm:$0xff]  ;;  %v251_v7 = vld [vmem:[#allocation2 + $0x140] sm:$0xff]  ;;  %v288_v21 = vld [vmem:[#allocation2 + $0x268] sm:$0xff] }
  0x38   : > { %619 = vmatpush.msrb.mxu0 %v371_v18  ;;  %656 = vmatpush.msrb.mxu2 %v403_v19  ;;  %v335_v59 = vld [vmem:[#allocation2 + $0x3b8] sm:$0xff]  ;;  %v279_v9 = vld [vmem:[#allocation2 + $0x220] sm:$0xff]  ;;  %v305_v32 = vld [vmem:[#allocation2 + $0x2f0] sm:$0xff] }
  0x39   : > { %570 = vmatpush.msrb.mxu1 %v334_v22  ;;  %604 = vmatpush.msrb.mxu3 %v378_v34  ;;  %v331_v63 = vld [vmem:[#allocation2 + $0x398] sm:$0xff]  ;;  %v247_v13 = vld [vmem:[#allocation2 + $0x120] sm:$0xff]  ;;  %v301_v34 = vld [vmem:[#allocation2 + $0x2d0] sm:$0xff] }
  0x3a   : > { %620 = vmatpush.msrb.mxu0 %v367_v23  ;;  %657 = vmatpush.msrb.mxu2 %v399_v24  ;;  %v327_v1 = vld [vmem:[#allocation2 + $0x378] sm:$0xff]  ;;  %v275_v16 = vld [vmem:[#allocation2 + $0x200] sm:$0xff]  ;;  %v268_v23 = vld [vmem:[#allocation2 + $0x1c8] sm:$0xff] }
  0x3b   : > { %571 = vmatpush.msrb.mxu1 %v330_v27  ;;  %463 = vmatmul.f32.gmra.mxu0 %v2773_v29  ;;  %v323_v6 = vld [vmem:[#allocation2 + $0x358] sm:$0xff]  ;;  %v243_v18 = vld [vmem:[#allocation2 + $0x100] sm:$0xff]  ;;  %v284_v24 = vld [vmem:[#allocation2 + $0x248] sm:$0xff] }
  0x3c   : > { %621 = vmatpush.msrb.mxu0 %v363_v28  ;;  %2436 = vmatmul.msk.f32.gmra.mxu1 %vm435_vm1, %v2753_v2  ;;  %v319_v12 = vld [vmem:[#allocation2 + $0x338] sm:$0xff]  ;;  %v239_v19 = vld [vmem:[#allocation2 + $0xe0] sm:$0xff]  ;;  %v264_v27 = vld [vmem:[#allocation2 + $0x1a8] sm:$0xff] }
  0x3d   : > { %521 = vmatmul.f32.gmra.mxu2 %v2773_v29  ;;  %2440 = vmatmul.msk.f32.gmra.mxu3 %vm435_vm1, %v2753_v2  ;;  %v315_v17 = vld [vmem:[#allocation2 + $0x318] sm:$0xff]  ;;  %v235_v22 = vld [vmem:[#allocation2 + $0xc0] sm:$0xff]  ;;  %v280_v28 = vld [vmem:[#allocation2 + $0x228] sm:$0xff] }
  0x3e   : > { %572 = vmatpush.msrb.mxu1 %v326_v30  ;;  %622 = vmatpush.msrb.mxu0 %v359_v31  ;;  %v231_v25 = vld [vmem:[#allocation2 + $0xa0] sm:$0xff]  ;;  %v260_v31 = vld [vmem:[#allocation2 + $0x188] sm:$0xff] }
  0x3f   : > { %658 = vmatpush.msrb.mxu2 %v395_v33  ;;  %723 = vmatpush.msra.mxu3 %v303_v41  ;;  %v227_v30 = vld [vmem:[#allocation2 + $0x80] sm:$0xff]  ;;  %v276_v33 = vld [vmem:[#allocation2 + $0x208] sm:$0xff]  ;;  %v297_v41 = vld [vmem:[#allocation2 + $0x2b0] sm:$0xff] }
  0x40   : > { %573 = vmatpush.msrb.mxu1 %v322_v35  ;;  %623 = vmatpush.msrb.mxu0 %v355_v37  ;;  %v219_v35 = vld [vmem:[#allocation2 + $0x40] sm:$0xff]  ;;  %v252_v37 = vld [vmem:[#allocation2 + $0x148] sm:$0xff] }
  0x41   : > { %659 = vmatpush.msrb.mxu2 %v391_v40  ;;  %724 = vmatpush.msra.mxu3 %v299_v45  ;;  %v306_v40 = vld [vmem:[#allocation2 + $0x2f8] sm:$0xff]  ;;  %v293_v45 = vld [vmem:[#allocation2 + $0x290] sm:$0xff] }
  0x42   : > { %574 = vmatpush.msrb.mxu1 %v318_v42  ;;  %624 = vmatpush.msrb.mxu0 %v351_v43  ;;  %v215_v42 = vld [vmem:[#allocation2 + $0x20] sm:$0xff]  ;;  %v248_v43 = vld [vmem:[#allocation2 + $0x128] sm:$0xff] }
  0x43   : > { %660 = vmatpush.msrb.mxu2 %v387_v44  ;;  %466 = vmatmul.f32.gmra.mxu0 %v2786_v48  ;;  %v302_v44 = vld [vmem:[#allocation2 + $0x2d8] sm:$0xff] }
  0x44   : > { %575 = vmatpush.msrb.mxu1 %v314_v46  ;;  %625 = vmatpush.msrb.mxu0 %v347_v47  ;;  %v244_v46 = vld [vmem:[#allocation2 + $0x108] sm:$0xff] }
  0x45   : > { %524 = vmatmul.f32.gmra.mxu2 %v2786_v48  ;;  %576 = vmatmul.f32.vlgmr.msrb.gmra.mxu1 %v2756_v10  ;;  %v2814_v47 = vld [vmem:[%s2722_s30 + $0x8] sm:$0xff] }
  0x46   : > { %2441 = vmatmul.msk.f32.vlgmr.msrb.gmra.mxu3 %vm435_vm1, %v2730_v36  ;;  %626 = vmatpush.msrb.mxu0 %v343_v49  ;;  %v240_v49 = vld [vmem:[#allocation2 + $0xe8] sm:$0xff] }
  0x47   : > { %686 = vmatpush.msra.mxu1 %v271_v50  ;;  %661 = vmatpush.msrb.mxu2 %v383_v51  ;;  %v273_v50 = vld [vmem:[#allocation2 + $0x1f0] sm:$0xff] }
  0x48   : > { %725 = vmatpush.msra.mxu3 %v295_v53  ;;  %627 = vmatpush.msrb.mxu0 %v339_v54  ;;  %v289_v51 = vld [vmem:[#allocation2 + $0x270] sm:$0xff]  ;;  %v298_v53 = vld [vmem:[#allocation2 + $0x2b8] sm:$0xff]  ;;  %v236_v54 = vld [vmem:[#allocation2 + $0xc8] sm:$0xff] }
  0x49   : > { %687 = vmatpush.msra.mxu1 %v267_v55  ;;  %662 = vmatpush.msrb.mxu2 %v379_v57  ;;  %v269_v55 = vld [vmem:[#allocation2 + $0x1d0] sm:$0xff] }
  0x4a   : > { %726 = vmatpush.msra.mxu3 %v291_v58  ;;  %628 = vmatpush.msrb.mxu0 %v335_v59  ;;  %v285_v57 = vld [vmem:[#allocation2 + $0x250] sm:$0xff]  ;;  %v294_v58 = vld [vmem:[#allocation2 + $0x298] sm:$0xff]  ;;  %v232_v59 = vld [vmem:[#allocation2 + $0xa8] sm:$0xff] }
  0x4b   : > { %688 = vmatpush.msra.mxu1 %v263_v60  ;;  %781 = vmatpush.msra.mxu2 %v304_v61  ;;  %v265_v60 = vld [vmem:[#allocation2 + $0x1b0] sm:$0xff] }
  0x4c   : > { %727 = vmatpush.msra.mxu3 %v287_v62  ;;  %629 = vmatpush.msrb.mxu0 %v331_v63  ;;  %v261_v61 = vld [vmem:[#allocation2 + $0x190] sm:$0xff]  ;;  %v290_v62 = vld [vmem:[#allocation2 + $0x278] sm:$0xff]  ;;  %v224_v63 = vld [vmem:[#allocation2 + $0x68] sm:$0xff] }
  0x4d   : > { %689 = vmatpush.msra.mxu1 %v259_v0  ;;  %469 = vmatmul.f32.gmra.mxu0 %v2782_v38  ;;  %v257_v0 = vld [vmem:[#allocation2 + $0x170] sm:$0xff] }
  0x4e   : > { %527 = vmatmul.f32.gmra.mxu2 %v2782_v38  ;;  %579 = vmatmul.f32.gmra.mxu1 %v2773_v29 }
  0x4f   : > { %2442 = vmatmul.msk.f32.gmra.mxu3 %vm435_vm1, %v2741_v52  ;;  %630 = vmatpush.msrb.mxu0 %v327_v1  ;;  %v277_v1 = vld [vmem:[#allocation2 + $0x210] sm:$0xff] }
  0x50   : > { %690 = vmatpush.msra.mxu1 %v255_v3  ;;  %782 = vmatpush.msra.mxu2 %v300_v4  ;;  %v220_v3 = vld [vmem:[#allocation2 + $0x48] sm:$0xff]  ;;  %v253_v4 = vld [vmem:[#allocation2 + $0x150] sm:$0xff] }
  0x51   : > { %728 = vmatpush.msra.mxu3 %v283_v5  ;;  %631 = vmatpush.msrb.mxu0 %v323_v6  ;;  %v286_v5 = vld [vmem:[#allocation2 + $0x258] sm:$0xff]  ;;  %v216_v6 = vld [vmem:[#allocation2 + $0x28] sm:$0xff] }
  0x52   : > { %691 = vmatpush.msra.mxu1 %v251_v7  ;;  %783 = vmatpush.msra.mxu2 %v296_v8  ;;  %v249_v7 = vld [vmem:[#allocation2 + $0x130] sm:$0xff] }
  0x53   : > { %729 = vmatpush.msra.mxu3 %v279_v9  ;;  %632 = vmatpush.msrb.mxu0 %v319_v12  ;;  %v245_v8 = vld [vmem:[#allocation2 + $0x110] sm:$0xff]  ;;  %v274_v12 = vld [vmem:[#allocation2 + $0x1f8] sm:$0xff] }
  0x54   : > { %692 = vmatpush.msra.mxu1 %v247_v13  ;;  %784 = vmatpush.msra.mxu2 %v292_v15  ;;  %v241_v9 = vld [vmem:[#allocation2 + $0xf0] sm:$0xff]  ;;  %v278_v13 = vld [vmem:[#allocation2 + $0x218] sm:$0xff] }
  0x55   : > { %730 = vmatpush.msra.mxu3 %v275_v16  ;;  %633 = vmatpush.msrb.mxu0 %v315_v17  ;;  %v237_v15 = vld [vmem:[#allocation2 + $0xd0] sm:$0xff]  ;;  %v270_v16 = vld [vmem:[#allocation2 + $0x1d8] sm:$0xff] }
  0x56   : > { %693 = vmatpush.msra.mxu1 %v243_v18  ;;  %634 = vmatmul.f32.vlgmr.msrb.gmra.mxu0 %v2756_v10  ;;  %v256_v10 = vld [vmem:[#allocation2 + $0x168] sm:$0xff]  ;;  %v233_v17 = vld [vmem:[#allocation2 + $0xb0] sm:$0xff]  ;;  %v266_v18 = vld [vmem:[#allocation2 + $0x1b8] sm:$0xff] }
  0x57   : > { %582 = vmatmul.f32.gmra.mxu1 %v2786_v48  ;;  %2443 = vmatmul.msk.f32.gmra.mxu3 %vm435_vm1, %v2760_v11 }
  0x58   : > { %2445 = vmatmul.msk.f32.vlgmr.msrb.gmra.mxu2 %vm435_vm1, %v2730_v36  ;;  %694 = vmatpush.msra.mxu1 %v239_v19  ;;  %v223_v36 = vld [vmem:[#allocation2 + $0x60] sm:$0xff] }
  0x59   : > { %744 = vmatpush.msra.mxu0 %v272_v20  ;;  %785 = vmatpush.msra.mxu2 %v288_v21  ;;  %v1015_v19 = vld [vmem:[#allocation2 + $0x8e0] sm:$0xff]  ;;  %v1016_v20 = vld [vmem:[#allocation2 + $0x8e8] sm:$0xff]  ;;  %v229_v21 = vld [vmem:[#allocation2 + $0x90] sm:$0xff] }
  0x5a   : > { %695 = vmatpush.msra.mxu1 %v235_v22  ;;  %839 = vmatpush.msrb.mxu3 %v305_v32  ;;  %v262_v22 = vld [vmem:[#allocation2 + $0x198] sm:$0xff]  ;;  %v221_v32 = vld [vmem:[#allocation2 + $0x50] sm:$0xff] }
  0x5b   : > { %745 = vmatpush.msra.mxu0 %v268_v23  ;;  %786 = vmatpush.msra.mxu2 %v284_v24  ;;  %v1011_v23 = vld [vmem:[#allocation2 + $0x8c0] sm:$0xff]  ;;  %v2835_v24 = vld [vmem:[%s2722_s30 + $0x30] sm:$0xf] }
  0x5c   : > { %696 = vmatpush.msra.mxu1 %v231_v25  ;;  %840 = vmatpush.msrb.mxu3 %v301_v34  ;;  %v2838_v25 = vld [vmem:[%s2722_s30 + $0x38] sm:$0xf] }
  0x5d   : > { %746 = vmatpush.msra.mxu0 %v264_v27  ;;  %787 = vmatpush.msra.mxu2 %v280_v28  ;;  %v1012_v27 = vld [vmem:[#allocation2 + $0x8c8] sm:$0xff]  ;;  %v225_v28 = vld [vmem:[#allocation2 + $0x70] sm:$0xff]  ;;  %v250_v34 = vld [vmem:[#allocation2 + $0x138] sm:$0xff] }
  0x5e   : > { %697 = vmatpush.msra.mxu1 %v227_v30  ;;  %637 = vmatmul.f32.gmra.mxu0 %v2773_v29  ;;  %v211_v29 = vld [vmem:[#allocation2] sm:$0xff]  ;;  %v258_v30 = vld [vmem:[#allocation2 + $0x178] sm:$0xff] }
  0x5f   : > { %747 = vmatpush.msra.mxu0 %v260_v31  ;;  %585 = vmatmul.f32.gmra.mxu1 %v2782_v38  ;;  %v1007_v31 = vld [vmem:[#allocation2 + $0x8a0] sm:$0xff] }
  0x60   : > { %2444 = vmatmul.msk.f32.gmra.mxu3 %vm435_vm1, %v2753_v2  ;;  %2446 = vmatmul.msk.f32.gmra.mxu2 %vm435_vm1, %v2741_v52  ;;  %v2811_v52 = vld [vmem:[%s2722_s30] sm:$0xff] }
  0x61   : > { %698 = vmatpush.msra.mxu1 %v223_v36  ;;  %748 = vmatpush.msra.mxu0 %v256_v10  ;;  %v254_v36 = vld [vmem:[#allocation2 + $0x158] sm:$0xff]  ;;  %v1003_v10 = vld [vmem:[#allocation2 + $0x880] sm:$0xff] }
  0x62   : > { %788 = vmatpush.msra.mxu2 %v276_v33  ;;  %841 = vmatpush.msrb.mxu3 %v297_v41  ;;  %v217_v33 = vld [vmem:[#allocation2 + $0x30] sm:$0xff]  ;;  %v246_v41 = vld [vmem:[#allocation2 + $0x118] sm:$0xff] }
  0x63   : > { %699 = vmatpush.msra.mxu1 %v219_v35  ;;  %749 = vmatpush.msra.mxu0 %v252_v37  ;;  %v999_v35 = vld [vmem:[#allocation2 + $0x860] sm:$0xff]  ;;  %v1008_v37 = vld [vmem:[#allocation2 + $0x8a8] sm:$0xff] }
  0x64   : > { %897 = vmatpush.msrb.mxu2 %v306_v40  ;;  %842 = vmatpush.msrb.mxu3 %v293_v45  ;;  %v213_v40 = vld [vmem:[#allocation2 + $0x10] sm:$0xff]  ;;  %v995_v45 = vld [vmem:[#allocation2 + $0x840] sm:$0xff] }
  0x65   : > { %700 = vmatpush.msra.mxu1 %v215_v42  ;;  %750 = vmatpush.msra.mxu0 %v248_v43  ;;  %v1004_v42 = vld [vmem:[#allocation2 + $0x888] sm:$0xff]  ;;  %v242_v43 = vld [vmem:[#allocation2 + $0xf8] sm:$0xff] }
  0x66   : > { %898 = vmatpush.msrb.mxu2 %v302_v44  ;;  %640 = vmatmul.f32.gmra.mxu0 %v2786_v48  ;;  %v228_v48 = vld [vmem:[#allocation2 + $0x88] sm:$0xff]  ;;  %v983_v44 = vld [vmem:[#allocation2 + $0x7e0] sm:$0xff] }
  0x67   : > { %701 = vmatpush.msra.mxu1 %v211_v29  ;;  %751 = vmatpush.msra.mxu0 %v244_v46  ;;  %v238_v29 = vld [vmem:[#allocation2 + $0xd8] sm:$0xff]  ;;  %v979_v46 = vld [vmem:[#allocation2 + $0x7c0] sm:$0xff] }
  0x68   : > { %2447 = vmatmul.msk.f32.gmra.mxu2 %vm435_vm1, %v2760_v11  ;;  %702 = vmatmul.f32.vlgmr.msra.gmra.mxu1 %v2811_v52  ;;  %v281_v11 = vld [vmem:[#allocation2 + $0x230] sm:$0xff] }
  0x69   : > { %2449 = vmatmul.msk.f32.vlgmr.msra.gmra.mxu3 %vm435_vm1, %v2814_v47  ;;  %752 = vmatpush.msra.mxu0 %v240_v49  ;;  %v991_v49 = vld [vmem:[#allocation2 + $0x820] sm:$0xff] }
  0x6a   : > { %802 = vmatpush.msrb.mxu1 %v273_v50  ;;  %843 = vmatpush.msrb.mxu3 %v289_v51  ;;  %v1000_v50 = vld [vmem:[#allocation2 + $0x868] sm:$0xff]  ;;  %v234_v51 = vld [vmem:[#allocation2 + $0xb8] sm:$0xff] }
  0x6b   : > { %899 = vmatpush.msrb.mxu2 %v298_v53  ;;  %753 = vmatpush.msra.mxu0 %v236_v54  ;;  %v975_v53 = vld [vmem:[#allocation2 + $0x7a0] sm:$0xff] }
  0x6c   : > { %803 = vmatpush.msrb.mxu1 %v269_v55  ;;  %844 = vmatpush.msrb.mxu3 %v285_v57  ;;  %v987_v54 = vld [vmem:[#allocation2 + $0x800] sm:$0xff]  ;;  %v230_v55 = vld [vmem:[#allocation2 + $0x98] sm:$0xff]  ;;  %v996_v57 = vld [vmem:[#allocation2 + $0x848] sm:$0xff] }
  0x6d   : > { %900 = vmatpush.msrb.mxu2 %v294_v58  ;;  %754 = vmatpush.msra.mxu0 %v232_v59  ;;  %v226_v58 = vld [vmem:[#allocation2 + $0x78] sm:$0xff]  ;;  %v971_v59 = vld [vmem:[#allocation2 + $0x780] sm:$0xff] }
  0x6e   : > { %804 = vmatpush.msrb.mxu1 %v265_v60  ;;  %845 = vmatpush.msrb.mxu3 %v281_v11  ;;  %v222_v60 = vld [vmem:[#allocation2 + $0x58] sm:$0xff]  ;;  %v967_v11 = vld [vmem:[#allocation2 + $0x760] sm:$0xff] }
  0x6f   : > { %901 = vmatpush.msrb.mxu2 %v290_v62  ;;  %755 = vmatpush.msra.mxu0 %v228_v48  ;;  %v992_v48 = vld [vmem:[#allocation2 + $0x828] sm:$0xff]  ;;  %v963_v62 = vld [vmem:[#allocation2 + $0x740] sm:$0xff] }
  0x70   : > { %805 = vmatpush.msrb.mxu1 %v261_v61  ;;  %643 = vmatmul.f32.gmra.mxu0 %v2782_v38  ;;  %v212_v38 = vld [vmem:[#allocation2 + $0x8] sm:$0xff]  ;;  %v218_v61 = vld [vmem:[#allocation2 + $0x38] sm:$0xff] }
  0x71   : > { %2448 = vmatmul.msk.f32.gmra.mxu2 %vm435_vm1, %v2753_v2  ;;  %705 = vmatmul.f32.gmra.mxu1 %v2744_v56  ;;  %v282_v2 = vld [vmem:[#allocation2 + $0x238] sm:$0xff] }
  0x72   : > { %2450 = vmatmul.msk.f32.gmra.mxu3 %vm435_vm1, %v2725_v26  ;;  %756 = vmatpush.msra.mxu0 %v224_v63  ;;  %v214_v63 = vld [vmem:[#allocation2 + $0x18] sm:$0xff] }
  0x73   : > { %806 = vmatpush.msrb.mxu1 %v257_v0  ;;  %846 = vmatpush.msrb.mxu3 %v277_v1  ;;  %v988_v0 = vld [vmem:[#allocation2 + $0x808] sm:$0xff]  ;;  %v959_v1 = vld [vmem:[#allocation2 + $0x720] sm:$0xff] }
  0x74   : > { %902 = vmatpush.msrb.mxu2 %v286_v5  ;;  %757 = vmatpush.msra.mxu0 %v220_v3  ;;  %v984_v3 = vld [vmem:[#allocation2 + $0x7e8] sm:$0xff] }
  0x75   : > { %807 = vmatpush.msrb.mxu1 %v253_v4  ;;  %1087 = vmatpush.msra.mxu3 %v1015_v19  ;;  %v955_v4 = vld [vmem:[#allocation2 + $0x700] sm:$0xff]  ;;  %v980_v5 = vld [vmem:[#allocation2 + $0x7c8] sm:$0xff]  ;;  %v1005_v19 = vld [vmem:[#allocation2 + $0x890] sm:$0xff] }
  0x76   : > { %758 = vmatpush.msra.mxu0 %v216_v6  ;;  %903 = vmatpush.msrb.mxu2 %v282_v2  ;;  %v1013_v2 = vld [vmem:[#allocation2 + $0x8d0] sm:$0xff] }
  0x77   : > { %808 = vmatpush.msrb.mxu1 %v249_v7  ;;  %1088 = vmatpush.msra.mxu3 %v1011_v23  ;;  %v1017_v7 = vld [vmem:[#allocation2 + $0x8f0] sm:$0xff]  ;;  %v1028_v23 = vrot.slane %v2725_v26, 2 }
  0x78   : > { %759 = vmatpush.msra.mxu0 %v212_v38  ;;  %904 = vmatpush.msrb.mxu2 %v278_v13  ;;  %v951_v38 = vld [vmem:[#allocation2 + $0x6e0] sm:$0xff]  ;;  %v972_v13 = vld [vmem:[#allocation2 + $0x788] sm:$0xff] }
  0x79   : > { %809 = vmatpush.msrb.mxu1 %v245_v8  ;;  %760 = vmatmul.f32.vlgmr.msra.gmra.mxu0 %v2811_v52  ;;  %v1018_v8 = vld [vmem:[#allocation2 + $0x8f8] sm:$0xff] }
  0x7a   : > { %708 = vmatmul.f32.gmra.mxu1 %v2763_v14  ;;  %2451 = vmatmul.msk.f32.gmra.mxu3 %vm435_vm1, %v2733_v39 }
  0x7b   : > { %2453 = vmatmul.msk.f32.vlgmr.msra.gmra.mxu2 %vm435_vm1, %v2814_v47  ;;  %810 = vmatpush.msrb.mxu1 %v241_v9  ;;  %v947_v9 = vld [vmem:[#allocation2 + $0x6c0] sm:$0xff] }
  0x7c   : > { %860 = vmatpush.msrb.mxu0 %v274_v12  ;;  %1145 = vmatpush.msra.mxu2 %v1016_v20  ;;  %v943_v12 = vld [vmem:[#allocation2 + $0x6a0] sm:$0xff] }
  0x7d   : > { %811 = vmatpush.msrb.mxu1 %v237_v15  ;;  %1089 = vmatpush.msra.mxu3 %v1007_v31  ;;  %v919_v15 = vld [vmem:[%s2722_s30 + $0x8] sm:$0xfc]  ;;  %v935_v20 = vld [vmem:[#allocation2 + $0x660] sm:$0xff]  ;;  %v1010_v31 = vld [vmem:[#allocation2 + $0x8b8] sm:$0xff] }
  0x7e   : > { %861 = vmatpush.msrb.mxu0 %v270_v16  ;;  %1146 = vmatpush.msra.mxu2 %v1012_v27 }
  0x7f   : > { %812 = vmatpush.msrb.mxu1 %v233_v17  ;;  %1090 = vmatpush.msra.mxu3 %v1003_v10  ;;  %v1014_v17 = vld [vmem:[#allocation2 + $0x8d8] sm:$0xff] }
  0x80   : > { %862 = vmatpush.msrb.mxu0 %v266_v18  ;;  %1147 = vmatpush.msra.mxu2 %v1008_v37  ;;  %v939_v18 = vld [vmem:[#allocation2 + $0x680] sm:$0xff] }
  0x81   : > { %813 = vmatpush.msrb.mxu1 %v229_v21  ;;  %763 = vmatmul.f32.gmra.mxu0 %v2744_v56  ;;  %v968_v21 = vld [vmem:[#allocation2 + $0x768] sm:$0xff]  ;;  %v927_v37 = vld [vmem:[#allocation2 + $0x620] sm:$0xff] }
  0x82   : > { %863 = vmatpush.msrb.mxu0 %v262_v22  ;;  %711 = vmatmul.f32.gmra.mxu1 %v2835_v24  ;;  %v1027_v22 = vrot.slane %v919_v15, 2  ;;  %v1395_v15 = vld [vmem:[#allocation2 + $0xbe0] sm:$0xff] }
  0x83   : > { %2452 = vmatmul.msk.f32.gmra.mxu3 %vm435_vm1, %v2838_v25  ;;  %2454 = vmatmul.msk.f32.gmra.mxu2 %vm435_vm1, %v2725_v26 }
  0x84   : > { %814 = vmatpush.msrb.mxu1 %v225_v28  ;;  %864 = vmatpush.msrb.mxu0 %v258_v30  ;;  %v918_v28 = vld [vmem:[%s2722_s30] sm:$0xfc]  ;;  %v1001_v30 = vld [vmem:[#allocation2 + $0x870] sm:$0xff] }
  0x85   : > { %1091 = vmatpush.msra.mxu3 %v999_v35  ;;  %1148 = vmatpush.msra.mxu2 %v1004_v42  ;;  %v1024_v10 = vrot.slane %v918_v28, 2  ;;  %v2881_v35 = vsel %vm1023_vm2, %v1027_v22, %v1028_v23  ;;  %v993_v42 = vld [vmem:[#allocation2 + $0x830] sm:$0xff]  ;;  %v986_v28 = vld [vmem:[#allocation2 + $0x7f8] sm:$0xff] }
  0x86   : > { %815 = vmatpush.msrb.mxu1 %v221_v32  ;;  %865 = vmatpush.msrb.mxu0 %v254_v36  ;;  %v964_v32 = vld [vmem:[#allocation2 + $0x748] sm:$0xff]  ;;  %v931_v36 = vld [vmem:[#allocation2 + $0x640] sm:$0xff]  ;;  %v953_v22 = vld [vmem:[#allocation2 + $0x6f0] sm:$0xff] }
  0x87   : > { %1092 = vmatpush.msra.mxu3 %v995_v45  ;;  %1149 = vmatpush.msra.mxu2 %v1000_v50  ;;  %v1002_v45 = vld [vmem:[#allocation2 + $0x878] sm:$0xff] }
  0x88   : > { %816 = vmatpush.msrb.mxu1 %v217_v33  ;;  %866 = vmatpush.msrb.mxu0 %v250_v34  ;;  %v1025_v33 = vrot.slane %v2744_v56, 2  ;;  %v997_v34 = vld [vmem:[#allocation2 + $0x850] sm:$0xff] }
  0x89   : > { %766 = vmatmul.f32.gmra.mxu0 %v2763_v14  ;;  %1093 = vmatpush.msra.mxu3 %v991_v49 }
  0x8a   : > { %817 = vmatpush.msrb.mxu1 %v213_v40  ;;  %867 = vmatpush.msrb.mxu0 %v246_v41  ;;  %v960_v40 = vld [vmem:[#allocation2 + $0x728] sm:$0xff] }
  0x8b   : > { %2455 = vmatmul.msk.f32.gmra.mxu2 %vm435_vm1, %v2733_v39  ;;  %818 = vmatmul.f32.vlgmr.msrb.gmra.mxu1 %v2811_v52 }
  0x8c   : > { %2457 = vmatmul.msk.f32.vlgmr.msrb.gmra.mxu3 %vm435_vm1, %v2814_v47  ;;  %868 = vmatpush.msrb.mxu0 %v242_v43  ;;  %v956_v43 = vld [vmem:[#allocation2 + $0x708] sm:$0xff] }
  0x8d   : > { %1050 = vmatpush.msra.mxu1 %v983_v44  ;;  %1094 = vmatpush.msra.mxu3 %v987_v54  ;;  %v2891_v44 = vsel %vm1023_vm2, %v1024_v10, %v1025_v33  ;;  %v981_v54 = vld [vmem:[#allocation2 + $0x7d0] sm:$0xff]  ;;  %v982_v10 = vld [vmem:[#allocation2 + $0x7d8] sm:$0xff] }
  0x8e   : > { %869 = vmatpush.msrb.mxu0 %v238_v29  ;;  %1150 = vmatpush.msra.mxu2 %v996_v57  ;;  %v2894_v29 = vld [vmem:[%s2722_s30 + $0x28] sm:$0xff] }
  0x8f   : > { %1051 = vmatpush.msra.mxu1 %v979_v46  ;;  %1203 = vmatpush.msrb.mxu3 %v1017_v7  ;;  %v1032_v46 = vrot.slane %v2894_v29, 2  ;;  %v936_v7 = vld [vmem:[#allocation2 + $0x668] sm:$0xff] }
  0x90   : > { %870 = vmatpush.msrb.mxu0 %v234_v51  ;;  %1151 = vmatpush.msra.mxu2 %v992_v48  ;;  %v989_v51 = vld [vmem:[#allocation2 + $0x810] sm:$0xff]  ;;  %v944_v48 = vld [vmem:[#allocation2 + $0x6a8] sm:$0xff] }
  0x91   : > { %1052 = vmatpush.msra.mxu1 %v975_v53  ;;  %769 = vmatmul.f32.gmra.mxu0 %v2835_v24  ;;  %v952_v53 = vld [vmem:[#allocation2 + $0x6e8] sm:$0xff]  ;;  %v2903_v57 = vsel %vm1023_vm2, %v1028_v23, %v1032_v46  ;;  %v1391_v23 = vld [vmem:[#allocation2 + $0xbc0] sm:$0xff] }
  0x92   : > { %871 = vmatpush.msrb.mxu0 %v230_v55  ;;  %1152 = vmatpush.msra.mxu2 %v988_v0  ;;  %v998_v55 = vld [vmem:[#allocation2 + $0x858] sm:$0xff]  ;;  %v940_v0 = vld [vmem:[#allocation2 + $0x688] sm:$0xff] }
  0x93   : > { %2456 = vmatmul.msk.f32.gmra.mxu2 %vm435_vm1, %v2838_v25  ;;  %821 = vmatmul.f32.gmra.mxu1 %v2744_v56 }
  0x94   : > { %2458 = vmatmul.msk.f32.gmra.mxu3 %vm435_vm1, %v2725_v26  ;;  %872 = vmatpush.msrb.mxu0 %v226_v58  ;;  %v948_v58 = vld [vmem:[#allocation2 + $0x6c8] sm:$0xff] }
  0x95   : > { %1053 = vmatpush.msra.mxu1 %v971_v59  ;;  %1204 = vmatpush.msrb.mxu3 %v1013_v2  ;;  %v1030_v59 = vrot.slane %v2763_v14, 2  ;;  %v932_v2 = vld [vmem:[#allocation2 + $0x648] sm:$0xff] }
  0x96   : > { %873 = vmatpush.msrb.mxu0 %v222_v60  ;;  %v977_v60 = vld [vmem:[#allocation2 + $0x7b0] sm:$0xff] }
  0x97   : > { %1054 = vmatpush.msra.mxu1 %v967_v11  ;;  %v921_v11 = vld [vmem:[%s2722_s30 + $0x38] sm:$0x3f] }
  0x98   : > { %874 = vmatpush.msrb.mxu0 %v218_v61  ;;  %v973_v61 = vld [vmem:[#allocation2 + $0x790] sm:$0xff] }
  0x99   : > { %1055 = vmatpush.msra.mxu1 %v963_v62 }
  0x9a   : > { %875 = vmatpush.msrb.mxu0 %v214_v63 }
  0x9b   : > { %2461 = vmatmul.msk.f32.vlgmr.msrb.gmra.mxu2 %vm435_vm1, %v2814_v47  ;;  %824 = vmatmul.f32.gmra.mxu1 %v2763_v14  ;;  %v976_v47 = vld [vmem:[#allocation2 + $0x7a8] sm:$0xff] }
  0x9c   : > { %876 = vmatmul.f32.vlgmr.msrb.gmra.mxu0 %v2811_v52  ;;  %2459 = vmatmul.msk.f32.gmra.mxu3 %vm435_vm1, %v2733_v39  ;;  %v1009_v52 = vld [vmem:[#allocation2 + $0x8b0] sm:$0xff] }
  0x9d   : > { %1056 = vmatpush.msra.mxu1 %v959_v1  ;;  %1108 = vmatpush.msra.mxu0 %v984_v3  ;;  %v2919_v1 = vrot.slane %v921_v11, 2  ;;  %v962_v11 = vld [vmem:[#allocation2 + $0x738] sm:$0xff] }
  0x9e   : > { %1261 = vmatpush.msrb.mxu2 %v1018_v8  ;;  %1205 = vmatpush.msrb.mxu3 %v1009_v52  ;;  %v990_v8 = vld [vmem:[#allocation2 + $0x818] sm:$0xff]  ;;  %v961_v52 = vld [vmem:[#allocation2 + $0x730] sm:$0xff] }
  0x9f   : > { %1057 = vmatpush.msra.mxu1 %v955_v4  ;;  %1109 = vmatpush.msra.mxu0 %v980_v5  ;;  %v920_v5 = vld [vmem:[%s2722_s30 + $0x30] sm:$0x3f] }
  0xa0   : > { %v2864_v6 = vpop.f32.mrf.mxu1  ;;  %1262 = vmatpush.msrb.mxu2 %v1014_v17  ;;  %1206 = vmatpush.msrb.mxu3 %v1005_v19  ;;  %v924_v17 = vld [vmem:[#allocation2 + $0x608] sm:$0xff] }
  0xa1   : > { %3526 = vst [vmem:[#allocation8_spill] sm:$0xff] %v2864_v6  ;;  %1058 = vmatpush.msra.mxu1 %v951_v38  ;;  %1110 = vmatpush.msra.mxu0 %v976_v47  ;;  %v965_v38 = vld [vmem:[#allocation2 + $0x750] sm:$0xff]  ;;  %v2929_v47 = vsel %vm1023_vm2, %v1032_v46, %v2919_v1  ;;  %v970_v46 = vld [vmem:[#allocation2 + $0x778] sm:$0xff]  ;;  %v1763_v6 = vld [vmem:[#allocation2 + $0xe80] sm:$0xff] }
  0xa2   : > { %1263 = vmatpush.msrb.mxu2 %v1010_v31  ;;  %1207 = vmatpush.msrb.mxu3 %v1001_v30  ;;  %v949_v31 = vld [vmem:[#allocation2 + $0x6d0] sm:$0xff] }
  0xa3   : > { %2462 = vmatmul.msk.f32.gmra.mxu2 %vm435_vm1, %v2725_v26  ;;  %1059 = vmatpush.msra.mxu1 %v947_v9  ;;  %v1006_v26 = vld [vmem:[#allocation2 + $0x898] sm:$0xff]  ;;  %v2931_v9 = vrot.slane %v920_v5, 2 }
  0xa4   : > { %827 = vmatmul.f32.gmra.mxu1 %v2835_v24  ;;  %879 = vmatmul.f32.gmra.mxu0 %v2744_v56  ;;  %v923_v56 = vld [vmem:[#allocation2 + $0x600] sm:$0xff] }
  0xa5   : > { %2460 = vmatmul.msk.f32.gmra.mxu3 %vm435_vm1, %v2838_v25  ;;  %1060 = vmatpush.msra.mxu1 %v943_v12  ;;  %v928_v12 = vld [vmem:[#allocation2 + $0x628] sm:$0xff] }
  0xa6   : > { %v2869_v16 = vpop.f32.mrf.mxu3  ;;  %1111 = vmatpush.msra.mxu0 %v972_v13  ;;  %1264 = vmatpush.msrb.mxu2 %v1006_v26  ;;  %v957_v13 = vld [vmem:[#allocation2 + $0x710] sm:$0xff]  ;;  %v978_v26 = vld [vmem:[#allocation2 + $0x7b8] sm:$0xff] }
  0xa7   : > { %1061 = vmatpush.msra.mxu1 %v939_v18  ;;  %1208 = vmatpush.msrb.mxu3 %v997_v34  ;;  %v2939_v18 = vsel %vm1023_vm2, %v1030_v59, %v2931_v9  ;;  %v1392_v34 = vld [vmem:[#allocation2 + $0xbc8] sm:$0xff] }
  0xa8   : > { %v2876_v27 = vpop.f32.mrf.mxu1  ;;  %1112 = vmatpush.msra.mxu0 %v968_v21  ;;  %1265 = vmatpush.msrb.mxu2 %v1002_v45  ;;  %v1396_v21 = vld [vmem:[#allocation2 + $0xbe8] sm:$0xff]  ;;  %v937_v45 = vld [vmem:[#allocation2 + $0x670] sm:$0xff] }
  0xa9   : > { %1062 = vmatpush.msra.mxu1 %v935_v20  ;;  %1209 = vmatpush.msrb.mxu3 %v993_v42  ;;  %v974_v42 = vld [vmem:[#allocation2 + $0x798] sm:$0xff] }
  0xaa   : > { %1113 = vmatpush.msra.mxu0 %v964_v32  ;;  %1266 = vmatpush.msrb.mxu2 %v998_v55  ;;  %v966_v55 = vld [vmem:[#allocation2 + $0x758] sm:$0xff] }
  0xab   : > { %2463 = vmatmul.msk.f32.gmra.mxu2 %vm435_vm1, %v2733_v39  ;;  %1063 = vmatpush.msra.mxu1 %v931_v36  ;;  %v985_v39 = vld [vmem:[#allocation2 + $0x7f0] sm:$0xff]  ;;  %v1387_v36 = vld [vmem:[#allocation2 + $0xba0] sm:$0xff] }
  0xac   : > { %882 = vmatmul.f32.gmra.mxu0 %v2763_v14  ;;  %1210 = vmatpush.msrb.mxu3 %v989_v51  ;;  %v994_v14 = vld [vmem:[#allocation2 + $0x838] sm:$0xff]  ;;  %v933_v51 = vld [vmem:[#allocation2 + $0x650] sm:$0xff] }
  0xad   : > { %2465 = vmatmul.msk.f32.vlgmr.msra.gmra.mxu3 %vm435_vm1, %v2881_v35  ;;  %1064 = vmatpush.msra.mxu1 %v927_v37  ;;  %v1383_v37 = vld [vmem:[#allocation2 + $0xb80] sm:$0xff] }
  0xae   : > { %v2885_v41 = vpop.f32.mrf.mxu3  ;;  %1114 = vmatpush.msra.mxu0 %v960_v40  ;;  %1267 = vmatpush.msrb.mxu2 %v994_v14  ;;  %v941_v40 = vld [vmem:[#allocation2 + $0x690] sm:$0xff]  ;;  %v1371_v14 = vld [vmem:[#allocation2 + $0xb20] sm:$0xff] }
  0xaf   : > { %1065 = vmatpush.msra.mxu1 %v923_v56  ;;  %1467 = vmatpush.msra.mxu3 %v1395_v15 }
  0xb0   : > { %v2897_v49 = vpop.f32.mrf.mxu0  ;;  %1115 = vmatpush.msra.mxu0 %v956_v43  ;;  %1066 = vmatmul.f32.vlgmr.msra.gmra.mxu1 %v2891_v44  ;;  %v1388_v43 = vld [vmem:[#allocation2 + $0xba8] sm:$0xff] }
  0xb1   : > { %3527 = vst [vmem:[#allocation9_spill] sm:$0xff] %v2897_v49  ;;  %v2899_v50 = vpop.f32.mrf.mxu1  ;;  %1166 = vmatpush.msrb.mxu1 %v985_v39  ;;  %1268 = vmatpush.msrb.mxu2 %v990_v8  ;;  %v1359_v8 = vld [vmem:[#allocation2 + $0xac0] sm:$0xff] }
  0xb2   : > { %1116 = vmatpush.msra.mxu0 %v952_v53  ;;  %1468 = vmatpush.msra.mxu3 %v1391_v23  ;;  %v1376_v23 = vld [vmem:[#allocation2 + $0xb48] sm:$0xff] }
  0xb3   : > { %2464 = vmatmul.msk.f32.gmra.mxu2 %vm435_vm1, %v2838_v25  ;;  %1167 = vmatpush.msrb.mxu1 %v981_v54  ;;  %v2917_v25 = vsel %vm1023_vm2, %v1025_v33, %v1030_v59  ;;  %v945_v33 = vld [vmem:[#allocation2 + $0x6b0] sm:$0xff]  ;;  %v1379_v54 = vld [vmem:[#allocation2 + $0xb60] sm:$0xff] }
  0xb4   : > { %885 = vmatmul.f32.gmra.mxu0 %v2835_v24  ;;  %v969_v24 = vld [vmem:[#allocation2 + $0x770] sm:$0xff]  ;;  %1469 = vmatpush.msra.mxu3 %v1387_v36  ;;  %v938_v36 = vld [vmem:[#allocation2 + $0x678] sm:$0xff] }
  0xb5   : > { %2466 = vmatmul.msk.f32.gmra.mxu3 %vm435_vm1, %v2903_v57  ;;  %1117 = vmatpush.msra.mxu0 %v948_v58  ;;  %v929_v59 = vld [vmem:[#allocation2 + $0x630] sm:$0xff] }
  0xb6   : > { %1168 = vmatpush.msrb.mxu1 %v977_v60  ;;  %1470 = vmatpush.msra.mxu3 %v1383_v37  ;;  %v1375_v60 = vld [vmem:[#allocation2 + $0xb40] sm:$0xff]  ;;  %v934_v37 = vld [vmem:[#allocation2 + $0x658] sm:$0xff] }
  0xb7   : > { %v2912_v62 = vpop.f32.mrf.mxu2  ;;  %1118 = vmatpush.msra.mxu0 %v944_v48  ;;  %v1384_v48 = vld [vmem:[#allocation2 + $0xb88] sm:$0xff] }
  0xb8   : > { %v2914_v63 = vpop.f32.mrf.mxu3  ;;  %v2921_v3 = vpop.f32.mrf.mxu0  ;;  %1169 = vmatpush.msrb.mxu1 %v973_v61  ;;  %1471 = vmatpush.msra.mxu3 %v1379_v54  ;;  %v925_v61 = vld [vmem:[#allocation2 + $0x610] sm:$0xff] }
  0xb9   : > { %v2923_v4 = vpop.f32.mrf.mxu1  ;;  %1119 = vmatpush.msra.mxu0 %v940_v0  ;;  %1069 = vmatmul.f32.gmra.mxu1 %v2917_v25  ;;  %v958_v0 = vld [vmem:[#allocation2 + $0x718] sm:$0xff]  ;;  %v1397_v54 = vld [vmem:[#allocation2 + $0xbf0] sm:$0xff] }
  0xba   : > { %3528 = vst [vmem:[#allocation10_spill] sm:$0xff] %v2923_v4  ;;  %1170 = vmatpush.msrb.mxu1 %v969_v24  ;;  %1472 = vmatpush.msra.mxu3 %v1375_v60  ;;  %v1363_v24 = vld [vmem:[#allocation2 + $0xae0] sm:$0xff]  ;;  %v1364_v60 = vld [vmem:[#allocation2 + $0xae8] sm:$0xff] }
  0xbb   : > { %1120 = vmatpush.msra.mxu0 %v936_v7  ;;  %2469 = vmatmul.msk.f32.vlgmr.msra.gmra.mxu2 %vm435_vm1, %v2881_v35  ;;  %v954_v7 = vld [vmem:[#allocation2 + $0x6f8] sm:$0xff] }
  0xbc   : > { %1171 = vmatpush.msrb.mxu1 %v965_v38  ;;  %1525 = vmatpush.msra.mxu2 %v1396_v21  ;;  %v946_v21 = vld [vmem:[#allocation2 + $0x6b8] sm:$0xff] }
  0xbd   : > { %2467 = vmatmul.msk.f32.gmra.mxu3 %vm435_vm1, %v2929_v47  ;;  %1121 = vmatpush.msra.mxu0 %v932_v2  ;;  %v1367_v2 = vld [vmem:[#allocation2 + $0xb00] sm:$0xff] }
  0xbe   : > { %1172 = vmatpush.msrb.mxu1 %v961_v52  ;;  %1526 = vmatpush.msra.mxu2 %v1392_v34  ;;  %v950_v52 = vld [vmem:[#allocation2 + $0x6d8] sm:$0xff] }
  0xbf   : > { %1122 = vmatpush.msra.mxu0 %v928_v12  ;;  %1473 = vmatpush.msra.mxu3 %v1371_v14  ;;  %v1360_v14 = vld [vmem:[#allocation2 + $0xac8] sm:$0xff] }
  0xc0   : > { %v2941_v19 = vpop.f32.mrf.mxu2  ;;  %v2943_v20 = vpop.f32.mrf.mxu3  ;;  %1173 = vmatpush.msrb.mxu1 %v957_v13  ;;  %1527 = vmatpush.msra.mxu2 %v1388_v43  ;;  %v1355_v13 = vld [vmem:[#allocation2 + $0xaa0] sm:$0xff]  ;;  %v1368_v43 = vld [vmem:[#allocation2 + $0xb08] sm:$0xff] }
  0xc1   : > { %v2945_v30 = vpop.f32.mrf.mxu0  ;;  %1123 = vmatpush.msra.mxu0 %v924_v17  ;;  %1072 = vmatmul.f32.gmra.mxu1 %v2939_v18  ;;  %v1380_v17 = vld [vmem:[#allocation2 + $0xb68] sm:$0xff] }
  0xc2   : > { %v2948_v32 = vpop.f32.mrf.mxu1  ;;  %1124 = vmatmul.f32.vlgmr.msra.gmra.mxu0 %v2891_v44  ;;  %1174 = vmatpush.msrb.mxu1 %v953_v22  ;;  %v1351_v22 = vld [vmem:[#allocation2 + $0xa80] sm:$0xff] }
  0xc3   : > { %1224 = vmatpush.msrb.mxu0 %v986_v28  ;;  %2470 = vmatmul.msk.f32.gmra.mxu2 %vm435_vm1, %v2903_v57  ;;  %v942_v28 = vld [vmem:[#allocation2 + $0x698] sm:$0xff] }
  0xc4   : > { %1175 = vmatpush.msrb.mxu1 %v949_v31  ;;  %1528 = vmatpush.msra.mxu2 %v1384_v48  ;;  %v1347_v31 = vld [vmem:[#allocation2 + $0xa60] sm:$0xff] }
  0xc5   : > { %2468 = vmatmul.msk.f32.gmra.mxu3 %vm435_vm1, %v2919_v1  ;;  %1225 = vmatpush.msrb.mxu0 %v982_v10 }
  0xc6   : > { %1176 = vmatpush.msrb.mxu1 %v945_v33  ;;  %1474 = vmatpush.msra.mxu3 %v1367_v2  ;;  %v1343_v33 = vld [vmem:[#allocation2 + $0xa40] sm:$0xff]  ;;  %v1356_v2 = vld [vmem:[#allocation2 + $0xaa8] sm:$0xff] }
  0xc7   : > { %1226 = vmatpush.msrb.mxu0 %v978_v26  ;;  %1529 = vmatpush.msra.mxu2 %v1380_v17  ;;  %v1372_v26 = vld [vmem:[#allocation2 + $0xb28] sm:$0xff]  ;;  %v1319_v17 = vld [vmem:[#allocation2 + $0x980] sm:$0xff] }
  0xc8   : > { %v2955_v56 = vpop.f32.mrf.mxu2  ;;  %1177 = vmatpush.msrb.mxu1 %v941_v40  ;;  %v1339_v40 = vld [vmem:[#allocation2 + $0xa20] sm:$0xff] }
  0xc9   : > { %v2957_v39 = vpop.f32.mrf.mxu3  ;;  %1227 = vmatpush.msrb.mxu0 %v974_v42  ;;  %1075 = vmatmul.f32.gmra.mxu1 %v2931_v9 }
  0xca   : > { %v2960_v53 = vpop.f32.mrf.mxu0  ;;  %1127 = vmatmul.f32.gmra.mxu0 %v2917_v25  ;;  %1178 = vmatpush.msrb.mxu1 %v937_v45  ;;  %v930_v45 = vld [vmem:[#allocation2 + $0x638] sm:$0xff] }
  0xcb   : > { %3529 = vst [vmem:[#allocation11_spill] sm:$0xff] %v2960_v53  ;;  %v2963_v58 = vpop.f32.mrf.mxu1  ;;  %1228 = vmatpush.msrb.mxu0 %v970_v46  ;;  %2471 = vmatmul.msk.f32.gmra.mxu2 %vm435_vm1, %v2929_v47  ;;  %v1678_v53 = vld [vmem:[%s2722_s30] sm:$0xf0] }
  0xcc   : > { %1179 = vmatpush.msrb.mxu1 %v933_v51  ;;  %1530 = vmatpush.msra.mxu2 %v1376_v23  ;;  %v1335_v51 = vld [vmem:[#allocation2 + $0xa00] sm:$0xff]  ;;  %v3013_v23 = vld [vmem:[%s2722_s30 + $0x18] sm:$0xff] }
  0xcd   : > { %2473 = vmatmul.msk.f32.vlgmr.msrb.gmra.mxu3 %vm435_vm1, %v2881_v35  ;;  %1229 = vmatpush.msrb.mxu0 %v966_v55  ;;  %v926_v55 = vld [vmem:[#allocation2 + $0x618] sm:$0xff]  ;;  %v1788_v4 = vrot.slane %v3013_v23, 4 }
  0xce   : > { %1180 = vmatpush.msrb.mxu1 %v929_v59  ;;  %1531 = vmatpush.msra.mxu2 %v1372_v26  ;;  %v1398_v59 = vld [vmem:[#allocation2 + $0xbf8] sm:$0xff]  ;;  %v1311_v26 = vld [vmem:[#allocation2 + $0x940] sm:$0xff] }
  0xcf   : > { %1230 = vmatpush.msrb.mxu0 %v962_v11  ;;  %1583 = vmatpush.msrb.mxu3 %v1397_v54  ;;  %v1327_v11 = vld [vmem:[#allocation2 + $0x9c0] sm:$0xff]  ;;  %v3025_v54 = vld [vmem:[%s2722_s30 + $0x10] sm:$0xff] }
  0xd0   : > { %1181 = vmatpush.msrb.mxu1 %v925_v61  ;;  %1532 = vmatpush.msra.mxu2 %v1368_v43  ;;  %v1393_v61 = vld [vmem:[#allocation2 + $0xbd0] sm:$0xff]  ;;  %v1344_v43 = vld [vmem:[#allocation2 + $0xa48] sm:$0xff] }
  0xd1   : > { %v2969_v5 = vpop.f32.mrf.mxu2  ;;  %1231 = vmatpush.msrb.mxu0 %v958_v0  ;;  %1182 = vmatmul.f32.vlgmr.msrb.gmra.mxu1 %v2891_v44 }
  0xd2   : > { %v2971_v38 = vpop.f32.mrf.mxu3  ;;  %1130 = vmatmul.f32.gmra.mxu0 %v2939_v18  ;;  %1430 = vmatpush.msra.mxu1 %v1363_v24  ;;  %v1323_v24 = vld [vmem:[#allocation2 + $0x9a0] sm:$0xff] }
  0xd3   : > { %1232 = vmatpush.msrb.mxu0 %v954_v7  ;;  %2472 = vmatmul.msk.f32.gmra.mxu2 %vm435_vm1, %v2919_v1  ;;  %v2979_v15 = vpop.f32.mrf.mxu0  ;;  %v1299_v7 = vld [vmem:[%s2722_s30 + $0x8] sm:$0xf8] }
  0xd4   : > { %v2975_v12 = vpop.f32.mrf.mxu1  ;;  %1431 = vmatpush.msra.mxu1 %v1359_v8  ;;  %v1389_v8 = vld [vmem:[#allocation2 + $0xbb0] sm:$0xff]  ;;  %1584 = vmatpush.msrb.mxu3 %v1393_v61 }
  0xd5   : > { %2474 = vmatmul.msk.f32.gmra.mxu3 %vm435_vm1, %v2903_v57  ;;  %1233 = vmatpush.msrb.mxu0 %v950_v52 }
  0xd6   : > { %1432 = vmatpush.msra.mxu1 %v1355_v13  ;;  %v1394_v13 = vld [vmem:[#allocation2 + $0xbd8] sm:$0xff]  ;;  %1585 = vmatpush.msrb.mxu3 %v1389_v8 }
  0xd7   : > { %1234 = vmatpush.msrb.mxu0 %v946_v21  ;;  %v1385_v21 = vld [vmem:[#allocation2 + $0xb90] sm:$0xff] }
  0xd8   : > { %1433 = vmatpush.msra.mxu1 %v1351_v22  ;;  %v1407_v22 = vrot.slane %v1299_v7, 3  ;;  %1586 = vmatpush.msrb.mxu3 %v1385_v21  ;;  %v1361_v21 = vld [vmem:[#allocation2 + $0xad0] sm:$0xff] }
  0xd9   : > { %1235 = vmatpush.msrb.mxu0 %v942_v28  ;;  %1185 = vmatmul.f32.gmra.mxu1 %v2917_v25  ;;  %v1408_v28 = vrot.slane %v3013_v23, 3 }
  0xda   : > { %v2983_v10 = vpop.f32.mrf.mxu3  ;;  %1133 = vmatmul.f32.gmra.mxu0 %v2931_v9  ;;  %1434 = vmatpush.msra.mxu1 %v1347_v31  ;;  %v1315_v31 = vld [vmem:[#allocation2 + $0x960] sm:$0xff] }
  0xdb   : > { %v2986_v34 = vpop.f32.mrf.mxu2  ;;  %1236 = vmatpush.msrb.mxu0 %v938_v36  ;;  %2477 = vmatmul.msk.f32.vlgmr.msrb.gmra.mxu2 %vm435_vm1, %v2881_v35  ;;  %v2993_v46 = vpop.f32.mrf.mxu0  ;;  %v1331_v35 = vld [vmem:[#allocation2 + $0x9e0] sm:$0xff] }
  0xdc   : > { %v2991_v42 = vpop.f32.mrf.mxu1  ;;  %1435 = vmatpush.msra.mxu1 %v1343_v33  ;;  %1641 = vmatpush.msrb.mxu2 %v1398_v59  ;;  %v1298_v36 = vld [vmem:[%s2722_s30] sm:$0xf8]  ;;  %v1348_v33 = vld [vmem:[#allocation2 + $0xa68] sm:$0xff] }
  0xdd   : > { %2475 = vmatmul.msk.f32.gmra.mxu3 %vm435_vm1, %v2929_v47  ;;  %1237 = vmatpush.msrb.mxu0 %v934_v37  ;;  %v1381_v37 = vld [vmem:[#allocation2 + $0xb70] sm:$0xff] }
  0xde   : > { %1436 = vmatpush.msra.mxu1 %v1339_v40  ;;  %1642 = vmatpush.msrb.mxu2 %v1394_v13  ;;  %v3020_v40 = vsel %vm1403_vm3, %v1407_v22, %v1408_v28  ;;  %v1365_v13 = vld [vmem:[#allocation2 + $0xaf0] sm:$0xff] }
  0xdf   : > { %1238 = vmatpush.msrb.mxu0 %v930_v45  ;;  %1587 = vmatpush.msrb.mxu3 %v1381_v37  ;;  %v1301_v37 = vld [vmem:[%s2722_s30 + $0x38] sm:$0x7f] }
  0xe0   : > { %1437 = vmatpush.msra.mxu1 %v1335_v51  ;;  %v1404_v51 = vrot.slane %v1298_v36, 3 }
  0xe1   : > { %1239 = vmatpush.msrb.mxu0 %v926_v55  ;;  %1188 = vmatmul.f32.gmra.mxu1 %v2939_v18  ;;  %v1405_v55 = vrot.slane %v3025_v54, 3 }
  0xe2   : > { %1240 = vmatmul.f32.vlgmr.msrb.gmra.mxu0 %v2891_v44  ;;  %1438 = vmatpush.msra.mxu1 %v1331_v35  ;;  %v1307_v35 = vld [vmem:[#allocation2 + $0x920] sm:$0xff] }
  0xe3   : > { %v2998_v48 = vpop.f32.mrf.mxu3  ;;  %v3001_v0 = vpop.f32.mrf.mxu2  ;;  %1488 = vmatpush.msra.mxu0 %v1364_v60  ;;  %2478 = vmatmul.msk.f32.gmra.mxu2 %vm435_vm1, %v2903_v57  ;;  %v1352_v57 = vld [vmem:[#allocation2 + $0xa88] sm:$0xff]  ;;  %v3039_v8 = vsel %vm1403_vm3, %v1404_v51, %v1405_v55  ;;  %v1382_v51 = vld [vmem:[#allocation2 + $0xb78] sm:$0xff] }
  0xe4   : > { %1439 = vmatpush.msra.mxu1 %v1327_v11  ;;  %v3006_v52 = vpop.f32.mrf.mxu0  ;;  %v1340_v60 = vld [vmem:[#allocation2 + $0xa28] sm:$0xff]  ;;  %v1377_v11 = vld [vmem:[#allocation2 + $0xb50] sm:$0xff] }
  0xe5   : > { %2476 = vmatmul.msk.f32.gmra.mxu3 %vm435_vm1, %v2919_v1  ;;  %1489 = vmatpush.msra.mxu0 %v1360_v14  ;;  %v3010_v44 = vpop.f32.mrf.mxu1  ;;  %v1303_v14 = vld [vmem:[#allocation2 + $0x900] sm:$0xff] }
  0xe6   : > { %3530 = vst [vmem:[#allocation12_spill] sm:$0xff] %v3010_v44  ;;  %1440 = vmatpush.msra.mxu1 %v1323_v24  ;;  %v1386_v24 = vld [vmem:[#allocation2 + $0xb98] sm:$0xff]  ;;  %1588 = vmatpush.msrb.mxu3 %v1377_v11  ;;  %v3065_v11 = vrot.slane %v1301_v37, 3  ;;  %v1767_v44 = vld [vmem:[#allocation2 + $0xea0] sm:$0xff] }
  0xe7   : > { %1490 = vmatpush.msra.mxu0 %v1356_v2  ;;  %v1412_v2 = vrot.slane %v2894_v29, 3  ;;  %v1328_v29 = vld [vmem:[#allocation2 + $0x9c8] sm:$0xff]  ;;  %v1374_v37 = vld [vmem:[#allocation2 + $0xb38] sm:$0xff] }
  0xe8   : > { %1441 = vmatpush.msra.mxu1 %v1319_v17  ;;  %v1332_v17 = vld [vmem:[#allocation2 + $0x9e8] sm:$0xff] }
  0xe9   : > { %1491 = vmatpush.msra.mxu0 %v1352_v57  ;;  %1191 = vmatmul.f32.gmra.mxu1 %v2931_v9  ;;  %v1373_v57 = vld [vmem:[#allocation2 + $0xb30] sm:$0xff]  ;;  %v3045_v22 = vsel %vm1403_vm3, %v1408_v28, %v1412_v2  ;;  %v1324_v28 = vld [vmem:[#allocation2 + $0x9a8] sm:$0xff] }
  0xea   : > { %1243 = vmatmul.f32.gmra.mxu0 %v2917_v25  ;;  %1442 = vmatpush.msra.mxu1 %v1315_v31  ;;  %v1390_v25 = vld [vmem:[#allocation2 + $0xbb8] sm:$0xff]  ;;  %v3048_v31 = vld [vmem:[%s2722_s30 + $0x20] sm:$0xff] }
  0xeb   : > { %v3022_v45 = vpop.f32.mrf.mxu2  ;;  %1492 = vmatpush.msra.mxu0 %v1348_v33  ;;  %2479 = vmatmul.msk.f32.gmra.mxu2 %vm435_vm1, %v2929_v47  ;;  %v1336_v47 = vld [vmem:[#allocation2 + $0xa08] sm:$0xff]  ;;  %v1410_v36 = vrot.slane %v3048_v31, 3 }
  0xec   : > { %v3030_v59 = vpop.f32.mrf.mxu3  ;;  %1443 = vmatpush.msra.mxu1 %v1311_v26  ;;  %1643 = vmatpush.msrb.mxu2 %v1390_v25  ;;  %v1357_v26 = vld [vmem:[#allocation2 + $0xab0] sm:$0xff] }
  0xed   : > { %3531 = vst [vmem:[#allocation13_spill] sm:$0xff] %v3030_v59  ;;  %2481 = vmatmul.msk.f32.vlgmr.msra.gmra.mxu3 %vm435_vm1, %v3020_v40  ;;  %1493 = vmatpush.msra.mxu0 %v1344_v43  ;;  %v3034_v61 = vpop.f32.mrf.mxu0  ;;  %v1369_v43 = vld [vmem:[#allocation2 + $0xb10] sm:$0xff] }
  0xee   : > { %1444 = vmatpush.msra.mxu1 %v1307_v35  ;;  %v3036_v7 = vpop.f32.mrf.mxu1  ;;  %1644 = vmatpush.msrb.mxu2 %v1386_v24  ;;  %v1353_v35 = vld [vmem:[#allocation2 + $0xa90] sm:$0xff] }
  0xef   : > { %1494 = vmatpush.msra.mxu0 %v1340_v60  ;;  %1589 = vmatpush.msrb.mxu3 %v1373_v57  ;;  %v3063_v60 = vsel %vm1403_vm3, %v1405_v55, %v1410_v36  ;;  %v1349_v24 = vld [vmem:[#allocation2 + $0xa70] sm:$0xff]  ;;  %v3074_v55 = vsel %vm1403_vm3, %v1412_v2, %v3065_v11  ;;  %v1312_v57 = vld [vmem:[#allocation2 + $0x948] sm:$0xff] }
  0xf0   : > { %1445 = vmatpush.msra.mxu1 %v1303_v14  ;;  %1645 = vmatpush.msrb.mxu2 %v1382_v51  ;;  %v1337_v2 = vld [vmem:[#allocation2 + $0xa10] sm:$0xff]  ;;  %v1370_v51 = vld [vmem:[#allocation2 + $0xb18] sm:$0xff] }
  0xf1   : > { %1495 = vmatpush.msra.mxu0 %v1336_v47  ;;  %1446 = vmatmul.f32.vlgmr.msra.gmra.mxu1 %v3039_v8  ;;  %v1300_v47 = vld [vmem:[%s2722_s30 + $0x30] sm:$0x7f] }
  0xf2   : > { %1246 = vmatmul.f32.gmra.mxu0 %v2939_v18  ;;  %1546 = vmatpush.msrb.mxu1 %v1365_v13  ;;  %v1316_v13 = vld [vmem:[#allocation2 + $0x968] sm:$0xff]  ;;  %v1321_v59 = vld [vmem:[#allocation2 + $0x990] sm:$0xff] }
  0xf3   : > { %1496 = vmatpush.msra.mxu0 %v1332_v17  ;;  %2480 = vmatmul.msk.f32.gmra.mxu2 %vm435_vm1, %v2919_v1  ;;  %v1320_v1 = vld [vmem:[#allocation2 + $0x988] sm:$0xff]  ;;  %v1345_v17 = vld [vmem:[#allocation2 + $0xa50] sm:$0xff] }
  0xf4   : > { %v3053_v33 = vpop.f32.mrf.mxu2  ;;  %1547 = vmatpush.msrb.mxu1 %v1361_v21  ;;  %1590 = vmatpush.msrb.mxu3 %v1369_v43  ;;  %v1378_v21 = vld [vmem:[#allocation2 + $0xb58] sm:$0xff] }
  0xf5   : > { %v3056_v18 = vpop.f32.mrf.mxu3  ;;  %2482 = vmatmul.msk.f32.gmra.mxu3 %vm435_vm1, %v3045_v22  ;;  %1497 = vmatpush.msra.mxu0 %v1328_v29  ;;  %v3076_v29 = vrot.slane %v1300_v47, 3 }
  0xf6   : > { %1548 = vmatpush.msrb.mxu1 %v1357_v26  ;;  %v3067_v14 = vpop.f32.mrf.mxu0  ;;  %v1341_v26 = vld [vmem:[#allocation2 + $0xa30] sm:$0xff]  ;;  %1646 = vmatpush.msrb.mxu2 %v1378_v21  ;;  %v1366_v21 = vld [vmem:[#allocation2 + $0xaf8] sm:$0xff] }
  0xf7   : > { %v3060_v25 = vpop.f32.mrf.mxu1  ;;  %1498 = vmatpush.msra.mxu0 %v1324_v28  ;;  %v1308_v28 = vld [vmem:[#allocation2 + $0x928] sm:$0xff] }
  0xf8   : > { %1549 = vmatpush.msrb.mxu1 %v1353_v35  ;;  %v1775_v35 = vld [vmem:[#allocation2 + $0xee0] sm:$0xff]  ;;  %1647 = vmatpush.msrb.mxu2 %v1374_v37  ;;  %v552_v37 = vadd.f32 %v2885_v41, %v2941_v19  ;;  %v1354_v19 = vld [vmem:[#allocation2 + $0xa98] sm:$0xff] }
  0xf9   : > { %1499 = vmatpush.msra.mxu0 %v1320_v1  ;;  %1449 = vmatmul.f32.gmra.mxu1 %v3063_v60  ;;  %v1304_v1 = vld [vmem:[#allocation2 + $0x908] sm:$0xff] }
  0xfa   : > { %1249 = vmatmul.f32.gmra.mxu0 %v2931_v9  ;;  %1550 = vmatpush.msrb.mxu1 %v1349_v24  ;;  %v3088_v24 = vsel %vm1403_vm3, %v1410_v36, %v3076_v29  ;;  %v1362_v36 = vld [vmem:[#allocation2 + $0xad8] sm:$0xff] }
  0xfb   : > { %1500 = vmatpush.msra.mxu0 %v1316_v13  ;;  %2485 = vmatmul.msk.f32.vlgmr.msra.gmra.mxu2 %vm435_vm1, %v3020_v40  ;;  %v1333_v13 = vld [vmem:[#allocation2 + $0x9f0] sm:$0xff] }
  0xfc   : > { %1551 = vmatpush.msrb.mxu1 %v1345_v17  ;;  %1847 = vmatpush.msra.mxu3 %v1775_v35  ;;  %v1772_v35 = vld [vmem:[#allocation2 + $0xec8] sm:$0xff] }
  0xfd   : > { %v3080_v43 = vpop.f32.mrf.mxu3  ;;  %2483 = vmatmul.msk.f32.gmra.mxu3 %vm435_vm1, %v3074_v55  ;;  %1501 = vmatpush.msra.mxu0 %v1312_v57  ;;  %v1329_v57 = vld [vmem:[#allocation2 + $0x9d0] sm:$0xff] }
  0xfe   : > { %v3084_v9 = vpop.f32.mrf.mxu2  ;;  %1552 = vmatpush.msrb.mxu1 %v1341_v26  ;;  %v764_v17 = vpop.f32.mrf.mxu0  ;;  %1648 = vmatpush.msrb.mxu2 %v1370_v51  ;;  %v1776_v26 = vld [vmem:[#allocation2 + $0xee8] sm:$0xff]  ;;  %v1358_v51 = vld [vmem:[#allocation2 + $0xab8] sm:$0xff] }
  0xff   : > { %1502 = vmatpush.msra.mxu0 %v1308_v28  ;;  %v3090_v47 = vpop.f32.mrf.mxu1  ;;  %v1325_v28 = vld [vmem:[#allocation2 + $0x9b0] sm:$0xff] }
 0x100   : > { %3532 = vst [vmem:[#allocation14_spill] sm:$0xff] %v3090_v47  ;;  %1553 = vmatpush.msrb.mxu1 %v1337_v2  ;;  %v1771_v2 = vld [vmem:[#allocation2 + $0xec0] sm:$0xff]  ;;  %1905 = vmatpush.msra.mxu2 %v1776_v26 }
 0x101   : > { %1503 = vmatpush.msra.mxu0 %v1304_v1  ;;  %1452 = vmatmul.f32.gmra.mxu1 %v3088_v24  ;;  %v765_v1 = vadd.f32 %v764_v17, %v552_v37  ;;  %v1350_v17 = vld [vmem:[#allocation2 + $0xa78] sm:$0xff] }
 0x102   : > { %1504 = vmatmul.f32.vlgmr.msra.gmra.mxu0 %v3039_v8  ;;  %1554 = vmatpush.msrb.mxu1 %v1333_v13 }
 0x103   : > { %1604 = vmatpush.msrb.mxu0 %v1366_v21  ;;  %2486 = vmatmul.msk.f32.gmra.mxu2 %vm435_vm1, %v3045_v22 }
 0x104   : > { %1555 = vmatpush.msrb.mxu1 %v1329_v57  ;;  %1848 = vmatpush.msra.mxu3 %v1771_v2  ;;  %v1317_v57 = vld [vmem:[#allocation2 + $0x970] sm:$0xff]  ;;  %v555_v2 = vadd.f32 %v2914_v63, %v2955_v56  ;;  %v1338_v63 = vld [vmem:[#allocation2 + $0xa18] sm:$0xff] }
 0x105   : > { %2484 = vmatmul.msk.f32.gmra.mxu3 %vm435_vm1, %v3065_v11  ;;  %1605 = vmatpush.msrb.mxu0 %v1362_v36  ;;  %v1313_v36 = vld [vmem:[#allocation2 + $0x950] sm:$0xff] }
 0x106   : > { %v3100_v13 = vpop.f32.mrf.mxu3  ;;  %v793_v41 = vpop.f32.mrf.mxu2  ;;  %1556 = vmatpush.msrb.mxu1 %v1325_v28  ;;  %1906 = vmatpush.msra.mxu2 %v1772_v35  ;;  %v1346_v28 = vld [vmem:[#allocation2 + $0xa58] sm:$0xff]  ;;  %v1768_v35 = vld [vmem:[#allocation2 + $0xea8] sm:$0xff] }
 0x107   : > { %3533 = vst [vmem:[#allocation15_spill] sm:$0xff] %v3100_v13  ;;  %v3102_v21 = vadd.f32 %v793_v41, %v765_v1  ;;  %1606 = vmatpush.msrb.mxu0 %v1358_v51  ;;  %v767_v26 = vpop.f32.mrf.mxu0  ;;  %1849 = vmatpush.msra.mxu3 %v1767_v44  ;;  %v1759_v44 = vld [vmem:[#allocation2 + $0xe60] sm:$0xff]  ;;  %v1342_v51 = vld [vmem:[#allocation2 + $0xa38] sm:$0xff]  ;;  %v1305_v41 = vld [vmem:[#allocation2 + $0x910] sm:$0xff] }
 0x108   : > { %1557 = vmatpush.msrb.mxu1 %v1321_v59  ;;  %v3104_v37 = vpop.f32.mrf.mxu1  ;;  %v1309_v59 = vld [vmem:[#allocation2 + $0x930] sm:$0xff]  ;;  %v768_v1 = vadd.f32 %v767_v26, %v555_v2  ;;  %1907 = vmatpush.msra.mxu2 %v1768_v35  ;;  %v1735_v35 = vld [vmem:[#allocation2 + $0xda0] sm:$0xff]  ;;  %v1778_v13 = vld [vmem:[#allocation2 + $0xef8] sm:$0xff] }
 0x109   : > { %3534 = vst [vmem:[#allocation16_spill] sm:$0xff] %v3104_v37  ;;  %1607 = vmatpush.msrb.mxu0 %v1354_v19  ;;  %1455 = vmatmul.f32.gmra.mxu1 %v3076_v29  ;;  %v1755_v19 = vld [vmem:[#allocation2 + $0xe40] sm:$0xff]  ;;  %v1698_v37 = vld [vmem:[#allocation2 + $0xc78] sm:$0xff] }
 0x10a   : > { %1507 = vmatmul.f32.gmra.mxu0 %v3063_v60  ;;  %1558 = vmatpush.msrb.mxu1 %v1317_v57 }
 0x10b   : > { %1608 = vmatpush.msrb.mxu0 %v1350_v17  ;;  %2487 = vmatmul.msk.f32.gmra.mxu2 %vm435_vm1, %v3074_v55 }
 0x10c   : > { %1559 = vmatpush.msrb.mxu1 %v1313_v36  ;;  %1850 = vmatpush.msra.mxu3 %v1763_v6  ;;  %v1743_v36 = vld [vmem:[#allocation2 + $0xde0] sm:$0xff]  ;;  %v1334_v6 = vld [vmem:[#allocation2 + $0x9f8] sm:$0xff] }
 0x10d   : > { %2489 = vmatmul.msk.f32.vlgmr.msrb.gmra.mxu3 %vm435_vm1, %v3020_v40  ;;  %1609 = vmatpush.msrb.mxu0 %v1346_v28  ;;  %v1739_v28 = vld [vmem:[#allocation2 + $0xdc0] sm:$0xff] }
 0x10e   : > { %v796_v57 = vpop.f32.mrf.mxu2  ;;  %1560 = vmatpush.msrb.mxu1 %v1309_v59  ;;  %1851 = vmatpush.msra.mxu3 %v1759_v44  ;;  %v1751_v59 = vld [vmem:[#allocation2 + $0xe20] sm:$0xff]  ;;  %v1330_v44 = vld [vmem:[#allocation2 + $0x9d8] sm:$0xff] }
 0x10f   : > { %v3114_v56 = vadd.f32 %v796_v57, %v768_v1  ;;  %v3116_v17 = vpop.f32.mrf.mxu3  ;;  %1610 = vmatpush.msrb.mxu0 %v1342_v51  ;;  %v770_v26 = vpop.f32.mrf.mxu0  ;;  %v558_v51 = vadd.f32 %v2943_v20, %v2969_v5  ;;  %v1764_v1 = vld [vmem:[#allocation2 + $0xe88] sm:$0xff]  ;;  %v1322_v20 = vld [vmem:[#allocation2 + $0x998] sm:$0xff] }
 0x110   : > { %3536 = vst [vmem:[#allocation18_spill] sm:$0xff] %v3116_v17  ;;  %1561 = vmatpush.msrb.mxu1 %v1305_v41  ;;  %1852 = vmatpush.msra.mxu3 %v1755_v19  ;;  %v3118_v2 = vpop.f32.mrf.mxu1  ;;  %v1326_v41 = vld [vmem:[#allocation2 + $0x9b8] sm:$0xff]  ;;  %v1747_v19 = vld [vmem:[#allocation2 + $0xe00] sm:$0xff] }
 0x111   : > { %3535 = vst [vmem:[#allocation17_spill] sm:$0xff] %v3114_v56  ;;  %1611 = vmatpush.msrb.mxu0 %v1338_v63  ;;  %1562 = vmatmul.f32.vlgmr.msrb.gmra.mxu1 %v3039_v8  ;;  %v771_v57 = vadd.f32 %v770_v26, %v558_v51  ;;  %v1731_v63 = vld [vmem:[#allocation2 + $0xd80] sm:$0xff]  ;;  %v1756_v51 = vld [vmem:[#allocation2 + $0xe48] sm:$0xff]  ;;  %v1714_v56 = vld [vmem:[#allocation2 + $0xcf8] sm:$0xff] }
 0x112   : > { %1510 = vmatmul.f32.gmra.mxu0 %v3088_v24  ;;  %1810 = vmatpush.msra.mxu1 %v1743_v36  ;;  %v1760_v36 = vld [vmem:[#allocation2 + $0xe68] sm:$0xff] }
 0x113   : > { %1612 = vmatpush.msrb.mxu0 %v1334_v6  ;;  %2488 = vmatmul.msk.f32.gmra.mxu2 %vm435_vm1, %v3065_v11  ;;  %v1727_v6 = vld [vmem:[#allocation2 + $0xd60] sm:$0xff] }
 0x114   : > { %1811 = vmatpush.msra.mxu1 %v1739_v28  ;;  %1853 = vmatpush.msra.mxu3 %v1751_v59  ;;  %v1318_v59 = vld [vmem:[#allocation2 + $0x978] sm:$0xff] }
 0x115   : > { %2490 = vmatmul.msk.f32.gmra.mxu3 %vm435_vm1, %v3045_v22  ;;  %1613 = vmatpush.msrb.mxu0 %v1330_v44  ;;  %v1723_v44 = vld [vmem:[#allocation2 + $0xd40] sm:$0xff] }
 0x116   : > { %v799_v49 = vpop.f32.mrf.mxu2  ;;  %1812 = vmatpush.msra.mxu1 %v1735_v35  ;;  %1908 = vmatpush.msra.mxu2 %v1764_v1  ;;  %v1719_v1 = vld [vmem:[#allocation2 + $0xd20] sm:$0xff] }
 0x117   : > { %v3128_v5 = vadd.f32 %v799_v49, %v771_v57  ;;  %1614 = vmatpush.msrb.mxu0 %v1326_v41  ;;  %1854 = vmatpush.msra.mxu3 %v1747_v19  ;;  %v3130_v28 = vpop.f32.mrf.mxu3  ;;  %v1314_v49 = vld [vmem:[#allocation2 + $0x958] sm:$0xff]  ;;  %v1752_v41 = vld [vmem:[#allocation2 + $0xe28] sm:$0xff]  ;;  %v1715_v57 = vld [vmem:[#allocation2 + $0xd00] sm:$0xff] }
 0x118   : > { %1813 = vmatpush.msra.mxu1 %v1731_v63  ;;  %1909 = vmatpush.msra.mxu2 %v1760_v36  ;;  %v3136_v35 = vpop.f32.mrf.mxu1  ;;  %v1310_v19 = vld [vmem:[#allocation2 + $0x938] sm:$0xff]  ;;  %v1748_v63 = vld [vmem:[#allocation2 + $0xe08] sm:$0xff]  ;;  %v1777_v36 = vld [vmem:[#allocation2 + $0xef0] sm:$0xff] }
 0x119   : > { %v3132_v26 = vpop.f32.mrf.mxu0  ;;  %1615 = vmatpush.msrb.mxu0 %v1322_v20  ;;  %1565 = vmatmul.f32.gmra.mxu1 %v3063_v60 }
 0x11a   : > { %1513 = vmatmul.f32.gmra.mxu0 %v3076_v29  ;;  %1814 = vmatpush.msra.mxu1 %v1727_v6  ;;  %v1306_v6 = vld [vmem:[#allocation2 + $0x918] sm:$0xff] }
 0x11b   : > { %1616 = vmatpush.msrb.mxu0 %v1318_v59  ;;  %2493 = vmatmul.msk.f32.vlgmr.msrb.gmra.mxu2 %vm435_vm1, %v3020_v40  ;;  %v1711_v59 = vld [vmem:[#allocation2 + $0xce0] sm:$0xff] }
 0x11c   : > { %1815 = vmatpush.msra.mxu1 %v1723_v44  ;;  %1910 = vmatpush.msra.mxu2 %v1756_v51  ;;  %v1744_v44 = vld [vmem:[#allocation2 + $0xde8] sm:$0xff] }
 0x11d   : > { %2491 = vmatmul.msk.f32.gmra.mxu3 %vm435_vm1, %v3074_v55  ;;  %1617 = vmatpush.msrb.mxu0 %v1314_v49  ;;  %v1707_v49 = vld [vmem:[#allocation2 + $0xcc0] sm:$0xff] }
 0x11e   : > { %v3142_v20 = vpop.f32.mrf.mxu2  ;;  %1816 = vmatpush.msra.mxu1 %v1719_v1  ;;  %1911 = vmatpush.msra.mxu2 %v1752_v41  ;;  %v1740_v1 = vld [vmem:[#allocation2 + $0xdc8] sm:$0xff]  ;;  %v668_v41 = vadd.f32 %v3001_v0, %v2993_v46  ;;  %v1699_v46 = vld [vmem:[#allocation2 + $0xc80] sm:$0xff]  ;;  %v1769_v0 = vld [vmem:[#allocation2 + $0xeb0] sm:$0xff] }
 0x11f   : > { %1618 = vmatpush.msrb.mxu0 %v1310_v19  ;;  %1963 = vmatpush.msrb.mxu3 %v1777_v36  ;;  %v3144_v40 = vpop.f32.mrf.mxu3  ;;  %v1703_v19 = vld [vmem:[#allocation2 + $0xca0] sm:$0xff]  ;;  %v1736_v36 = vld [vmem:[#allocation2 + $0xda8] sm:$0xff] }
 0x120   : > { %1817 = vmatpush.msra.mxu1 %v1715_v57  ;;  %1912 = vmatpush.msra.mxu2 %v1748_v63  ;;  %v1679_v57 = vld [vmem:[%s2722_s30 + $0x8] sm:$0xf0]  ;;  %v1773_v63 = vld [vmem:[#allocation2 + $0xed0] sm:$0xff] }
 0x121   : > { %v880_v51 = vpop.f32.mrf.mxu0  ;;  %1619 = vmatpush.msrb.mxu0 %v1306_v6  ;;  %1568 = vmatmul.f32.gmra.mxu1 %v3088_v24  ;;  %v1774_v6 = vld [vmem:[#allocation2 + $0xed8] sm:$0xff]  ;;  %v3153_v47 = vpop.f32.mrf.mxu1 }
 0x122   : > { %1620 = vmatmul.f32.vlgmr.msrb.gmra.mxu0 %v3039_v8  ;;  %1818 = vmatpush.msra.mxu1 %v1711_v59  ;;  %v881_v8 = vadd.f32 %v880_v51, %v668_v41 }
 0x123   : > { %1868 = vmatpush.msra.mxu0 %v1744_v44  ;;  %2494 = vmatmul.msk.f32.gmra.mxu2 %vm435_vm1, %v3045_v22  ;;  %v1732_v22 = vld [vmem:[#allocation2 + $0xd88] sm:$0xff]  ;;  %v1787_v44 = vrot.slane %v1679_v57, 4  ;;  %v1765_v57 = vld [vmem:[#allocation2 + $0xe90] sm:$0xff] }
 0x124   : > { %1819 = vmatpush.msra.mxu1 %v1707_v49  ;;  %2021 = vmatpush.msrb.mxu2 %v1778_v13  ;;  %v1695_v13 = vld [vmem:[#allocation2 + $0xc60] sm:$0xff] }
 0x125   : > { %2492 = vmatmul.msk.f32.gmra.mxu3 %vm435_vm1, %v3065_v11  ;;  %1869 = vmatpush.msra.mxu0 %v1740_v1  ;;  %v1728_v1 = vld [vmem:[#allocation2 + $0xd68] sm:$0xff]  ;;  %v3166_v23 = vsel %vm1783_vm4, %v1787_v44, %v1788_v4 }
 0x126   : > { %v909_v59 = vpop.f32.mrf.mxu2  ;;  %1820 = vmatpush.msra.mxu1 %v1703_v19  ;;  %1964 = vmatpush.msrb.mxu3 %v1773_v63  ;;  %v1691_v19 = vld [vmem:[#allocation2 + $0xc40] sm:$0xff]  ;;  %v1724_v63 = vld [vmem:[#allocation2 + $0xd48] sm:$0xff] }
 0x127   : > { %v3158_v49 = vadd.f32 %v909_v59, %v881_v8  ;;  %1870 = vmatpush.msra.mxu0 %v1736_v36  ;;  %2022 = vmatpush.msrb.mxu2 %v1774_v6  ;;  %v1784_v36 = vrot.slane %v1678_v53, 4  ;;  %v1785_v6 = vrot.slane %v3025_v54, 4  ;;  %v671_v8 = vadd.f32 %v3022_v45, %v3006_v52  ;;  %v1770_v59 = vld [vmem:[#allocation2 + $0xeb8] sm:$0xff]  ;;  %v1683_v54 = vld [vmem:[#allocation2 + $0xc00] sm:$0xff]  ;;  %v1757_v52 = vld [vmem:[#allocation2 + $0xe50] sm:$0xff] }
 0x128   : > { %v3161_v51 = vpop.f32.mrf.mxu3  ;;  %1821 = vmatpush.msra.mxu1 %v1699_v46  ;;  %1965 = vmatpush.msrb.mxu3 %v1769_v0  ;;  %v1687_v46 = vld [vmem:[#allocation2 + $0xc20] sm:$0xff]  ;;  %v1761_v0 = vld [vmem:[#allocation2 + $0xe70] sm:$0xff]  ;;  %v1716_v44 = vld [vmem:[#allocation2 + $0xd08] sm:$0xff] }
 0x129   : > { %v883_v41 = vpop.f32.mrf.mxu0  ;;  %1871 = vmatpush.msra.mxu0 %v1732_v22  ;;  %1571 = vmatmul.f32.gmra.mxu1 %v3076_v29 }
 0x12a   : > { %1623 = vmatmul.f32.gmra.mxu0 %v3063_v60  ;;  %1822 = vmatpush.msra.mxu1 %v1695_v13  ;;  %v1720_v60 = vld [vmem:[#allocation2 + $0xd28] sm:$0xff]  ;;  %v884_v22 = vadd.f32 %v883_v41, %v671_v8  ;;  %v1745_v41 = vld [vmem:[#allocation2 + $0xdf0] sm:$0xff] }
 0x12b   : > { %1872 = vmatpush.msra.mxu0 %v1728_v1  ;;  %2495 = vmatmul.msk.f32.gmra.mxu2 %vm435_vm1, %v3074_v55  ;;  %v3178_v55 = vsel %vm1783_vm4, %v1784_v36, %v1785_v6  ;;  %v2586_v13 = vld [vmem:[%s2722_s30 + $0x28] sm:$0xff]  ;;  %v1741_v8 = vld [vmem:[#allocation2 + $0xdd0] sm:$0xff] }
 0x12c   : > { %1823 = vmatpush.msra.mxu1 %v1691_v19  ;;  %1966 = vmatpush.msrb.mxu3 %v1765_v57  ;;  %v1792_v1 = vrot.slane %v2586_v13, 4  ;;  %v1753_v36 = vld [vmem:[#allocation2 + $0xe30] sm:$0xff]  ;;  %v1762_v13 = vld [vmem:[#allocation2 + $0xe78] sm:$0xff] }
 0x12d   : > { %2497 = vmatmul.msk.f32.vlgmr.msra.gmra.mxu3 %vm435_vm1, %v3166_v23  ;;  %1873 = vmatpush.msra.mxu0 %v1724_v63  ;;  %v3175_v53 = vpop.f32.mrf.mxu1  ;;  %v1712_v63 = vld [vmem:[#allocation2 + $0xce8] sm:$0xff] }
 0x12e   : > { %3537 = vst [vmem:[#allocation19_spill] sm:$0xff] %v3175_v53  ;;  %v912_v45 = vpop.f32.mrf.mxu2  ;;  %1824 = vmatpush.msra.mxu1 %v1687_v46  ;;  %1967 = vmatpush.msrb.mxu3 %v1761_v0  ;;  %v3188_v0 = vsel %vm1783_vm4, %v1788_v4, %v1792_v1  ;;  %v1693_v53 = vld [vmem:[#allocation2 + $0xc50] sm:$0xff] }
 0x12f   : > { %v3181_v19 = vadd.f32 %v912_v45, %v884_v22  ;;  %1874 = vmatpush.msra.mxu0 %v1720_v60  ;;  %2023 = vmatpush.msrb.mxu2 %v1770_v59  ;;  %v1708_v60 = vld [vmem:[#allocation2 + $0xcc8] sm:$0xff]  ;;  %v1790_v59 = vrot.slane %v3048_v31, 4  ;;  %v674_v22 = vadd.f32 %v3053_v33, %v3034_v61  ;;  %v1766_v45 = vld [vmem:[#allocation2 + $0xe98] sm:$0xff]  ;;  %v1733_v31 = vld [vmem:[#allocation2 + $0xd90] sm:$0xff] }
 0x130   : > { %v3183_v57 = vpop.f32.mrf.mxu3  ;;  %1825 = vmatpush.msra.mxu1 %v1683_v54  ;;  %1968 = vmatpush.msrb.mxu3 %v1757_v52  ;;  %v1737_v54 = vld [vmem:[#allocation2 + $0xdb0] sm:$0xff]  ;;  %v1681_v52 = vld [vmem:[%s2722_s30 + $0x38] sm:$0xff] }
 0x131   : > { %3538 = vst [vmem:[#allocation20_spill] sm:$0xff] %v3183_v57  ;;  %1875 = vmatpush.msra.mxu0 %v1716_v44  ;;  %1826 = vmatmul.f32.vlgmr.msra.gmra.mxu1 %v3178_v55  ;;  %v886_v46 = vpop.f32.mrf.mxu0  ;;  %v1704_v44 = vld [vmem:[#allocation2 + $0xca8] sm:$0xff] }
 0x132   : > { %1626 = vmatmul.f32.gmra.mxu0 %v3088_v24  ;;  %1926 = vmatpush.msrb.mxu1 %v1745_v41  ;;  %v1749_v24 = vld [vmem:[#allocation2 + $0xe10] sm:$0xff]  ;;  %v887_v4 = vadd.f32 %v886_v46, %v674_v22  ;;  %v3201_v41 = vsel %vm1783_vm4, %v1785_v6, %v1790_v59  ;;  %v1696_v22 = vld [vmem:[#allocation2 + $0xc68] sm:$0xff]  ;;  %v1758_v6 = vld [vmem:[#allocation2 + $0xe58] sm:$0xff] }
 0x133   : > { %1876 = vmatpush.msra.mxu0 %v1712_v63  ;;  %2496 = vmatmul.msk.f32.gmra.mxu2 %vm435_vm1, %v3065_v11  ;;  %v1700_v11 = vld [vmem:[#allocation2 + $0xc88] sm:$0xff]  ;;  %v3203_v63 = vrot.slane %v1681_v52, 4  ;;  %v1680_v46 = vld [vmem:[%s2722_s30 + $0x30] sm:$0xff] }
 0x134   : > { %1927 = vmatpush.msrb.mxu1 %v1741_v8  ;;  %1969 = vmatpush.msrb.mxu3 %v1753_v36  ;;  %v1729_v36 = vld [vmem:[#allocation2 + $0xd70] sm:$0xff] }
 0x135   : > { %2498 = vmatmul.msk.f32.gmra.mxu3 %vm435_vm1, %v3188_v0  ;;  %1877 = vmatpush.msra.mxu0 %v1708_v60  ;;  %v3214_v52 = vsel %vm1783_vm4, %v1792_v1, %v3203_v63 }
 0x136   : > { %v915_v61 = vpop.f32.mrf.mxu2  ;;  %v3198_v33 = vpop.f32.mrf.mxu1  ;;  %1928 = vmatpush.msrb.mxu1 %v1737_v54  ;;  %2024 = vmatpush.msrb.mxu2 %v1766_v45  ;;  %v1725_v54 = vld [vmem:[#allocation2 + $0xd50] sm:$0xff]  ;;  %v1692_v45 = vld [vmem:[#allocation2 + $0xc48] sm:$0xff] }
 0x137   : > { %v3205_v8 = vadd.f32 %v915_v61, %v887_v4  ;;  %1878 = vmatpush.msra.mxu0 %v1704_v44  ;;  %1970 = vmatpush.msrb.mxu3 %v1749_v24  ;;  %v3216_v44 = vrot.slane %v1680_v46, 4  ;;  %v1721_v24 = vld [vmem:[#allocation2 + $0xd30] sm:$0xff]  ;;  %v1754_v4 = vld [vmem:[#allocation2 + $0xe38] sm:$0xff] }
 0x138   : > { %v3208_v60 = vpop.f32.mrf.mxu3  ;;  %1929 = vmatpush.msrb.mxu1 %v1733_v31  ;;  %2025 = vmatpush.msrb.mxu2 %v1762_v13  ;;  %v1688_v31 = vld [vmem:[#allocation2 + $0xc28] sm:$0xff]  ;;  %v1750_v13 = vld [vmem:[#allocation2 + $0xe18] sm:$0xff] }
 0x139   : > { %1879 = vmatpush.msra.mxu0 %v1700_v11  ;;  %1829 = vmatmul.f32.gmra.mxu1 %v3201_v41  ;;  %v1684_v11 = vld [vmem:[#allocation2 + $0xc08] sm:$0xff] }
 0x13a   : > { %1629 = vmatmul.f32.gmra.mxu0 %v3076_v29  ;;  %1930 = vmatpush.msrb.mxu1 %v1729_v36  ;;  %v1717_v29 = vld [vmem:[#allocation2 + $0xd10] sm:$0xff]  ;;  %v3228_v36 = vsel %vm1783_vm4, %v1790_v59, %v3216_v44 }
 0x13b   : > { %1880 = vmatpush.msra.mxu0 %v1696_v22  ;;  %2501 = vmatmul.msk.f32.vlgmr.msra.gmra.mxu2 %vm435_vm1, %v3166_v23  ;;  %v1713_v22 = vld [vmem:[#allocation2 + $0xcf0] sm:$0xff] }
 0x13c   : > { %1931 = vmatpush.msrb.mxu1 %v1725_v54  ;;  %2026 = vmatpush.msrb.mxu2 %v1758_v6  ;;  %v1746_v6 = vld [vmem:[#allocation2 + $0xdf8] sm:$0xff]  ;;  %v1705_v59 = vld [vmem:[#allocation2 + $0xcb0] sm:$0xff] }
 0x13d   : > { %2499 = vmatmul.msk.f32.gmra.mxu3 %vm435_vm1, %v3214_v52  ;;  %1881 = vmatpush.msra.mxu0 %v1692_v45  ;;  %v1709_v45 = vld [vmem:[#allocation2 + $0xcd0] sm:$0xff] }
 0x13e   : > { %v3222_v1 = vpop.f32.mrf.mxu1  ;;  %v3224_v61 = vpop.f32.mrf.mxu2  ;;  %1932 = vmatpush.msrb.mxu1 %v1721_v24  ;;  %2027 = vmatpush.msrb.mxu2 %v1754_v4  ;;  %v1742_v24 = vld [vmem:[#allocation2 + $0xdd8] sm:$0xff] }
 0x13f   : > { %v3230_v46 = vpop.f32.mrf.mxu0  ;;  %1882 = vmatpush.msra.mxu0 %v1688_v31  ;;  %v1738_v4 = vld [vmem:[#allocation2 + $0xdb8] sm:$0xff]  ;;  %v1701_v31 = vld [vmem:[#allocation2 + $0xc90] sm:$0xff] }
 0x140   : > { %v3232_v54 = vpop.f32.mrf.mxu3  ;;  %1933 = vmatpush.msrb.mxu1 %v1717_v29  ;;  %2028 = vmatpush.msrb.mxu2 %v1750_v13 }
 0x141   : > { %1883 = vmatpush.msra.mxu0 %v1684_v11  ;;  %1832 = vmatmul.f32.gmra.mxu1 %v3228_v36  ;;  %v1734_v11 = vld [vmem:[#allocation2 + $0xd98] sm:$0xff] }
 0x142   : > { %1884 = vmatmul.f32.vlgmr.msra.gmra.mxu0 %v3178_v55  ;;  %1934 = vmatpush.msrb.mxu1 %v1713_v22 }
 0x143   : > { %1984 = vmatpush.msrb.mxu0 %v1746_v6  ;;  %2502 = vmatmul.msk.f32.gmra.mxu2 %vm435_vm1, %v3188_v0  ;;  %v1697_v6 = vld [vmem:[#allocation2 + $0xc70] sm:$0xff] }
 0x144   : > { %1935 = vmatpush.msrb.mxu1 %v1709_v45  ;;  %v1730_v45 = vld [vmem:[#allocation2 + $0xd78] sm:$0xff] }
 0x145   : > { %2500 = vmatmul.msk.f32.gmra.mxu3 %vm435_vm1, %v3203_v63  ;;  %1985 = vmatpush.msrb.mxu0 %v1742_v24  ;;  %v1726_v24 = vld [vmem:[#allocation2 + $0xd58] sm:$0xff] }
 0x146   : > { %v3240_v29 = vpop.f32.mrf.mxu1  ;;  %v3242_v13 = vpop.f32.mrf.mxu2  ;;  %1936 = vmatpush.msrb.mxu1 %v1705_v59  ;;  %v1689_v59 = vld [vmem:[#allocation2 + $0xc30] sm:$0xff] }
 0x147   : > { %3539 = vst [vmem:[#allocation21_spill] sm:$0xff] %v3240_v29  ;;  %v3244_v22 = vpop.f32.mrf.mxu0  ;;  %1986 = vmatpush.msrb.mxu0 %v1738_v4  ;;  %v1722_v4 = vld [vmem:[#allocation2 + $0xd38] sm:$0xff] }
 0x148   : > { %v3246_v57 = vpop.f32.mrf.mxu3  ;;  %1937 = vmatpush.msrb.mxu1 %v1701_v31  ;;  %v1685_v31 = vld [vmem:[#allocation2 + $0xc10] sm:$0xff]  ;;  %v1718_v29 = vld [vmem:[#allocation2 + $0xd18] sm:$0xff] }
 0x149   : > { %3540 = vst [vmem:[#allocation22_spill] sm:$0xff] %v3246_v57  ;;  %1987 = vmatpush.msrb.mxu0 %v1734_v11  ;;  %1835 = vmatmul.f32.gmra.mxu1 %v3216_v44 }
 0x14a   : > { %1887 = vmatmul.f32.gmra.mxu0 %v3201_v41  ;;  %1938 = vmatpush.msrb.mxu1 %v1697_v6 }
 0x14b   : > { %1988 = vmatpush.msrb.mxu0 %v1730_v45  ;;  %2503 = vmatmul.msk.f32.gmra.mxu2 %vm435_vm1, %v3214_v52 }
 0x14c   : > { %1939 = vmatpush.msrb.mxu1 %v1693_v53  ;;  %v1710_v53 = vld [vmem:[#allocation2 + $0xcd8] sm:$0xff] }
 0x14d   : > { %2505 = vmatmul.msk.f32.vlgmr.msrb.gmra.mxu3 %vm435_vm1, %v3166_v23  ;;  %1989 = vmatpush.msrb.mxu0 %v1726_v24  ;;  %v1706_v24 = vld [vmem:[#allocation2 + $0xcb8] sm:$0xff] }
 0x14e   : > { %v3254_v11 = vpop.f32.mrf.mxu2  ;;  %v3256_v57 = vpop.f32.mrf.mxu1  ;;  %1940 = vmatpush.msrb.mxu1 %v1689_v59  ;;  %v610_v59 = vadd.f32 %v2971_v38, %v2963_v58  ;;  %v1694_v38 = vld [vmem:[#allocation2 + $0xc58] sm:$0xff] }
 0x14f   : > { %3541 = vst [vmem:[#allocation23_spill] sm:$0xff] %v3254_v11  ;;  %v3258_v6 = vpop.f32.mrf.mxu0  ;;  %1990 = vmatpush.msrb.mxu0 %v1722_v4 }
 0x150   : > { %3542 = vst [vmem:[#allocation24_spill] sm:$0xff] %v3256_v57  ;;  %v3260_v45 = vpop.f32.mrf.mxu3  ;;  %1941 = vmatpush.msrb.mxu1 %v1685_v31  ;;  %v823_v17 = vadd.f32 %v3118_v2, %v610_v59  ;;  %v665_v2 = vadd.f32 %v2986_v34, %v2979_v15 }
 0x151   : > { %3543 = vst [vmem:[#allocation25_spill] sm:$0xff] %v3258_v6  ;;  %1991 = vmatpush.msrb.mxu0 %v1718_v29  ;;  %1942 = vmatmul.f32.vlgmr.msrb.gmra.mxu1 %v3178_v55  ;;  %v1702_v29 = vld [vmem:[#allocation2 + $0xc98] sm:$0xff] }
 0x152   : > { %3544 = vst [vmem:[#allocation26_spill] sm:$0xff] %v3260_v45  ;;  %1890 = vmatmul.f32.gmra.mxu0 %v3228_v36  ;;  %v852_v11 = vadd.f32 %v3130_v28, %v823_v17  ;;  %v1690_v17 = vld [vmem:[#allocation2 + $0xc38] sm:$0xff]  ;;  %v613_v28 = vadd.f32 %v2983_v10, %v2975_v12 }
 0x153   : > { %1992 = vmatpush.msrb.mxu0 %v1714_v56  ;;  %2504 = vmatmul.msk.f32.gmra.mxu2 %vm435_vm1, %v3203_v63 }
 0x155   : > { %2506 = vmatmul.msk.f32.gmra.mxu3 %vm435_vm1, %v3188_v0  ;;  %1993 = vmatpush.msrb.mxu0 %v1710_v53 }
 0x156   : > { %v1163_v4 = vpop.f32.mrf.mxu2  ;;  %v1186_v31 = vpop.f32.mrf.mxu1 }
 0x157   : > { %v1134_v45 = vpop.f32.mrf.mxu0  ;;  %1994 = vmatpush.msrb.mxu0 %v1706_v24 }
 0x158   : > { %v1164_v57 = vadd.f32 %v1163_v4, %v1134_v45  ;;  %v1215_v56 = vpop.f32.mrf.mxu3 }
 0x159   : > { %v1216_v6 = vadd.f32 %v1215_v56, %v1186_v31  ;;  %1995 = vmatpush.msrb.mxu0 %v1702_v29  ;;  %1945 = vmatmul.f32.gmra.mxu1 %v3201_v41 }
 0x15a   : > { %v3274_v58 = vadd.f32 %v1164_v57, %v3128_v5  ;;  %1893 = vmatmul.f32.gmra.mxu0 %v3216_v44  ;;  %v878_v5 = vadd.f32 %v3132_v26, %v665_v2 }
 0x15b   : > { %v3277_v53 = vadd.f32 %v1216_v6, %v852_v11  ;;  %1996 = vmatpush.msrb.mxu0 %v1698_v37  ;;  %2509 = vmatmul.msk.f32.vlgmr.msrb.gmra.mxu2 %vm435_vm1, %v3166_v23  ;;  %v1686_v6 = vld [vmem:[#allocation2 + $0xc18] sm:$0xff]  ;;  %v826_v37 = vadd.f32 %v3136_v35, %v613_v28  ;;  %v616_v35 = vadd.f32 %v2998_v48, %v2991_v42 }
 0x15c   : > { %v907_v23 = vadd.f32 %v3142_v20, %v878_v5 }
 0x15d   : > { %2507 = vmatmul.msk.f32.gmra.mxu3 %vm435_vm1, %v3214_v52  ;;  %1997 = vmatpush.msrb.mxu0 %v1694_v38  ;;  %v855_v24 = vadd.f32 %v3144_v40, %v826_v37  ;;  %v829_v59 = vadd.f32 %v3153_v47, %v616_v35 }
 0x15e   : > { %v1189_v57 = vpop.f32.mrf.mxu1  ;;  %v1270_v11 = vpop.f32.mrf.mxu2 }
 0x15f   : > { %v1241_v45 = vpop.f32.mrf.mxu0  ;;  %1998 = vmatpush.msrb.mxu0 %v1690_v17 }
 0x160   : > { %v1218_v15 = vpop.f32.mrf.mxu3  ;;  %v1271_v34 = vadd.f32 %v1270_v11, %v1241_v45 }
 0x161   : > { %v1219_v12 = vadd.f32 %v1218_v15, %v1189_v57  ;;  %1999 = vmatpush.msrb.mxu0 %v1686_v6  ;;  %1948 = vmatmul.f32.gmra.mxu1 %v3228_v36 }
 0x162   : > { %v3292_v10 = vadd.f32 %v1271_v34, %v907_v23  ;;  %2000 = vmatmul.f32.vlgmr.msrb.gmra.mxu0 %v3178_v55  ;;  %v858_v55 = vadd.f32 %v3161_v51, %v829_v59  ;;  %v3545_v59 = vld [vmem:[#allocation25_spill] sm:$0xff] }
 0x163   : > { %v3295_v26 = vadd.f32 %v1219_v12, %v855_v24  ;;  %2510 = vmatmul.msk.f32.gmra.mxu2 %vm435_vm1, %v3188_v0 }
 0x165   : > { %2508 = vmatmul.msk.f32.gmra.mxu3 %vm435_vm1, %v3203_v63 }
 0x166   : > { %v1192_v20 = vpop.f32.mrf.mxu1  ;;  %v1273_v40 = vpop.f32.mrf.mxu2 }
 0x167   : > { %v1244_v4 = vpop.f32.mrf.mxu0 }
 0x168   : > { %v1221_v31 = vpop.f32.mrf.mxu3  ;;  %v1274_v29 = vadd.f32 %v1273_v40, %v1244_v4  ;;  %v607_v40 = vadd.f32 %v2957_v39, %v2948_v32  ;;  %v3546_v4 = vld [vmem:[#allocation23_spill] sm:$0xff] }
 0x169   : > { %v1222_v56 = vadd.f32 %v1221_v31, %v1192_v20  ;;  %1951 = vmatmul.f32.gmra.mxu1 %v3216_v44  ;;  %v1161_v31 = vadd.f32 %v3546_v4, %v3545_v59  ;;  %v2058_v4 = vlaneseq }
 0x16a   : > { %v3307_v0 = vadd.f32 %v1274_v29, %v3158_v49  ;;  %2003 = vmatmul.f32.gmra.mxu0 %v3201_v41  ;;  %v494_v49 = vadd.f32 %v2876_v27, %v2921_v3  ;;  %v549_v27 = vadd.f32 %v2869_v16, %v2912_v62  ;;  %v1103_v16 = vadd.f32 %v3232_v54, %v3222_v1  ;;  %v3547_v29 = vld [vmem:[#allocation16_spill] sm:$0xff] }
 0x16b   : > { %v3310_v42 = vadd.f32 %v1222_v56, %v858_v55  ;;  %2511 = vmatmul.msk.f32.gmra.mxu2 %vm435_vm1, %v3214_v52  ;;  %v1100_v52 = vadd.f32 %v3208_v60, %v3198_v33  ;;  %v820_v55 = vadd.f32 %v3547_v29, %v607_v40  ;;  %v3548_v56 = vld [vmem:[#allocation24_spill] sm:$0xff]  ;;  %v3552_v29 = vld [vmem:[#allocation11_spill] sm:$0xff] }
 0x16c   : > { %v707_v41 = vadd.f32 %v3036_v7, %v494_v49  ;;  %v497_v7 = vadd.f32 %v2899_v50, %v2945_v30 }
 0x16e   : > { %v1276_v48 = vpop.f32.mrf.mxu2  ;;  %v1447_v47 = vpop.f32.mrf.mxu1  ;;  %v736_v11 = vadd.f32 %v3056_v18, %v707_v41  ;;  %v762_v18 = vadd.f32 %v3067_v14, %v549_v27  ;;  %v710_v60 = vadd.f32 %v3060_v25, %v497_v7  ;;  %v1158_v25 = vadd.f32 %v3242_v13, %v3244_v22 }
 0x16f   : > { %v1247_v38 = vpop.f32.mrf.mxu0 }
 0x170   : > { %v1277_v2 = vadd.f32 %v1276_v48, %v1247_v38  ;;  %v1476_v17 = vpop.f32.mrf.mxu3  ;;  %v1286_v45 = vadd.f32 %v1100_v52, %v736_v11  ;;  %v791_v62 = vadd.f32 %v3084_v9, %v762_v18  ;;  %v1287_v54 = vadd.f32 %v1158_v25, %v3102_v21  ;;  %v3549_v48 = vld [vmem:[#allocation26_spill] sm:$0xff] }
 0x171   : > { %v3314_v28 = vadd.f32 %v1476_v17, %v1447_v47  ;;  %v1213_v13 = vadd.f32 %v3549_v48, %v3548_v56  ;;  %v3550_v38 = vld [vmem:[#allocation18_spill] sm:$0xff]  ;;  %v3551_v17 = vld [vmem:[#allocation17_spill] sm:$0xff]  ;;  %v3399_v48 = vshrl.u32 %v2058_v4, 7 }
 0x172   : > { %v3317_v51 = vadd.f32 %v1277_v2, %v3181_v19  ;;  %2006 = vmatmul.f32.gmra.mxu0 %v3228_v36  ;;  %v849_v2 = vadd.f32 %v3550_v38, %v820_v55  ;;  %v1291_v49 = vadd.f32 %v1161_v31, %v3551_v17  ;;  %v3553_v55 = vld [vmem:[#allocation10_spill] sm:$0xff] }
 0x173   : > { %2512 = vmatmul.msk.f32.gmra.mxu2 %vm435_vm1, %v3203_v63  ;;  %v1155_v63 = vadd.f32 %v3224_v61, %v3230_v46  ;;  %v500_v56 = vadd.f32 %v3553_v55, %v3552_v29  ;;  %v2063_v55 = vmul.u32 2, %v3399_v48 }
 0x175   : > { %v1283_v50 = vadd.f32 %v1155_v63, %v791_v62 }
 0x176   : > { %v1279_v5 = vpop.f32.mrf.mxu2  ;;  %v1450_v57 = vpop.f32.mrf.mxu1 }
 0x177   : > { %v1250_v6 = vpop.f32.mrf.mxu0 }
 0x178   : > { %v1280_v19 = vadd.f32 %v1279_v5, %v1250_v6  ;;  %v1479_v37 = vpop.f32.mrf.mxu3  ;;  %v1284_v5 = vadd.f32 %v1213_v13, %v849_v2  ;;  %v3554_v13 = vld [vmem:[#allocation14_spill] sm:$0xff]  ;;  %v3557_v2 = vld [vmem:[#allocation15_spill] sm:$0xff] }
 0x179   : > { %v1480_v36 = vadd.f32 %v1479_v37, %v1450_v57 }
 0x17a   : > { %v3331_v3 = vadd.f32 %v1280_v19, %v3205_v8  ;;  %2009 = vmatmul.f32.gmra.mxu0 %v3216_v44  ;;  %v739_v44 = vadd.f32 %v3080_v43, %v710_v60 }
 0x17b   : > { %v3336_v33 = vadd.f32 %v1480_v36, %v1286_v45 }
 0x17c   : > { %v1290_v24 = vadd.f32 %v1103_v16, %v739_v44 }
 0x17e   : > { %v1453_v8 = vpop.f32.mrf.mxu1  ;;  %v1534_v23 = vpop.f32.mrf.mxu2 }
 0x17f   : > { %v1505_v15 = vpop.f32.mrf.mxu0 }
 0x180   : > { %v1482_v30 = vpop.f32.mrf.mxu3  ;;  %v1535_v34 = vadd.f32 %v1534_v23, %v1505_v15 }
 0x181   : > { %v1483_v14 = vadd.f32 %v1482_v30, %v1453_v8 }
 0x182   : > { %v3346_v12 = vadd.f32 %v1535_v34, %v1283_v50 }
 0x183   : > { %v3348_v61 = vadd.f32 %v1483_v14, %v1290_v24 }
 0x186   : > { %v1456_v1 = vpop.f32.mrf.mxu1  ;;  %v1537_v46 = vpop.f32.mrf.mxu2 }
 0x187   : > { %v1508_v9 = vpop.f32.mrf.mxu0 }
 0x188   : > { %v1485_v35 = vpop.f32.mrf.mxu3  ;;  %v1538_v43 = vadd.f32 %v1537_v46, %v1508_v9 }
 0x189   : > { %v1486_v17 = vadd.f32 %v1485_v35, %v1456_v1  ;;  %v3413_v1 = vand.u32 127, %v2058_v4 }
 0x18a   : > { %v3353_v20 = vadd.f32 %v1538_v43, %v1287_v54 }
 0x18b   : > { %vm2065_vm6 = vcmp.eq.s32.totalorder %v3413_v1, %v2063_v55 }
 0x18e   : > { %v1540_v22 = vpop.f32.mrf.mxu2  ;;  %v1563_v47 = vpop.f32.mrf.mxu1 }
 0x18f   : > { %v1511_v21 = vpop.f32.mrf.mxu0 }
 0x190   : > { %v1541_v41 = vadd.f32 %v1540_v22, %v1511_v21  ;;  %v1592_v52 = vpop.f32.mrf.mxu3  ;;  %v3555_v22 = vld [vmem:[#allocation21_spill] sm:$0xff] }
 0x191   : > { %v1593_v57 = vadd.f32 %v1592_v52, %v1563_v47  ;;  %v3556_v47 = vld [vmem:[#allocation22_spill] sm:$0xff] }
 0x192   : > { %v3364_v32 = vadd.f32 %v1541_v41, %v1291_v49  ;;  %v1106_v38 = vadd.f32 %v3556_v47, %v3555_v22  ;;  %v3558_v49 = vld [vmem:[#allocation9_spill] sm:$0xff]  ;;  %v3559_v41 = vld [vmem:[#allocation8_spill] sm:$0xff] }
 0x193   : > { %v3366_v39 = vadd.f32 %v1593_v57, %v1284_v5  ;;  %v491_v52 = vadd.f32 %v3559_v41, %v3558_v49 }
 0x196   : > { %v3368_v11 = vpop.f32.mrf.mxu2  ;;  %v1566_v6 = vpop.f32.mrf.mxu1 }
 0x197   : > { %v3370_v19 = vpop.f32.mrf.mxu0 }
 0x198   : > { %v1595_v37 = vpop.f32.mrf.mxu3 }
 0x199   : > { %v1596_v45 = vadd.f32 %v1595_v37, %v1566_v6  ;;  %v3408_v6 = vadd.s32 8, %v3399_v48  ;;  %v1544_v48 = vadd.f32 %v3368_v11, %v3370_v19 }
 0x19b   : > { %v3373_v36 = vadd.f32 %v1596_v45, %v3277_v53  ;;  %v2064_v35 = vmul.u32 2, %v3408_v6 }
 0x19d   : > { %vm2066_vm5 = vcmp.eq.s32.totalorder %v3413_v1, %v2064_v35 }
 0x19e   : > { %v1569_v27 = vpop.f32.mrf.mxu1  ;;  %v1650_v7 = vpop.f32.mrf.mxu2 }
 0x19f   : > { %v1621_v18 = vpop.f32.mrf.mxu0 }
 0x1a0   : > { %v1598_v63 = vpop.f32.mrf.mxu3  ;;  %v1651_v60 = vadd.f32 %v1650_v7, %v1621_v18 }
 0x1a1   : > { %v1599_v16 = vadd.f32 %v1598_v63, %v1569_v27  ;;  %v3560_v27 = vld [vmem:[#allocation12_spill] sm:$0xff]  ;;  %v3561_v63 = vld [vmem:[#allocation19_spill] sm:$0xff] }
 0x1a2   : > { %v3376_v62 = vadd.f32 %v1651_v60, %v3292_v10  ;;  %v704_v7 = vadd.f32 %v3560_v27, %v491_v52  ;;  %v3562_v60 = vld [vmem:[#allocation20_spill] sm:$0xff] }
 0x1a3   : > { %v3379_v8 = vadd.f32 %v1599_v16, %v3295_v26  ;;  %v1097_v16 = vadd.f32 %v3562_v60, %v3561_v63  ;;  %v2069_v60 = vadd.s32 1, %v2063_v55 }
 0x1a5   : > { %vm2071_vm8 = vcmp.eq.s32.totalorder %v3413_v1, %v2069_v60 }
 0x1a6   : > { %v3381_v23 = vpop.f32.mrf.mxu1  ;;  %v1653_v44 = vpop.f32.mrf.mxu2 }
 0x1a7   : > { %v1624_v15 = vpop.f32.mrf.mxu0 }
 0x1a8   : > { %v3383_v50 = vpop.f32.mrf.mxu3  ;;  %v1654_v53 = vadd.f32 %v1653_v44, %v1624_v15 }
 0x1aa   : > { %v3386_v30 = vadd.f32 %v1654_v53, %v3307_v0 }
 0x1ae   : > { %v1656_v34 = vpop.f32.mrf.mxu2  ;;  %v1827_v24 = vpop.f32.mrf.mxu1 }
 0x1af   : > { %v1627_v14 = vpop.f32.mrf.mxu0 }
 0x1b0   : > { %v1657_v25 = vadd.f32 %v1656_v34, %v1627_v14  ;;  %v1856_v46 = vpop.f32.mrf.mxu3  ;;  %v3563_v34 = vld [vmem:[#allocation13_spill] sm:$0xff] }
 0x1b1   : > { %v733_v14 = vadd.f32 %v3563_v34, %v704_v7 }
 0x1b2   : > { %v3389_v10 = vadd.f32 %v1657_v25, %v3317_v51  ;;  %v713_v51 = vadd.f32 %v3554_v13, %v500_v56  ;;  %v1857_v13 = vadd.f32 %v1856_v46, %v1827_v24 }
 0x1b3   : > { %v1282_v56 = vadd.f32 %v1097_v16, %v733_v14 }
 0x1b4   : > { %v742_v21 = vadd.f32 %v3557_v2, %v713_v51  ;;  %v1675_v2 = vadd.f32 %v1544_v48, %v3274_v58 }
 0x1b6   : > { %v3391_v26 = vpop.f32.mrf.mxu2  ;;  %v1830_v9 = vpop.f32.mrf.mxu1  ;;  %v1294_v37 = vadd.f32 %v1106_v38, %v742_v21 }
 0x1b7   : > { %v3393_v54 = vpop.f32.mrf.mxu0 }
 0x1b8   : > { %v1859_v43 = vpop.f32.mrf.mxu3  ;;  %v1674_v44 = vadd.f32 %v1486_v17, %v1294_v37 }
 0x1b9   : > { %v1860_v25 = vadd.f32 %v1859_v43, %v1830_v9  ;;  %v1662_v9 = vadd.f32 %v3314_v28, %v1282_v56 }
 0x1bb   : > { %v3432_v43 = vadd.f32 %v1860_v25, %v3336_v33  ;;  %v3437_v46 = vadd.f32 %v1857_v13, %v1662_v9 }
 0x1be   : > { %v1833_v40 = vpop.f32.mrf.mxu1  ;;  %v3395_v59 = vpop.f32.mrf.mxu2 }
 0x1bf   : > { %v1885_v0 = vpop.f32.mrf.mxu0 }
 0x1c0   : > { %v1862_v31 = vpop.f32.mrf.mxu3 }
 0x1c1   : > { %v1863_v15 = vadd.f32 %v1862_v31, %v1833_v40  ;;  %v2667_v31 = vmov 0.0  }
 0x1c2   : > { %v3442_v28 = vsel %vm2066_vm5, 1.0, %v2667_v31  ;;  %v3447_v33 = vsel %vm2065_vm6, 1.0, %v2667_v31  ;;  %v2073_v14 = vsel %vm2071_vm8, 1.0, %v2667_v31 }
 0x1c3   : > { %v3421_v51 = vadd.f32 %v1863_v15, %v3348_v61 }
 0x1c6   : > { %v1836_v5 = vpop.f32.mrf.mxu1  ;;  %v1917_v57 = vpop.f32.mrf.mxu2 }
 0x1c7   : > { %v1888_v45 = vpop.f32.mrf.mxu0 }
 0x1c8   : > { %v1865_v18 = vpop.f32.mrf.mxu3  ;;  %v1918_v41 = vadd.f32 %v1917_v57, %v1888_v45 }
 0x1c9   : > { %v1866_v53 = vadd.f32 %v1865_v18, %v1836_v5  ;;  %v1915_v5 = vadd.f32 %v3395_v59, %v1885_v0 }
 0x1ca   : > { %v2047_v19 = vadd.f32 %v1918_v41, %v3353_v20 }
 0x1cb   : > { %v3417_v29 = vadd.f32 %v1866_v53, %v1674_v44  ;;  %v2043_v18 = vadd.f32 %v1915_v5, %v3346_v12 }
 0x1cd   : > { %2513 = vmatpush.msk.msra.mxu1 %vm1783_vm4, %v3417_v29  ;;  %2541 = vmatpush.msk.msra.mxu3 %vm1783_vm4, %v3417_v29 }
 0x1ce   : > { %v1920_v40 = vpop.f32.mrf.mxu2  ;;  %v1943_v4 = vpop.f32.mrf.mxu1 }
 0x1cf   : > { %2107 = vmatpush.msra.mxu1 %v3421_v51  ;;  %2542 = vmatpush.msra.mxu3 %v3421_v51  ;;  %v1891_v61 = vpop.f32.mrf.mxu0 }
 0x1d0   : > { %v1972_v24 = vpop.f32.mrf.mxu3  ;;  %v1921_v21 = vadd.f32 %v1920_v40, %v1891_v61 }
 0x1d1   : > { %2108 = vmatpush.msra.mxu1 %v3432_v43  ;;  %2543 = vmatpush.msra.mxu3 %v3432_v43  ;;  %v1973_v15 = vadd.f32 %v1972_v24, %v1943_v4 }
 0x1d2   : > { %v2051_v11 = vadd.f32 %v1921_v21, %v3364_v32  ;;  %v1602_v32 = vadd.f32 %v3383_v50, %v3381_v23 }
 0x1d3   : > { %2109 = vmatpush.msra.mxu1 %v3437_v46  ;;  %2544 = vmatpush.msra.mxu3 %v3437_v46  ;;  %v2044_v34 = vadd.f32 %v1973_v15, %v3366_v39  ;;  %v2070_v39 = vadd.s32 1, %v2064_v35 }
 0x1d4   : > { %2515 = vmatmul.msk.f32.vlgmr.msra.gmra.mxu3 %vm2075_vm7, %v3442_v28  ;;  %2514 = vmatmul.msk.f32.vlgmr.msra.gmra.mxu1 %vm2075_vm7, %v3447_v33  ;;  %v1676_v45 = vadd.f32 %v1602_v32, %v3310_v42 }
 0x1d5   : > { %vm2072_vm9 = vcmp.eq.s32.totalorder %v3413_v1, %v2070_v39 }
 0x1d6   : > { %v1923_v22 = vpop.f32.mrf.mxu2  ;;  %v1946_v47 = vpop.f32.mrf.mxu1 }
 0x1d7   : > { %v1894_v38 = vpop.f32.mrf.mxu0 }
 0x1d8   : > { %v1924_v17 = vadd.f32 %v1923_v22, %v1894_v38  ;;  %v1975_v49 = vpop.f32.mrf.mxu3 }
 0x1d9   : > { %v1976_v16 = vadd.f32 %v1975_v49, %v1946_v47 }
 0x1da   : > { %v2055_v52 = vadd.f32 %v1924_v17, %v1675_v2 }
 0x1db   : > { %v2048_v42 = vadd.f32 %v1976_v16, %v3373_v36 }
 0x1dc   : > { %2516 = vmatpush.msk.msrb.mxu3 %vm1783_vm4, %v2055_v52 }
 0x1de   : > { %2130 = vmatpush.msrb.mxu3 %v2051_v11  ;;  %v1949_v37 = vpop.f32.mrf.mxu1  ;;  %v2030_v27 = vpop.f32.mrf.mxu2 }
 0x1df   : > { %v2001_v7 = vpop.f32.mrf.mxu0 }
 0x1e0   : > { %v1978_v58 = vpop.f32.mrf.mxu3  ;;  %2131 = vmatpush.msrb.mxu3 %v2047_v19  ;;  %v2031_v35 = vadd.f32 %v2030_v27, %v2001_v7 }
 0x1e1   : > { %v1979_v12 = vadd.f32 %v1978_v58, %v1949_v37 }
 0x1e2   : > { %2132 = vmatpush.msrb.mxu3 %v2043_v18  ;;  %v2045_v1 = vadd.f32 %v2031_v35, %v3376_v62 }
 0x1e3   : > { %2517 = vmatmul.msk.f32.vlgmr.msrb.gmra.mxu3 %vm2075_vm7, %v3447_v33  ;;  %v2052_v23 = vadd.f32 %v1979_v12, %v3379_v8  ;;  %v1660_v8 = vadd.f32 %v3391_v26, %v3393_v54 }
 0x1e4   : > { %2528 = vmatpush.msk.msra.mxu3 %vm1783_vm4, %v2055_v52  ;;  %v2323_v52 = vld [vmem:[#allocation4] sm:$0x3] }
 0x1e5   : > { %v1677_v54 = vadd.f32 %v1660_v8, %v3331_v3  ;;  %v2074_v3 = vsel %vm2072_vm9, 1.0, %v2667_v31  ;;  %v2326_v27 = vperm.slane %v2323_v52, 1 }
 0x1e6   : > { %2228 = vmatpush.msra.mxu3 %v2051_v11  ;;  %v1952_v59 = vpop.f32.mrf.mxu1  ;;  %v2033_v20 = vpop.f32.mrf.mxu2  ;;  %v2325_v11 = vperm.slane %v2323_v52, 0 }
 0x1e7   : > { %v2004_v0 = vpop.f32.mrf.mxu0 }
 0x1e8   : > { %v1981_v57 = vpop.f32.mrf.mxu3  ;;  %2229 = vmatpush.msra.mxu3 %v2047_v19 }
 0x1e9   : > { %v1982_v63 = vadd.f32 %v1981_v57, %v1952_v59 }
 0x1ea   : > { %2230 = vmatpush.msra.mxu3 %v2043_v18 }
 0x1eb   : > { %v2056_v44 = vadd.f32 %v1982_v63, %v1676_v45  ;;  %2518 = vmatmul.msk.f32.gmra.mxu3 %vm2075_vm7, %v3442_v28 }
 0x1ed   : > { %2519 = vmatpush.msk.msra.mxu0 %vm1783_vm4, %v2056_v44  ;;  %2545 = vmatpush.msk.msra.mxu2 %vm1783_vm4, %v2056_v44 }
 0x1ee   : > { %v2036_v50 = vpop.f32.mrf.mxu2 }
 0x1ef   : > { %2153 = vmatpush.msra.mxu0 %v2052_v23  ;;  %2546 = vmatpush.msra.mxu2 %v2052_v23  ;;  %v2007_v53 = vpop.f32.mrf.mxu0 }
 0x1f0   : > { %v2037_v25 = vadd.f32 %v2036_v50, %v2007_v53 }
 0x1f1   : > { %2154 = vmatpush.msra.mxu0 %v2048_v42  ;;  %2547 = vmatpush.msra.mxu2 %v2048_v42 }
 0x1f2   : > { %v2053_v56 = vadd.f32 %v2037_v25, %v3389_v10 }
 0x1f3   : > { %2155 = vmatpush.msra.mxu0 %v2044_v34  ;;  %2548 = vmatpush.msra.mxu2 %v2044_v34 }
 0x1f4   : > { %2521 = vmatmul.msk.f32.vlgmr.msra.gmra.mxu2 %vm2075_vm7, %v3442_v28  ;;  %2529 = vmatmul.msk.f32.vlgmr.msra.gmra.mxu3 %vm2075_vm7, %v2073_v14 }
 0x1f5   : > { %2525 = vmatpush.msk.msrb.mxu2 %vm1783_vm4, %v3417_v29  ;;  %2531 = vmatpush.msk.msrb.mxu0 %vm1783_vm4, %v2056_v44  ;;  %v2034_v29 = vadd.f32 %v2033_v20, %v2004_v0 }
 0x1f6   : > { %v2039_v36 = vpop.f32.mrf.mxu2  ;;  %2520 = vmatmul.msk.f32.vlgmr.msra.gmra.mxu0 %vm2075_vm7, %v3447_v33 }
 0x1f7   : > { %2205 = vmatpush.msrb.mxu2 %v3421_v51  ;;  %2251 = vmatpush.msrb.mxu0 %v2052_v23  ;;  %v2010_v26 = vpop.f32.mrf.mxu0  ;;  %v2049_v13 = vadd.f32 %v2034_v29, %v3386_v30 }
 0x1f8   : > { %v2040_v55 = vadd.f32 %v2039_v36, %v2010_v26 }
 0x1f9   : > { %2206 = vmatpush.msrb.mxu2 %v3432_v43  ;;  %2252 = vmatpush.msrb.mxu0 %v2048_v42 }
 0x1fa   : > { %v2057_v6 = vadd.f32 %v2040_v55, %v1677_v54 }
 0x1fb   : > { %2207 = vmatpush.msrb.mxu2 %v3437_v46  ;;  %2253 = vmatpush.msrb.mxu0 %v2044_v34 }
 0x1fc   : > { %2526 = vmatmul.msk.f32.vlgmr.msrb.gmra.mxu2 %vm2075_vm7, %v2073_v14  ;;  %2522 = vmatpush.msk.msrb.mxu1 %vm1783_vm4, %v2057_v6 }
 0x1fd   : > { %2530 = vmatmul.msk.f32.gmra.mxu3 %vm2075_vm7, %v2074_v3 }
 0x1fe   : > { %2176 = vmatpush.msrb.mxu1 %v2053_v56  ;;  %2532 = vmatmul.msk.f32.vlgmr.msrb.gmra.mxu0 %vm2075_vm7, %v2073_v14 }
 0x200   : > { %2177 = vmatpush.msrb.mxu1 %v2049_v13 }
 0x202   : > { %2178 = vmatpush.msrb.mxu1 %v2045_v1 }
 0x203   : > { %2523 = vmatmul.msk.f32.vlgmr.msrb.gmra.mxu1 %vm2075_vm7, %v3447_v33 }
 0x204   : > { %2527 = vmatmul.msk.f32.gmra.mxu2 %vm2075_vm7, %v2074_v3  ;;  %2534 = vmatpush.msk.msra.mxu1 %vm1783_vm4, %v2057_v6 }
 0x206   : > { %2274 = vmatpush.msra.mxu1 %v2053_v56  ;;  %2533 = vmatmul.msk.f32.gmra.mxu0 %vm2075_vm7, %v2074_v3 }
 0x208   : > { %2275 = vmatpush.msra.mxu1 %v2049_v13 }
 0x20a   : > { %2276 = vmatpush.msra.mxu1 %v2045_v1 }
 0x20b   : > { %2524 = vmatmul.msk.f32.gmra.mxu1 %vm2075_vm7, %v3442_v28 }
 0x213   : > { %2535 = vmatmul.msk.f32.vlgmr.msra.gmra.mxu1 %vm2075_vm7, %v2073_v14 }
 0x21b   : > { %2536 = vmatmul.msk.f32.gmra.mxu1 %vm2075_vm7, %v2074_v3 }
 0x251   : > { %v2111_v40 = vpop.f32.mrf.mxu1 }
 0x257   : > { %v2114_v62 = vpop.f32.mrf.mxu3 }
 0x266   : > { %v2134_v30 = vpop.f32.mrf.mxu3 }
 0x26e   : > { %v2137_v10 = vpop.f32.mrf.mxu3 }
 0x273   : > { %v2157_v51 = vpop.f32.mrf.mxu0 }
 0x277   : > { %v2232_v4 = vpop.f32.mrf.mxu3  ;;  %v2160_v46 = vpop.f32.mrf.mxu2 }
 0x278   : > { %v2285_v9 = vmax.f32 %v2134_v30, %v2232_v4 }
 0x27a   : > { %2298 = vrot.lane.b32.xlu0 %v2285_v9, %s2668_s4 }
 0x27b   : > { %v2255_v43 = vpop.f32.mrf.mxu0 }
 0x27c   : > { %v2286_v61 = vmax.f32 %v2157_v51, %v2255_v43 }
 0x27f   : > { %v2209_v41 = vpop.f32.mrf.mxu2 }
 0x280   : > { %v2180_v24 = vpop.f32.mrf.mxu1  ;;  %v2235_v47 = vpop.f32.mrf.mxu3  ;;  %v2284_v5 = vmax.f32 %v2111_v40, %v2209_v41 }
 0x281   : > { %v2289_v2 = vmax.f32 %v2137_v10, %v2235_v47 }
 0x282   : > { %2300 = vrot.lane.b32.xlu0 %v2286_v61, %s2668_s4 }
 0x283   : > { %v2258_v31 = vpop.f32.mrf.mxu0 }
 0x284   : > { %v2290_v28 = vmax.f32 %v2160_v46, %v2258_v31 }
 0x286   : > { %2306 = vrot.lane.b32.xlu2 %v2290_v28, %s2668_s4 }
 0x287   : > { %v2212_v16 = vpop.f32.mrf.mxu2 }
 0x288   : > { %v2183_v33 = vpop.f32.mrf.mxu1  ;;  %v2288_v15 = vmax.f32 %v2114_v62, %v2212_v16 }
 0x290   : > { %v2278_v48 = vpop.f32.mrf.mxu1 }
 0x291   : > { %v2287_v22 = vmax.f32 %v2180_v24, %v2278_v48 }
 0x293   : > { %2302 = vrot.lane.b32.xlu1 %v2287_v22, %s2668_s4 }
 0x298   : > { %v2281_v38 = vpop.f32.mrf.mxu1 }
 0x299   : > { %v2291_v21 = vmax.f32 %v2183_v33, %v2281_v38 }
 0x29b   : > { %2304 = vrot.lane.b32.xlu1 %v2289_v2, %s2668_s4  ;;  %2308 = vrot.lane.b32.xlu2 %v2291_v21, %s2668_s4 }
 0x2e0   : > { %v2307_v17 = vpop.permute.xlu2 %2306 }
 0x2ec   : > { %v2299_v49 = vpop.permute.xlu0 %2298 }
 0x2f4   : > { %v2301_v19 = vpop.permute.xlu0 %2300 }
 0x2f5   : > { %v2311_v37 = vsel %vm2310_vm10, %v2299_v49, %v2301_v19  ;;  %v2309_v7 = vpop.permute.xlu2 %2308 }
 0x2f6   : > { %v2319_v18 = vmax.f32 %v2284_v5, %v2311_v37  ;;  %v2314_v58 = vsel %vm2310_vm10, %v2307_v17, %v2309_v7 }
 0x2f7   : > { %v2322_v32 = vmax.f32 %v2289_v2, %v2314_v58 }
 0x2f8   : > { %v2329_v59 = vadd.f32 %v2325_v11, %v2319_v18 }
 0x2f9   : > { %v2332_v20 = vadd.f32 %v2326_v27, %v2322_v32 }
 0x2fa   : > { %v2333_v0 = vmax.f32 %v2329_v59, 0.0 }
 0x2fb   : > { %v2336_v57 = vmax.f32 %v2332_v20, 0.0 }
 0x2fc   : > { %2337 = vst [vmem:[%s202_s8] sm:$0xff] %v2333_v0 }
 0x2fd   : > { %2342 = vst.msk [vmem:[%s202_s8 + $0x18] sm:$0x3f] %vm2341_vm11, %v2336_v57 }
 0x305   : > { %v2303_v45 = vpop.permute.xlu1 %2302 }
 0x306   : > { %v2312_v12 = vsel %vm2310_vm10, %v2301_v19, %v2303_v45 }
 0x307   : > { %v2320_v63 = vmax.f32 %v2285_v9, %v2312_v12 }
 0x309   : > { %v2330_v60 = vadd.f32 %v2326_v27, %v2320_v63 }
 0x30b   : > { %v2334_v44 = vmax.f32 %v2330_v60, 0.0 }
 0x30d   : > { %2339 = vst.msk [vmem:[%s202_s8 + $0x8] sm:$0xff] %vm2338_vm12, %v2334_v44  ;;  %v2305_v23 = vpop.permute.xlu1 %2304 }
 0x30e   : > { %v2313_v50 = vsel %vm2310_vm10, %v2305_v23, %v2307_v17 }
 0x30f   : > { %v2321_v42 = vmax.f32 %v2288_v15, %v2313_v50 }
 0x311   : > { %v2331_v53 = vadd.f32 %v2325_v11, %v2321_v42 }
 0x313   : > { %v2335_v34 = vmax.f32 %v2331_v53, 0.0 }
 0x315   : > { %2340 = vst [vmem:[%s202_s8 + $0x10] sm:$0x3f] %v2335_v34 }
 0x316 PF: > { %s15_s12 = sadd.s32 1, %s2661_s12  }
 0x317   : > { %p12_p7 = scmp.ge.s32.totalorder %s15_s12, 4  }
 0x319   :  { %14 = sbr.rel (!%p12_p7) target bundleno = 2 (0x2), region = 75 }
 0x31e   :  { %2364 = vsyncpa [#allocation3], 1 }
 0x31f   :  { %2366 = vsyncpa [#allocation3 + $0x1], 1 }
 0x320   :  { %2367 = vsyncpa [#allocation5], 1 }

</bundles_post_ra>
